<compile_context>
chip_gen: v6e
topology: v6e:2x2x1
jax: 0.10.0
libtpu: 0.0.40
codegen_flags: <defaults>
</compile_context>

<pallas_src>
import functools

import numpy as np
import jax
import jax.numpy as jnp
from jax import lax
from jax.experimental import pallas as pl
from jax.experimental.pallas import tpu as pltpu


# ------------------------- model hyper-parameters ---------------------------
HEAD_NUM = 4
SIZE_PER_HEAD = 8
HIDDEN = HEAD_NUM * SIZE_PER_HEAD          # 32
INTER = 4 * HIDDEN                         # 128
LAYER_NUM = 2
VOCAB_SIZE = 128
ROTARY_DIM = 8                             # == size_per_head here
MAX_SEQ_LEN = 16
START_ID = 1
END_ID = 2
LN_EPS = 1e-5
NEG_INF = -1e30


# ------------------------------- Pallas kernel -------------------------------
def _layernorm(x, w, b):
    mu = jnp.mean(x, axis=-1, keepdims=True)
    var = jnp.mean((x - mu) ** 2, axis=-1, keepdims=True)
    return (x - mu) * lax.rsqrt(var + LN_EPS) * w + b


def gptj_generate_kernel(ids_ref, wte_ref,                    # [B*T_in,1] i32, [V,H] bf16
                         lnw_ref, lnb_ref,                    # [L,1,H] f32
                         wqkv_ref, bqkv_ref, wout_ref,        # [L,H,3H] bf16, [L,1,3H] f32, [L,H,H] bf16
                         wfc_ref, bfc_ref, wproj_ref, bproj_ref,  # [L,H,I] bf16, [L,1,I], [L,I,H] bf16, [L,1,H]
                         cosp_ref, sinp_ref, cosa_ref, sina_ref, rot_ref,  # rotary tables
                         pmask_ref, colinfo_ref,              # [BTin,BTin] f32, [2,B*T] i32
                         flnw_ref, flnb_ref, wlm_ref, blm_ref,  # final LN + LM head
                         out_ref,                             # [B, out_len] i32 generated ids
                         k_cache, v_cache,                    # VMEM scratch [L, B*T_total, H] f32
                         *, n_layers, n_heads, d_head, batch, t_in, t_total,
                         out_len, vocab):
    H = n_heads * d_head
    B = batch
    BT = B * t_total
    scale = 1.0 / float(d_head) ** 0.5

    # KV cache starts zeroed (reads past `pos` are masked anyway; this just keeps
    # uninitialized-VMEM NaNs out of the matmuls entirely).
    k_cache[...] = jnp.zeros_like(k_cache)
    v_cache[...] = jnp.zeros_like(v_cache)

    wte = wte_ref[...]                       # [V, H] bf16 embedding table, VMEM-resident
    Rb = rot_ref[...]                        # [H, H] bf16 block-diag rotate_every_two (+-1, exact)
    col_b = colinfo_ref[0:1, :]              # [1, B*T] i32: batch id of each cache row
    col_t = colinfo_ref[1:2, :]              # [1, B*T] i32: position of each cache row

    def rotary(x, cos, sin):
        # GPT-J interleaved rotary: x*cos + rotate_every_two(x)*sin.
        xr = jnp.dot(x.astype(jnp.bfloat16), Rb, preferred_element_type=jnp.float32)
        return x * cos + xr * sin

    def mha(q, k_all, v_all, mask, additive):
        """Rows of q attend rows of k_all/v_all. bf16 MXU operands, fp32 accumulation."""
        qb = q.astype(jnp.bfloat16)
        kb = k_all.astype(jnp.bfloat16)
        vb = v_all.astype(jnp.bfloat16)
        ctxs = []
        for hh in range(n_heads):
            sl = slice(hh * d_head, (hh + 1) * d_head)
            s = lax.dot_general(qb[:, sl], kb[:, sl], (((1,), (1,)), ((), ())),
                                preferred_element_type=jnp.float32) * scale
            s = (s + mask) if additive else jnp.where(mask, s, NEG_INF)
            p = jnp.exp(s - jnp.max(s, axis=-1, keepdims=True))
            p = p / jnp.sum(p, axis=-1, keepdims=True)   # exact softmax denominator
            ctxs.append(jnp.dot(p.astype(jnp.bfloat16), vb[:, sl],
                                preferred_element_type=jnp.float32))
        return jnp.concatenate(ctxs, axis=-1)            # [rows, H] fp32 context

    def layer(x, l, cos, sin, attend):
        # single pre-LN feeds BOTH the attention and the parallel MLP branch (GPT-J)
        ln = _layernorm(x, lnw_ref[l], lnb_ref[l])
        ln_b = ln.astype(jnp.bfloat16)
        qkv = jnp.dot(ln_b, wqkv_ref[l], preferred_element_type=jnp.float32) + bqkv_ref[l]
        q = rotary(qkv[:, 0:H], cos, sin)
        k = rotary(qkv[:, H:2 * H], cos, sin)
        v = qkv[:, 2 * H:3 * H]
        ctx = attend(l, q, k, v)
        attn = jnp.dot(ctx.astype(jnp.bfloat16), wout_ref[l],
                       preferred_element_type=jnp.float32)          # no bias (GPT-J dense)
        h1 = jnp.dot(ln_b, wfc_ref[l], preferred_element_type=jnp.float32) + bfc_ref[l]
        g = 0.5 * h1 * (1.0 + jnp.tanh(0.7978845608028654 *
                                       (h1 + 0.044715 * h1 * h1 * h1)))   # gelu_new
        mlp = jnp.dot(g.astype(jnp.bfloat16), wproj_ref[l],
                      preferred_element_type=jnp.float32) + bproj_ref[l]
        return x + attn + mlp                            # parallel residual

    def lm_head_argmax(x_last):
        ln_f = _layernorm(x_last, flnw_ref[...], flnb_ref[...])
        logits = jnp.dot(ln_f.astype(jnp.bfloat16), wlm_ref[...],
                         preferred_element_type=jnp.float32) + blm_ref[...]   # [B, V]
        m = jnp.max(logits, axis=-1, keepdims=True)
        lanes = lax.broadcasted_iota(jnp.int32, logits.shape, 1).astype(jnp.float32)
        first = jnp.min(jnp.where(logits == m, lanes, float(vocab)),
                        axis=-1, keepdims=True)          # greedy: first index of max
        return first.astype(jnp.int32)                   # [B, 1]

    def embed(tok):
        onehot = tok == lax.broadcasted_iota(jnp.int32, (B, vocab), 1)
        oh = jnp.where(onehot, 1.0, 0.0).astype(jnp.bfloat16)
        return jnp.dot(oh, wte, preferred_element_type=jnp.float32)   # [B, H]

    # ----- prefill: whole prompt, batch folded into matmul rows [B*t_in, H] -----
    ids = ids_ref[...]                                   # [B*t_in, 1] int32
    onehot_p = ids == lax.broadcasted_iota(jnp.int32, (B * t_in, vocab), 1)
    x = jnp.dot(jnp.where(onehot_p, 1.0, 0.0).astype(jnp.bfloat16), wte,
                preferred_element_type=jnp.float32)      # [B*t_in, H]
    pmask = pmask_ref[...]                               # additive: causal within batch, -inf across

    def attend_prefill(l, q, k, v):
        for b in range(B):                               # fill KV cache rows b*t_total + t
            k_cache[l, pl.ds(b * t_total, t_in), :] = k[b * t_in:(b + 1) * t_in, :]
            v_cache[l, pl.ds(b * t_total, t_in), :] = v[b * t_in:(b + 1) * t_in, :]
        return mha(q, k, v, pmask, additive=True)

    for l in range(n_layers):                            # static unrolled; weights VMEM-resident
        x = layer(x, l, cosp_ref[...], sinp_ref[...], attend_prefill)

    # last prompt row of each batch -> first generated token (direct static row reads)
    x_last = jnp.concatenate(
        [x[b * t_in + t_in - 1:b * t_in + t_in, :] for b in range(B)], axis=0)
    tok = lm_head_argmax(x_last)
    out_ref[:, 0:1] = tok

    # ----- decode: one new row per batch per step, attention over the KV cache -----
    for s in range(1, out_len):                          # statically unrolled decode steps
        pos = t_in + s - 1                               # position of the token emitted at step s-1
        x_new = embed(tok)                               # [B, H]
        cos_row = cosa_ref[pos:pos + 1, :]               # [1, H] broadcast over batch rows
        sin_row = sina_ref[pos:pos + 1, :]
        row_b = lax.broadcasted_iota(jnp.int32, (B, BT), 0)
        valid = (col_b == row_b) & (col_t <= pos)        # own batch, positions <= pos

        def attend_decode(l, q, k, v, _pos=pos, _valid=valid):
            for b in range(B):                           # append this step's K/V to the cache
                r = b * t_total + _pos
                k_cache[l, pl.ds(r, 1), :] = k[b:b + 1, :]
                v_cache[l, pl.ds(r, 1), :] = v[b:b + 1, :]
            return mha(q, k_cache[l], v_cache[l], _valid, additive=False)

        for l in range(n_layers):
            x_new = layer(x_new, l, cos_row, sin_row, attend_decode)

        tok = lm_head_argmax(x_new)
        out_ref[:, s:s + 1] = tok


# ------------------------------ host-side tables ------------------------------
def make_tables(B, t_in, t_total):
    half = ROTARY_DIM // 2
    inv_freq = 1.0 / (10000.0 ** (np.arange(0, ROTARY_DIM, 2, dtype=np.float32) / ROTARY_DIM))
    pos = np.arange(t_total, dtype=np.float32)
    freqs = np.einsum("i,j->ij", pos, inv_freq)                 # [T, half]
    cos_r = np.repeat(np.cos(freqs), 2, axis=-1)                # interleaved duplication
    sin_r = np.repeat(np.sin(freqs), 2, axis=-1)
    cos_head = np.ones((t_total, SIZE_PER_HEAD), np.float32)    # identity past rot_dim
    sin_head = np.zeros((t_total, SIZE_PER_HEAD), np.float32)
    cos_head[:, :ROTARY_DIM] = cos_r
    sin_head[:, :ROTARY_DIM] = sin_r
    cos_a = np.tile(cos_head, (1, HEAD_NUM))                    # [T, H]
    sin_a = np.tile(sin_head, (1, HEAD_NUM))
    cos_p = np.concatenate([cos_a[:t_in]] * B, axis=0)          # [B*t_in, H] (batch folded)
    sin_p = np.concatenate([sin_a[:t_in]] * B, axis=0)

    # rotate_every_two as a block-diagonal +-1 matmul (exact in bf16)
    R = np.zeros((SIZE_PER_HEAD, SIZE_PER_HEAD), np.float32)
    for i in range(half):
        R[2 * i + 1, 2 * i] = -1.0
        R[2 * i, 2 * i + 1] = 1.0
    Rb = np.zeros((HIDDEN, HIDDEN), np.float32)
    for h in range(HEAD_NUM):
        Rb[h * SIZE_PER_HEAD:(h + 1) * SIZE_PER_HEAD,
           h * SIZE_PER_HEAD:(h + 1) * SIZE_PER_HEAD] = R

    # prefill additive mask: causal within each batch block, -inf across batches
    pmask = np.full((B * t_in, B * t_in), NEG_INF, np.float32)
    for b in range(B):
        blk = np.triu(np.full((t_in, t_in), NEG_INF, np.float32), k=1)
        pmask[b * t_in:(b + 1) * t_in, b * t_in:(b + 1) * t_in] = blk

    # per-cache-row (batch id, position) table for the decode masks
    colinfo = np.stack([np.repeat(np.arange(B), t_total),
                        np.tile(np.arange(t_total), B)]).astype(np.int32)  # [2, B*T]

    return dict(
        cos_p=jnp.asarray(cos_p), sin_p=jnp.asarray(sin_p),
        cos_a=jnp.asarray(cos_a), sin_a=jnp.asarray(sin_a),
        rot=jnp.asarray(Rb).astype(jnp.bfloat16),
        pmask=jnp.asarray(pmask),
        colinfo=jnp.asarray(colinfo),
    )


# ------------------------------ pallas wrapper --------------------------------
@functools.partial(jax.jit, static_argnames=("output_len",))
def gptj_generate(params, start_ids, *, output_len):
    """Fused prefill + greedy decode; returns generated token ids [B, output_len]."""
    B, t_in = start_ids.shape
    t_total = t_in + output_len
    tabs = make_tables(B, t_in, t_total)
    ids_in = start_ids.reshape(B * t_in, 1).astype(jnp.int32)

    operands = [ids_in, params["wte"],
                params["ln_w"], params["ln_b"],
                params["w_qkv"], params["b_qkv"], params["w_out"],
                params["w_fc"], params["b_fc"], params["w_proj"], params["b_proj"],
                tabs["cos_p"], tabs["sin_p"], tabs["cos_a"], tabs["sin_a"], tabs["rot"],
                tabs["pmask"], tabs["colinfo"],
                params["final_ln_w"], params["final_ln_b"],
                params["lm_w"], params["lm_b"]]

    kernel = functools.partial(
        gptj_generate_kernel, n_layers=LAYER_NUM, n_heads=HEAD_NUM,
        d_head=SIZE_PER_HEAD, batch=B, t_in=t_in, t_total=t_total,
        out_len=output_len, vocab=VOCAB_SIZE)

    vmem = pl.BlockSpec(memory_space=pltpu.MemorySpace.VMEM)   # whole array, single DMA (no grid)
    gen = pl.pallas_call(
        kernel,
        out_shape=jax.ShapeDtypeStruct((B, output_len), jnp.int32),
        in_specs=[vmem] * len(operands),
        out_specs=vmem,
        scratch_shapes=[pltpu.VMEM((LAYER_NUM, B * t_total, HIDDEN), jnp.float32),  # K cache
                        pltpu.VMEM((LAYER_NUM, B * t_total, HIDDEN), jnp.float32)], # V cache
    )(*operands)
    return gen


# ------------------------------ parameter setup ------------------------------
def init_params(key):
    def nrm(k, shape, scale=0.02, dtype=jnp.float32):
        return (jax.random.normal(k, shape, dtype=jnp.float32) * scale).astype(dtype)

    k = jax.random.split(key, 6)
    return dict(
        # per-layer weights stacked along a leading L axis (VMEM-resident in the kernel)
        ln_w=jnp.ones((LAYER_NUM, 1, HIDDEN), jnp.float32),
        ln_b=jnp.zeros((LAYER_NUM, 1, HIDDEN), jnp.float32),
        w_qkv=nrm(k[0], (LAYER_NUM, HIDDEN, 3 * HIDDEN), dtype=jnp.bfloat16),
        b_qkv=jnp.zeros((LAYER_NUM, 1, 3 * HIDDEN), jnp.float32),   # zeros in GPTJWeights
        w_out=nrm(k[1], (LAYER_NUM, HIDDEN, HIDDEN), dtype=jnp.bfloat16),
        w_fc=nrm(k[2], (LAYER_NUM, HIDDEN, INTER), dtype=jnp.bfloat16),
        b_fc=jnp.zeros((LAYER_NUM, 1, INTER), jnp.float32),
        w_proj=nrm(k[3], (LAYER_NUM, INTER, HIDDEN), dtype=jnp.bfloat16),
        b_proj=jnp.zeros((LAYER_NUM, 1, HIDDEN), jnp.float32),
        # embeddings / head
        wte=nrm(k[4], (VOCAB_SIZE, HIDDEN), dtype=jnp.bfloat16),
        final_ln_w=jnp.ones((1, HIDDEN), jnp.float32),
        final_ln_b=jnp.zeros((1, HIDDEN), jnp.float32),
        lm_w=nrm(k[5], (VOCAB_SIZE, HIDDEN)).T.astype(jnp.bfloat16),  # [H, V] (FT layout transposed)
        lm_b=jnp.zeros((1, VOCAB_SIZE), jnp.float32),
    )


# ------------------------------ GPT-J forward --------------------------------
def gptj_forward(params, start_ids, start_lengths, output_len, beam_width=1):
    """Mirrors GPTJ.forward(start_ids, start_lengths, output_len, ...) with greedy
    decoding; returns output_ids [batch, beam_width, input_len + output_len]."""
    lengths = np.asarray(start_lengths)
    # TODO(synk): ragged start_lengths (per-sequence padding / offsets) is not handled.
    assert np.all(lengths == lengths[0]), "all prompts must have equal length"
    start_ids = jnp.asarray(start_ids, jnp.int32)
    B, input_len = start_ids.shape
    assert input_len > 0
    gen = gptj_generate(params, start_ids, output_len=output_len)      # [B, output_len]
    ids = jnp.concatenate([start_ids, gen], axis=1)
    # TODO(synk): FT sampling knobs (top_k/top_p/temperature/beam search) -> greedy only.
    return jnp.broadcast_to(ids[:, None, :], (B, beam_width, input_len + output_len))


# ----------------------------------- main ------------------------------------
if __name__ == "__main__":
    key = jax.random.PRNGKey(0)
    pkey, ikey = jax.random.split(key)
    params = init_params(pkey)

    batch = 2
    input_len = 8
    output_len = 4
    start_ids = jax.random.randint(ikey, (batch, input_len), 3, VOCAB_SIZE, dtype=jnp.int32)
    start_lengths = jnp.full((batch,), input_len, dtype=jnp.int32)

    output_ids = gptj_forward(params, start_ids, start_lengths, output_len)
    output_ids = jax.block_until_ready(output_ids)
    assert output_ids.shape == (batch, 1, input_len + output_len)
    print("KERNEL_OK")
</pallas_src>

<mosaic_0001>
module attributes {stable_mosaic.version = 11 : i64} {
  func.func @gptj_generate_kernel(%arg0: memref<16x1xi32, #tpu.memory_space<vmem>>, %arg1: memref<128x32xbf16, #tpu.memory_space<vmem>>, %arg2: memref<2x1x32xf32, #tpu.memory_space<vmem>>, %arg3: memref<2x1x32xf32, #tpu.memory_space<vmem>>, %arg4: memref<2x32x96xbf16, #tpu.memory_space<vmem>>, %arg5: memref<2x1x96xf32, #tpu.memory_space<vmem>>, %arg6: memref<2x32x32xbf16, #tpu.memory_space<vmem>>, %arg7: memref<2x32x128xbf16, #tpu.memory_space<vmem>>, %arg8: memref<2x1x128xf32, #tpu.memory_space<vmem>>, %arg9: memref<2x128x32xbf16, #tpu.memory_space<vmem>>, %arg10: memref<2x1x32xf32, #tpu.memory_space<vmem>>, %arg11: memref<16x32xf32, #tpu.memory_space<vmem>>, %arg12: memref<16x32xf32, #tpu.memory_space<vmem>>, %arg13: memref<12x32xf32, #tpu.memory_space<vmem>>, %arg14: memref<12x32xf32, #tpu.memory_space<vmem>>, %arg15: memref<32x32xbf16, #tpu.memory_space<vmem>>, %arg16: memref<16x16xf32, #tpu.memory_space<vmem>>, %arg17: memref<2x24xi32, #tpu.memory_space<vmem>>, %arg18: memref<1x32xf32, #tpu.memory_space<vmem>>, %arg19: memref<1x32xf32, #tpu.memory_space<vmem>>, %arg20: memref<32x128xbf16, #tpu.memory_space<vmem>>, %arg21: memref<1x128xf32, #tpu.memory_space<vmem>>, %arg22: memref<2x4xi32, #tpu.memory_space<vmem>>, %arg23: memref<2x24x32xf32, #tpu.memory_space<vmem>>, %arg24: memref<2x24x32xf32, #tpu.memory_space<vmem>>) attributes {dimension_semantics = [], scalar_prefetch = 0 : i64, scratch_operands = 2 : i64, tpu.core_type = #tpu.core_type<tc>} {
    %cst = arith.constant 0.000000e+00 : f32
    %0 = vector.broadcast %cst : f32 to vector<2x24x32xf32>
    %c0 = arith.constant 0 : index
    %c0_0 = arith.constant 0 : index
    %c0_1 = arith.constant 0 : index
    %1 = vector.load %arg23[%c0, %c0_0, %c0_1] : memref<2x24x32xf32, #tpu.memory_space<vmem>>, vector<2x24x32xf32>
    tpu.vector_store %arg23[%c0, %c0_0, %c0_1], %0 {strides = array<i32>} : memref<2x24x32xf32, #tpu.memory_space<vmem>>, vector<2x24x32xf32>,
    %cst_2 = arith.constant 0.000000e+00 : f32
    %2 = vector.broadcast %cst_2 : f32 to vector<2x24x32xf32>
    %c0_3 = arith.constant 0 : index
    %c0_4 = arith.constant 0 : index
    %c0_5 = arith.constant 0 : index
    %3 = vector.load %arg24[%c0_3, %c0_4, %c0_5] : memref<2x24x32xf32, #tpu.memory_space<vmem>>, vector<2x24x32xf32>
    tpu.vector_store %arg24[%c0_3, %c0_4, %c0_5], %2 {strides = array<i32>} : memref<2x24x32xf32, #tpu.memory_space<vmem>>, vector<2x24x32xf32>,
    %c0_6 = arith.constant 0 : index
    %c0_7 = arith.constant 0 : index
    %4 = vector.load %arg1[%c0_6, %c0_7] : memref<128x32xbf16, #tpu.memory_space<vmem>>, vector<128x32xbf16>
    %c0_8 = arith.constant 0 : index
    %c0_9 = arith.constant 0 : index
    %5 = vector.load %arg15[%c0_8, %c0_9] : memref<32x32xbf16, #tpu.memory_space<vmem>>, vector<32x32xbf16>
    %c0_10 = arith.constant 0 : index
    %c0_11 = arith.constant 0 : index
    %6 = vector.load %arg17[%c0_10, %c0_11] : memref<2x24xi32, #tpu.memory_space<vmem>>, vector<1x24xi32>
    %c1 = arith.constant 1 : index
    %c0_12 = arith.constant 0 : index
    %7 = vector.load %arg17[%c1, %c0_12] : memref<2x24xi32, #tpu.memory_space<vmem>>, vector<1x24xi32>
    %c0_13 = arith.constant 0 : index
    %c0_14 = arith.constant 0 : index
    %8 = vector.load %arg0[%c0_13, %c0_14] : memref<16x1xi32, #tpu.memory_space<vmem>>, vector<16x1xi32>
    %9 = tpu.iota {dimensions = array<i32: 1>} : vector<16x128xi32>
    %10 = vector.broadcast %8 : vector<16x1xi32> to vector<16x128xi32>
    %11 = arith.cmpi eq, %10, %9 : vector<16x128xi32>
    %cst_15 = arith.constant 1.000000e+00 : f32
    %cst_16 = arith.constant 0.000000e+00 : f32
    %12 = vector.broadcast %cst_15 : f32 to vector<16x128xf32>
    %13 = vector.broadcast %cst_16 : f32 to vector<16x128xf32>
    %14 = arith.select %11, %12, %13 : vector<16x128xi1>, vector<16x128xf32>
    %15 = arith.truncf %14 : vector<16x128xf32> to vector<16x128xbf16>
    %cst_17 = arith.constant dense<0.000000e+00> : vector<16x32xf32>
    %16 = tpu.matmul %15, %4, %cst_17 {dimension_numbers = #tpu.dot_dimension_numbers<[1], [0], [0], [1], [0, 0, 1, 1], [], []>} : vector<16x128xbf16>, vector<128x32xbf16>, vector<16x32xf32> -> vector<16x32xf32>
    %c0_18 = arith.constant 0 : index
    %c0_19 = arith.constant 0 : index
    %17 = vector.load %arg16[%c0_18, %c0_19] : memref<16x16xf32, #tpu.memory_space<vmem>>, vector<16x16xf32>
    %c0_20 = arith.constant 0 : index
    %c0_21 = arith.constant 0 : index
    %18 = vector.load %arg11[%c0_20, %c0_21] : memref<16x32xf32, #tpu.memory_space<vmem>>, vector<16x32xf32>
    %c0_22 = arith.constant 0 : index
    %c0_23 = arith.constant 0 : index
    %19 = vector.load %arg12[%c0_22, %c0_23] : memref<16x32xf32, #tpu.memory_space<vmem>>, vector<16x32xf32>
    %c0_24 = arith.constant 0 : index
    %c0_25 = arith.constant 0 : index
    %c0_26 = arith.constant 0 : index
    %20 = vector.load %arg2[%c0_24, %c0_25, %c0_26] : memref<2x1x32xf32, #tpu.memory_space<vmem>>, vector<1x1x32xf32>
    %21 = vector.shape_cast %20 : vector<1x1x32xf32> to vector<1x32xf32>
    %c0_27 = arith.constant 0 : index
    %c0_28 = arith.constant 0 : index
    %c0_29 = arith.constant 0 : index
    %22 = vector.load %arg3[%c0_27, %c0_28, %c0_29] : memref<2x1x32xf32, #tpu.memory_space<vmem>>, vector<1x1x32xf32>
    %23 = vector.shape_cast %22 : vector<1x1x32xf32> to vector<1x32xf32>
    %cst_30 = arith.constant dense<0.000000e+00> : vector<16xf32>
    %24 = vector.multi_reduction <add>, %16, %cst_30 [1] : vector<16x32xf32> to vector<16xf32>
    %25 = vector.shape_cast %24 : vector<16xf32> to vector<16x1xf32>
    %cst_31 = arith.constant 3.200000e+01 : f32
    %26 = vector.broadcast %cst_31 : f32 to vector<16x1xf32>
    %27 = arith.divf %25, %26 : vector<16x1xf32>
    %28 = vector.broadcast %27 : vector<16x1xf32> to vector<16x32xf32>
    %29 = arith.subf %16, %28 : vector<16x32xf32>
    %30 = arith.mulf %29, %29 : vector<16x32xf32>
    %cst_32 = arith.constant dense<0.000000e+00> : vector<16xf32>
    %31 = vector.multi_reduction <add>, %30, %cst_32 [1] : vector<16x32xf32> to vector<16xf32>
    %32 = vector.shape_cast %31 : vector<16xf32> to vector<16x1xf32>
    %cst_33 = arith.constant 3.200000e+01 : f32
    %33 = vector.broadcast %cst_33 : f32 to vector<16x1xf32>
    %34 = arith.divf %32, %33 : vector<16x1xf32>
    %35 = vector.broadcast %27 : vector<16x1xf32> to vector<16x32xf32>
    %36 = arith.subf %16, %35 : vector<16x32xf32>
    %cst_34 = arith.constant 9.99999974E-6 : f32
    %37 = vector.broadcast %cst_34 : f32 to vector<16x1xf32>
    %38 = arith.addf %34, %37 : vector<16x1xf32>
    %39 = math.rsqrt %38 : vector<16x1xf32>
    %40 = vector.broadcast %39 : vector<16x1xf32> to vector<16x32xf32>
    %41 = arith.mulf %36, %40 : vector<16x32xf32>
    %42 = vector.broadcast %21 : vector<1x32xf32> to vector<16x32xf32>
    %43 = arith.mulf %41, %42 : vector<16x32xf32>
    %44 = vector.broadcast %23 : vector<1x32xf32> to vector<16x32xf32>
    %45 = arith.addf %43, %44 : vector<16x32xf32>
    %46 = arith.truncf %45 : vector<16x32xf32> to vector<16x32xbf16>
    %c0_35 = arith.constant 0 : index
    %c0_36 = arith.constant 0 : index
    %c0_37 = arith.constant 0 : index
    %47 = vector.load %arg4[%c0_35, %c0_36, %c0_37] : memref<2x32x96xbf16, #tpu.memory_space<vmem>>, vector<1x32x96xbf16>
    %48 = vector.shape_cast %47 : vector<1x32x96xbf16> to vector<32x96xbf16>
    %cst_38 = arith.constant dense<0.000000e+00> : vector<16x96xf32>
    %49 = tpu.matmul %46, %48, %cst_38 {dimension_numbers = #tpu.dot_dimension_numbers<[1], [0], [0], [1], [0, 0, 1, 1], [], []>} : vector<16x32xbf16>, vector<32x96xbf16>, vector<16x96xf32> -> vector<16x96xf32>
    %c0_39 = arith.constant 0 : index
    %c0_40 = arith.constant 0 : index
    %c0_41 = arith.constant 0 : index
    %50 = vector.load %arg5[%c0_39, %c0_40, %c0_41] : memref<2x1x96xf32, #tpu.memory_space<vmem>>, vector<1x1x96xf32>
    %51 = vector.shape_cast %50 : vector<1x1x96xf32> to vector<1x96xf32>
    %52 = vector.broadcast %51 : vector<1x96xf32> to vector<16x96xf32>
    %53 = arith.addf %49, %52 : vector<16x96xf32>
    %54 = vector.extract_strided_slice %53 {offsets = [0, 0], sizes = [16, 32], strides = [1, 1]} : vector<16x96xf32> to vector<16x32xf32>
    %55 = arith.truncf %54 : vector<16x32xf32> to vector<16x32xbf16>
    %cst_42 = arith.constant dense<0.000000e+00> : vector<16x32xf32>
    %56 = tpu.matmul %55, %5, %cst_42 {dimension_numbers = #tpu.dot_dimension_numbers<[1], [0], [0], [1], [0, 0, 1, 1], [], []>} : vector<16x32xbf16>, vector<32x32xbf16>, vector<16x32xf32> -> vector<16x32xf32>
    %57 = arith.mulf %54, %18 : vector<16x32xf32>
    %58 = arith.mulf %56, %19 : vector<16x32xf32>
    %59 = arith.addf %57, %58 : vector<16x32xf32>
    %60 = vector.extract_strided_slice %53 {offsets = [0, 32], sizes = [16, 32], strides = [1, 1]} : vector<16x96xf32> to vector<16x32xf32>
    %61 = arith.truncf %60 : vector<16x32xf32> to vector<16x32xbf16>
    %cst_43 = arith.constant dense<0.000000e+00> : vector<16x32xf32>
    %62 = tpu.matmul %61, %5, %cst_43 {dimension_numbers = #tpu.dot_dimension_numbers<[1], [0], [0], [1], [0, 0, 1, 1], [], []>} : vector<16x32xbf16>, vector<32x32xbf16>, vector<16x32xf32> -> vector<16x32xf32>
    %63 = arith.mulf %60, %18 : vector<16x32xf32>
    %64 = arith.mulf %62, %19 : vector<16x32xf32>
    %65 = arith.addf %63, %64 : vector<16x32xf32>
    %66 = vector.extract_strided_slice %53 {offsets = [0, 64], sizes = [16, 32], strides = [1, 1]} : vector<16x96xf32> to vector<16x32xf32>
    %67 = vector.extract_strided_slice %65 {offsets = [0, 0], sizes = [8, 32], strides = [1, 1]} : vector<16x32xf32> to vector<8x32xf32>
    %c0_44 = arith.constant 0 : index
    %c0_45 = arith.constant 0 : index
    %c0_46 = arith.constant 0 : index
    %68 = vector.load %arg23[%c0_44, %c0_45, %c0_46] : memref<2x24x32xf32, #tpu.memory_space<vmem>>, vector<1x8x32xf32>
    %69 = vector.shape_cast %68 : vector<1x8x32xf32> to vector<8x32xf32>
    %70 = vector.shape_cast %67 : vector<8x32xf32> to vector<1x8x32xf32>
    tpu.vector_store %arg23[%c0_44, %c0_45, %c0_46], %70 {strides = array<i32>} : memref<2x24x32xf32, #tpu.memory_space<vmem>>, vector<1x8x32xf32>,
    %71 = vector.extract_strided_slice %66 {offsets = [0, 0], sizes = [8, 32], strides = [1, 1]} : vector<16x32xf32> to vector<8x32xf32>
    %c0_47 = arith.constant 0 : index
    %c0_48 = arith.constant 0 : index
    %c0_49 = arith.constant 0 : index
    %72 = vector.load %arg24[%c0_47, %c0_48, %c0_49] : memref<2x24x32xf32, #tpu.memory_space<vmem>>, vector<1x8x32xf32>
    %73 = vector.shape_cast %72 : vector<1x8x32xf32> to vector<8x32xf32>
    %74 = vector.shape_cast %71 : vector<8x32xf32> to vector<1x8x32xf32>
    tpu.vector_store %arg24[%c0_47, %c0_48, %c0_49], %74 {strides = array<i32>} : memref<2x24x32xf32, #tpu.memory_space<vmem>>, vector<1x8x32xf32>,
    %75 = vector.extract_strided_slice %65 {offsets = [8, 0], sizes = [8, 32], strides = [1, 1]} : vector<16x32xf32> to vector<8x32xf32>
    %c0_50 = arith.constant 0 : index
    %c12 = arith.constant 12 : index
    %c0_51 = arith.constant 0 : index
    %76 = vector.load %arg23[%c0_50, %c12, %c0_51] : memref<2x24x32xf32, #tpu.memory_space<vmem>>, vector<1x8x32xf32>
    %77 = vector.shape_cast %76 : vector<1x8x32xf32> to vector<8x32xf32>
    %78 = vector.shape_cast %75 : vector<8x32xf32> to vector<1x8x32xf32>
    tpu.vector_store %arg23[%c0_50, %c12, %c0_51], %78 {strides = array<i32>} : memref<2x24x32xf32, #tpu.memory_space<vmem>>, vector<1x8x32xf32>,
    %79 = vector.extract_strided_slice %66 {offsets = [8, 0], sizes = [8, 32], strides = [1, 1]} : vector<16x32xf32> to vector<8x32xf32>
    %c0_52 = arith.constant 0 : index
    %c12_53 = arith.constant 12 : index
    %c0_54 = arith.constant 0 : index
    %80 = vector.load %arg24[%c0_52, %c12_53, %c0_54] : memref<2x24x32xf32, #tpu.memory_space<vmem>>, vector<1x8x32xf32>
    %81 = vector.shape_cast %80 : vector<1x8x32xf32> to vector<8x32xf32>
    %82 = vector.shape_cast %79 : vector<8x32xf32> to vector<1x8x32xf32>
    tpu.vector_store %arg24[%c0_52, %c12_53, %c0_54], %82 {strides = array<i32>} : memref<2x24x32xf32, #tpu.memory_space<vmem>>, vector<1x8x32xf32>,
    %83 = arith.truncf %59 : vector<16x32xf32> to vector<16x32xbf16>
    %84 = arith.truncf %65 : vector<16x32xf32> to vector<16x32xbf16>
    %85 = arith.truncf %66 : vector<16x32xf32> to vector<16x32xbf16>
    %86 = vector.extract_strided_slice %83 {offsets = [0, 0], sizes = [16, 8], strides = [1, 1]} : vector<16x32xbf16> to vector<16x8xbf16>
    %87 = vector.extract_strided_slice %84 {offsets = [0, 0], sizes = [16, 8], strides = [1, 1]} : vector<16x32xbf16> to vector<16x8xbf16>
    %cst_55 = arith.constant dense<0.000000e+00> : vector<16x16xf32>
    %88 = tpu.matmul %86, %87, %cst_55 {dimension_numbers = #tpu.dot_dimension_numbers<[1], [1], [0], [0], [0, 0, 1, 0], [], []>} : vector<16x8xbf16>, vector<16x8xbf16>, vector<16x16xf32> -> vector<16x16xf32>
    %cst_56 = arith.constant 0.353553385 : f32
    %89 = vector.broadcast %cst_56 : f32 to vector<16x16xf32>
    %90 = arith.mulf %88, %89 : vector<16x16xf32>
    %91 = arith.addf %90, %17 : vector<16x16xf32>
    %cst_57 = arith.constant dense<0xFF800000> : vector<16xf32>
    %92 = vector.multi_reduction <maximumf>, %91, %cst_57 [1] : vector<16x16xf32> to vector<16xf32>
    %93 = vector.shape_cast %92 : vector<16xf32> to vector<16x1xf32>
    %94 = vector.broadcast %93 : vector<16x1xf32> to vector<16x16xf32>
    %95 = arith.subf %91, %94 : vector<16x16xf32>
    %96 = math.exp %95 : vector<16x16xf32>
    %cst_58 = arith.constant dense<0.000000e+00> : vector<16xf32>
    %97 = vector.multi_reduction <add>, %96, %cst_58 [1] : vector<16x16xf32> to vector<16xf32>
    %98 = vector.shape_cast %97 : vector<16xf32> to vector<16x1xf32>
    %99 = vector.broadcast %98 : vector<16x1xf32> to vector<16x16xf32>
    %100 = arith.divf %96, %99 : vector<16x16xf32>
    %101 = arith.truncf %100 : vector<16x16xf32> to vector<16x16xbf16>
    %102 = vector.extract_strided_slice %85 {offsets = [0, 0], sizes = [16, 8], strides = [1, 1]} : vector<16x32xbf16> to vector<16x8xbf16>
    %cst_59 = arith.constant dense<0.000000e+00> : vector<16x8xf32>
    %103 = tpu.matmul %101, %102, %cst_59 {dimension_numbers = #tpu.dot_dimension_numbers<[1], [0], [0], [1], [0, 0, 1, 1], [], []>} : vector<16x16xbf16>, vector<16x8xbf16>, vector<16x8xf32> -> vector<16x8xf32>
    %104 = vector.extract_strided_slice %83 {offsets = [0, 8], sizes = [16, 8], strides = [1, 1]} : vector<16x32xbf16> to vector<16x8xbf16>
    %105 = vector.extract_strided_slice %84 {offsets = [0, 8], sizes = [16, 8], strides = [1, 1]} : vector<16x32xbf16> to vector<16x8xbf16>
    %cst_60 = arith.constant dense<0.000000e+00> : vector<16x16xf32>
    %106 = tpu.matmul %104, %105, %cst_60 {dimension_numbers = #tpu.dot_dimension_numbers<[1], [1], [0], [0], [0, 0, 1, 0], [], []>} : vector<16x8xbf16>, vector<16x8xbf16>, vector<16x16xf32> -> vector<16x16xf32>
    %cst_61 = arith.constant 0.353553385 : f32
    %107 = vector.broadcast %cst_61 : f32 to vector<16x16xf32>
    %108 = arith.mulf %106, %107 : vector<16x16xf32>
    %109 = arith.addf %108, %17 : vector<16x16xf32>
    %cst_62 = arith.constant dense<0xFF800000> : vector<16xf32>
    %110 = vector.multi_reduction <maximumf>, %109, %cst_62 [1] : vector<16x16xf32> to vector<16xf32>
    %111 = vector.shape_cast %110 : vector<16xf32> to vector<16x1xf32>
    %112 = vector.broadcast %111 : vector<16x1xf32> to vector<16x16xf32>
    %113 = arith.subf %109, %112 : vector<16x16xf32>
    %114 = math.exp %113 : vector<16x16xf32>
    %cst_63 = arith.constant dense<0.000000e+00> : vector<16xf32>
    %115 = vector.multi_reduction <add>, %114, %cst_63 [1] : vector<16x16xf32> to vector<16xf32>
    %116 = vector.shape_cast %115 : vector<16xf32> to vector<16x1xf32>
    %117 = vector.broadcast %116 : vector<16x1xf32> to vector<16x16xf32>
    %118 = arith.divf %114, %117 : vector<16x16xf32>
    %119 = arith.truncf %118 : vector<16x16xf32> to vector<16x16xbf16>
    %120 = vector.extract_strided_slice %85 {offsets = [0, 8], sizes = [16, 8], strides = [1, 1]} : vector<16x32xbf16> to vector<16x8xbf16>
    %cst_64 = arith.constant dense<0.000000e+00> : vector<16x8xf32>
    %121 = tpu.matmul %119, %120, %cst_64 {dimension_numbers = #tpu.dot_dimension_numbers<[1], [0], [0], [1], [0, 0, 1, 1], [], []>} : vector<16x16xbf16>, vector<16x8xbf16>, vector<16x8xf32> -> vector<16x8xf32>
    %122 = vector.extract_strided_slice %83 {offsets = [0, 16], sizes = [16, 8], strides = [1, 1]} : vector<16x32xbf16> to vector<16x8xbf16>
    %123 = vector.extract_strided_slice %84 {offsets = [0, 16], sizes = [16, 8], strides = [1, 1]} : vector<16x32xbf16> to vector<16x8xbf16>
    %cst_65 = arith.constant dense<0.000000e+00> : vector<16x16xf32>
    %124 = tpu.matmul %122, %123, %cst_65 {dimension_numbers = #tpu.dot_dimension_numbers<[1], [1], [0], [0], [0, 0, 1, 0], [], []>} : vector<16x8xbf16>, vector<16x8xbf16>, vector<16x16xf32> -> vector<16x16xf32>
    %cst_66 = arith.constant 0.353553385 : f32
    %125 = vector.broadcast %cst_66 : f32 to vector<16x16xf32>
    %126 = arith.mulf %124, %125 : vector<16x16xf32>
    %127 = arith.addf %126, %17 : vector<16x16xf32>
    %cst_67 = arith.constant dense<0xFF800000> : vector<16xf32>
    %128 = vector.multi_reduction <maximumf>, %127, %cst_67 [1] : vector<16x16xf32> to vector<16xf32>
    %129 = vector.shape_cast %128 : vector<16xf32> to vector<16x1xf32>
    %130 = vector.broadcast %129 : vector<16x1xf32> to vector<16x16xf32>
    %131 = arith.subf %127, %130 : vector<16x16xf32>
    %132 = math.exp %131 : vector<16x16xf32>
    %cst_68 = arith.constant dense<0.000000e+00> : vector<16xf32>
    %133 = vector.multi_reduction <add>, %132, %cst_68 [1] : vector<16x16xf32> to vector<16xf32>
    %134 = vector.shape_cast %133 : vector<16xf32> to vector<16x1xf32>
    %135 = vector.broadcast %134 : vector<16x1xf32> to vector<16x16xf32>
    %136 = arith.divf %132, %135 : vector<16x16xf32>
    %137 = arith.truncf %136 : vector<16x16xf32> to vector<16x16xbf16>
    %138 = vector.extract_strided_slice %85 {offsets = [0, 16], sizes = [16, 8], strides = [1, 1]} : vector<16x32xbf16> to vector<16x8xbf16>
    %cst_69 = arith.constant dense<0.000000e+00> : vector<16x8xf32>
    %139 = tpu.matmul %137, %138, %cst_69 {dimension_numbers = #tpu.dot_dimension_numbers<[1], [0], [0], [1], [0, 0, 1, 1], [], []>} : vector<16x16xbf16>, vector<16x8xbf16>, vector<16x8xf32> -> vector<16x8xf32>
    %140 = vector.extract_strided_slice %83 {offsets = [0, 24], sizes = [16, 8], strides = [1, 1]} : vector<16x32xbf16> to vector<16x8xbf16>
    %141 = vector.extract_strided_slice %84 {offsets = [0, 24], sizes = [16, 8], strides = [1, 1]} : vector<16x32xbf16> to vector<16x8xbf16>
    %cst_70 = arith.constant dense<0.000000e+00> : vector<16x16xf32>
    %142 = tpu.matmul %140, %141, %cst_70 {dimension_numbers = #tpu.dot_dimension_numbers<[1], [1], [0], [0], [0, 0, 1, 0], [], []>} : vector<16x8xbf16>, vector<16x8xbf16>, vector<16x16xf32> -> vector<16x16xf32>
    %cst_71 = arith.constant 0.353553385 : f32
    %143 = vector.broadcast %cst_71 : f32 to vector<16x16xf32>
    %144 = arith.mulf %142, %143 : vector<16x16xf32>
    %145 = arith.addf %144, %17 : vector<16x16xf32>
    %cst_72 = arith.constant dense<0xFF800000> : vector<16xf32>
    %146 = vector.multi_reduction <maximumf>, %145, %cst_72 [1] : vector<16x16xf32> to vector<16xf32>
    %147 = vector.shape_cast %146 : vector<16xf32> to vector<16x1xf32>
    %148 = vector.broadcast %147 : vector<16x1xf32> to vector<16x16xf32>
    %149 = arith.subf %145, %148 : vector<16x16xf32>
    %150 = math.exp %149 : vector<16x16xf32>
    %cst_73 = arith.constant dense<0.000000e+00> : vector<16xf32>
    %151 = vector.multi_reduction <add>, %150, %cst_73 [1] : vector<16x16xf32> to vector<16xf32>
    %152 = vector.shape_cast %151 : vector<16xf32> to vector<16x1xf32>
    %153 = vector.broadcast %152 : vector<16x1xf32> to vector<16x16xf32>
    %154 = arith.divf %150, %153 : vector<16x16xf32>
    %155 = arith.truncf %154 : vector<16x16xf32> to vector<16x16xbf16>
    %156 = vector.extract_strided_slice %85 {offsets = [0, 24], sizes = [16, 8], strides = [1, 1]} : vector<16x32xbf16> to vector<16x8xbf16>
    %cst_74 = arith.constant dense<0.000000e+00> : vector<16x8xf32>
    %157 = tpu.matmul %155, %156, %cst_74 {dimension_numbers = #tpu.dot_dimension_numbers<[1], [0], [0], [1], [0, 0, 1, 1], [], []>} : vector<16x16xbf16>, vector<16x8xbf16>, vector<16x8xf32> -> vector<16x8xf32>
    %158 = tpu.concatenate %103, %121, %139, %157 in 1 : vector<16x8xf32>, vector<16x8xf32>, vector<16x8xf32>, vector<16x8xf32> -> vector<16x32xf32>
    %159 = arith.truncf %158 : vector<16x32xf32> to vector<16x32xbf16>
    %c0_75 = arith.constant 0 : index
    %c0_76 = arith.constant 0 : index
    %c0_77 = arith.constant 0 : index
    %160 = vector.load %arg6[%c0_75, %c0_76, %c0_77] : memref<2x32x32xbf16, #tpu.memory_space<vmem>>, vector<1x32x32xbf16>
    %161 = vector.shape_cast %160 : vector<1x32x32xbf16> to vector<32x32xbf16>
    %cst_78 = arith.constant dense<0.000000e+00> : vector<16x32xf32>
    %162 = tpu.matmul %159, %161, %cst_78 {dimension_numbers = #tpu.dot_dimension_numbers<[1], [0], [0], [1], [0, 0, 1, 1], [], []>} : vector<16x32xbf16>, vector<32x32xbf16>, vector<16x32xf32> -> vector<16x32xf32>
    %c0_79 = arith.constant 0 : index
    %c0_80 = arith.constant 0 : index
    %c0_81 = arith.constant 0 : index
    %163 = vector.load %arg7[%c0_79, %c0_80, %c0_81] : memref<2x32x128xbf16, #tpu.memory_space<vmem>>, vector<1x32x128xbf16>
    %164 = vector.shape_cast %163 : vector<1x32x128xbf16> to vector<32x128xbf16>
    %cst_82 = arith.constant dense<0.000000e+00> : vector<16x128xf32>
    %165 = tpu.matmul %46, %164, %cst_82 {dimension_numbers = #tpu.dot_dimension_numbers<[1], [0], [0], [1], [0, 0, 1, 1], [], []>} : vector<16x32xbf16>, vector<32x128xbf16>, vector<16x128xf32> -> vector<16x128xf32>
    %c0_83 = arith.constant 0 : index
    %c0_84 = arith.constant 0 : index
    %c0_85 = arith.constant 0 : index
    %166 = vector.load %arg8[%c0_83, %c0_84, %c0_85] : memref<2x1x128xf32, #tpu.memory_space<vmem>>, vector<1x1x128xf32>
    %167 = vector.shape_cast %166 : vector<1x1x128xf32> to vector<1x128xf32>
    %168 = vector.broadcast %167 : vector<1x128xf32> to vector<16x128xf32>
    %169 = arith.addf %165, %168 : vector<16x128xf32>
    %cst_86 = arith.constant 5.000000e-01 : f32
    %170 = vector.broadcast %cst_86 : f32 to vector<16x128xf32>
    %171 = arith.mulf %170, %169 : vector<16x128xf32>
    %cst_87 = arith.constant 4.471500e-02 : f32
    %172 = vector.broadcast %cst_87 : f32 to vector<16x128xf32>
    %173 = arith.mulf %172, %169 : vector<16x128xf32>
    %174 = arith.mulf %173, %169 : vector<16x128xf32>
    %175 = arith.mulf %174, %169 : vector<16x128xf32>
    %176 = arith.addf %169, %175 : vector<16x128xf32>
    %cst_88 = arith.constant 0.797884583 : f32
    %177 = vector.broadcast %cst_88 : f32 to vector<16x128xf32>
    %178 = arith.mulf %177, %176 : vector<16x128xf32>
    %179 = math.tanh %178 : vector<16x128xf32>
    %cst_89 = arith.constant 1.000000e+00 : f32
    %180 = vector.broadcast %cst_89 : f32 to vector<16x128xf32>
    %181 = arith.addf %180, %179 : vector<16x128xf32>
    %182 = arith.mulf %171, %181 : vector<16x128xf32>
    %183 = arith.truncf %182 : vector<16x128xf32> to vector<16x128xbf16>
    %c0_90 = arith.constant 0 : index
    %c0_91 = arith.constant 0 : index
    %c0_92 = arith.constant 0 : index
    %184 = vector.load %arg9[%c0_90, %c0_91, %c0_92] : memref<2x128x32xbf16, #tpu.memory_space<vmem>>, vector<1x128x32xbf16>
    %185 = vector.shape_cast %184 : vector<1x128x32xbf16> to vector<128x32xbf16>
    %cst_93 = arith.constant dense<0.000000e+00> : vector<16x32xf32>
    %186 = tpu.matmul %183, %185, %cst_93 {dimension_numbers = #tpu.dot_dimension_numbers<[1], [0], [0], [1], [0, 0, 1, 1], [], []>} : vector<16x128xbf16>, vector<128x32xbf16>, vector<16x32xf32> -> vector<16x32xf32>
    %c0_94 = arith.constant 0 : index
    %c0_95 = arith.constant 0 : index
    %c0_96 = arith.constant 0 : index
    %187 = vector.load %arg10[%c0_94, %c0_95, %c0_96] : memref<2x1x32xf32, #tpu.memory_space<vmem>>, vector<1x1x32xf32>
    %188 = vector.shape_cast %187 : vector<1x1x32xf32> to vector<1x32xf32>
    %189 = vector.broadcast %188 : vector<1x32xf32> to vector<16x32xf32>
    %190 = arith.addf %186, %189 : vector<16x32xf32>
    %191 = arith.addf %16, %162 : vector<16x32xf32>
    %192 = arith.addf %191, %190 : vector<16x32xf32>
    %c0_97 = arith.constant 0 : index
    %c0_98 = arith.constant 0 : index
    %193 = vector.load %arg11[%c0_97, %c0_98] : memref<16x32xf32, #tpu.memory_space<vmem>>, vector<16x32xf32>
    %c0_99 = arith.constant 0 : index
    %c0_100 = arith.constant 0 : index
    %194 = vector.load %arg12[%c0_99, %c0_100] : memref<16x32xf32, #tpu.memory_space<vmem>>, vector<16x32xf32>
    %c1_101 = arith.constant 1 : index
    %c0_102 = arith.constant 0 : index
    %c0_103 = arith.constant 0 : index
    %195 = vector.load %arg2[%c1_101, %c0_102, %c0_103] : memref<2x1x32xf32, #tpu.memory_space<vmem>>, vector<1x1x32xf32>
    %196 = vector.shape_cast %195 : vector<1x1x32xf32> to vector<1x32xf32>
    %c1_104 = arith.constant 1 : index
    %c0_105 = arith.constant 0 : index
    %c0_106 = arith.constant 0 : index
    %197 = vector.load %arg3[%c1_104, %c0_105, %c0_106] : memref<2x1x32xf32, #tpu.memory_space<vmem>>, vector<1x1x32xf32>
    %198 = vector.shape_cast %197 : vector<1x1x32xf32> to vector<1x32xf32>
    %cst_107 = arith.constant dense<0.000000e+00> : vector<16xf32>
    %199 = vector.multi_reduction <add>, %192, %cst_107 [1] : vector<16x32xf32> to vector<16xf32>
    %200 = vector.shape_cast %199 : vector<16xf32> to vector<16x1xf32>
    %cst_108 = arith.constant 3.200000e+01 : f32
    %201 = vector.broadcast %cst_108 : f32 to vector<16x1xf32>
    %202 = arith.divf %200, %201 : vector<16x1xf32>
    %203 = vector.broadcast %202 : vector<16x1xf32> to vector<16x32xf32>
    %204 = arith.subf %192, %203 : vector<16x32xf32>
    %205 = arith.mulf %204, %204 : vector<16x32xf32>
    %cst_109 = arith.constant dense<0.000000e+00> : vector<16xf32>
    %206 = vector.multi_reduction <add>, %205, %cst_109 [1] : vector<16x32xf32> to vector<16xf32>
    %207 = vector.shape_cast %206 : vector<16xf32> to vector<16x1xf32>
    %cst_110 = arith.constant 3.200000e+01 : f32
    %208 = vector.broadcast %cst_110 : f32 to vector<16x1xf32>
    %209 = arith.divf %207, %208 : vector<16x1xf32>
    %210 = vector.broadcast %202 : vector<16x1xf32> to vector<16x32xf32>
    %211 = arith.subf %192, %210 : vector<16x32xf32>
    %cst_111 = arith.constant 9.99999974E-6 : f32
    %212 = vector.broadcast %cst_111 : f32 to vector<16x1xf32>
    %213 = arith.addf %209, %212 : vector<16x1xf32>
    %214 = math.rsqrt %213 : vector<16x1xf32>
    %215 = vector.broadcast %214 : vector<16x1xf32> to vector<16x32xf32>
    %216 = arith.mulf %211, %215 : vector<16x32xf32>
    %217 = vector.broadcast %196 : vector<1x32xf32> to vector<16x32xf32>
    %218 = arith.mulf %216, %217 : vector<16x32xf32>
    %219 = vector.broadcast %198 : vector<1x32xf32> to vector<16x32xf32>
    %220 = arith.addf %218, %219 : vector<16x32xf32>
    %221 = arith.truncf %220 : vector<16x32xf32> to vector<16x32xbf16>
    %c1_112 = arith.constant 1 : index
    %c0_113 = arith.constant 0 : index
    %c0_114 = arith.constant 0 : index
    %222 = vector.load %arg4[%c1_112, %c0_113, %c0_114] : memref<2x32x96xbf16, #tpu.memory_space<vmem>>, vector<1x32x96xbf16>
    %223 = vector.shape_cast %222 : vector<1x32x96xbf16> to vector<32x96xbf16>
    %cst_115 = arith.constant dense<0.000000e+00> : vector<16x96xf32>
    %224 = tpu.matmul %221, %223, %cst_115 {dimension_numbers = #tpu.dot_dimension_numbers<[1], [0], [0], [1], [0, 0, 1, 1], [], []>} : vector<16x32xbf16>, vector<32x96xbf16>, vector<16x96xf32> -> vector<16x96xf32>
    %c1_116 = arith.constant 1 : index
    %c0_117 = arith.constant 0 : index
    %c0_118 = arith.constant 0 : index
    %225 = vector.load %arg5[%c1_116, %c0_117, %c0_118] : memref<2x1x96xf32, #tpu.memory_space<vmem>>, vector<1x1x96xf32>
    %226 = vector.shape_cast %225 : vector<1x1x96xf32> to vector<1x96xf32>
    %227 = vector.broadcast %226 : vector<1x96xf32> to vector<16x96xf32>
    %228 = arith.addf %224, %227 : vector<16x96xf32>
    %229 = vector.extract_strided_slice %228 {offsets = [0, 0], sizes = [16, 32], strides = [1, 1]} : vector<16x96xf32> to vector<16x32xf32>
    %230 = arith.truncf %229 : vector<16x32xf32> to vector<16x32xbf16>
    %cst_119 = arith.constant dense<0.000000e+00> : vector<16x32xf32>
    %231 = tpu.matmul %230, %5, %cst_119 {dimension_numbers = #tpu.dot_dimension_numbers<[1], [0], [0], [1], [0, 0, 1, 1], [], []>} : vector<16x32xbf16>, vector<32x32xbf16>, vector<16x32xf32> -> vector<16x32xf32>
    %232 = arith.mulf %229, %193 : vector<16x32xf32>
    %233 = arith.mulf %231, %194 : vector<16x32xf32>
    %234 = arith.addf %232, %233 : vector<16x32xf32>
    %235 = vector.extract_strided_slice %228 {offsets = [0, 32], sizes = [16, 32], strides = [1, 1]} : vector<16x96xf32> to vector<16x32xf32>
    %236 = arith.truncf %235 : vector<16x32xf32> to vector<16x32xbf16>
    %cst_120 = arith.constant dense<0.000000e+00> : vector<16x32xf32>
    %237 = tpu.matmul %236, %5, %cst_120 {dimension_numbers = #tpu.dot_dimension_numbers<[1], [0], [0], [1], [0, 0, 1, 1], [], []>} : vector<16x32xbf16>, vector<32x32xbf16>, vector<16x32xf32> -> vector<16x32xf32>
    %238 = arith.mulf %235, %193 : vector<16x32xf32>
    %239 = arith.mulf %237, %194 : vector<16x32xf32>
    %240 = arith.addf %238, %239 : vector<16x32xf32>
    %241 = vector.extract_strided_slice %228 {offsets = [0, 64], sizes = [16, 32], strides = [1, 1]} : vector<16x96xf32> to vector<16x32xf32>
    %242 = vector.extract_strided_slice %240 {offsets = [0, 0], sizes = [8, 32], strides = [1, 1]} : vector<16x32xf32> to vector<8x32xf32>
    %c1_121 = arith.constant 1 : index
    %c0_122 = arith.constant 0 : index
    %c0_123 = arith.constant 0 : index
    %243 = vector.load %arg23[%c1_121, %c0_122, %c0_123] : memref<2x24x32xf32, #tpu.memory_space<vmem>>, vector<1x8x32xf32>
    %244 = vector.shape_cast %243 : vector<1x8x32xf32> to vector<8x32xf32>
    %245 = vector.shape_cast %242 : vector<8x32xf32> to vector<1x8x32xf32>
    tpu.vector_store %arg23[%c1_121, %c0_122, %c0_123], %245 {strides = array<i32>} : memref<2x24x32xf32, #tpu.memory_space<vmem>>, vector<1x8x32xf32>,
    %246 = vector.extract_strided_slice %241 {offsets = [0, 0], sizes = [8, 32], strides = [1, 1]} : vector<16x32xf32> to vector<8x32xf32>
    %c1_124 = arith.constant 1 : index
    %c0_125 = arith.constant 0 : index
    %c0_126 = arith.constant 0 : index
    %247 = vector.load %arg24[%c1_124, %c0_125, %c0_126] : memref<2x24x32xf32, #tpu.memory_space<vmem>>, vector<1x8x32xf32>
    %248 = vector.shape_cast %247 : vector<1x8x32xf32> to vector<8x32xf32>
    %249 = vector.shape_cast %246 : vector<8x32xf32> to vector<1x8x32xf32>
    tpu.vector_store %arg24[%c1_124, %c0_125, %c0_126], %249 {strides = array<i32>} : memref<2x24x32xf32, #tpu.memory_space<vmem>>, vector<1x8x32xf32>,
    %250 = vector.extract_strided_slice %240 {offsets = [8, 0], sizes = [8, 32], strides = [1, 1]} : vector<16x32xf32> to vector<8x32xf32>
    %c1_127 = arith.constant 1 : index
    %c12_128 = arith.constant 12 : index
    %c0_129 = arith.constant 0 : index
    %251 = vector.load %arg23[%c1_127, %c12_128, %c0_129] : memref<2x24x32xf32, #tpu.memory_space<vmem>>, vector<1x8x32xf32>
    %252 = vector.shape_cast %251 : vector<1x8x32xf32> to vector<8x32xf32>
    %253 = vector.shape_cast %250 : vector<8x32xf32> to vector<1x8x32xf32>
    tpu.vector_store %arg23[%c1_127, %c12_128, %c0_129], %253 {strides = array<i32>} : memref<2x24x32xf32, #tpu.memory_space<vmem>>, vector<1x8x32xf32>,
    %254 = vector.extract_strided_slice %241 {offsets = [8, 0], sizes = [8, 32], strides = [1, 1]} : vector<16x32xf32> to vector<8x32xf32>
    %c1_130 = arith.constant 1 : index
    %c12_131 = arith.constant 12 : index
    %c0_132 = arith.constant 0 : index
    %255 = vector.load %arg24[%c1_130, %c12_131, %c0_132] : memref<2x24x32xf32, #tpu.memory_space<vmem>>, vector<1x8x32xf32>
    %256 = vector.shape_cast %255 : vector<1x8x32xf32> to vector<8x32xf32>
    %257 = vector.shape_cast %254 : vector<8x32xf32> to vector<1x8x32xf32>
    tpu.vector_store %arg24[%c1_130, %c12_131, %c0_132], %257 {strides = array<i32>} : memref<2x24x32xf32, #tpu.memory_space<vmem>>, vector<1x8x32xf32>,
    %258 = arith.truncf %234 : vector<16x32xf32> to vector<16x32xbf16>
    %259 = arith.truncf %240 : vector<16x32xf32> to vector<16x32xbf16>
    %260 = arith.truncf %241 : vector<16x32xf32> to vector<16x32xbf16>
    %261 = vector.extract_strided_slice %258 {offsets = [0, 0], sizes = [16, 8], strides = [1, 1]} : vector<16x32xbf16> to vector<16x8xbf16>
    %262 = vector.extract_strided_slice %259 {offsets = [0, 0], sizes = [16, 8], strides = [1, 1]} : vector<16x32xbf16> to vector<16x8xbf16>
    %cst_133 = arith.constant dense<0.000000e+00> : vector<16x16xf32>
    %263 = tpu.matmul %261, %262, %cst_133 {dimension_numbers = #tpu.dot_dimension_numbers<[1], [1], [0], [0], [0, 0, 1, 0], [], []>} : vector<16x8xbf16>, vector<16x8xbf16>, vector<16x16xf32> -> vector<16x16xf32>
    %cst_134 = arith.constant 0.353553385 : f32
    %264 = vector.broadcast %cst_134 : f32 to vector<16x16xf32>
    %265 = arith.mulf %263, %264 : vector<16x16xf32>
    %266 = arith.addf %265, %17 : vector<16x16xf32>
    %cst_135 = arith.constant dense<0xFF800000> : vector<16xf32>
    %267 = vector.multi_reduction <maximumf>, %266, %cst_135 [1] : vector<16x16xf32> to vector<16xf32>
    %268 = vector.shape_cast %267 : vector<16xf32> to vector<16x1xf32>
    %269 = vector.broadcast %268 : vector<16x1xf32> to vector<16x16xf32>
    %270 = arith.subf %266, %269 : vector<16x16xf32>
    %271 = math.exp %270 : vector<16x16xf32>
    %cst_136 = arith.constant dense<0.000000e+00> : vector<16xf32>
    %272 = vector.multi_reduction <add>, %271, %cst_136 [1] : vector<16x16xf32> to vector<16xf32>
    %273 = vector.shape_cast %272 : vector<16xf32> to vector<16x1xf32>
    %274 = vector.broadcast %273 : vector<16x1xf32> to vector<16x16xf32>
    %275 = arith.divf %271, %274 : vector<16x16xf32>
    %276 = arith.truncf %275 : vector<16x16xf32> to vector<16x16xbf16>
    %277 = vector.extract_strided_slice %260 {offsets = [0, 0], sizes = [16, 8], strides = [1, 1]} : vector<16x32xbf16> to vector<16x8xbf16>
    %cst_137 = arith.constant dense<0.000000e+00> : vector<16x8xf32>
    %278 = tpu.matmul %276, %277, %cst_137 {dimension_numbers = #tpu.dot_dimension_numbers<[1], [0], [0], [1], [0, 0, 1, 1], [], []>} : vector<16x16xbf16>, vector<16x8xbf16>, vector<16x8xf32> -> vector<16x8xf32>
    %279 = vector.extract_strided_slice %258 {offsets = [0, 8], sizes = [16, 8], strides = [1, 1]} : vector<16x32xbf16> to vector<16x8xbf16>
    %280 = vector.extract_strided_slice %259 {offsets = [0, 8], sizes = [16, 8], strides = [1, 1]} : vector<16x32xbf16> to vector<16x8xbf16>
    %cst_138 = arith.constant dense<0.000000e+00> : vector<16x16xf32>
    %281 = tpu.matmul %279, %280, %cst_138 {dimension_numbers = #tpu.dot_dimension_numbers<[1], [1], [0], [0], [0, 0, 1, 0], [], []>} : vector<16x8xbf16>, vector<16x8xbf16>, vector<16x16xf32> -> vector<16x16xf32>
    %cst_139 = arith.constant 0.353553385 : f32
    %282 = vector.broadcast %cst_139 : f32 to vector<16x16xf32>
    %283 = arith.mulf %281, %282 : vector<16x16xf32>
    %284 = arith.addf %283, %17 : vector<16x16xf32>
    %cst_140 = arith.constant dense<0xFF800000> : vector<16xf32>
    %285 = vector.multi_reduction <maximumf>, %284, %cst_140 [1] : vector<16x16xf32> to vector<16xf32>
    %286 = vector.shape_cast %285 : vector<16xf32> to vector<16x1xf32>
    %287 = vector.broadcast %286 : vector<16x1xf32> to vector<16x16xf32>
    %288 = arith.subf %284, %287 : vector<16x16xf32>
    %289 = math.exp %288 : vector<16x16xf32>
    %cst_141 = arith.constant dense<0.000000e+00> : vector<16xf32>
    %290 = vector.multi_reduction <add>, %289, %cst_141 [1] : vector<16x16xf32> to vector<16xf32>
    %291 = vector.shape_cast %290 : vector<16xf32> to vector<16x1xf32>
    %292 = vector.broadcast %291 : vector<16x1xf32> to vector<16x16xf32>
    %293 = arith.divf %289, %292 : vector<16x16xf32>
    %294 = arith.truncf %293 : vector<16x16xf32> to vector<16x16xbf16>
    %295 = vector.extract_strided_slice %260 {offsets = [0, 8], sizes = [16, 8], strides = [1, 1]} : vector<16x32xbf16> to vector<16x8xbf16>
    %cst_142 = arith.constant dense<0.000000e+00> : vector<16x8xf32>
    %296 = tpu.matmul %294, %295, %cst_142 {dimension_numbers = #tpu.dot_dimension_numbers<[1], [0], [0], [1], [0, 0, 1, 1], [], []>} : vector<16x16xbf16>, vector<16x8xbf16>, vector<16x8xf32> -> vector<16x8xf32>
    %297 = vector.extract_strided_slice %258 {offsets = [0, 16], sizes = [16, 8], strides = [1, 1]} : vector<16x32xbf16> to vector<16x8xbf16>
    %298 = vector.extract_strided_slice %259 {offsets = [0, 16], sizes = [16, 8], strides = [1, 1]} : vector<16x32xbf16> to vector<16x8xbf16>
    %cst_143 = arith.constant dense<0.000000e+00> : vector<16x16xf32>
    %299 = tpu.matmul %297, %298, %cst_143 {dimension_numbers = #tpu.dot_dimension_numbers<[1], [1], [0], [0], [0, 0, 1, 0], [], []>} : vector<16x8xbf16>, vector<16x8xbf16>, vector<16x16xf32> -> vector<16x16xf32>
    %cst_144 = arith.constant 0.353553385 : f32
    %300 = vector.broadcast %cst_144 : f32 to vector<16x16xf32>
    %301 = arith.mulf %299, %300 : vector<16x16xf32>
    %302 = arith.addf %301, %17 : vector<16x16xf32>
    %cst_145 = arith.constant dense<0xFF800000> : vector<16xf32>
    %303 = vector.multi_reduction <maximumf>, %302, %cst_145 [1] : vector<16x16xf32> to vector<16xf32>
    %304 = vector.shape_cast %303 : vector<16xf32> to vector<16x1xf32>
    %305 = vector.broadcast %304 : vector<16x1xf32> to vector<16x16xf32>
    %306 = arith.subf %302, %305 : vector<16x16xf32>
    %307 = math.exp %306 : vector<16x16xf32>
    %cst_146 = arith.constant dense<0.000000e+00> : vector<16xf32>
    %308 = vector.multi_reduction <add>, %307, %cst_146 [1] : vector<16x16xf32> to vector<16xf32>
    %309 = vector.shape_cast %308 : vector<16xf32> to vector<16x1xf32>
    %310 = vector.broadcast %309 : vector<16x1xf32> to vector<16x16xf32>
    %311 = arith.divf %307, %310 : vector<16x16xf32>
    %312 = arith.truncf %311 : vector<16x16xf32> to vector<16x16xbf16>
    %313 = vector.extract_strided_slice %260 {offsets = [0, 16], sizes = [16, 8], strides = [1, 1]} : vector<16x32xbf16> to vector<16x8xbf16>
    %cst_147 = arith.constant dense<0.000000e+00> : vector<16x8xf32>
    %314 = tpu.matmul %312, %313, %cst_147 {dimension_numbers = #tpu.dot_dimension_numbers<[1], [0], [0], [1], [0, 0, 1, 1], [], []>} : vector<16x16xbf16>, vector<16x8xbf16>, vector<16x8xf32> -> vector<16x8xf32>
    %315 = vector.extract_strided_slice %258 {offsets = [0, 24], sizes = [16, 8], strides = [1, 1]} : vector<16x32xbf16> to vector<16x8xbf16>
    %316 = vector.extract_strided_slice %259 {offsets = [0, 24], sizes = [16, 8], strides = [1, 1]} : vector<16x32xbf16> to vector<16x8xbf16>
    %cst_148 = arith.constant dense<0.000000e+00> : vector<16x16xf32>
    %317 = tpu.matmul %315, %316, %cst_148 {dimension_numbers = #tpu.dot_dimension_numbers<[1], [1], [0], [0], [0, 0, 1, 0], [], []>} : vector<16x8xbf16>, vector<16x8xbf16>, vector<16x16xf32> -> vector<16x16xf32>
    %cst_149 = arith.constant 0.353553385 : f32
    %318 = vector.broadcast %cst_149 : f32 to vector<16x16xf32>
    %319 = arith.mulf %317, %318 : vector<16x16xf32>
    %320 = arith.addf %319, %17 : vector<16x16xf32>
    %cst_150 = arith.constant dense<0xFF800000> : vector<16xf32>
    %321 = vector.multi_reduction <maximumf>, %320, %cst_150 [1] : vector<16x16xf32> to vector<16xf32>
    %322 = vector.shape_cast %321 : vector<16xf32> to vector<16x1xf32>
    %323 = vector.broadcast %322 : vector<16x1xf32> to vector<16x16xf32>
    %324 = arith.subf %320, %323 : vector<16x16xf32>
    %325 = math.exp %324 : vector<16x16xf32>
    %cst_151 = arith.constant dense<0.000000e+00> : vector<16xf32>
    %326 = vector.multi_reduction <add>, %325, %cst_151 [1] : vector<16x16xf32> to vector<16xf32>
    %327 = vector.shape_cast %326 : vector<16xf32> to vector<16x1xf32>
    %328 = vector.broadcast %327 : vector<16x1xf32> to vector<16x16xf32>
    %329 = arith.divf %325, %328 : vector<16x16xf32>
    %330 = arith.truncf %329 : vector<16x16xf32> to vector<16x16xbf16>
    %331 = vector.extract_strided_slice %260 {offsets = [0, 24], sizes = [16, 8], strides = [1, 1]} : vector<16x32xbf16> to vector<16x8xbf16>
    %cst_152 = arith.constant dense<0.000000e+00> : vector<16x8xf32>
    %332 = tpu.matmul %330, %331, %cst_152 {dimension_numbers = #tpu.dot_dimension_numbers<[1], [0], [0], [1], [0, 0, 1, 1], [], []>} : vector<16x16xbf16>, vector<16x8xbf16>, vector<16x8xf32> -> vector<16x8xf32>
    %333 = tpu.concatenate %278, %296, %314, %332 in 1 : vector<16x8xf32>, vector<16x8xf32>, vector<16x8xf32>, vector<16x8xf32> -> vector<16x32xf32>
    %334 = arith.truncf %333 : vector<16x32xf32> to vector<16x32xbf16>
    %c1_153 = arith.constant 1 : index
    %c0_154 = arith.constant 0 : index
    %c0_155 = arith.constant 0 : index
    %335 = vector.load %arg6[%c1_153, %c0_154, %c0_155] : memref<2x32x32xbf16, #tpu.memory_space<vmem>>, vector<1x32x32xbf16>
    %336 = vector.shape_cast %335 : vector<1x32x32xbf16> to vector<32x32xbf16>
    %cst_156 = arith.constant dense<0.000000e+00> : vector<16x32xf32>
    %337 = tpu.matmul %334, %336, %cst_156 {dimension_numbers = #tpu.dot_dimension_numbers<[1], [0], [0], [1], [0, 0, 1, 1], [], []>} : vector<16x32xbf16>, vector<32x32xbf16>, vector<16x32xf32> -> vector<16x32xf32>
    %c1_157 = arith.constant 1 : index
    %c0_158 = arith.constant 0 : index
    %c0_159 = arith.constant 0 : index
    %338 = vector.load %arg7[%c1_157, %c0_158, %c0_159] : memref<2x32x128xbf16, #tpu.memory_space<vmem>>, vector<1x32x128xbf16>
    %339 = vector.shape_cast %338 : vector<1x32x128xbf16> to vector<32x128xbf16>
    %cst_160 = arith.constant dense<0.000000e+00> : vector<16x128xf32>
    %340 = tpu.matmul %221, %339, %cst_160 {dimension_numbers = #tpu.dot_dimension_numbers<[1], [0], [0], [1], [0, 0, 1, 1], [], []>} : vector<16x32xbf16>, vector<32x128xbf16>, vector<16x128xf32> -> vector<16x128xf32>
    %c1_161 = arith.constant 1 : index
    %c0_162 = arith.constant 0 : index
    %c0_163 = arith.constant 0 : index
    %341 = vector.load %arg8[%c1_161, %c0_162, %c0_163] : memref<2x1x128xf32, #tpu.memory_space<vmem>>, vector<1x1x128xf32>
    %342 = vector.shape_cast %341 : vector<1x1x128xf32> to vector<1x128xf32>
    %343 = vector.broadcast %342 : vector<1x128xf32> to vector<16x128xf32>
    %344 = arith.addf %340, %343 : vector<16x128xf32>
    %cst_164 = arith.constant 5.000000e-01 : f32
    %345 = vector.broadcast %cst_164 : f32 to vector<16x128xf32>
    %346 = arith.mulf %345, %344 : vector<16x128xf32>
    %cst_165 = arith.constant 4.471500e-02 : f32
    %347 = vector.broadcast %cst_165 : f32 to vector<16x128xf32>
    %348 = arith.mulf %347, %344 : vector<16x128xf32>
    %349 = arith.mulf %348, %344 : vector<16x128xf32>
    %350 = arith.mulf %349, %344 : vector<16x128xf32>
    %351 = arith.addf %344, %350 : vector<16x128xf32>
    %cst_166 = arith.constant 0.797884583 : f32
    %352 = vector.broadcast %cst_166 : f32 to vector<16x128xf32>
    %353 = arith.mulf %352, %351 : vector<16x128xf32>
    %354 = math.tanh %353 : vector<16x128xf32>
    %cst_167 = arith.constant 1.000000e+00 : f32
    %355 = vector.broadcast %cst_167 : f32 to vector<16x128xf32>
    %356 = arith.addf %355, %354 : vector<16x128xf32>
    %357 = arith.mulf %346, %356 : vector<16x128xf32>
    %358 = arith.truncf %357 : vector<16x128xf32> to vector<16x128xbf16>
    %c1_168 = arith.constant 1 : index
    %c0_169 = arith.constant 0 : index
    %c0_170 = arith.constant 0 : index
    %359 = vector.load %arg9[%c1_168, %c0_169, %c0_170] : memref<2x128x32xbf16, #tpu.memory_space<vmem>>, vector<1x128x32xbf16>
    %360 = vector.shape_cast %359 : vector<1x128x32xbf16> to vector<128x32xbf16>
    %cst_171 = arith.constant dense<0.000000e+00> : vector<16x32xf32>
    %361 = tpu.matmul %358, %360, %cst_171 {dimension_numbers = #tpu.dot_dimension_numbers<[1], [0], [0], [1], [0, 0, 1, 1], [], []>} : vector<16x128xbf16>, vector<128x32xbf16>, vector<16x32xf32> -> vector<16x32xf32>
    %c1_172 = arith.constant 1 : index
    %c0_173 = arith.constant 0 : index
    %c0_174 = arith.constant 0 : index
    %362 = vector.load %arg10[%c1_172, %c0_173, %c0_174] : memref<2x1x32xf32, #tpu.memory_space<vmem>>, vector<1x1x32xf32>
    %363 = vector.shape_cast %362 : vector<1x1x32xf32> to vector<1x32xf32>
    %364 = vector.broadcast %363 : vector<1x32xf32> to vector<16x32xf32>
    %365 = arith.addf %361, %364 : vector<16x32xf32>
    %366 = arith.addf %192, %337 : vector<16x32xf32>
    %367 = arith.addf %366, %365 : vector<16x32xf32>
    %368 = vector.extract_strided_slice %367 {offsets = [7, 0], sizes = [1, 32], strides = [1, 1]} : vector<16x32xf32> to vector<1x32xf32>
    %369 = vector.extract_strided_slice %367 {offsets = [15, 0], sizes = [1, 32], strides = [1, 1]} : vector<16x32xf32> to vector<1x32xf32>
    %370 = tpu.concatenate %368, %369 in 0 : vector<1x32xf32>, vector<1x32xf32> -> vector<2x32xf32>
    %c0_175 = arith.constant 0 : index
    %c0_176 = arith.constant 0 : index
    %371 = vector.load %arg18[%c0_175, %c0_176] : memref<1x32xf32, #tpu.memory_space<vmem>>, vector<1x32xf32>
    %c0_177 = arith.constant 0 : index
    %c0_178 = arith.constant 0 : index
    %372 = vector.load %arg19[%c0_177, %c0_178] : memref<1x32xf32, #tpu.memory_space<vmem>>, vector<1x32xf32>
    %cst_179 = arith.constant dense<0.000000e+00> : vector<2xf32>
    %373 = vector.multi_reduction <add>, %370, %cst_179 [1] : vector<2x32xf32> to vector<2xf32>
    %374 = vector.shape_cast %373 : vector<2xf32> to vector<2x1xf32>
    %cst_180 = arith.constant 3.200000e+01 : f32
    %375 = vector.broadcast %cst_180 : f32 to vector<2x1xf32>
    %376 = arith.divf %374, %375 : vector<2x1xf32>
    %377 = vector.broadcast %376 : vector<2x1xf32> to vector<2x32xf32>
    %378 = arith.subf %370, %377 : vector<2x32xf32>
    %379 = arith.mulf %378, %378 : vector<2x32xf32>
    %cst_181 = arith.constant dense<0.000000e+00> : vector<2xf32>
    %380 = vector.multi_reduction <add>, %379, %cst_181 [1] : vector<2x32xf32> to vector<2xf32>
    %381 = vector.shape_cast %380 : vector<2xf32> to vector<2x1xf32>
    %cst_182 = arith.constant 3.200000e+01 : f32
    %382 = vector.broadcast %cst_182 : f32 to vector<2x1xf32>
    %383 = arith.divf %381, %382 : vector<2x1xf32>
    %384 = vector.broadcast %376 : vector<2x1xf32> to vector<2x32xf32>
    %385 = arith.subf %370, %384 : vector<2x32xf32>
    %cst_183 = arith.constant 9.99999974E-6 : f32
    %386 = vector.broadcast %cst_183 : f32 to vector<2x1xf32>
    %387 = arith.addf %383, %386 : vector<2x1xf32>
    %388 = math.rsqrt %387 : vector<2x1xf32>
    %389 = vector.broadcast %388 : vector<2x1xf32> to vector<2x32xf32>
    %390 = arith.mulf %385, %389 : vector<2x32xf32>
    %391 = vector.broadcast %371 : vector<1x32xf32> to vector<2x32xf32>
    %392 = arith.mulf %390, %391 : vector<2x32xf32>
    %393 = vector.broadcast %372 : vector<1x32xf32> to vector<2x32xf32>
    %394 = arith.addf %392, %393 : vector<2x32xf32>
    %395 = arith.truncf %394 : vector<2x32xf32> to vector<2x32xbf16>
    %c0_184 = arith.constant 0 : index
    %c0_185 = arith.constant 0 : index
    %396 = vector.load %arg20[%c0_184, %c0_185] : memref<32x128xbf16, #tpu.memory_space<vmem>>, vector<32x128xbf16>
    %cst_186 = arith.constant dense<0.000000e+00> : vector<2x128xf32>
    %397 = tpu.matmul %395, %396, %cst_186 {dimension_numbers = #tpu.dot_dimension_numbers<[1], [0], [0], [1], [0, 0, 1, 1], [], []>} : vector<2x32xbf16>, vector<32x128xbf16>, vector<2x128xf32> -> vector<2x128xf32>
    %c0_187 = arith.constant 0 : index
    %c0_188 = arith.constant 0 : index
    %398 = vector.load %arg21[%c0_187, %c0_188] : memref<1x128xf32, #tpu.memory_space<vmem>>, vector<1x128xf32>
    %399 = vector.broadcast %398 : vector<1x128xf32> to vector<2x128xf32>
    %400 = arith.addf %397, %399 : vector<2x128xf32>
    %cst_189 = arith.constant dense<0xFF800000> : vector<2xf32>
    %401 = vector.multi_reduction <maximumf>, %400, %cst_189 [1] : vector<2x128xf32> to vector<2xf32>
    %402 = vector.shape_cast %401 : vector<2xf32> to vector<2x1xf32>
    %403 = tpu.iota {dimensions = array<i32: 1>} : vector<2x128xi32>
    %404 = arith.sitofp %403 : vector<2x128xi32> to vector<2x128xf32>
    %405 = vector.broadcast %402 : vector<2x1xf32> to vector<2x128xf32>
    %406 = arith.cmpf oeq, %400, %405 : vector<2x128xf32>
    %cst_190 = arith.constant 1.280000e+02 : f32
    %407 = vector.broadcast %cst_190 : f32 to vector<2x128xf32>
    %408 = arith.select %406, %404, %407 : vector<2x128xi1>, vector<2x128xf32>
    %cst_191 = arith.constant dense<0x7F800000> : vector<2xf32>
    %409 = vector.multi_reduction <minimumf>, %408, %cst_191 [1] : vector<2x128xf32> to vector<2xf32>
    %410 = vector.shape_cast %409 : vector<2xf32> to vector<2x1xf32>
    %411 = arith.fptosi %410 : vector<2x1xf32> to vector<2x1xi32>
    %c0_192 = arith.constant 0 : index
    %c0_193 = arith.constant 0 : index
    %412 = vector.load %arg22[%c0_192, %c0_193] : memref<2x4xi32, #tpu.memory_space<vmem>>, vector<2x1xi32>
    tpu.vector_store %arg22[%c0_192, %c0_193], %411 {strides = array<i32>} : memref<2x4xi32, #tpu.memory_space<vmem>>, vector<2x1xi32>,
    %413 = tpu.iota {dimensions = array<i32: 1>} : vector<2x128xi32>
    %414 = vector.broadcast %411 : vector<2x1xi32> to vector<2x128xi32>
    %415 = arith.cmpi eq, %414, %413 : vector<2x128xi32>
    %cst_194 = arith.constant 1.000000e+00 : f32
    %cst_195 = arith.constant 0.000000e+00 : f32
    %416 = vector.broadcast %cst_194 : f32 to vector<2x128xf32>
    %417 = vector.broadcast %cst_195 : f32 to vector<2x128xf32>
    %418 = arith.select %415, %416, %417 : vector<2x128xi1>, vector<2x128xf32>
    %419 = arith.truncf %418 : vector<2x128xf32> to vector<2x128xbf16>
    %cst_196 = arith.constant dense<0.000000e+00> : vector<2x32xf32>
    %420 = tpu.matmul %419, %4, %cst_196 {dimension_numbers = #tpu.dot_dimension_numbers<[1], [0], [0], [1], [0, 0, 1, 1], [], []>} : vector<2x128xbf16>, vector<128x32xbf16>, vector<2x32xf32> -> vector<2x32xf32>
    %c8 = arith.constant 8 : index
    %c0_197 = arith.constant 0 : index
    %421 = vector.load %arg13[%c8, %c0_197] : memref<12x32xf32, #tpu.memory_space<vmem>>, vector<1x32xf32>
    %c8_198 = arith.constant 8 : index
    %c0_199 = arith.constant 0 : index
    %422 = vector.load %arg14[%c8_198, %c0_199] : memref<12x32xf32, #tpu.memory_space<vmem>>, vector<1x32xf32>
    %423 = tpu.iota {dimensions = array<i32: 0>} : vector<2x24xi32>
    %424 = vector.broadcast %6 : vector<1x24xi32> to vector<2x24xi32>
    %425 = arith.cmpi eq, %424, %423 : vector<2x24xi32>
    %c8_i32 = arith.constant 8 : i32
    %426 = vector.broadcast %c8_i32 : i32 to vector<1x24xi32>
    %427 = arith.cmpi sle, %7, %426 : vector<1x24xi32>
    %428 = vector.broadcast %427 : vector<1x24xi1> to vector<2x24xi1>
    %429 = arith.andi %425, %428 : vector<2x24xi1>
    %c0_200 = arith.constant 0 : index
    %c0_201 = arith.constant 0 : index
    %c0_202 = arith.constant 0 : index
    %430 = vector.load %arg2[%c0_200, %c0_201, %c0_202] : memref<2x1x32xf32, #tpu.memory_space<vmem>>, vector<1x1x32xf32>
    %431 = vector.shape_cast %430 : vector<1x1x32xf32> to vector<1x32xf32>
    %c0_203 = arith.constant 0 : index
    %c0_204 = arith.constant 0 : index
    %c0_205 = arith.constant 0 : index
    %432 = vector.load %arg3[%c0_203, %c0_204, %c0_205] : memref<2x1x32xf32, #tpu.memory_space<vmem>>, vector<1x1x32xf32>
    %433 = vector.shape_cast %432 : vector<1x1x32xf32> to vector<1x32xf32>
    %cst_206 = arith.constant dense<0.000000e+00> : vector<2xf32>
    %434 = vector.multi_reduction <add>, %420, %cst_206 [1] : vector<2x32xf32> to vector<2xf32>
    %435 = vector.shape_cast %434 : vector<2xf32> to vector<2x1xf32>
    %cst_207 = arith.constant 3.200000e+01 : f32
    %436 = vector.broadcast %cst_207 : f32 to vector<2x1xf32>
    %437 = arith.divf %435, %436 : vector<2x1xf32>
    %438 = vector.broadcast %437 : vector<2x1xf32> to vector<2x32xf32>
    %439 = arith.subf %420, %438 : vector<2x32xf32>
    %440 = arith.mulf %439, %439 : vector<2x32xf32>
    %cst_208 = arith.constant dense<0.000000e+00> : vector<2xf32>
    %441 = vector.multi_reduction <add>, %440, %cst_208 [1] : vector<2x32xf32> to vector<2xf32>
    %442 = vector.shape_cast %441 : vector<2xf32> to vector<2x1xf32>
    %cst_209 = arith.constant 3.200000e+01 : f32
    %443 = vector.broadcast %cst_209 : f32 to vector<2x1xf32>
    %444 = arith.divf %442, %443 : vector<2x1xf32>
    %445 = vector.broadcast %437 : vector<2x1xf32> to vector<2x32xf32>
    %446 = arith.subf %420, %445 : vector<2x32xf32>
    %cst_210 = arith.constant 9.99999974E-6 : f32
    %447 = vector.broadcast %cst_210 : f32 to vector<2x1xf32>
    %448 = arith.addf %444, %447 : vector<2x1xf32>
    %449 = math.rsqrt %448 : vector<2x1xf32>
    %450 = vector.broadcast %449 : vector<2x1xf32> to vector<2x32xf32>
    %451 = arith.mulf %446, %450 : vector<2x32xf32>
    %452 = vector.broadcast %431 : vector<1x32xf32> to vector<2x32xf32>
    %453 = arith.mulf %451, %452 : vector<2x32xf32>
    %454 = vector.broadcast %433 : vector<1x32xf32> to vector<2x32xf32>
    %455 = arith.addf %453, %454 : vector<2x32xf32>
    %456 = arith.truncf %455 : vector<2x32xf32> to vector<2x32xbf16>
    %c0_211 = arith.constant 0 : index
    %c0_212 = arith.constant 0 : index
    %c0_213 = arith.constant 0 : index
    %457 = vector.load %arg4[%c0_211, %c0_212, %c0_213] : memref<2x32x96xbf16, #tpu.memory_space<vmem>>, vector<1x32x96xbf16>
    %458 = vector.shape_cast %457 : vector<1x32x96xbf16> to vector<32x96xbf16>
    %cst_214 = arith.constant dense<0.000000e+00> : vector<2x96xf32>
    %459 = tpu.matmul %456, %458, %cst_214 {dimension_numbers = #tpu.dot_dimension_numbers<[1], [0], [0], [1], [0, 0, 1, 1], [], []>} : vector<2x32xbf16>, vector<32x96xbf16>, vector<2x96xf32> -> vector<2x96xf32>
    %c0_215 = arith.constant 0 : index
    %c0_216 = arith.constant 0 : index
    %c0_217 = arith.constant 0 : index
    %460 = vector.load %arg5[%c0_215, %c0_216, %c0_217] : memref<2x1x96xf32, #tpu.memory_space<vmem>>, vector<1x1x96xf32>
    %461 = vector.shape_cast %460 : vector<1x1x96xf32> to vector<1x96xf32>
    %462 = vector.broadcast %461 : vector<1x96xf32> to vector<2x96xf32>
    %463 = arith.addf %459, %462 : vector<2x96xf32>
    %464 = vector.extract_strided_slice %463 {offsets = [0, 0], sizes = [2, 32], strides = [1, 1]} : vector<2x96xf32> to vector<2x32xf32>
    %465 = arith.truncf %464 : vector<2x32xf32> to vector<2x32xbf16>
    %cst_218 = arith.constant dense<0.000000e+00> : vector<2x32xf32>
    %466 = tpu.matmul %465, %5, %cst_218 {dimension_numbers = #tpu.dot_dimension_numbers<[1], [0], [0], [1], [0, 0, 1, 1], [], []>} : vector<2x32xbf16>, vector<32x32xbf16>, vector<2x32xf32> -> vector<2x32xf32>
    %467 = vector.broadcast %421 : vector<1x32xf32> to vector<2x32xf32>
    %468 = arith.mulf %464, %467 : vector<2x32xf32>
    %469 = vector.broadcast %422 : vector<1x32xf32> to vector<2x32xf32>
    %470 = arith.mulf %466, %469 : vector<2x32xf32>
    %471 = arith.addf %468, %470 : vector<2x32xf32>
    %472 = vector.extract_strided_slice %463 {offsets = [0, 32], sizes = [2, 32], strides = [1, 1]} : vector<2x96xf32> to vector<2x32xf32>
    %473 = arith.truncf %472 : vector<2x32xf32> to vector<2x32xbf16>
    %cst_219 = arith.constant dense<0.000000e+00> : vector<2x32xf32>
    %474 = tpu.matmul %473, %5, %cst_219 {dimension_numbers = #tpu.dot_dimension_numbers<[1], [0], [0], [1], [0, 0, 1, 1], [], []>} : vector<2x32xbf16>, vector<32x32xbf16>, vector<2x32xf32> -> vector<2x32xf32>
    %475 = vector.broadcast %421 : vector<1x32xf32> to vector<2x32xf32>
    %476 = arith.mulf %472, %475 : vector<2x32xf32>
    %477 = vector.broadcast %422 : vector<1x32xf32> to vector<2x32xf32>
    %478 = arith.mulf %474, %477 : vector<2x32xf32>
    %479 = arith.addf %476, %478 : vector<2x32xf32>
    %480 = vector.extract_strided_slice %463 {offsets = [0, 64], sizes = [2, 32], strides = [1, 1]} : vector<2x96xf32> to vector<2x32xf32>
    %481 = vector.extract_strided_slice %479 {offsets = [0, 0], sizes = [1, 32], strides = [1, 1]} : vector<2x32xf32> to vector<1x32xf32>
    %c0_220 = arith.constant 0 : index
    %c8_221 = arith.constant 8 : index
    %c0_222 = arith.constant 0 : index
    %482 = vector.load %arg23[%c0_220, %c8_221, %c0_222] : memref<2x24x32xf32, #tpu.memory_space<vmem>>, vector<1x1x32xf32>
    %483 = vector.shape_cast %482 : vector<1x1x32xf32> to vector<1x32xf32>
    %484 = vector.shape_cast %481 : vector<1x32xf32> to vector<1x1x32xf32>
    tpu.vector_store %arg23[%c0_220, %c8_221, %c0_222], %484 {strides = array<i32>} : memref<2x24x32xf32, #tpu.memory_space<vmem>>, vector<1x1x32xf32>,
    %485 = vector.extract_strided_slice %480 {offsets = [0, 0], sizes = [1, 32], strides = [1, 1]} : vector<2x32xf32> to vector<1x32xf32>
    %c0_223 = arith.constant 0 : index
    %c8_224 = arith.constant 8 : index
    %c0_225 = arith.constant 0 : index
    %486 = vector.load %arg24[%c0_223, %c8_224, %c0_225] : memref<2x24x32xf32, #tpu.memory_space<vmem>>, vector<1x1x32xf32>
    %487 = vector.shape_cast %486 : vector<1x1x32xf32> to vector<1x32xf32>
    %488 = vector.shape_cast %485 : vector<1x32xf32> to vector<1x1x32xf32>
    tpu.vector_store %arg24[%c0_223, %c8_224, %c0_225], %488 {strides = array<i32>} : memref<2x24x32xf32, #tpu.memory_space<vmem>>, vector<1x1x32xf32>,
    %489 = vector.extract_strided_slice %479 {offsets = [1, 0], sizes = [1, 32], strides = [1, 1]} : vector<2x32xf32> to vector<1x32xf32>
    %c0_226 = arith.constant 0 : index
    %c20 = arith.constant 20 : index
    %c0_227 = arith.constant 0 : index
    %490 = vector.load %arg23[%c0_226, %c20, %c0_227] : memref<2x24x32xf32, #tpu.memory_space<vmem>>, vector<1x1x32xf32>
    %491 = vector.shape_cast %490 : vector<1x1x32xf32> to vector<1x32xf32>
    %492 = vector.shape_cast %489 : vector<1x32xf32> to vector<1x1x32xf32>
    tpu.vector_store %arg23[%c0_226, %c20, %c0_227], %492 {strides = array<i32>} : memref<2x24x32xf32, #tpu.memory_space<vmem>>, vector<1x1x32xf32>,
    %493 = vector.extract_strided_slice %480 {offsets = [1, 0], sizes = [1, 32], strides = [1, 1]} : vector<2x32xf32> to vector<1x32xf32>
    %c0_228 = arith.constant 0 : index
    %c20_229 = arith.constant 20 : index
    %c0_230 = arith.constant 0 : index
    %494 = vector.load %arg24[%c0_228, %c20_229, %c0_230] : memref<2x24x32xf32, #tpu.memory_space<vmem>>, vector<1x1x32xf32>
    %495 = vector.shape_cast %494 : vector<1x1x32xf32> to vector<1x32xf32>
    %496 = vector.shape_cast %493 : vector<1x32xf32> to vector<1x1x32xf32>
    tpu.vector_store %arg24[%c0_228, %c20_229, %c0_230], %496 {strides = array<i32>} : memref<2x24x32xf32, #tpu.memory_space<vmem>>, vector<1x1x32xf32>,
    %c0_231 = arith.constant 0 : index
    %c0_232 = arith.constant 0 : index
    %c0_233 = arith.constant 0 : index
    %497 = vector.load %arg23[%c0_231, %c0_232, %c0_233] : memref<2x24x32xf32, #tpu.memory_space<vmem>>, vector<1x24x32xf32>
    %498 = vector.shape_cast %497 : vector<1x24x32xf32> to vector<24x32xf32>
    %c0_234 = arith.constant 0 : index
    %c0_235 = arith.constant 0 : index
    %c0_236 = arith.constant 0 : index
    %499 = vector.load %arg24[%c0_234, %c0_235, %c0_236] : memref<2x24x32xf32, #tpu.memory_space<vmem>>, vector<1x24x32xf32>
    %500 = vector.shape_cast %499 : vector<1x24x32xf32> to vector<24x32xf32>
    %501 = arith.truncf %471 : vector<2x32xf32> to vector<2x32xbf16>
    %502 = arith.truncf %498 : vector<24x32xf32> to vector<24x32xbf16>
    %503 = arith.truncf %500 : vector<24x32xf32> to vector<24x32xbf16>
    %504 = vector.extract_strided_slice %501 {offsets = [0, 0], sizes = [2, 8], strides = [1, 1]} : vector<2x32xbf16> to vector<2x8xbf16>
    %505 = vector.extract_strided_slice %502 {offsets = [0, 0], sizes = [24, 8], strides = [1, 1]} : vector<24x32xbf16> to vector<24x8xbf16>
    %cst_237 = arith.constant dense<0.000000e+00> : vector<2x24xf32>
    %506 = tpu.matmul %504, %505, %cst_237 {dimension_numbers = #tpu.dot_dimension_numbers<[1], [1], [0], [0], [0, 0, 1, 0], [], []>} : vector<2x8xbf16>, vector<24x8xbf16>, vector<2x24xf32> -> vector<2x24xf32>
    %cst_238 = arith.constant 0.353553385 : f32
    %507 = vector.broadcast %cst_238 : f32 to vector<2x24xf32>
    %508 = arith.mulf %506, %507 : vector<2x24xf32>
    %cst_239 = arith.constant -1.000000e+30 : f32
    %509 = vector.broadcast %cst_239 : f32 to vector<2x24xf32>
    %510 = arith.select %429, %508, %509 : vector<2x24xi1>, vector<2x24xf32>
    %cst_240 = arith.constant dense<0xFF800000> : vector<2xf32>
    %511 = vector.multi_reduction <maximumf>, %510, %cst_240 [1] : vector<2x24xf32> to vector<2xf32>
    %512 = vector.shape_cast %511 : vector<2xf32> to vector<2x1xf32>
    %513 = vector.broadcast %512 : vector<2x1xf32> to vector<2x24xf32>
    %514 = arith.subf %510, %513 : vector<2x24xf32>
    %515 = math.exp %514 : vector<2x24xf32>
    %cst_241 = arith.constant dense<0.000000e+00> : vector<2xf32>
    %516 = vector.multi_reduction <add>, %515, %cst_241 [1] : vector<2x24xf32> to vector<2xf32>
    %517 = vector.shape_cast %516 : vector<2xf32> to vector<2x1xf32>
    %518 = vector.broadcast %517 : vector<2x1xf32> to vector<2x24xf32>
    %519 = arith.divf %515, %518 : vector<2x24xf32>
    %520 = arith.truncf %519 : vector<2x24xf32> to vector<2x24xbf16>
    %521 = vector.extract_strided_slice %503 {offsets = [0, 0], sizes = [24, 8], strides = [1, 1]} : vector<24x32xbf16> to vector<24x8xbf16>
    %cst_242 = arith.constant dense<0.000000e+00> : vector<2x8xf32>
    %522 = tpu.matmul %520, %521, %cst_242 {dimension_numbers = #tpu.dot_dimension_numbers<[1], [0], [0], [1], [0, 0, 1, 1], [], []>} : vector<2x24xbf16>, vector<24x8xbf16>, vector<2x8xf32> -> vector<2x8xf32>
    %523 = vector.extract_strided_slice %501 {offsets = [0, 8], sizes = [2, 8], strides = [1, 1]} : vector<2x32xbf16> to vector<2x8xbf16>
    %524 = vector.extract_strided_slice %502 {offsets = [0, 8], sizes = [24, 8], strides = [1, 1]} : vector<24x32xbf16> to vector<24x8xbf16>
    %cst_243 = arith.constant dense<0.000000e+00> : vector<2x24xf32>
    %525 = tpu.matmul %523, %524, %cst_243 {dimension_numbers = #tpu.dot_dimension_numbers<[1], [1], [0], [0], [0, 0, 1, 0], [], []>} : vector<2x8xbf16>, vector<24x8xbf16>, vector<2x24xf32> -> vector<2x24xf32>
    %cst_244 = arith.constant 0.353553385 : f32
    %526 = vector.broadcast %cst_244 : f32 to vector<2x24xf32>
    %527 = arith.mulf %525, %526 : vector<2x24xf32>
    %cst_245 = arith.constant -1.000000e+30 : f32
    %528 = vector.broadcast %cst_245 : f32 to vector<2x24xf32>
    %529 = arith.select %429, %527, %528 : vector<2x24xi1>, vector<2x24xf32>
    %cst_246 = arith.constant dense<0xFF800000> : vector<2xf32>
    %530 = vector.multi_reduction <maximumf>, %529, %cst_246 [1] : vector<2x24xf32> to vector<2xf32>
    %531 = vector.shape_cast %530 : vector<2xf32> to vector<2x1xf32>
    %532 = vector.broadcast %531 : vector<2x1xf32> to vector<2x24xf32>
    %533 = arith.subf %529, %532 : vector<2x24xf32>
    %534 = math.exp %533 : vector<2x24xf32>
    %cst_247 = arith.constant dense<0.000000e+00> : vector<2xf32>
    %535 = vector.multi_reduction <add>, %534, %cst_247 [1] : vector<2x24xf32> to vector<2xf32>
    %536 = vector.shape_cast %535 : vector<2xf32> to vector<2x1xf32>
    %537 = vector.broadcast %536 : vector<2x1xf32> to vector<2x24xf32>
    %538 = arith.divf %534, %537 : vector<2x24xf32>
    %539 = arith.truncf %538 : vector<2x24xf32> to vector<2x24xbf16>
    %540 = vector.extract_strided_slice %503 {offsets = [0, 8], sizes = [24, 8], strides = [1, 1]} : vector<24x32xbf16> to vector<24x8xbf16>
    %cst_248 = arith.constant dense<0.000000e+00> : vector<2x8xf32>
    %541 = tpu.matmul %539, %540, %cst_248 {dimension_numbers = #tpu.dot_dimension_numbers<[1], [0], [0], [1], [0, 0, 1, 1], [], []>} : vector<2x24xbf16>, vector<24x8xbf16>, vector<2x8xf32> -> vector<2x8xf32>
    %542 = vector.extract_strided_slice %501 {offsets = [0, 16], sizes = [2, 8], strides = [1, 1]} : vector<2x32xbf16> to vector<2x8xbf16>
    %543 = vector.extract_strided_slice %502 {offsets = [0, 16], sizes = [24, 8], strides = [1, 1]} : vector<24x32xbf16> to vector<24x8xbf16>
    %cst_249 = arith.constant dense<0.000000e+00> : vector<2x24xf32>
    %544 = tpu.matmul %542, %543, %cst_249 {dimension_numbers = #tpu.dot_dimension_numbers<[1], [1], [0], [0], [0, 0, 1, 0], [], []>} : vector<2x8xbf16>, vector<24x8xbf16>, vector<2x24xf32> -> vector<2x24xf32>
    %cst_250 = arith.constant 0.353553385 : f32
    %545 = vector.broadcast %cst_250 : f32 to vector<2x24xf32>
    %546 = arith.mulf %544, %545 : vector<2x24xf32>
    %cst_251 = arith.constant -1.000000e+30 : f32
    %547 = vector.broadcast %cst_251 : f32 to vector<2x24xf32>
    %548 = arith.select %429, %546, %547 : vector<2x24xi1>, vector<2x24xf32>
    %cst_252 = arith.constant dense<0xFF800000> : vector<2xf32>
    %549 = vector.multi_reduction <maximumf>, %548, %cst_252 [1] : vector<2x24xf32> to vector<2xf32>
    %550 = vector.shape_cast %549 : vector<2xf32> to vector<2x1xf32>
    %551 = vector.broadcast %550 : vector<2x1xf32> to vector<2x24xf32>
    %552 = arith.subf %548, %551 : vector<2x24xf32>
    %553 = math.exp %552 : vector<2x24xf32>
    %cst_253 = arith.constant dense<0.000000e+00> : vector<2xf32>
    %554 = vector.multi_reduction <add>, %553, %cst_253 [1] : vector<2x24xf32> to vector<2xf32>
    %555 = vector.shape_cast %554 : vector<2xf32> to vector<2x1xf32>
    %556 = vector.broadcast %555 : vector<2x1xf32> to vector<2x24xf32>
    %557 = arith.divf %553, %556 : vector<2x24xf32>
    %558 = arith.truncf %557 : vector<2x24xf32> to vector<2x24xbf16>
    %559 = vector.extract_strided_slice %503 {offsets = [0, 16], sizes = [24, 8], strides = [1, 1]} : vector<24x32xbf16> to vector<24x8xbf16>
    %cst_254 = arith.constant dense<0.000000e+00> : vector<2x8xf32>
    %560 = tpu.matmul %558, %559, %cst_254 {dimension_numbers = #tpu.dot_dimension_numbers<[1], [0], [0], [1], [0, 0, 1, 1], [], []>} : vector<2x24xbf16>, vector<24x8xbf16>, vector<2x8xf32> -> vector<2x8xf32>
    %561 = vector.extract_strided_slice %501 {offsets = [0, 24], sizes = [2, 8], strides = [1, 1]} : vector<2x32xbf16> to vector<2x8xbf16>
    %562 = vector.extract_strided_slice %502 {offsets = [0, 24], sizes = [24, 8], strides = [1, 1]} : vector<24x32xbf16> to vector<24x8xbf16>
    %cst_255 = arith.constant dense<0.000000e+00> : vector<2x24xf32>
    %563 = tpu.matmul %561, %562, %cst_255 {dimension_numbers = #tpu.dot_dimension_numbers<[1], [1], [0], [0], [0, 0, 1, 0], [], []>} : vector<2x8xbf16>, vector<24x8xbf16>, vector<2x24xf32> -> vector<2x24xf32>
    %cst_256 = arith.constant 0.353553385 : f32
    %564 = vector.broadcast %cst_256 : f32 to vector<2x24xf32>
    %565 = arith.mulf %563, %564 : vector<2x24xf32>
    %cst_257 = arith.constant -1.000000e+30 : f32
    %566 = vector.broadcast %cst_257 : f32 to vector<2x24xf32>
    %567 = arith.select %429, %565, %566 : vector<2x24xi1>, vector<2x24xf32>
    %cst_258 = arith.constant dense<0xFF800000> : vector<2xf32>
    %568 = vector.multi_reduction <maximumf>, %567, %cst_258 [1] : vector<2x24xf32> to vector<2xf32>
    %569 = vector.shape_cast %568 : vector<2xf32> to vector<2x1xf32>
    %570 = vector.broadcast %569 : vector<2x1xf32> to vector<2x24xf32>
    %571 = arith.subf %567, %570 : vector<2x24xf32>
    %572 = math.exp %571 : vector<2x24xf32>
    %cst_259 = arith.constant dense<0.000000e+00> : vector<2xf32>
    %573 = vector.multi_reduction <add>, %572, %cst_259 [1] : vector<2x24xf32> to vector<2xf32>
    %574 = vector.shape_cast %573 : vector<2xf32> to vector<2x1xf32>
    %575 = vector.broadcast %574 : vector<2x1xf32> to vector<2x24xf32>
    %576 = arith.divf %572, %575 : vector<2x24xf32>
    %577 = arith.truncf %576 : vector<2x24xf32> to vector<2x24xbf16>
    %578 = vector.extract_strided_slice %503 {offsets = [0, 24], sizes = [24, 8], strides = [1, 1]} : vector<24x32xbf16> to vector<24x8xbf16>
    %cst_260 = arith.constant dense<0.000000e+00> : vector<2x8xf32>
    %579 = tpu.matmul %577, %578, %cst_260 {dimension_numbers = #tpu.dot_dimension_numbers<[1], [0], [0], [1], [0, 0, 1, 1], [], []>} : vector<2x24xbf16>, vector<24x8xbf16>, vector<2x8xf32> -> vector<2x8xf32>
    %580 = tpu.concatenate %522, %541, %560, %579 in 1 : vector<2x8xf32>, vector<2x8xf32>, vector<2x8xf32>, vector<2x8xf32> -> vector<2x32xf32>
    %581 = arith.truncf %580 : vector<2x32xf32> to vector<2x32xbf16>
    %c0_261 = arith.constant 0 : index
    %c0_262 = arith.constant 0 : index
    %c0_263 = arith.constant 0 : index
    %582 = vector.load %arg6[%c0_261, %c0_262, %c0_263] : memref<2x32x32xbf16, #tpu.memory_space<vmem>>, vector<1x32x32xbf16>
    %583 = vector.shape_cast %582 : vector<1x32x32xbf16> to vector<32x32xbf16>
    %cst_264 = arith.constant dense<0.000000e+00> : vector<2x32xf32>
    %584 = tpu.matmul %581, %583, %cst_264 {dimension_numbers = #tpu.dot_dimension_numbers<[1], [0], [0], [1], [0, 0, 1, 1], [], []>} : vector<2x32xbf16>, vector<32x32xbf16>, vector<2x32xf32> -> vector<2x32xf32>
    %c0_265 = arith.constant 0 : index
    %c0_266 = arith.constant 0 : index
    %c0_267 = arith.constant 0 : index
    %585 = vector.load %arg7[%c0_265, %c0_266, %c0_267] : memref<2x32x128xbf16, #tpu.memory_space<vmem>>, vector<1x32x128xbf16>
    %586 = vector.shape_cast %585 : vector<1x32x128xbf16> to vector<32x128xbf16>
    %cst_268 = arith.constant dense<0.000000e+00> : vector<2x128xf32>
    %587 = tpu.matmul %456, %586, %cst_268 {dimension_numbers = #tpu.dot_dimension_numbers<[1], [0], [0], [1], [0, 0, 1, 1], [], []>} : vector<2x32xbf16>, vector<32x128xbf16>, vector<2x128xf32> -> vector<2x128xf32>
    %c0_269 = arith.constant 0 : index
    %c0_270 = arith.constant 0 : index
    %c0_271 = arith.constant 0 : index
    %588 = vector.load %arg8[%c0_269, %c0_270, %c0_271] : memref<2x1x128xf32, #tpu.memory_space<vmem>>, vector<1x1x128xf32>
    %589 = vector.shape_cast %588 : vector<1x1x128xf32> to vector<1x128xf32>
    %590 = vector.broadcast %589 : vector<1x128xf32> to vector<2x128xf32>
    %591 = arith.addf %587, %590 : vector<2x128xf32>
    %cst_272 = arith.constant 5.000000e-01 : f32
    %592 = vector.broadcast %cst_272 : f32 to vector<2x128xf32>
    %593 = arith.mulf %592, %591 : vector<2x128xf32>
    %cst_273 = arith.constant 4.471500e-02 : f32
    %594 = vector.broadcast %cst_273 : f32 to vector<2x128xf32>
    %595 = arith.mulf %594, %591 : vector<2x128xf32>
    %596 = arith.mulf %595, %591 : vector<2x128xf32>
    %597 = arith.mulf %596, %591 : vector<2x128xf32>
    %598 = arith.addf %591, %597 : vector<2x128xf32>
    %cst_274 = arith.constant 0.797884583 : f32
    %599 = vector.broadcast %cst_274 : f32 to vector<2x128xf32>
    %600 = arith.mulf %599, %598 : vector<2x128xf32>
    %601 = math.tanh %600 : vector<2x128xf32>
    %cst_275 = arith.constant 1.000000e+00 : f32
    %602 = vector.broadcast %cst_275 : f32 to vector<2x128xf32>
    %603 = arith.addf %602, %601 : vector<2x128xf32>
    %604 = arith.mulf %593, %603 : vector<2x128xf32>
    %605 = arith.truncf %604 : vector<2x128xf32> to vector<2x128xbf16>
    %c0_276 = arith.constant 0 : index
    %c0_277 = arith.constant 0 : index
    %c0_278 = arith.constant 0 : index
    %606 = vector.load %arg9[%c0_276, %c0_277, %c0_278] : memref<2x128x32xbf16, #tpu.memory_space<vmem>>, vector<1x128x32xbf16>
    %607 = vector.shape_cast %606 : vector<1x128x32xbf16> to vector<128x32xbf16>
    %cst_279 = arith.constant dense<0.000000e+00> : vector<2x32xf32>
    %608 = tpu.matmul %605, %607, %cst_279 {dimension_numbers = #tpu.dot_dimension_numbers<[1], [0], [0], [1], [0, 0, 1, 1], [], []>} : vector<2x128xbf16>, vector<128x32xbf16>, vector<2x32xf32> -> vector<2x32xf32>
    %c0_280 = arith.constant 0 : index
    %c0_281 = arith.constant 0 : index
    %c0_282 = arith.constant 0 : index
    %609 = vector.load %arg10[%c0_280, %c0_281, %c0_282] : memref<2x1x32xf32, #tpu.memory_space<vmem>>, vector<1x1x32xf32>
    %610 = vector.shape_cast %609 : vector<1x1x32xf32> to vector<1x32xf32>
    %611 = vector.broadcast %610 : vector<1x32xf32> to vector<2x32xf32>
    %612 = arith.addf %608, %611 : vector<2x32xf32>
    %613 = arith.addf %420, %584 : vector<2x32xf32>
    %614 = arith.addf %613, %612 : vector<2x32xf32>
    %c1_283 = arith.constant 1 : index
    %c0_284 = arith.constant 0 : index
    %c0_285 = arith.constant 0 : index
    %615 = vector.load %arg2[%c1_283, %c0_284, %c0_285] : memref<2x1x32xf32, #tpu.memory_space<vmem>>, vector<1x1x32xf32>
    %616 = vector.shape_cast %615 : vector<1x1x32xf32> to vector<1x32xf32>
    %c1_286 = arith.constant 1 : index
    %c0_287 = arith.constant 0 : index
    %c0_288 = arith.constant 0 : index
    %617 = vector.load %arg3[%c1_286, %c0_287, %c0_288] : memref<2x1x32xf32, #tpu.memory_space<vmem>>, vector<1x1x32xf32>
    %618 = vector.shape_cast %617 : vector<1x1x32xf32> to vector<1x32xf32>
    %cst_289 = arith.constant dense<0.000000e+00> : vector<2xf32>
    %619 = vector.multi_reduction <add>, %614, %cst_289 [1] : vector<2x32xf32> to vector<2xf32>
    %620 = vector.shape_cast %619 : vector<2xf32> to vector<2x1xf32>
    %cst_290 = arith.constant 3.200000e+01 : f32
    %621 = vector.broadcast %cst_290 : f32 to vector<2x1xf32>
    %622 = arith.divf %620, %621 : vector<2x1xf32>
    %623 = vector.broadcast %622 : vector<2x1xf32> to vector<2x32xf32>
    %624 = arith.subf %614, %623 : vector<2x32xf32>
    %625 = arith.mulf %624, %624 : vector<2x32xf32>
    %cst_291 = arith.constant dense<0.000000e+00> : vector<2xf32>
    %626 = vector.multi_reduction <add>, %625, %cst_291 [1] : vector<2x32xf32> to vector<2xf32>
    %627 = vector.shape_cast %626 : vector<2xf32> to vector<2x1xf32>
    %cst_292 = arith.constant 3.200000e+01 : f32
    %628 = vector.broadcast %cst_292 : f32 to vector<2x1xf32>
    %629 = arith.divf %627, %628 : vector<2x1xf32>
    %630 = vector.broadcast %622 : vector<2x1xf32> to vector<2x32xf32>
    %631 = arith.subf %614, %630 : vector<2x32xf32>
    %cst_293 = arith.constant 9.99999974E-6 : f32
    %632 = vector.broadcast %cst_293 : f32 to vector<2x1xf32>
    %633 = arith.addf %629, %632 : vector<2x1xf32>
    %634 = math.rsqrt %633 : vector<2x1xf32>
    %635 = vector.broadcast %634 : vector<2x1xf32> to vector<2x32xf32>
    %636 = arith.mulf %631, %635 : vector<2x32xf32>
    %637 = vector.broadcast %616 : vector<1x32xf32> to vector<2x32xf32>
    %638 = arith.mulf %636, %637 : vector<2x32xf32>
    %639 = vector.broadcast %618 : vector<1x32xf32> to vector<2x32xf32>
    %640 = arith.addf %638, %639 : vector<2x32xf32>
    %641 = arith.truncf %640 : vector<2x32xf32> to vector<2x32xbf16>
    %c1_294 = arith.constant 1 : index
    %c0_295 = arith.constant 0 : index
    %c0_296 = arith.constant 0 : index
    %642 = vector.load %arg4[%c1_294, %c0_295, %c0_296] : memref<2x32x96xbf16, #tpu.memory_space<vmem>>, vector<1x32x96xbf16>
    %643 = vector.shape_cast %642 : vector<1x32x96xbf16> to vector<32x96xbf16>
    %cst_297 = arith.constant dense<0.000000e+00> : vector<2x96xf32>
    %644 = tpu.matmul %641, %643, %cst_297 {dimension_numbers = #tpu.dot_dimension_numbers<[1], [0], [0], [1], [0, 0, 1, 1], [], []>} : vector<2x32xbf16>, vector<32x96xbf16>, vector<2x96xf32> -> vector<2x96xf32>
    %c1_298 = arith.constant 1 : index
    %c0_299 = arith.constant 0 : index
    %c0_300 = arith.constant 0 : index
    %645 = vector.load %arg5[%c1_298, %c0_299, %c0_300] : memref<2x1x96xf32, #tpu.memory_space<vmem>>, vector<1x1x96xf32>
    %646 = vector.shape_cast %645 : vector<1x1x96xf32> to vector<1x96xf32>
    %647 = vector.broadcast %646 : vector<1x96xf32> to vector<2x96xf32>
    %648 = arith.addf %644, %647 : vector<2x96xf32>
    %649 = vector.extract_strided_slice %648 {offsets = [0, 0], sizes = [2, 32], strides = [1, 1]} : vector<2x96xf32> to vector<2x32xf32>
    %650 = arith.truncf %649 : vector<2x32xf32> to vector<2x32xbf16>
    %cst_301 = arith.constant dense<0.000000e+00> : vector<2x32xf32>
    %651 = tpu.matmul %650, %5, %cst_301 {dimension_numbers = #tpu.dot_dimension_numbers<[1], [0], [0], [1], [0, 0, 1, 1], [], []>} : vector<2x32xbf16>, vector<32x32xbf16>, vector<2x32xf32> -> vector<2x32xf32>
    %652 = vector.broadcast %421 : vector<1x32xf32> to vector<2x32xf32>
    %653 = arith.mulf %649, %652 : vector<2x32xf32>
    %654 = vector.broadcast %422 : vector<1x32xf32> to vector<2x32xf32>
    %655 = arith.mulf %651, %654 : vector<2x32xf32>
    %656 = arith.addf %653, %655 : vector<2x32xf32>
    %657 = vector.extract_strided_slice %648 {offsets = [0, 32], sizes = [2, 32], strides = [1, 1]} : vector<2x96xf32> to vector<2x32xf32>
    %658 = arith.truncf %657 : vector<2x32xf32> to vector<2x32xbf16>
    %cst_302 = arith.constant dense<0.000000e+00> : vector<2x32xf32>
    %659 = tpu.matmul %658, %5, %cst_302 {dimension_numbers = #tpu.dot_dimension_numbers<[1], [0], [0], [1], [0, 0, 1, 1], [], []>} : vector<2x32xbf16>, vector<32x32xbf16>, vector<2x32xf32> -> vector<2x32xf32>
    %660 = vector.broadcast %421 : vector<1x32xf32> to vector<2x32xf32>
    %661 = arith.mulf %657, %660 : vector<2x32xf32>
    %662 = vector.broadcast %422 : vector<1x32xf32> to vector<2x32xf32>
    %663 = arith.mulf %659, %662 : vector<2x32xf32>
    %664 = arith.addf %661, %663 : vector<2x32xf32>
    %665 = vector.extract_strided_slice %648 {offsets = [0, 64], sizes = [2, 32], strides = [1, 1]} : vector<2x96xf32> to vector<2x32xf32>
    %666 = vector.extract_strided_slice %664 {offsets = [0, 0], sizes = [1, 32], strides = [1, 1]} : vector<2x32xf32> to vector<1x32xf32>
    %c1_303 = arith.constant 1 : index
    %c8_304 = arith.constant 8 : index
    %c0_305 = arith.constant 0 : index
    %667 = vector.load %arg23[%c1_303, %c8_304, %c0_305] : memref<2x24x32xf32, #tpu.memory_space<vmem>>, vector<1x1x32xf32>
    %668 = vector.shape_cast %667 : vector<1x1x32xf32> to vector<1x32xf32>
    %669 = vector.shape_cast %666 : vector<1x32xf32> to vector<1x1x32xf32>
    tpu.vector_store %arg23[%c1_303, %c8_304, %c0_305], %669 {strides = array<i32>} : memref<2x24x32xf32, #tpu.memory_space<vmem>>, vector<1x1x32xf32>,
    %670 = vector.extract_strided_slice %665 {offsets = [0, 0], sizes = [1, 32], strides = [1, 1]} : vector<2x32xf32> to vector<1x32xf32>
    %c1_306 = arith.constant 1 : index
    %c8_307 = arith.constant 8 : index
    %c0_308 = arith.constant 0 : index
    %671 = vector.load %arg24[%c1_306, %c8_307, %c0_308] : memref<2x24x32xf32, #tpu.memory_space<vmem>>, vector<1x1x32xf32>
    %672 = vector.shape_cast %671 : vector<1x1x32xf32> to vector<1x32xf32>
    %673 = vector.shape_cast %670 : vector<1x32xf32> to vector<1x1x32xf32>
    tpu.vector_store %arg24[%c1_306, %c8_307, %c0_308], %673 {strides = array<i32>} : memref<2x24x32xf32, #tpu.memory_space<vmem>>, vector<1x1x32xf32>,
    %674 = vector.extract_strided_slice %664 {offsets = [1, 0], sizes = [1, 32], strides = [1, 1]} : vector<2x32xf32> to vector<1x32xf32>
    %c1_309 = arith.constant 1 : index
    %c20_310 = arith.constant 20 : index
    %c0_311 = arith.constant 0 : index
    %675 = vector.load %arg23[%c1_309, %c20_310, %c0_311] : memref<2x24x32xf32, #tpu.memory_space<vmem>>, vector<1x1x32xf32>
    %676 = vector.shape_cast %675 : vector<1x1x32xf32> to vector<1x32xf32>
    %677 = vector.shape_cast %674 : vector<1x32xf32> to vector<1x1x32xf32>
    tpu.vector_store %arg23[%c1_309, %c20_310, %c0_311], %677 {strides = array<i32>} : memref<2x24x32xf32, #tpu.memory_space<vmem>>, vector<1x1x32xf32>,
    %678 = vector.extract_strided_slice %665 {offsets = [1, 0], sizes = [1, 32], strides = [1, 1]} : vector<2x32xf32> to vector<1x32xf32>
    %c1_312 = arith.constant 1 : index
    %c20_313 = arith.constant 20 : index
    %c0_314 = arith.constant 0 : index
    %679 = vector.load %arg24[%c1_312, %c20_313, %c0_314] : memref<2x24x32xf32, #tpu.memory_space<vmem>>, vector<1x1x32xf32>
    %680 = vector.shape_cast %679 : vector<1x1x32xf32> to vector<1x32xf32>
    %681 = vector.shape_cast %678 : vector<1x32xf32> to vector<1x1x32xf32>
    tpu.vector_store %arg24[%c1_312, %c20_313, %c0_314], %681 {strides = array<i32>} : memref<2x24x32xf32, #tpu.memory_space<vmem>>, vector<1x1x32xf32>,
    %c1_315 = arith.constant 1 : index
    %c0_316 = arith.constant 0 : index
    %c0_317 = arith.constant 0 : index
    %682 = vector.load %arg23[%c1_315, %c0_316, %c0_317] : memref<2x24x32xf32, #tpu.memory_space<vmem>>, vector<1x24x32xf32>
    %683 = vector.shape_cast %682 : vector<1x24x32xf32> to vector<24x32xf32>
    %c1_318 = arith.constant 1 : index
    %c0_319 = arith.constant 0 : index
    %c0_320 = arith.constant 0 : index
    %684 = vector.load %arg24[%c1_318, %c0_319, %c0_320] : memref<2x24x32xf32, #tpu.memory_space<vmem>>, vector<1x24x32xf32>
    %685 = vector.shape_cast %684 : vector<1x24x32xf32> to vector<24x32xf32>
    %686 = arith.truncf %656 : vector<2x32xf32> to vector<2x32xbf16>
    %687 = arith.truncf %683 : vector<24x32xf32> to vector<24x32xbf16>
    %688 = arith.truncf %685 : vector<24x32xf32> to vector<24x32xbf16>
    %689 = vector.extract_strided_slice %686 {offsets = [0, 0], sizes = [2, 8], strides = [1, 1]} : vector<2x32xbf16> to vector<2x8xbf16>
    %690 = vector.extract_strided_slice %687 {offsets = [0, 0], sizes = [24, 8], strides = [1, 1]} : vector<24x32xbf16> to vector<24x8xbf16>
    %cst_321 = arith.constant dense<0.000000e+00> : vector<2x24xf32>
    %691 = tpu.matmul %689, %690, %cst_321 {dimension_numbers = #tpu.dot_dimension_numbers<[1], [1], [0], [0], [0, 0, 1, 0], [], []>} : vector<2x8xbf16>, vector<24x8xbf16>, vector<2x24xf32> -> vector<2x24xf32>
    %cst_322 = arith.constant 0.353553385 : f32
    %692 = vector.broadcast %cst_322 : f32 to vector<2x24xf32>
    %693 = arith.mulf %691, %692 : vector<2x24xf32>
    %cst_323 = arith.constant -1.000000e+30 : f32
    %694 = vector.broadcast %cst_323 : f32 to vector<2x24xf32>
    %695 = arith.select %429, %693, %694 : vector<2x24xi1>, vector<2x24xf32>
    %cst_324 = arith.constant dense<0xFF800000> : vector<2xf32>
    %696 = vector.multi_reduction <maximumf>, %695, %cst_324 [1] : vector<2x24xf32> to vector<2xf32>
    %697 = vector.shape_cast %696 : vector<2xf32> to vector<2x1xf32>
    %698 = vector.broadcast %697 : vector<2x1xf32> to vector<2x24xf32>
    %699 = arith.subf %695, %698 : vector<2x24xf32>
    %700 = math.exp %699 : vector<2x24xf32>
    %cst_325 = arith.constant dense<0.000000e+00> : vector<2xf32>
    %701 = vector.multi_reduction <add>, %700, %cst_325 [1] : vector<2x24xf32> to vector<2xf32>
    %702 = vector.shape_cast %701 : vector<2xf32> to vector<2x1xf32>
    %703 = vector.broadcast %702 : vector<2x1xf32> to vector<2x24xf32>
    %704 = arith.divf %700, %703 : vector<2x24xf32>
    %705 = arith.truncf %704 : vector<2x24xf32> to vector<2x24xbf16>
    %706 = vector.extract_strided_slice %688 {offsets = [0, 0], sizes = [24, 8], strides = [1, 1]} : vector<24x32xbf16> to vector<24x8xbf16>
    %cst_326 = arith.constant dense<0.000000e+00> : vector<2x8xf32>
    %707 = tpu.matmul %705, %706, %cst_326 {dimension_numbers = #tpu.dot_dimension_numbers<[1], [0], [0], [1], [0, 0, 1, 1], [], []>} : vector<2x24xbf16>, vector<24x8xbf16>, vector<2x8xf32> -> vector<2x8xf32>
    %708 = vector.extract_strided_slice %686 {offsets = [0, 8], sizes = [2, 8], strides = [1, 1]} : vector<2x32xbf16> to vector<2x8xbf16>
    %709 = vector.extract_strided_slice %687 {offsets = [0, 8], sizes = [24, 8], strides = [1, 1]} : vector<24x32xbf16> to vector<24x8xbf16>
    %cst_327 = arith.constant dense<0.000000e+00> : vector<2x24xf32>
    %710 = tpu.matmul %708, %709, %cst_327 {dimension_numbers = #tpu.dot_dimension_numbers<[1], [1], [0], [0], [0, 0, 1, 0], [], []>} : vector<2x8xbf16>, vector<24x8xbf16>, vector<2x24xf32> -> vector<2x24xf32>
    %cst_328 = arith.constant 0.353553385 : f32
    %711 = vector.broadcast %cst_328 : f32 to vector<2x24xf32>
    %712 = arith.mulf %710, %711 : vector<2x24xf32>
    %cst_329 = arith.constant -1.000000e+30 : f32
    %713 = vector.broadcast %cst_329 : f32 to vector<2x24xf32>
    %714 = arith.select %429, %712, %713 : vector<2x24xi1>, vector<2x24xf32>
    %cst_330 = arith.constant dense<0xFF800000> : vector<2xf32>
    %715 = vector.multi_reduction <maximumf>, %714, %cst_330 [1] : vector<2x24xf32> to vector<2xf32>
    %716 = vector.shape_cast %715 : vector<2xf32> to vector<2x1xf32>
    %717 = vector.broadcast %716 : vector<2x1xf32> to vector<2x24xf32>
    %718 = arith.subf %714, %717 : vector<2x24xf32>
    %719 = math.exp %718 : vector<2x24xf32>
    %cst_331 = arith.constant dense<0.000000e+00> : vector<2xf32>
    %720 = vector.multi_reduction <add>, %719, %cst_331 [1] : vector<2x24xf32> to vector<2xf32>
    %721 = vector.shape_cast %720 : vector<2xf32> to vector<2x1xf32>
    %722 = vector.broadcast %721 : vector<2x1xf32> to vector<2x24xf32>
    %723 = arith.divf %719, %722 : vector<2x24xf32>
    %724 = arith.truncf %723 : vector<2x24xf32> to vector<2x24xbf16>
    %725 = vector.extract_strided_slice %688 {offsets = [0, 8], sizes = [24, 8], strides = [1, 1]} : vector<24x32xbf16> to vector<24x8xbf16>
    %cst_332 = arith.constant dense<0.000000e+00> : vector<2x8xf32>
    %726 = tpu.matmul %724, %725, %cst_332 {dimension_numbers = #tpu.dot_dimension_numbers<[1], [0], [0], [1], [0, 0, 1, 1], [], []>} : vector<2x24xbf16>, vector<24x8xbf16>, vector<2x8xf32> -> vector<2x8xf32>
    %727 = vector.extract_strided_slice %686 {offsets = [0, 16], sizes = [2, 8], strides = [1, 1]} : vector<2x32xbf16> to vector<2x8xbf16>
    %728 = vector.extract_strided_slice %687 {offsets = [0, 16], sizes = [24, 8], strides = [1, 1]} : vector<24x32xbf16> to vector<24x8xbf16>
    %cst_333 = arith.constant dense<0.000000e+00> : vector<2x24xf32>
    %729 = tpu.matmul %727, %728, %cst_333 {dimension_numbers = #tpu.dot_dimension_numbers<[1], [1], [0], [0], [0, 0, 1, 0], [], []>} : vector<2x8xbf16>, vector<24x8xbf16>, vector<2x24xf32> -> vector<2x24xf32>
    %cst_334 = arith.constant 0.353553385 : f32
    %730 = vector.broadcast %cst_334 : f32 to vector<2x24xf32>
    %731 = arith.mulf %729, %730 : vector<2x24xf32>
    %cst_335 = arith.constant -1.000000e+30 : f32
    %732 = vector.broadcast %cst_335 : f32 to vector<2x24xf32>
    %733 = arith.select %429, %731, %732 : vector<2x24xi1>, vector<2x24xf32>
    %cst_336 = arith.constant dense<0xFF800000> : vector<2xf32>
    %734 = vector.multi_reduction <maximumf>, %733, %cst_336 [1] : vector<2x24xf32> to vector<2xf32>
    %735 = vector.shape_cast %734 : vector<2xf32> to vector<2x1xf32>
    %736 = vector.broadcast %735 : vector<2x1xf32> to vector<2x24xf32>
    %737 = arith.subf %733, %736 : vector<2x24xf32>
    %738 = math.exp %737 : vector<2x24xf32>
    %cst_337 = arith.constant dense<0.000000e+00> : vector<2xf32>
    %739 = vector.multi_reduction <add>, %738, %cst_337 [1] : vector<2x24xf32> to vector<2xf32>
    %740 = vector.shape_cast %739 : vector<2xf32> to vector<2x1xf32>
    %741 = vector.broadcast %740 : vector<2x1xf32> to vector<2x24xf32>
    %742 = arith.divf %738, %741 : vector<2x24xf32>
    %743 = arith.truncf %742 : vector<2x24xf32> to vector<2x24xbf16>
    %744 = vector.extract_strided_slice %688 {offsets = [0, 16], sizes = [24, 8], strides = [1, 1]} : vector<24x32xbf16> to vector<24x8xbf16>
    %cst_338 = arith.constant dense<0.000000e+00> : vector<2x8xf32>
    %745 = tpu.matmul %743, %744, %cst_338 {dimension_numbers = #tpu.dot_dimension_numbers<[1], [0], [0], [1], [0, 0, 1, 1], [], []>} : vector<2x24xbf16>, vector<24x8xbf16>, vector<2x8xf32> -> vector<2x8xf32>
    %746 = vector.extract_strided_slice %686 {offsets = [0, 24], sizes = [2, 8], strides = [1, 1]} : vector<2x32xbf16> to vector<2x8xbf16>
    %747 = vector.extract_strided_slice %687 {offsets = [0, 24], sizes = [24, 8], strides = [1, 1]} : vector<24x32xbf16> to vector<24x8xbf16>
    %cst_339 = arith.constant dense<0.000000e+00> : vector<2x24xf32>
    %748 = tpu.matmul %746, %747, %cst_339 {dimension_numbers = #tpu.dot_dimension_numbers<[1], [1], [0], [0], [0, 0, 1, 0], [], []>} : vector<2x8xbf16>, vector<24x8xbf16>, vector<2x24xf32> -> vector<2x24xf32>
    %cst_340 = arith.constant 0.353553385 : f32
    %749 = vector.broadcast %cst_340 : f32 to vector<2x24xf32>
    %750 = arith.mulf %748, %749 : vector<2x24xf32>
    %cst_341 = arith.constant -1.000000e+30 : f32
    %751 = vector.broadcast %cst_341 : f32 to vector<2x24xf32>
    %752 = arith.select %429, %750, %751 : vector<2x24xi1>, vector<2x24xf32>
    %cst_342 = arith.constant dense<0xFF800000> : vector<2xf32>
    %753 = vector.multi_reduction <maximumf>, %752, %cst_342 [1] : vector<2x24xf32> to vector<2xf32>
    %754 = vector.shape_cast %753 : vector<2xf32> to vector<2x1xf32>
    %755 = vector.broadcast %754 : vector<2x1xf32> to vector<2x24xf32>
    %756 = arith.subf %752, %755 : vector<2x24xf32>
    %757 = math.exp %756 : vector<2x24xf32>
    %cst_343 = arith.constant dense<0.000000e+00> : vector<2xf32>
    %758 = vector.multi_reduction <add>, %757, %cst_343 [1] : vector<2x24xf32> to vector<2xf32>
    %759 = vector.shape_cast %758 : vector<2xf32> to vector<2x1xf32>
    %760 = vector.broadcast %759 : vector<2x1xf32> to vector<2x24xf32>
    %761 = arith.divf %757, %760 : vector<2x24xf32>
    %762 = arith.truncf %761 : vector<2x24xf32> to vector<2x24xbf16>
    %763 = vector.extract_strided_slice %688 {offsets = [0, 24], sizes = [24, 8], strides = [1, 1]} : vector<24x32xbf16> to vector<24x8xbf16>
    %cst_344 = arith.constant dense<0.000000e+00> : vector<2x8xf32>
    %764 = tpu.matmul %762, %763, %cst_344 {dimension_numbers = #tpu.dot_dimension_numbers<[1], [0], [0], [1], [0, 0, 1, 1], [], []>} : vector<2x24xbf16>, vector<24x8xbf16>, vector<2x8xf32> -> vector<2x8xf32>
    %765 = tpu.concatenate %707, %726, %745, %764 in 1 : vector<2x8xf32>, vector<2x8xf32>, vector<2x8xf32>, vector<2x8xf32> -> vector<2x32xf32>
    %766 = arith.truncf %765 : vector<2x32xf32> to vector<2x32xbf16>
    %c1_345 = arith.constant 1 : index
    %c0_346 = arith.constant 0 : index
    %c0_347 = arith.constant 0 : index
    %767 = vector.load %arg6[%c1_345, %c0_346, %c0_347] : memref<2x32x32xbf16, #tpu.memory_space<vmem>>, vector<1x32x32xbf16>
    %768 = vector.shape_cast %767 : vector<1x32x32xbf16> to vector<32x32xbf16>
    %cst_348 = arith.constant dense<0.000000e+00> : vector<2x32xf32>
    %769 = tpu.matmul %766, %768, %cst_348 {dimension_numbers = #tpu.dot_dimension_numbers<[1], [0], [0], [1], [0, 0, 1, 1], [], []>} : vector<2x32xbf16>, vector<32x32xbf16>, vector<2x32xf32> -> vector<2x32xf32>
    %c1_349 = arith.constant 1 : index
    %c0_350 = arith.constant 0 : index
    %c0_351 = arith.constant 0 : index
    %770 = vector.load %arg7[%c1_349, %c0_350, %c0_351] : memref<2x32x128xbf16, #tpu.memory_space<vmem>>, vector<1x32x128xbf16>
    %771 = vector.shape_cast %770 : vector<1x32x128xbf16> to vector<32x128xbf16>
    %cst_352 = arith.constant dense<0.000000e+00> : vector<2x128xf32>
    %772 = tpu.matmul %641, %771, %cst_352 {dimension_numbers = #tpu.dot_dimension_numbers<[1], [0], [0], [1], [0, 0, 1, 1], [], []>} : vector<2x32xbf16>, vector<32x128xbf16>, vector<2x128xf32> -> vector<2x128xf32>
    %c1_353 = arith.constant 1 : index
    %c0_354 = arith.constant 0 : index
    %c0_355 = arith.constant 0 : index
    %773 = vector.load %arg8[%c1_353, %c0_354, %c0_355] : memref<2x1x128xf32, #tpu.memory_space<vmem>>, vector<1x1x128xf32>
    %774 = vector.shape_cast %773 : vector<1x1x128xf32> to vector<1x128xf32>
    %775 = vector.broadcast %774 : vector<1x128xf32> to vector<2x128xf32>
    %776 = arith.addf %772, %775 : vector<2x128xf32>
    %cst_356 = arith.constant 5.000000e-01 : f32
    %777 = vector.broadcast %cst_356 : f32 to vector<2x128xf32>
    %778 = arith.mulf %777, %776 : vector<2x128xf32>
    %cst_357 = arith.constant 4.471500e-02 : f32
    %779 = vector.broadcast %cst_357 : f32 to vector<2x128xf32>
    %780 = arith.mulf %779, %776 : vector<2x128xf32>
    %781 = arith.mulf %780, %776 : vector<2x128xf32>
    %782 = arith.mulf %781, %776 : vector<2x128xf32>
    %783 = arith.addf %776, %782 : vector<2x128xf32>
    %cst_358 = arith.constant 0.797884583 : f32
    %784 = vector.broadcast %cst_358 : f32 to vector<2x128xf32>
    %785 = arith.mulf %784, %783 : vector<2x128xf32>
    %786 = math.tanh %785 : vector<2x128xf32>
    %cst_359 = arith.constant 1.000000e+00 : f32
    %787 = vector.broadcast %cst_359 : f32 to vector<2x128xf32>
    %788 = arith.addf %787, %786 : vector<2x128xf32>
    %789 = arith.mulf %778, %788 : vector<2x128xf32>
    %790 = arith.truncf %789 : vector<2x128xf32> to vector<2x128xbf16>
    %c1_360 = arith.constant 1 : index
    %c0_361 = arith.constant 0 : index
    %c0_362 = arith.constant 0 : index
    %791 = vector.load %arg9[%c1_360, %c0_361, %c0_362] : memref<2x128x32xbf16, #tpu.memory_space<vmem>>, vector<1x128x32xbf16>
    %792 = vector.shape_cast %791 : vector<1x128x32xbf16> to vector<128x32xbf16>
    %cst_363 = arith.constant dense<0.000000e+00> : vector<2x32xf32>
    %793 = tpu.matmul %790, %792, %cst_363 {dimension_numbers = #tpu.dot_dimension_numbers<[1], [0], [0], [1], [0, 0, 1, 1], [], []>} : vector<2x128xbf16>, vector<128x32xbf16>, vector<2x32xf32> -> vector<2x32xf32>
    %c1_364 = arith.constant 1 : index
    %c0_365 = arith.constant 0 : index
    %c0_366 = arith.constant 0 : index
    %794 = vector.load %arg10[%c1_364, %c0_365, %c0_366] : memref<2x1x32xf32, #tpu.memory_space<vmem>>, vector<1x1x32xf32>
    %795 = vector.shape_cast %794 : vector<1x1x32xf32> to vector<1x32xf32>
    %796 = vector.broadcast %795 : vector<1x32xf32> to vector<2x32xf32>
    %797 = arith.addf %793, %796 : vector<2x32xf32>
    %798 = arith.addf %614, %769 : vector<2x32xf32>
    %799 = arith.addf %798, %797 : vector<2x32xf32>
    %c0_367 = arith.constant 0 : index
    %c0_368 = arith.constant 0 : index
    %800 = vector.load %arg18[%c0_367, %c0_368] : memref<1x32xf32, #tpu.memory_space<vmem>>, vector<1x32xf32>
    %c0_369 = arith.constant 0 : index
    %c0_370 = arith.constant 0 : index
    %801 = vector.load %arg19[%c0_369, %c0_370] : memref<1x32xf32, #tpu.memory_space<vmem>>, vector<1x32xf32>
    %cst_371 = arith.constant dense<0.000000e+00> : vector<2xf32>
    %802 = vector.multi_reduction <add>, %799, %cst_371 [1] : vector<2x32xf32> to vector<2xf32>
    %803 = vector.shape_cast %802 : vector<2xf32> to vector<2x1xf32>
    %cst_372 = arith.constant 3.200000e+01 : f32
    %804 = vector.broadcast %cst_372 : f32 to vector<2x1xf32>
    %805 = arith.divf %803, %804 : vector<2x1xf32>
    %806 = vector.broadcast %805 : vector<2x1xf32> to vector<2x32xf32>
    %807 = arith.subf %799, %806 : vector<2x32xf32>
    %808 = arith.mulf %807, %807 : vector<2x32xf32>
    %cst_373 = arith.constant dense<0.000000e+00> : vector<2xf32>
    %809 = vector.multi_reduction <add>, %808, %cst_373 [1] : vector<2x32xf32> to vector<2xf32>
    %810 = vector.shape_cast %809 : vector<2xf32> to vector<2x1xf32>
    %cst_374 = arith.constant 3.200000e+01 : f32
    %811 = vector.broadcast %cst_374 : f32 to vector<2x1xf32>
    %812 = arith.divf %810, %811 : vector<2x1xf32>
    %813 = vector.broadcast %805 : vector<2x1xf32> to vector<2x32xf32>
    %814 = arith.subf %799, %813 : vector<2x32xf32>
    %cst_375 = arith.constant 9.99999974E-6 : f32
    %815 = vector.broadcast %cst_375 : f32 to vector<2x1xf32>
    %816 = arith.addf %812, %815 : vector<2x1xf32>
    %817 = math.rsqrt %816 : vector<2x1xf32>
    %818 = vector.broadcast %817 : vector<2x1xf32> to vector<2x32xf32>
    %819 = arith.mulf %814, %818 : vector<2x32xf32>
    %820 = vector.broadcast %800 : vector<1x32xf32> to vector<2x32xf32>
    %821 = arith.mulf %819, %820 : vector<2x32xf32>
    %822 = vector.broadcast %801 : vector<1x32xf32> to vector<2x32xf32>
    %823 = arith.addf %821, %822 : vector<2x32xf32>
    %824 = arith.truncf %823 : vector<2x32xf32> to vector<2x32xbf16>
    %c0_376 = arith.constant 0 : index
    %c0_377 = arith.constant 0 : index
    %825 = vector.load %arg20[%c0_376, %c0_377] : memref<32x128xbf16, #tpu.memory_space<vmem>>, vector<32x128xbf16>
    %cst_378 = arith.constant dense<0.000000e+00> : vector<2x128xf32>
    %826 = tpu.matmul %824, %825, %cst_378 {dimension_numbers = #tpu.dot_dimension_numbers<[1], [0], [0], [1], [0, 0, 1, 1], [], []>} : vector<2x32xbf16>, vector<32x128xbf16>, vector<2x128xf32> -> vector<2x128xf32>
    %c0_379 = arith.constant 0 : index
    %c0_380 = arith.constant 0 : index
    %827 = vector.load %arg21[%c0_379, %c0_380] : memref<1x128xf32, #tpu.memory_space<vmem>>, vector<1x128xf32>
    %828 = vector.broadcast %827 : vector<1x128xf32> to vector<2x128xf32>
    %829 = arith.addf %826, %828 : vector<2x128xf32>
    %cst_381 = arith.constant dense<0xFF800000> : vector<2xf32>
    %830 = vector.multi_reduction <maximumf>, %829, %cst_381 [1] : vector<2x128xf32> to vector<2xf32>
    %831 = vector.shape_cast %830 : vector<2xf32> to vector<2x1xf32>
    %832 = tpu.iota {dimensions = array<i32: 1>} : vector<2x128xi32>
    %833 = arith.sitofp %832 : vector<2x128xi32> to vector<2x128xf32>
    %834 = vector.broadcast %831 : vector<2x1xf32> to vector<2x128xf32>
    %835 = arith.cmpf oeq, %829, %834 : vector<2x128xf32>
    %cst_382 = arith.constant 1.280000e+02 : f32
    %836 = vector.broadcast %cst_382 : f32 to vector<2x128xf32>
    %837 = arith.select %835, %833, %836 : vector<2x128xi1>, vector<2x128xf32>
    %cst_383 = arith.constant dense<0x7F800000> : vector<2xf32>
    %838 = vector.multi_reduction <minimumf>, %837, %cst_383 [1] : vector<2x128xf32> to vector<2xf32>
    %839 = vector.shape_cast %838 : vector<2xf32> to vector<2x1xf32>
    %840 = arith.fptosi %839 : vector<2x1xf32> to vector<2x1xi32>
    %c0_384 = arith.constant 0 : index
    %c1_385 = arith.constant 1 : index
    %841 = vector.load %arg22[%c0_384, %c1_385] : memref<2x4xi32, #tpu.memory_space<vmem>>, vector<2x1xi32>
    tpu.vector_store %arg22[%c0_384, %c1_385], %840 {strides = array<i32>} : memref<2x4xi32, #tpu.memory_space<vmem>>, vector<2x1xi32>,
    %842 = tpu.iota {dimensions = array<i32: 1>} : vector<2x128xi32>
    %843 = vector.broadcast %840 : vector<2x1xi32> to vector<2x128xi32>
    %844 = arith.cmpi eq, %843, %842 : vector<2x128xi32>
    %cst_386 = arith.constant 1.000000e+00 : f32
    %cst_387 = arith.constant 0.000000e+00 : f32
    %845 = vector.broadcast %cst_386 : f32 to vector<2x128xf32>
    %846 = vector.broadcast %cst_387 : f32 to vector<2x128xf32>
    %847 = arith.select %844, %845, %846 : vector<2x128xi1>, vector<2x128xf32>
    %848 = arith.truncf %847 : vector<2x128xf32> to vector<2x128xbf16>
    %cst_388 = arith.constant dense<0.000000e+00> : vector<2x32xf32>
    %849 = tpu.matmul %848, %4, %cst_388 {dimension_numbers = #tpu.dot_dimension_numbers<[1], [0], [0], [1], [0, 0, 1, 1], [], []>} : vector<2x128xbf16>, vector<128x32xbf16>, vector<2x32xf32> -> vector<2x32xf32>
    %c9 = arith.constant 9 : index
    %c0_389 = arith.constant 0 : index
    %850 = vector.load %arg13[%c9, %c0_389] : memref<12x32xf32, #tpu.memory_space<vmem>>, vector<1x32xf32>
    %c9_390 = arith.constant 9 : index
    %c0_391 = arith.constant 0 : index
    %851 = vector.load %arg14[%c9_390, %c0_391] : memref<12x32xf32, #tpu.memory_space<vmem>>, vector<1x32xf32>
    %852 = tpu.iota {dimensions = array<i32: 0>} : vector<2x24xi32>
    %853 = vector.broadcast %6 : vector<1x24xi32> to vector<2x24xi32>
    %854 = arith.cmpi eq, %853, %852 : vector<2x24xi32>
    %c9_i32 = arith.constant 9 : i32
    %855 = vector.broadcast %c9_i32 : i32 to vector<1x24xi32>
    %856 = arith.cmpi sle, %7, %855 : vector<1x24xi32>
    %857 = vector.broadcast %856 : vector<1x24xi1> to vector<2x24xi1>
    %858 = arith.andi %854, %857 : vector<2x24xi1>
    %c0_392 = arith.constant 0 : index
    %c0_393 = arith.constant 0 : index
    %c0_394 = arith.constant 0 : index
    %859 = vector.load %arg2[%c0_392, %c0_393, %c0_394] : memref<2x1x32xf32, #tpu.memory_space<vmem>>, vector<1x1x32xf32>
    %860 = vector.shape_cast %859 : vector<1x1x32xf32> to vector<1x32xf32>
    %c0_395 = arith.constant 0 : index
    %c0_396 = arith.constant 0 : index
    %c0_397 = arith.constant 0 : index
    %861 = vector.load %arg3[%c0_395, %c0_396, %c0_397] : memref<2x1x32xf32, #tpu.memory_space<vmem>>, vector<1x1x32xf32>
    %862 = vector.shape_cast %861 : vector<1x1x32xf32> to vector<1x32xf32>
    %cst_398 = arith.constant dense<0.000000e+00> : vector<2xf32>
    %863 = vector.multi_reduction <add>, %849, %cst_398 [1] : vector<2x32xf32> to vector<2xf32>
    %864 = vector.shape_cast %863 : vector<2xf32> to vector<2x1xf32>
    %cst_399 = arith.constant 3.200000e+01 : f32
    %865 = vector.broadcast %cst_399 : f32 to vector<2x1xf32>
    %866 = arith.divf %864, %865 : vector<2x1xf32>
    %867 = vector.broadcast %866 : vector<2x1xf32> to vector<2x32xf32>
    %868 = arith.subf %849, %867 : vector<2x32xf32>
    %869 = arith.mulf %868, %868 : vector<2x32xf32>
    %cst_400 = arith.constant dense<0.000000e+00> : vector<2xf32>
    %870 = vector.multi_reduction <add>, %869, %cst_400 [1] : vector<2x32xf32> to vector<2xf32>
    %871 = vector.shape_cast %870 : vector<2xf32> to vector<2x1xf32>
    %cst_401 = arith.constant 3.200000e+01 : f32
    %872 = vector.broadcast %cst_401 : f32 to vector<2x1xf32>
    %873 = arith.divf %871, %872 : vector<2x1xf32>
    %874 = vector.broadcast %866 : vector<2x1xf32> to vector<2x32xf32>
    %875 = arith.subf %849, %874 : vector<2x32xf32>
    %cst_402 = arith.constant 9.99999974E-6 : f32
    %876 = vector.broadcast %cst_402 : f32 to vector<2x1xf32>
    %877 = arith.addf %873, %876 : vector<2x1xf32>
    %878 = math.rsqrt %877 : vector<2x1xf32>
    %879 = vector.broadcast %878 : vector<2x1xf32> to vector<2x32xf32>
    %880 = arith.mulf %875, %879 : vector<2x32xf32>
    %881 = vector.broadcast %860 : vector<1x32xf32> to vector<2x32xf32>
    %882 = arith.mulf %880, %881 : vector<2x32xf32>
    %883 = vector.broadcast %862 : vector<1x32xf32> to vector<2x32xf32>
    %884 = arith.addf %882, %883 : vector<2x32xf32>
    %885 = arith.truncf %884 : vector<2x32xf32> to vector<2x32xbf16>
    %c0_403 = arith.constant 0 : index
    %c0_404 = arith.constant 0 : index
    %c0_405 = arith.constant 0 : index
    %886 = vector.load %arg4[%c0_403, %c0_404, %c0_405] : memref<2x32x96xbf16, #tpu.memory_space<vmem>>, vector<1x32x96xbf16>
    %887 = vector.shape_cast %886 : vector<1x32x96xbf16> to vector<32x96xbf16>
    %cst_406 = arith.constant dense<0.000000e+00> : vector<2x96xf32>
    %888 = tpu.matmul %885, %887, %cst_406 {dimension_numbers = #tpu.dot_dimension_numbers<[1], [0], [0], [1], [0, 0, 1, 1], [], []>} : vector<2x32xbf16>, vector<32x96xbf16>, vector<2x96xf32> -> vector<2x96xf32>
    %c0_407 = arith.constant 0 : index
    %c0_408 = arith.constant 0 : index
    %c0_409 = arith.constant 0 : index
    %889 = vector.load %arg5[%c0_407, %c0_408, %c0_409] : memref<2x1x96xf32, #tpu.memory_space<vmem>>, vector<1x1x96xf32>
    %890 = vector.shape_cast %889 : vector<1x1x96xf32> to vector<1x96xf32>
    %891 = vector.broadcast %890 : vector<1x96xf32> to vector<2x96xf32>
    %892 = arith.addf %888, %891 : vector<2x96xf32>
    %893 = vector.extract_strided_slice %892 {offsets = [0, 0], sizes = [2, 32], strides = [1, 1]} : vector<2x96xf32> to vector<2x32xf32>
    %894 = arith.truncf %893 : vector<2x32xf32> to vector<2x32xbf16>
    %cst_410 = arith.constant dense<0.000000e+00> : vector<2x32xf32>
    %895 = tpu.matmul %894, %5, %cst_410 {dimension_numbers = #tpu.dot_dimension_numbers<[1], [0], [0], [1], [0, 0, 1, 1], [], []>} : vector<2x32xbf16>, vector<32x32xbf16>, vector<2x32xf32> -> vector<2x32xf32>
    %896 = vector.broadcast %850 : vector<1x32xf32> to vector<2x32xf32>
    %897 = arith.mulf %893, %896 : vector<2x32xf32>
    %898 = vector.broadcast %851 : vector<1x32xf32> to vector<2x32xf32>
    %899 = arith.mulf %895, %898 : vector<2x32xf32>
    %900 = arith.addf %897, %899 : vector<2x32xf32>
    %901 = vector.extract_strided_slice %892 {offsets = [0, 32], sizes = [2, 32], strides = [1, 1]} : vector<2x96xf32> to vector<2x32xf32>
    %902 = arith.truncf %901 : vector<2x32xf32> to vector<2x32xbf16>
    %cst_411 = arith.constant dense<0.000000e+00> : vector<2x32xf32>
    %903 = tpu.matmul %902, %5, %cst_411 {dimension_numbers = #tpu.dot_dimension_numbers<[1], [0], [0], [1], [0, 0, 1, 1], [], []>} : vector<2x32xbf16>, vector<32x32xbf16>, vector<2x32xf32> -> vector<2x32xf32>
    %904 = vector.broadcast %850 : vector<1x32xf32> to vector<2x32xf32>
    %905 = arith.mulf %901, %904 : vector<2x32xf32>
    %906 = vector.broadcast %851 : vector<1x32xf32> to vector<2x32xf32>
    %907 = arith.mulf %903, %906 : vector<2x32xf32>
    %908 = arith.addf %905, %907 : vector<2x32xf32>
    %909 = vector.extract_strided_slice %892 {offsets = [0, 64], sizes = [2, 32], strides = [1, 1]} : vector<2x96xf32> to vector<2x32xf32>
    %910 = vector.extract_strided_slice %908 {offsets = [0, 0], sizes = [1, 32], strides = [1, 1]} : vector<2x32xf32> to vector<1x32xf32>
    %c0_412 = arith.constant 0 : index
    %c9_413 = arith.constant 9 : index
    %c0_414 = arith.constant 0 : index
    %911 = vector.load %arg23[%c0_412, %c9_413, %c0_414] : memref<2x24x32xf32, #tpu.memory_space<vmem>>, vector<1x1x32xf32>
    %912 = vector.shape_cast %911 : vector<1x1x32xf32> to vector<1x32xf32>
    %913 = vector.shape_cast %910 : vector<1x32xf32> to vector<1x1x32xf32>
    tpu.vector_store %arg23[%c0_412, %c9_413, %c0_414], %913 {strides = array<i32>} : memref<2x24x32xf32, #tpu.memory_space<vmem>>, vector<1x1x32xf32>,
    %914 = vector.extract_strided_slice %909 {offsets = [0, 0], sizes = [1, 32], strides = [1, 1]} : vector<2x32xf32> to vector<1x32xf32>
    %c0_415 = arith.constant 0 : index
    %c9_416 = arith.constant 9 : index
    %c0_417 = arith.constant 0 : index
    %915 = vector.load %arg24[%c0_415, %c9_416, %c0_417] : memref<2x24x32xf32, #tpu.memory_space<vmem>>, vector<1x1x32xf32>
    %916 = vector.shape_cast %915 : vector<1x1x32xf32> to vector<1x32xf32>
    %917 = vector.shape_cast %914 : vector<1x32xf32> to vector<1x1x32xf32>
    tpu.vector_store %arg24[%c0_415, %c9_416, %c0_417], %917 {strides = array<i32>} : memref<2x24x32xf32, #tpu.memory_space<vmem>>, vector<1x1x32xf32>,
    %918 = vector.extract_strided_slice %908 {offsets = [1, 0], sizes = [1, 32], strides = [1, 1]} : vector<2x32xf32> to vector<1x32xf32>
    %c0_418 = arith.constant 0 : index
    %c21 = arith.constant 21 : index
    %c0_419 = arith.constant 0 : index
    %919 = vector.load %arg23[%c0_418, %c21, %c0_419] : memref<2x24x32xf32, #tpu.memory_space<vmem>>, vector<1x1x32xf32>
    %920 = vector.shape_cast %919 : vector<1x1x32xf32> to vector<1x32xf32>
    %921 = vector.shape_cast %918 : vector<1x32xf32> to vector<1x1x32xf32>
    tpu.vector_store %arg23[%c0_418, %c21, %c0_419], %921 {strides = array<i32>} : memref<2x24x32xf32, #tpu.memory_space<vmem>>, vector<1x1x32xf32>,
    %922 = vector.extract_strided_slice %909 {offsets = [1, 0], sizes = [1, 32], strides = [1, 1]} : vector<2x32xf32> to vector<1x32xf32>
    %c0_420 = arith.constant 0 : index
    %c21_421 = arith.constant 21 : index
    %c0_422 = arith.constant 0 : index
    %923 = vector.load %arg24[%c0_420, %c21_421, %c0_422] : memref<2x24x32xf32, #tpu.memory_space<vmem>>, vector<1x1x32xf32>
    %924 = vector.shape_cast %923 : vector<1x1x32xf32> to vector<1x32xf32>
    %925 = vector.shape_cast %922 : vector<1x32xf32> to vector<1x1x32xf32>
    tpu.vector_store %arg24[%c0_420, %c21_421, %c0_422], %925 {strides = array<i32>} : memref<2x24x32xf32, #tpu.memory_space<vmem>>, vector<1x1x32xf32>,
    %c0_423 = arith.constant 0 : index
    %c0_424 = arith.constant 0 : index
    %c0_425 = arith.constant 0 : index
    %926 = vector.load %arg23[%c0_423, %c0_424, %c0_425] : memref<2x24x32xf32, #tpu.memory_space<vmem>>, vector<1x24x32xf32>
    %927 = vector.shape_cast %926 : vector<1x24x32xf32> to vector<24x32xf32>
    %c0_426 = arith.constant 0 : index
    %c0_427 = arith.constant 0 : index
    %c0_428 = arith.constant 0 : index
    %928 = vector.load %arg24[%c0_426, %c0_427, %c0_428] : memref<2x24x32xf32, #tpu.memory_space<vmem>>, vector<1x24x32xf32>
    %929 = vector.shape_cast %928 : vector<1x24x32xf32> to vector<24x32xf32>
    %930 = arith.truncf %900 : vector<2x32xf32> to vector<2x32xbf16>
    %931 = arith.truncf %927 : vector<24x32xf32> to vector<24x32xbf16>
    %932 = arith.truncf %929 : vector<24x32xf32> to vector<24x32xbf16>
    %933 = vector.extract_strided_slice %930 {offsets = [0, 0], sizes = [2, 8], strides = [1, 1]} : vector<2x32xbf16> to vector<2x8xbf16>
    %934 = vector.extract_strided_slice %931 {offsets = [0, 0], sizes = [24, 8], strides = [1, 1]} : vector<24x32xbf16> to vector<24x8xbf16>
    %cst_429 = arith.constant dense<0.000000e+00> : vector<2x24xf32>
    %935 = tpu.matmul %933, %934, %cst_429 {dimension_numbers = #tpu.dot_dimension_numbers<[1], [1], [0], [0], [0, 0, 1, 0], [], []>} : vector<2x8xbf16>, vector<24x8xbf16>, vector<2x24xf32> -> vector<2x24xf32>
    %cst_430 = arith.constant 0.353553385 : f32
    %936 = vector.broadcast %cst_430 : f32 to vector<2x24xf32>
    %937 = arith.mulf %935, %936 : vector<2x24xf32>
    %cst_431 = arith.constant -1.000000e+30 : f32
    %938 = vector.broadcast %cst_431 : f32 to vector<2x24xf32>
    %939 = arith.select %858, %937, %938 : vector<2x24xi1>, vector<2x24xf32>
    %cst_432 = arith.constant dense<0xFF800000> : vector<2xf32>
    %940 = vector.multi_reduction <maximumf>, %939, %cst_432 [1] : vector<2x24xf32> to vector<2xf32>
    %941 = vector.shape_cast %940 : vector<2xf32> to vector<2x1xf32>
    %942 = vector.broadcast %941 : vector<2x1xf32> to vector<2x24xf32>
    %943 = arith.subf %939, %942 : vector<2x24xf32>
    %944 = math.exp %943 : vector<2x24xf32>
    %cst_433 = arith.constant dense<0.000000e+00> : vector<2xf32>
    %945 = vector.multi_reduction <add>, %944, %cst_433 [1] : vector<2x24xf32> to vector<2xf32>
    %946 = vector.shape_cast %945 : vector<2xf32> to vector<2x1xf32>
    %947 = vector.broadcast %946 : vector<2x1xf32> to vector<2x24xf32>
    %948 = arith.divf %944, %947 : vector<2x24xf32>
    %949 = arith.truncf %948 : vector<2x24xf32> to vector<2x24xbf16>
    %950 = vector.extract_strided_slice %932 {offsets = [0, 0], sizes = [24, 8], strides = [1, 1]} : vector<24x32xbf16> to vector<24x8xbf16>
    %cst_434 = arith.constant dense<0.000000e+00> : vector<2x8xf32>
    %951 = tpu.matmul %949, %950, %cst_434 {dimension_numbers = #tpu.dot_dimension_numbers<[1], [0], [0], [1], [0, 0, 1, 1], [], []>} : vector<2x24xbf16>, vector<24x8xbf16>, vector<2x8xf32> -> vector<2x8xf32>
    %952 = vector.extract_strided_slice %930 {offsets = [0, 8], sizes = [2, 8], strides = [1, 1]} : vector<2x32xbf16> to vector<2x8xbf16>
    %953 = vector.extract_strided_slice %931 {offsets = [0, 8], sizes = [24, 8], strides = [1, 1]} : vector<24x32xbf16> to vector<24x8xbf16>
    %cst_435 = arith.constant dense<0.000000e+00> : vector<2x24xf32>
    %954 = tpu.matmul %952, %953, %cst_435 {dimension_numbers = #tpu.dot_dimension_numbers<[1], [1], [0], [0], [0, 0, 1, 0], [], []>} : vector<2x8xbf16>, vector<24x8xbf16>, vector<2x24xf32> -> vector<2x24xf32>
    %cst_436 = arith.constant 0.353553385 : f32
    %955 = vector.broadcast %cst_436 : f32 to vector<2x24xf32>
    %956 = arith.mulf %954, %955 : vector<2x24xf32>
    %cst_437 = arith.constant -1.000000e+30 : f32
    %957 = vector.broadcast %cst_437 : f32 to vector<2x24xf32>
    %958 = arith.select %858, %956, %957 : vector<2x24xi1>, vector<2x24xf32>
    %cst_438 = arith.constant dense<0xFF800000> : vector<2xf32>
    %959 = vector.multi_reduction <maximumf>, %958, %cst_438 [1] : vector<2x24xf32> to vector<2xf32>
    %960 = vector.shape_cast %959 : vector<2xf32> to vector<2x1xf32>
    %961 = vector.broadcast %960 : vector<2x1xf32> to vector<2x24xf32>
    %962 = arith.subf %958, %961 : vector<2x24xf32>
    %963 = math.exp %962 : vector<2x24xf32>
    %cst_439 = arith.constant dense<0.000000e+00> : vector<2xf32>
    %964 = vector.multi_reduction <add>, %963, %cst_439 [1] : vector<2x24xf32> to vector<2xf32>
    %965 = vector.shape_cast %964 : vector<2xf32> to vector<2x1xf32>
    %966 = vector.broadcast %965 : vector<2x1xf32> to vector<2x24xf32>
    %967 = arith.divf %963, %966 : vector<2x24xf32>
    %968 = arith.truncf %967 : vector<2x24xf32> to vector<2x24xbf16>
    %969 = vector.extract_strided_slice %932 {offsets = [0, 8], sizes = [24, 8], strides = [1, 1]} : vector<24x32xbf16> to vector<24x8xbf16>
    %cst_440 = arith.constant dense<0.000000e+00> : vector<2x8xf32>
    %970 = tpu.matmul %968, %969, %cst_440 {dimension_numbers = #tpu.dot_dimension_numbers<[1], [0], [0], [1], [0, 0, 1, 1], [], []>} : vector<2x24xbf16>, vector<24x8xbf16>, vector<2x8xf32> -> vector<2x8xf32>
    %971 = vector.extract_strided_slice %930 {offsets = [0, 16], sizes = [2, 8], strides = [1, 1]} : vector<2x32xbf16> to vector<2x8xbf16>
    %972 = vector.extract_strided_slice %931 {offsets = [0, 16], sizes = [24, 8], strides = [1, 1]} : vector<24x32xbf16> to vector<24x8xbf16>
    %cst_441 = arith.constant dense<0.000000e+00> : vector<2x24xf32>
    %973 = tpu.matmul %971, %972, %cst_441 {dimension_numbers = #tpu.dot_dimension_numbers<[1], [1], [0], [0], [0, 0, 1, 0], [], []>} : vector<2x8xbf16>, vector<24x8xbf16>, vector<2x24xf32> -> vector<2x24xf32>
    %cst_442 = arith.constant 0.353553385 : f32
    %974 = vector.broadcast %cst_442 : f32 to vector<2x24xf32>
    %975 = arith.mulf %973, %974 : vector<2x24xf32>
    %cst_443 = arith.constant -1.000000e+30 : f32
    %976 = vector.broadcast %cst_443 : f32 to vector<2x24xf32>
    %977 = arith.select %858, %975, %976 : vector<2x24xi1>, vector<2x24xf32>
    %cst_444 = arith.constant dense<0xFF800000> : vector<2xf32>
    %978 = vector.multi_reduction <maximumf>, %977, %cst_444 [1] : vector<2x24xf32> to vector<2xf32>
    %979 = vector.shape_cast %978 : vector<2xf32> to vector<2x1xf32>
    %980 = vector.broadcast %979 : vector<2x1xf32> to vector<2x24xf32>
    %981 = arith.subf %977, %980 : vector<2x24xf32>
    %982 = math.exp %981 : vector<2x24xf32>
    %cst_445 = arith.constant dense<0.000000e+00> : vector<2xf32>
    %983 = vector.multi_reduction <add>, %982, %cst_445 [1] : vector<2x24xf32> to vector<2xf32>
    %984 = vector.shape_cast %983 : vector<2xf32> to vector<2x1xf32>
    %985 = vector.broadcast %984 : vector<2x1xf32> to vector<2x24xf32>
    %986 = arith.divf %982, %985 : vector<2x24xf32>
    %987 = arith.truncf %986 : vector<2x24xf32> to vector<2x24xbf16>
    %988 = vector.extract_strided_slice %932 {offsets = [0, 16], sizes = [24, 8], strides = [1, 1]} : vector<24x32xbf16> to vector<24x8xbf16>
    %cst_446 = arith.constant dense<0.000000e+00> : vector<2x8xf32>
    %989 = tpu.matmul %987, %988, %cst_446 {dimension_numbers = #tpu.dot_dimension_numbers<[1], [0], [0], [1], [0, 0, 1, 1], [], []>} : vector<2x24xbf16>, vector<24x8xbf16>, vector<2x8xf32> -> vector<2x8xf32>
    %990 = vector.extract_strided_slice %930 {offsets = [0, 24], sizes = [2, 8], strides = [1, 1]} : vector<2x32xbf16> to vector<2x8xbf16>
    %991 = vector.extract_strided_slice %931 {offsets = [0, 24], sizes = [24, 8], strides = [1, 1]} : vector<24x32xbf16> to vector<24x8xbf16>
    %cst_447 = arith.constant dense<0.000000e+00> : vector<2x24xf32>
    %992 = tpu.matmul %990, %991, %cst_447 {dimension_numbers = #tpu.dot_dimension_numbers<[1], [1], [0], [0], [0, 0, 1, 0], [], []>} : vector<2x8xbf16>, vector<24x8xbf16>, vector<2x24xf32> -> vector<2x24xf32>
    %cst_448 = arith.constant 0.353553385 : f32
    %993 = vector.broadcast %cst_448 : f32 to vector<2x24xf32>
    %994 = arith.mulf %992, %993 : vector<2x24xf32>
    %cst_449 = arith.constant -1.000000e+30 : f32
    %995 = vector.broadcast %cst_449 : f32 to vector<2x24xf32>
    %996 = arith.select %858, %994, %995 : vector<2x24xi1>, vector<2x24xf32>
    %cst_450 = arith.constant dense<0xFF800000> : vector<2xf32>
    %997 = vector.multi_reduction <maximumf>, %996, %cst_450 [1] : vector<2x24xf32> to vector<2xf32>
    %998 = vector.shape_cast %997 : vector<2xf32> to vector<2x1xf32>
    %999 = vector.broadcast %998 : vector<2x1xf32> to vector<2x24xf32>
    %1000 = arith.subf %996, %999 : vector<2x24xf32>
    %1001 = math.exp %1000 : vector<2x24xf32>
    %cst_451 = arith.constant dense<0.000000e+00> : vector<2xf32>
    %1002 = vector.multi_reduction <add>, %1001, %cst_451 [1] : vector<2x24xf32> to vector<2xf32>
    %1003 = vector.shape_cast %1002 : vector<2xf32> to vector<2x1xf32>
    %1004 = vector.broadcast %1003 : vector<2x1xf32> to vector<2x24xf32>
    %1005 = arith.divf %1001, %1004 : vector<2x24xf32>
    %1006 = arith.truncf %1005 : vector<2x24xf32> to vector<2x24xbf16>
    %1007 = vector.extract_strided_slice %932 {offsets = [0, 24], sizes = [24, 8], strides = [1, 1]} : vector<24x32xbf16> to vector<24x8xbf16>
    %cst_452 = arith.constant dense<0.000000e+00> : vector<2x8xf32>
    %1008 = tpu.matmul %1006, %1007, %cst_452 {dimension_numbers = #tpu.dot_dimension_numbers<[1], [0], [0], [1], [0, 0, 1, 1], [], []>} : vector<2x24xbf16>, vector<24x8xbf16>, vector<2x8xf32> -> vector<2x8xf32>
    %1009 = tpu.concatenate %951, %970, %989, %1008 in 1 : vector<2x8xf32>, vector<2x8xf32>, vector<2x8xf32>, vector<2x8xf32> -> vector<2x32xf32>
    %1010 = arith.truncf %1009 : vector<2x32xf32> to vector<2x32xbf16>
    %c0_453 = arith.constant 0 : index
    %c0_454 = arith.constant 0 : index
    %c0_455 = arith.constant 0 : index
    %1011 = vector.load %arg6[%c0_453, %c0_454, %c0_455] : memref<2x32x32xbf16, #tpu.memory_space<vmem>>, vector<1x32x32xbf16>
    %1012 = vector.shape_cast %1011 : vector<1x32x32xbf16> to vector<32x32xbf16>
    %cst_456 = arith.constant dense<0.000000e+00> : vector<2x32xf32>
    %1013 = tpu.matmul %1010, %1012, %cst_456 {dimension_numbers = #tpu.dot_dimension_numbers<[1], [0], [0], [1], [0, 0, 1, 1], [], []>} : vector<2x32xbf16>, vector<32x32xbf16>, vector<2x32xf32> -> vector<2x32xf32>
    %c0_457 = arith.constant 0 : index
    %c0_458 = arith.constant 0 : index
    %c0_459 = arith.constant 0 : index
    %1014 = vector.load %arg7[%c0_457, %c0_458, %c0_459] : memref<2x32x128xbf16, #tpu.memory_space<vmem>>, vector<1x32x128xbf16>
    %1015 = vector.shape_cast %1014 : vector<1x32x128xbf16> to vector<32x128xbf16>
    %cst_460 = arith.constant dense<0.000000e+00> : vector<2x128xf32>
    %1016 = tpu.matmul %885, %1015, %cst_460 {dimension_numbers = #tpu.dot_dimension_numbers<[1], [0], [0], [1], [0, 0, 1, 1], [], []>} : vector<2x32xbf16>, vector<32x128xbf16>, vector<2x128xf32> -> vector<2x128xf32>
    %c0_461 = arith.constant 0 : index
    %c0_462 = arith.constant 0 : index
    %c0_463 = arith.constant 0 : index
    %1017 = vector.load %arg8[%c0_461, %c0_462, %c0_463] : memref<2x1x128xf32, #tpu.memory_space<vmem>>, vector<1x1x128xf32>
    %1018 = vector.shape_cast %1017 : vector<1x1x128xf32> to vector<1x128xf32>
    %1019 = vector.broadcast %1018 : vector<1x128xf32> to vector<2x128xf32>
    %1020 = arith.addf %1016, %1019 : vector<2x128xf32>
    %cst_464 = arith.constant 5.000000e-01 : f32
    %1021 = vector.broadcast %cst_464 : f32 to vector<2x128xf32>
    %1022 = arith.mulf %1021, %1020 : vector<2x128xf32>
    %cst_465 = arith.constant 4.471500e-02 : f32
    %1023 = vector.broadcast %cst_465 : f32 to vector<2x128xf32>
    %1024 = arith.mulf %1023, %1020 : vector<2x128xf32>
    %1025 = arith.mulf %1024, %1020 : vector<2x128xf32>
    %1026 = arith.mulf %1025, %1020 : vector<2x128xf32>
    %1027 = arith.addf %1020, %1026 : vector<2x128xf32>
    %cst_466 = arith.constant 0.797884583 : f32
    %1028 = vector.broadcast %cst_466 : f32 to vector<2x128xf32>
    %1029 = arith.mulf %1028, %1027 : vector<2x128xf32>
    %1030 = math.tanh %1029 : vector<2x128xf32>
    %cst_467 = arith.constant 1.000000e+00 : f32
    %1031 = vector.broadcast %cst_467 : f32 to vector<2x128xf32>
    %1032 = arith.addf %1031, %1030 : vector<2x128xf32>
    %1033 = arith.mulf %1022, %1032 : vector<2x128xf32>
    %1034 = arith.truncf %1033 : vector<2x128xf32> to vector<2x128xbf16>
    %c0_468 = arith.constant 0 : index
    %c0_469 = arith.constant 0 : index
    %c0_470 = arith.constant 0 : index
    %1035 = vector.load %arg9[%c0_468, %c0_469, %c0_470] : memref<2x128x32xbf16, #tpu.memory_space<vmem>>, vector<1x128x32xbf16>
    %1036 = vector.shape_cast %1035 : vector<1x128x32xbf16> to vector<128x32xbf16>
    %cst_471 = arith.constant dense<0.000000e+00> : vector<2x32xf32>
    %1037 = tpu.matmul %1034, %1036, %cst_471 {dimension_numbers = #tpu.dot_dimension_numbers<[1], [0], [0], [1], [0, 0, 1, 1], [], []>} : vector<2x128xbf16>, vector<128x32xbf16>, vector<2x32xf32> -> vector<2x32xf32>
    %c0_472 = arith.constant 0 : index
    %c0_473 = arith.constant 0 : index
    %c0_474 = arith.constant 0 : index
    %1038 = vector.load %arg10[%c0_472, %c0_473, %c0_474] : memref<2x1x32xf32, #tpu.memory_space<vmem>>, vector<1x1x32xf32>
    %1039 = vector.shape_cast %1038 : vector<1x1x32xf32> to vector<1x32xf32>
    %1040 = vector.broadcast %1039 : vector<1x32xf32> to vector<2x32xf32>
    %1041 = arith.addf %1037, %1040 : vector<2x32xf32>
    %1042 = arith.addf %849, %1013 : vector<2x32xf32>
    %1043 = arith.addf %1042, %1041 : vector<2x32xf32>
    %c1_475 = arith.constant 1 : index
    %c0_476 = arith.constant 0 : index
    %c0_477 = arith.constant 0 : index
    %1044 = vector.load %arg2[%c1_475, %c0_476, %c0_477] : memref<2x1x32xf32, #tpu.memory_space<vmem>>, vector<1x1x32xf32>
    %1045 = vector.shape_cast %1044 : vector<1x1x32xf32> to vector<1x32xf32>
    %c1_478 = arith.constant 1 : index
    %c0_479 = arith.constant 0 : index
    %c0_480 = arith.constant 0 : index
    %1046 = vector.load %arg3[%c1_478, %c0_479, %c0_480] : memref<2x1x32xf32, #tpu.memory_space<vmem>>, vector<1x1x32xf32>
    %1047 = vector.shape_cast %1046 : vector<1x1x32xf32> to vector<1x32xf32>
    %cst_481 = arith.constant dense<0.000000e+00> : vector<2xf32>
    %1048 = vector.multi_reduction <add>, %1043, %cst_481 [1] : vector<2x32xf32> to vector<2xf32>
    %1049 = vector.shape_cast %1048 : vector<2xf32> to vector<2x1xf32>
    %cst_482 = arith.constant 3.200000e+01 : f32
    %1050 = vector.broadcast %cst_482 : f32 to vector<2x1xf32>
    %1051 = arith.divf %1049, %1050 : vector<2x1xf32>
    %1052 = vector.broadcast %1051 : vector<2x1xf32> to vector<2x32xf32>
    %1053 = arith.subf %1043, %1052 : vector<2x32xf32>
    %1054 = arith.mulf %1053, %1053 : vector<2x32xf32>
    %cst_483 = arith.constant dense<0.000000e+00> : vector<2xf32>
    %1055 = vector.multi_reduction <add>, %1054, %cst_483 [1] : vector<2x32xf32> to vector<2xf32>
    %1056 = vector.shape_cast %1055 : vector<2xf32> to vector<2x1xf32>
    %cst_484 = arith.constant 3.200000e+01 : f32
    %1057 = vector.broadcast %cst_484 : f32 to vector<2x1xf32>
    %1058 = arith.divf %1056, %1057 : vector<2x1xf32>
    %1059 = vector.broadcast %1051 : vector<2x1xf32> to vector<2x32xf32>
    %1060 = arith.subf %1043, %1059 : vector<2x32xf32>
    %cst_485 = arith.constant 9.99999974E-6 : f32
    %1061 = vector.broadcast %cst_485 : f32 to vector<2x1xf32>
    %1062 = arith.addf %1058, %1061 : vector<2x1xf32>
    %1063 = math.rsqrt %1062 : vector<2x1xf32>
    %1064 = vector.broadcast %1063 : vector<2x1xf32> to vector<2x32xf32>
    %1065 = arith.mulf %1060, %1064 : vector<2x32xf32>
    %1066 = vector.broadcast %1045 : vector<1x32xf32> to vector<2x32xf32>
    %1067 = arith.mulf %1065, %1066 : vector<2x32xf32>
    %1068 = vector.broadcast %1047 : vector<1x32xf32> to vector<2x32xf32>
    %1069 = arith.addf %1067, %1068 : vector<2x32xf32>
    %1070 = arith.truncf %1069 : vector<2x32xf32> to vector<2x32xbf16>
    %c1_486 = arith.constant 1 : index
    %c0_487 = arith.constant 0 : index
    %c0_488 = arith.constant 0 : index
    %1071 = vector.load %arg4[%c1_486, %c0_487, %c0_488] : memref<2x32x96xbf16, #tpu.memory_space<vmem>>, vector<1x32x96xbf16>
    %1072 = vector.shape_cast %1071 : vector<1x32x96xbf16> to vector<32x96xbf16>
    %cst_489 = arith.constant dense<0.000000e+00> : vector<2x96xf32>
    %1073 = tpu.matmul %1070, %1072, %cst_489 {dimension_numbers = #tpu.dot_dimension_numbers<[1], [0], [0], [1], [0, 0, 1, 1], [], []>} : vector<2x32xbf16>, vector<32x96xbf16>, vector<2x96xf32> -> vector<2x96xf32>
    %c1_490 = arith.constant 1 : index
    %c0_491 = arith.constant 0 : index
    %c0_492 = arith.constant 0 : index
    %1074 = vector.load %arg5[%c1_490, %c0_491, %c0_492] : memref<2x1x96xf32, #tpu.memory_space<vmem>>, vector<1x1x96xf32>
    %1075 = vector.shape_cast %1074 : vector<1x1x96xf32> to vector<1x96xf32>
    %1076 = vector.broadcast %1075 : vector<1x96xf32> to vector<2x96xf32>
    %1077 = arith.addf %1073, %1076 : vector<2x96xf32>
    %1078 = vector.extract_strided_slice %1077 {offsets = [0, 0], sizes = [2, 32], strides = [1, 1]} : vector<2x96xf32> to vector<2x32xf32>
    %1079 = arith.truncf %1078 : vector<2x32xf32> to vector<2x32xbf16>
    %cst_493 = arith.constant dense<0.000000e+00> : vector<2x32xf32>
    %1080 = tpu.matmul %1079, %5, %cst_493 {dimension_numbers = #tpu.dot_dimension_numbers<[1], [0], [0], [1], [0, 0, 1, 1], [], []>} : vector<2x32xbf16>, vector<32x32xbf16>, vector<2x32xf32> -> vector<2x32xf32>
    %1081 = vector.broadcast %850 : vector<1x32xf32> to vector<2x32xf32>
    %1082 = arith.mulf %1078, %1081 : vector<2x32xf32>
    %1083 = vector.broadcast %851 : vector<1x32xf32> to vector<2x32xf32>
    %1084 = arith.mulf %1080, %1083 : vector<2x32xf32>
    %1085 = arith.addf %1082, %1084 : vector<2x32xf32>
    %1086 = vector.extract_strided_slice %1077 {offsets = [0, 32], sizes = [2, 32], strides = [1, 1]} : vector<2x96xf32> to vector<2x32xf32>
    %1087 = arith.truncf %1086 : vector<2x32xf32> to vector<2x32xbf16>
    %cst_494 = arith.constant dense<0.000000e+00> : vector<2x32xf32>
    %1088 = tpu.matmul %1087, %5, %cst_494 {dimension_numbers = #tpu.dot_dimension_numbers<[1], [0], [0], [1], [0, 0, 1, 1], [], []>} : vector<2x32xbf16>, vector<32x32xbf16>, vector<2x32xf32> -> vector<2x32xf32>
    %1089 = vector.broadcast %850 : vector<1x32xf32> to vector<2x32xf32>
    %1090 = arith.mulf %1086, %1089 : vector<2x32xf32>
    %1091 = vector.broadcast %851 : vector<1x32xf32> to vector<2x32xf32>
    %1092 = arith.mulf %1088, %1091 : vector<2x32xf32>
    %1093 = arith.addf %1090, %1092 : vector<2x32xf32>
    %1094 = vector.extract_strided_slice %1077 {offsets = [0, 64], sizes = [2, 32], strides = [1, 1]} : vector<2x96xf32> to vector<2x32xf32>
    %1095 = vector.extract_strided_slice %1093 {offsets = [0, 0], sizes = [1, 32], strides = [1, 1]} : vector<2x32xf32> to vector<1x32xf32>
    %c1_495 = arith.constant 1 : index
    %c9_496 = arith.constant 9 : index
    %c0_497 = arith.constant 0 : index
    %1096 = vector.load %arg23[%c1_495, %c9_496, %c0_497] : memref<2x24x32xf32, #tpu.memory_space<vmem>>, vector<1x1x32xf32>
    %1097 = vector.shape_cast %1096 : vector<1x1x32xf32> to vector<1x32xf32>
    %1098 = vector.shape_cast %1095 : vector<1x32xf32> to vector<1x1x32xf32>
    tpu.vector_store %arg23[%c1_495, %c9_496, %c0_497], %1098 {strides = array<i32>} : memref<2x24x32xf32, #tpu.memory_space<vmem>>, vector<1x1x32xf32>,
    %1099 = vector.extract_strided_slice %1094 {offsets = [0, 0], sizes = [1, 32], strides = [1, 1]} : vector<2x32xf32> to vector<1x32xf32>
    %c1_498 = arith.constant 1 : index
    %c9_499 = arith.constant 9 : index
    %c0_500 = arith.constant 0 : index
    %1100 = vector.load %arg24[%c1_498, %c9_499, %c0_500] : memref<2x24x32xf32, #tpu.memory_space<vmem>>, vector<1x1x32xf32>
    %1101 = vector.shape_cast %1100 : vector<1x1x32xf32> to vector<1x32xf32>
    %1102 = vector.shape_cast %1099 : vector<1x32xf32> to vector<1x1x32xf32>
    tpu.vector_store %arg24[%c1_498, %c9_499, %c0_500], %1102 {strides = array<i32>} : memref<2x24x32xf32, #tpu.memory_space<vmem>>, vector<1x1x32xf32>,
    %1103 = vector.extract_strided_slice %1093 {offsets = [1, 0], sizes = [1, 32], strides = [1, 1]} : vector<2x32xf32> to vector<1x32xf32>
    %c1_501 = arith.constant 1 : index
    %c21_502 = arith.constant 21 : index
    %c0_503 = arith.constant 0 : index
    %1104 = vector.load %arg23[%c1_501, %c21_502, %c0_503] : memref<2x24x32xf32, #tpu.memory_space<vmem>>, vector<1x1x32xf32>
    %1105 = vector.shape_cast %1104 : vector<1x1x32xf32> to vector<1x32xf32>
    %1106 = vector.shape_cast %1103 : vector<1x32xf32> to vector<1x1x32xf32>
    tpu.vector_store %arg23[%c1_501, %c21_502, %c0_503], %1106 {strides = array<i32>} : memref<2x24x32xf32, #tpu.memory_space<vmem>>, vector<1x1x32xf32>,
    %1107 = vector.extract_strided_slice %1094 {offsets = [1, 0], sizes = [1, 32], strides = [1, 1]} : vector<2x32xf32> to vector<1x32xf32>
    %c1_504 = arith.constant 1 : index
    %c21_505 = arith.constant 21 : index
    %c0_506 = arith.constant 0 : index
    %1108 = vector.load %arg24[%c1_504, %c21_505, %c0_506] : memref<2x24x32xf32, #tpu.memory_space<vmem>>, vector<1x1x32xf32>
    %1109 = vector.shape_cast %1108 : vector<1x1x32xf32> to vector<1x32xf32>
    %1110 = vector.shape_cast %1107 : vector<1x32xf32> to vector<1x1x32xf32>
    tpu.vector_store %arg24[%c1_504, %c21_505, %c0_506], %1110 {strides = array<i32>} : memref<2x24x32xf32, #tpu.memory_space<vmem>>, vector<1x1x32xf32>,
    %c1_507 = arith.constant 1 : index
    %c0_508 = arith.constant 0 : index
    %c0_509 = arith.constant 0 : index
    %1111 = vector.load %arg23[%c1_507, %c0_508, %c0_509] : memref<2x24x32xf32, #tpu.memory_space<vmem>>, vector<1x24x32xf32>
    %1112 = vector.shape_cast %1111 : vector<1x24x32xf32> to vector<24x32xf32>
    %c1_510 = arith.constant 1 : index
    %c0_511 = arith.constant 0 : index
    %c0_512 = arith.constant 0 : index
    %1113 = vector.load %arg24[%c1_510, %c0_511, %c0_512] : memref<2x24x32xf32, #tpu.memory_space<vmem>>, vector<1x24x32xf32>
    %1114 = vector.shape_cast %1113 : vector<1x24x32xf32> to vector<24x32xf32>
    %1115 = arith.truncf %1085 : vector<2x32xf32> to vector<2x32xbf16>
    %1116 = arith.truncf %1112 : vector<24x32xf32> to vector<24x32xbf16>
    %1117 = arith.truncf %1114 : vector<24x32xf32> to vector<24x32xbf16>
    %1118 = vector.extract_strided_slice %1115 {offsets = [0, 0], sizes = [2, 8], strides = [1, 1]} : vector<2x32xbf16> to vector<2x8xbf16>
    %1119 = vector.extract_strided_slice %1116 {offsets = [0, 0], sizes = [24, 8], strides = [1, 1]} : vector<24x32xbf16> to vector<24x8xbf16>
    %cst_513 = arith.constant dense<0.000000e+00> : vector<2x24xf32>
    %1120 = tpu.matmul %1118, %1119, %cst_513 {dimension_numbers = #tpu.dot_dimension_numbers<[1], [1], [0], [0], [0, 0, 1, 0], [], []>} : vector<2x8xbf16>, vector<24x8xbf16>, vector<2x24xf32> -> vector<2x24xf32>
    %cst_514 = arith.constant 0.353553385 : f32
    %1121 = vector.broadcast %cst_514 : f32 to vector<2x24xf32>
    %1122 = arith.mulf %1120, %1121 : vector<2x24xf32>
    %cst_515 = arith.constant -1.000000e+30 : f32
    %1123 = vector.broadcast %cst_515 : f32 to vector<2x24xf32>
    %1124 = arith.select %858, %1122, %1123 : vector<2x24xi1>, vector<2x24xf32>
    %cst_516 = arith.constant dense<0xFF800000> : vector<2xf32>
    %1125 = vector.multi_reduction <maximumf>, %1124, %cst_516 [1] : vector<2x24xf32> to vector<2xf32>
    %1126 = vector.shape_cast %1125 : vector<2xf32> to vector<2x1xf32>
    %1127 = vector.broadcast %1126 : vector<2x1xf32> to vector<2x24xf32>
    %1128 = arith.subf %1124, %1127 : vector<2x24xf32>
    %1129 = math.exp %1128 : vector<2x24xf32>
    %cst_517 = arith.constant dense<0.000000e+00> : vector<2xf32>
    %1130 = vector.multi_reduction <add>, %1129, %cst_517 [1] : vector<2x24xf32> to vector<2xf32>
    %1131 = vector.shape_cast %1130 : vector<2xf32> to vector<2x1xf32>
    %1132 = vector.broadcast %1131 : vector<2x1xf32> to vector<2x24xf32>
    %1133 = arith.divf %1129, %1132 : vector<2x24xf32>
    %1134 = arith.truncf %1133 : vector<2x24xf32> to vector<2x24xbf16>
    %1135 = vector.extract_strided_slice %1117 {offsets = [0, 0], sizes = [24, 8], strides = [1, 1]} : vector<24x32xbf16> to vector<24x8xbf16>
    %cst_518 = arith.constant dense<0.000000e+00> : vector<2x8xf32>
    %1136 = tpu.matmul %1134, %1135, %cst_518 {dimension_numbers = #tpu.dot_dimension_numbers<[1], [0], [0], [1], [0, 0, 1, 1], [], []>} : vector<2x24xbf16>, vector<24x8xbf16>, vector<2x8xf32> -> vector<2x8xf32>
    %1137 = vector.extract_strided_slice %1115 {offsets = [0, 8], sizes = [2, 8], strides = [1, 1]} : vector<2x32xbf16> to vector<2x8xbf16>
    %1138 = vector.extract_strided_slice %1116 {offsets = [0, 8], sizes = [24, 8], strides = [1, 1]} : vector<24x32xbf16> to vector<24x8xbf16>
    %cst_519 = arith.constant dense<0.000000e+00> : vector<2x24xf32>
    %1139 = tpu.matmul %1137, %1138, %cst_519 {dimension_numbers = #tpu.dot_dimension_numbers<[1], [1], [0], [0], [0, 0, 1, 0], [], []>} : vector<2x8xbf16>, vector<24x8xbf16>, vector<2x24xf32> -> vector<2x24xf32>
    %cst_520 = arith.constant 0.353553385 : f32
    %1140 = vector.broadcast %cst_520 : f32 to vector<2x24xf32>
    %1141 = arith.mulf %1139, %1140 : vector<2x24xf32>
    %cst_521 = arith.constant -1.000000e+30 : f32
    %1142 = vector.broadcast %cst_521 : f32 to vector<2x24xf32>
    %1143 = arith.select %858, %1141, %1142 : vector<2x24xi1>, vector<2x24xf32>
    %cst_522 = arith.constant dense<0xFF800000> : vector<2xf32>
    %1144 = vector.multi_reduction <maximumf>, %1143, %cst_522 [1] : vector<2x24xf32> to vector<2xf32>
    %1145 = vector.shape_cast %1144 : vector<2xf32> to vector<2x1xf32>
    %1146 = vector.broadcast %1145 : vector<2x1xf32> to vector<2x24xf32>
    %1147 = arith.subf %1143, %1146 : vector<2x24xf32>
    %1148 = math.exp %1147 : vector<2x24xf32>
    %cst_523 = arith.constant dense<0.000000e+00> : vector<2xf32>
    %1149 = vector.multi_reduction <add>, %1148, %cst_523 [1] : vector<2x24xf32> to vector<2xf32>
    %1150 = vector.shape_cast %1149 : vector<2xf32> to vector<2x1xf32>
    %1151 = vector.broadcast %1150 : vector<2x1xf32> to vector<2x24xf32>
    %1152 = arith.divf %1148, %1151 : vector<2x24xf32>
    %1153 = arith.truncf %1152 : vector<2x24xf32> to vector<2x24xbf16>
    %1154 = vector.extract_strided_slice %1117 {offsets = [0, 8], sizes = [24, 8], strides = [1, 1]} : vector<24x32xbf16> to vector<24x8xbf16>
    %cst_524 = arith.constant dense<0.000000e+00> : vector<2x8xf32>
    %1155 = tpu.matmul %1153, %1154, %cst_524 {dimension_numbers = #tpu.dot_dimension_numbers<[1], [0], [0], [1], [0, 0, 1, 1], [], []>} : vector<2x24xbf16>, vector<24x8xbf16>, vector<2x8xf32> -> vector<2x8xf32>
    %1156 = vector.extract_strided_slice %1115 {offsets = [0, 16], sizes = [2, 8], strides = [1, 1]} : vector<2x32xbf16> to vector<2x8xbf16>
    %1157 = vector.extract_strided_slice %1116 {offsets = [0, 16], sizes = [24, 8], strides = [1, 1]} : vector<24x32xbf16> to vector<24x8xbf16>
    %cst_525 = arith.constant dense<0.000000e+00> : vector<2x24xf32>
    %1158 = tpu.matmul %1156, %1157, %cst_525 {dimension_numbers = #tpu.dot_dimension_numbers<[1], [1], [0], [0], [0, 0, 1, 0], [], []>} : vector<2x8xbf16>, vector<24x8xbf16>, vector<2x24xf32> -> vector<2x24xf32>
    %cst_526 = arith.constant 0.353553385 : f32
    %1159 = vector.broadcast %cst_526 : f32 to vector<2x24xf32>
    %1160 = arith.mulf %1158, %1159 : vector<2x24xf32>
    %cst_527 = arith.constant -1.000000e+30 : f32
    %1161 = vector.broadcast %cst_527 : f32 to vector<2x24xf32>
    %1162 = arith.select %858, %1160, %1161 : vector<2x24xi1>, vector<2x24xf32>
    %cst_528 = arith.constant dense<0xFF800000> : vector<2xf32>
    %1163 = vector.multi_reduction <maximumf>, %1162, %cst_528 [1] : vector<2x24xf32> to vector<2xf32>
    %1164 = vector.shape_cast %1163 : vector<2xf32> to vector<2x1xf32>
    %1165 = vector.broadcast %1164 : vector<2x1xf32> to vector<2x24xf32>
    %1166 = arith.subf %1162, %1165 : vector<2x24xf32>
    %1167 = math.exp %1166 : vector<2x24xf32>
    %cst_529 = arith.constant dense<0.000000e+00> : vector<2xf32>
    %1168 = vector.multi_reduction <add>, %1167, %cst_529 [1] : vector<2x24xf32> to vector<2xf32>
    %1169 = vector.shape_cast %1168 : vector<2xf32> to vector<2x1xf32>
    %1170 = vector.broadcast %1169 : vector<2x1xf32> to vector<2x24xf32>
    %1171 = arith.divf %1167, %1170 : vector<2x24xf32>
    %1172 = arith.truncf %1171 : vector<2x24xf32> to vector<2x24xbf16>
    %1173 = vector.extract_strided_slice %1117 {offsets = [0, 16], sizes = [24, 8], strides = [1, 1]} : vector<24x32xbf16> to vector<24x8xbf16>
    %cst_530 = arith.constant dense<0.000000e+00> : vector<2x8xf32>
    %1174 = tpu.matmul %1172, %1173, %cst_530 {dimension_numbers = #tpu.dot_dimension_numbers<[1], [0], [0], [1], [0, 0, 1, 1], [], []>} : vector<2x24xbf16>, vector<24x8xbf16>, vector<2x8xf32> -> vector<2x8xf32>
    %1175 = vector.extract_strided_slice %1115 {offsets = [0, 24], sizes = [2, 8], strides = [1, 1]} : vector<2x32xbf16> to vector<2x8xbf16>
    %1176 = vector.extract_strided_slice %1116 {offsets = [0, 24], sizes = [24, 8], strides = [1, 1]} : vector<24x32xbf16> to vector<24x8xbf16>
    %cst_531 = arith.constant dense<0.000000e+00> : vector<2x24xf32>
    %1177 = tpu.matmul %1175, %1176, %cst_531 {dimension_numbers = #tpu.dot_dimension_numbers<[1], [1], [0], [0], [0, 0, 1, 0], [], []>} : vector<2x8xbf16>, vector<24x8xbf16>, vector<2x24xf32> -> vector<2x24xf32>
    %cst_532 = arith.constant 0.353553385 : f32
    %1178 = vector.broadcast %cst_532 : f32 to vector<2x24xf32>
    %1179 = arith.mulf %1177, %1178 : vector<2x24xf32>
    %cst_533 = arith.constant -1.000000e+30 : f32
    %1180 = vector.broadcast %cst_533 : f32 to vector<2x24xf32>
    %1181 = arith.select %858, %1179, %1180 : vector<2x24xi1>, vector<2x24xf32>
    %cst_534 = arith.constant dense<0xFF800000> : vector<2xf32>
    %1182 = vector.multi_reduction <maximumf>, %1181, %cst_534 [1] : vector<2x24xf32> to vector<2xf32>
    %1183 = vector.shape_cast %1182 : vector<2xf32> to vector<2x1xf32>
    %1184 = vector.broadcast %1183 : vector<2x1xf32> to vector<2x24xf32>
    %1185 = arith.subf %1181, %1184 : vector<2x24xf32>
    %1186 = math.exp %1185 : vector<2x24xf32>
    %cst_535 = arith.constant dense<0.000000e+00> : vector<2xf32>
    %1187 = vector.multi_reduction <add>, %1186, %cst_535 [1] : vector<2x24xf32> to vector<2xf32>
    %1188 = vector.shape_cast %1187 : vector<2xf32> to vector<2x1xf32>
    %1189 = vector.broadcast %1188 : vector<2x1xf32> to vector<2x24xf32>
    %1190 = arith.divf %1186, %1189 : vector<2x24xf32>
    %1191 = arith.truncf %1190 : vector<2x24xf32> to vector<2x24xbf16>
    %1192 = vector.extract_strided_slice %1117 {offsets = [0, 24], sizes = [24, 8], strides = [1, 1]} : vector<24x32xbf16> to vector<24x8xbf16>
    %cst_536 = arith.constant dense<0.000000e+00> : vector<2x8xf32>
    %1193 = tpu.matmul %1191, %1192, %cst_536 {dimension_numbers = #tpu.dot_dimension_numbers<[1], [0], [0], [1], [0, 0, 1, 1], [], []>} : vector<2x24xbf16>, vector<24x8xbf16>, vector<2x8xf32> -> vector<2x8xf32>
    %1194 = tpu.concatenate %1136, %1155, %1174, %1193 in 1 : vector<2x8xf32>, vector<2x8xf32>, vector<2x8xf32>, vector<2x8xf32> -> vector<2x32xf32>
    %1195 = arith.truncf %1194 : vector<2x32xf32> to vector<2x32xbf16>
    %c1_537 = arith.constant 1 : index
    %c0_538 = arith.constant 0 : index
    %c0_539 = arith.constant 0 : index
    %1196 = vector.load %arg6[%c1_537, %c0_538, %c0_539] : memref<2x32x32xbf16, #tpu.memory_space<vmem>>, vector<1x32x32xbf16>
    %1197 = vector.shape_cast %1196 : vector<1x32x32xbf16> to vector<32x32xbf16>
    %cst_540 = arith.constant dense<0.000000e+00> : vector<2x32xf32>
    %1198 = tpu.matmul %1195, %1197, %cst_540 {dimension_numbers = #tpu.dot_dimension_numbers<[1], [0], [0], [1], [0, 0, 1, 1], [], []>} : vector<2x32xbf16>, vector<32x32xbf16>, vector<2x32xf32> -> vector<2x32xf32>
    %c1_541 = arith.constant 1 : index
    %c0_542 = arith.constant 0 : index
    %c0_543 = arith.constant 0 : index
    %1199 = vector.load %arg7[%c1_541, %c0_542, %c0_543] : memref<2x32x128xbf16, #tpu.memory_space<vmem>>, vector<1x32x128xbf16>
    %1200 = vector.shape_cast %1199 : vector<1x32x128xbf16> to vector<32x128xbf16>
    %cst_544 = arith.constant dense<0.000000e+00> : vector<2x128xf32>
    %1201 = tpu.matmul %1070, %1200, %cst_544 {dimension_numbers = #tpu.dot_dimension_numbers<[1], [0], [0], [1], [0, 0, 1, 1], [], []>} : vector<2x32xbf16>, vector<32x128xbf16>, vector<2x128xf32> -> vector<2x128xf32>
    %c1_545 = arith.constant 1 : index
    %c0_546 = arith.constant 0 : index
    %c0_547 = arith.constant 0 : index
    %1202 = vector.load %arg8[%c1_545, %c0_546, %c0_547] : memref<2x1x128xf32, #tpu.memory_space<vmem>>, vector<1x1x128xf32>
    %1203 = vector.shape_cast %1202 : vector<1x1x128xf32> to vector<1x128xf32>
    %1204 = vector.broadcast %1203 : vector<1x128xf32> to vector<2x128xf32>
    %1205 = arith.addf %1201, %1204 : vector<2x128xf32>
    %cst_548 = arith.constant 5.000000e-01 : f32
    %1206 = vector.broadcast %cst_548 : f32 to vector<2x128xf32>
    %1207 = arith.mulf %1206, %1205 : vector<2x128xf32>
    %cst_549 = arith.constant 4.471500e-02 : f32
    %1208 = vector.broadcast %cst_549 : f32 to vector<2x128xf32>
    %1209 = arith.mulf %1208, %1205 : vector<2x128xf32>
    %1210 = arith.mulf %1209, %1205 : vector<2x128xf32>
    %1211 = arith.mulf %1210, %1205 : vector<2x128xf32>
    %1212 = arith.addf %1205, %1211 : vector<2x128xf32>
    %cst_550 = arith.constant 0.797884583 : f32
    %1213 = vector.broadcast %cst_550 : f32 to vector<2x128xf32>
    %1214 = arith.mulf %1213, %1212 : vector<2x128xf32>
    %1215 = math.tanh %1214 : vector<2x128xf32>
    %cst_551 = arith.constant 1.000000e+00 : f32
    %1216 = vector.broadcast %cst_551 : f32 to vector<2x128xf32>
    %1217 = arith.addf %1216, %1215 : vector<2x128xf32>
    %1218 = arith.mulf %1207, %1217 : vector<2x128xf32>
    %1219 = arith.truncf %1218 : vector<2x128xf32> to vector<2x128xbf16>
    %c1_552 = arith.constant 1 : index
    %c0_553 = arith.constant 0 : index
    %c0_554 = arith.constant 0 : index
    %1220 = vector.load %arg9[%c1_552, %c0_553, %c0_554] : memref<2x128x32xbf16, #tpu.memory_space<vmem>>, vector<1x128x32xbf16>
    %1221 = vector.shape_cast %1220 : vector<1x128x32xbf16> to vector<128x32xbf16>
    %cst_555 = arith.constant dense<0.000000e+00> : vector<2x32xf32>
    %1222 = tpu.matmul %1219, %1221, %cst_555 {dimension_numbers = #tpu.dot_dimension_numbers<[1], [0], [0], [1], [0, 0, 1, 1], [], []>} : vector<2x128xbf16>, vector<128x32xbf16>, vector<2x32xf32> -> vector<2x32xf32>
    %c1_556 = arith.constant 1 : index
    %c0_557 = arith.constant 0 : index
    %c0_558 = arith.constant 0 : index
    %1223 = vector.load %arg10[%c1_556, %c0_557, %c0_558] : memref<2x1x32xf32, #tpu.memory_space<vmem>>, vector<1x1x32xf32>
    %1224 = vector.shape_cast %1223 : vector<1x1x32xf32> to vector<1x32xf32>
    %1225 = vector.broadcast %1224 : vector<1x32xf32> to vector<2x32xf32>
    %1226 = arith.addf %1222, %1225 : vector<2x32xf32>
    %1227 = arith.addf %1043, %1198 : vector<2x32xf32>
    %1228 = arith.addf %1227, %1226 : vector<2x32xf32>
    %c0_559 = arith.constant 0 : index
    %c0_560 = arith.constant 0 : index
    %1229 = vector.load %arg18[%c0_559, %c0_560] : memref<1x32xf32, #tpu.memory_space<vmem>>, vector<1x32xf32>
    %c0_561 = arith.constant 0 : index
    %c0_562 = arith.constant 0 : index
    %1230 = vector.load %arg19[%c0_561, %c0_562] : memref<1x32xf32, #tpu.memory_space<vmem>>, vector<1x32xf32>
    %cst_563 = arith.constant dense<0.000000e+00> : vector<2xf32>
    %1231 = vector.multi_reduction <add>, %1228, %cst_563 [1] : vector<2x32xf32> to vector<2xf32>
    %1232 = vector.shape_cast %1231 : vector<2xf32> to vector<2x1xf32>
    %cst_564 = arith.constant 3.200000e+01 : f32
    %1233 = vector.broadcast %cst_564 : f32 to vector<2x1xf32>
    %1234 = arith.divf %1232, %1233 : vector<2x1xf32>
    %1235 = vector.broadcast %1234 : vector<2x1xf32> to vector<2x32xf32>
    %1236 = arith.subf %1228, %1235 : vector<2x32xf32>
    %1237 = arith.mulf %1236, %1236 : vector<2x32xf32>
    %cst_565 = arith.constant dense<0.000000e+00> : vector<2xf32>
    %1238 = vector.multi_reduction <add>, %1237, %cst_565 [1] : vector<2x32xf32> to vector<2xf32>
    %1239 = vector.shape_cast %1238 : vector<2xf32> to vector<2x1xf32>
    %cst_566 = arith.constant 3.200000e+01 : f32
    %1240 = vector.broadcast %cst_566 : f32 to vector<2x1xf32>
    %1241 = arith.divf %1239, %1240 : vector<2x1xf32>
    %1242 = vector.broadcast %1234 : vector<2x1xf32> to vector<2x32xf32>
    %1243 = arith.subf %1228, %1242 : vector<2x32xf32>
    %cst_567 = arith.constant 9.99999974E-6 : f32
    %1244 = vector.broadcast %cst_567 : f32 to vector<2x1xf32>
    %1245 = arith.addf %1241, %1244 : vector<2x1xf32>
    %1246 = math.rsqrt %1245 : vector<2x1xf32>
    %1247 = vector.broadcast %1246 : vector<2x1xf32> to vector<2x32xf32>
    %1248 = arith.mulf %1243, %1247 : vector<2x32xf32>
    %1249 = vector.broadcast %1229 : vector<1x32xf32> to vector<2x32xf32>
    %1250 = arith.mulf %1248, %1249 : vector<2x32xf32>
    %1251 = vector.broadcast %1230 : vector<1x32xf32> to vector<2x32xf32>
    %1252 = arith.addf %1250, %1251 : vector<2x32xf32>
    %1253 = arith.truncf %1252 : vector<2x32xf32> to vector<2x32xbf16>
    %c0_568 = arith.constant 0 : index
    %c0_569 = arith.constant 0 : index
    %1254 = vector.load %arg20[%c0_568, %c0_569] : memref<32x128xbf16, #tpu.memory_space<vmem>>, vector<32x128xbf16>
    %cst_570 = arith.constant dense<0.000000e+00> : vector<2x128xf32>
    %1255 = tpu.matmul %1253, %1254, %cst_570 {dimension_numbers = #tpu.dot_dimension_numbers<[1], [0], [0], [1], [0, 0, 1, 1], [], []>} : vector<2x32xbf16>, vector<32x128xbf16>, vector<2x128xf32> -> vector<2x128xf32>
    %c0_571 = arith.constant 0 : index
    %c0_572 = arith.constant 0 : index
    %1256 = vector.load %arg21[%c0_571, %c0_572] : memref<1x128xf32, #tpu.memory_space<vmem>>, vector<1x128xf32>
    %1257 = vector.broadcast %1256 : vector<1x128xf32> to vector<2x128xf32>
    %1258 = arith.addf %1255, %1257 : vector<2x128xf32>
    %cst_573 = arith.constant dense<0xFF800000> : vector<2xf32>
    %1259 = vector.multi_reduction <maximumf>, %1258, %cst_573 [1] : vector<2x128xf32> to vector<2xf32>
    %1260 = vector.shape_cast %1259 : vector<2xf32> to vector<2x1xf32>
    %1261 = tpu.iota {dimensions = array<i32: 1>} : vector<2x128xi32>
    %1262 = arith.sitofp %1261 : vector<2x128xi32> to vector<2x128xf32>
    %1263 = vector.broadcast %1260 : vector<2x1xf32> to vector<2x128xf32>
    %1264 = arith.cmpf oeq, %1258, %1263 : vector<2x128xf32>
    %cst_574 = arith.constant 1.280000e+02 : f32
    %1265 = vector.broadcast %cst_574 : f32 to vector<2x128xf32>
    %1266 = arith.select %1264, %1262, %1265 : vector<2x128xi1>, vector<2x128xf32>
    %cst_575 = arith.constant dense<0x7F800000> : vector<2xf32>
    %1267 = vector.multi_reduction <minimumf>, %1266, %cst_575 [1] : vector<2x128xf32> to vector<2xf32>
    %1268 = vector.shape_cast %1267 : vector<2xf32> to vector<2x1xf32>
    %1269 = arith.fptosi %1268 : vector<2x1xf32> to vector<2x1xi32>
    %c0_576 = arith.constant 0 : index
    %c2 = arith.constant 2 : index
    %1270 = vector.load %arg22[%c0_576, %c2] : memref<2x4xi32, #tpu.memory_space<vmem>>, vector<2x1xi32>
    tpu.vector_store %arg22[%c0_576, %c2], %1269 {strides = array<i32>} : memref<2x4xi32, #tpu.memory_space<vmem>>, vector<2x1xi32>,
    %1271 = tpu.iota {dimensions = array<i32: 1>} : vector<2x128xi32>
    %1272 = vector.broadcast %1269 : vector<2x1xi32> to vector<2x128xi32>
    %1273 = arith.cmpi eq, %1272, %1271 : vector<2x128xi32>
    %cst_577 = arith.constant 1.000000e+00 : f32
    %cst_578 = arith.constant 0.000000e+00 : f32
    %1274 = vector.broadcast %cst_577 : f32 to vector<2x128xf32>
    %1275 = vector.broadcast %cst_578 : f32 to vector<2x128xf32>
    %1276 = arith.select %1273, %1274, %1275 : vector<2x128xi1>, vector<2x128xf32>
    %1277 = arith.truncf %1276 : vector<2x128xf32> to vector<2x128xbf16>
    %cst_579 = arith.constant dense<0.000000e+00> : vector<2x32xf32>
    %1278 = tpu.matmul %1277, %4, %cst_579 {dimension_numbers = #tpu.dot_dimension_numbers<[1], [0], [0], [1], [0, 0, 1, 1], [], []>} : vector<2x128xbf16>, vector<128x32xbf16>, vector<2x32xf32> -> vector<2x32xf32>
    %c10 = arith.constant 10 : index
    %c0_580 = arith.constant 0 : index
    %1279 = vector.load %arg13[%c10, %c0_580] : memref<12x32xf32, #tpu.memory_space<vmem>>, vector<1x32xf32>
    %c10_581 = arith.constant 10 : index
    %c0_582 = arith.constant 0 : index
    %1280 = vector.load %arg14[%c10_581, %c0_582] : memref<12x32xf32, #tpu.memory_space<vmem>>, vector<1x32xf32>
    %1281 = tpu.iota {dimensions = array<i32: 0>} : vector<2x24xi32>
    %1282 = vector.broadcast %6 : vector<1x24xi32> to vector<2x24xi32>
    %1283 = arith.cmpi eq, %1282, %1281 : vector<2x24xi32>
    %c10_i32 = arith.constant 10 : i32
    %1284 = vector.broadcast %c10_i32 : i32 to vector<1x24xi32>
    %1285 = arith.cmpi sle, %7, %1284 : vector<1x24xi32>
    %1286 = vector.broadcast %1285 : vector<1x24xi1> to vector<2x24xi1>
    %1287 = arith.andi %1283, %1286 : vector<2x24xi1>
    %c0_583 = arith.constant 0 : index
    %c0_584 = arith.constant 0 : index
    %c0_585 = arith.constant 0 : index
    %1288 = vector.load %arg2[%c0_583, %c0_584, %c0_585] : memref<2x1x32xf32, #tpu.memory_space<vmem>>, vector<1x1x32xf32>
    %1289 = vector.shape_cast %1288 : vector<1x1x32xf32> to vector<1x32xf32>
    %c0_586 = arith.constant 0 : index
    %c0_587 = arith.constant 0 : index
    %c0_588 = arith.constant 0 : index
    %1290 = vector.load %arg3[%c0_586, %c0_587, %c0_588] : memref<2x1x32xf32, #tpu.memory_space<vmem>>, vector<1x1x32xf32>
    %1291 = vector.shape_cast %1290 : vector<1x1x32xf32> to vector<1x32xf32>
    %cst_589 = arith.constant dense<0.000000e+00> : vector<2xf32>
    %1292 = vector.multi_reduction <add>, %1278, %cst_589 [1] : vector<2x32xf32> to vector<2xf32>
    %1293 = vector.shape_cast %1292 : vector<2xf32> to vector<2x1xf32>
    %cst_590 = arith.constant 3.200000e+01 : f32
    %1294 = vector.broadcast %cst_590 : f32 to vector<2x1xf32>
    %1295 = arith.divf %1293, %1294 : vector<2x1xf32>
    %1296 = vector.broadcast %1295 : vector<2x1xf32> to vector<2x32xf32>
    %1297 = arith.subf %1278, %1296 : vector<2x32xf32>
    %1298 = arith.mulf %1297, %1297 : vector<2x32xf32>
    %cst_591 = arith.constant dense<0.000000e+00> : vector<2xf32>
    %1299 = vector.multi_reduction <add>, %1298, %cst_591 [1] : vector<2x32xf32> to vector<2xf32>
    %1300 = vector.shape_cast %1299 : vector<2xf32> to vector<2x1xf32>
    %cst_592 = arith.constant 3.200000e+01 : f32
    %1301 = vector.broadcast %cst_592 : f32 to vector<2x1xf32>
    %1302 = arith.divf %1300, %1301 : vector<2x1xf32>
    %1303 = vector.broadcast %1295 : vector<2x1xf32> to vector<2x32xf32>
    %1304 = arith.subf %1278, %1303 : vector<2x32xf32>
    %cst_593 = arith.constant 9.99999974E-6 : f32
    %1305 = vector.broadcast %cst_593 : f32 to vector<2x1xf32>
    %1306 = arith.addf %1302, %1305 : vector<2x1xf32>
    %1307 = math.rsqrt %1306 : vector<2x1xf32>
    %1308 = vector.broadcast %1307 : vector<2x1xf32> to vector<2x32xf32>
    %1309 = arith.mulf %1304, %1308 : vector<2x32xf32>
    %1310 = vector.broadcast %1289 : vector<1x32xf32> to vector<2x32xf32>
    %1311 = arith.mulf %1309, %1310 : vector<2x32xf32>
    %1312 = vector.broadcast %1291 : vector<1x32xf32> to vector<2x32xf32>
    %1313 = arith.addf %1311, %1312 : vector<2x32xf32>
    %1314 = arith.truncf %1313 : vector<2x32xf32> to vector<2x32xbf16>
    %c0_594 = arith.constant 0 : index
    %c0_595 = arith.constant 0 : index
    %c0_596 = arith.constant 0 : index
    %1315 = vector.load %arg4[%c0_594, %c0_595, %c0_596] : memref<2x32x96xbf16, #tpu.memory_space<vmem>>, vector<1x32x96xbf16>
    %1316 = vector.shape_cast %1315 : vector<1x32x96xbf16> to vector<32x96xbf16>
    %cst_597 = arith.constant dense<0.000000e+00> : vector<2x96xf32>
    %1317 = tpu.matmul %1314, %1316, %cst_597 {dimension_numbers = #tpu.dot_dimension_numbers<[1], [0], [0], [1], [0, 0, 1, 1], [], []>} : vector<2x32xbf16>, vector<32x96xbf16>, vector<2x96xf32> -> vector<2x96xf32>
    %c0_598 = arith.constant 0 : index
    %c0_599 = arith.constant 0 : index
    %c0_600 = arith.constant 0 : index
    %1318 = vector.load %arg5[%c0_598, %c0_599, %c0_600] : memref<2x1x96xf32, #tpu.memory_space<vmem>>, vector<1x1x96xf32>
    %1319 = vector.shape_cast %1318 : vector<1x1x96xf32> to vector<1x96xf32>
    %1320 = vector.broadcast %1319 : vector<1x96xf32> to vector<2x96xf32>
    %1321 = arith.addf %1317, %1320 : vector<2x96xf32>
    %1322 = vector.extract_strided_slice %1321 {offsets = [0, 0], sizes = [2, 32], strides = [1, 1]} : vector<2x96xf32> to vector<2x32xf32>
    %1323 = arith.truncf %1322 : vector<2x32xf32> to vector<2x32xbf16>
    %cst_601 = arith.constant dense<0.000000e+00> : vector<2x32xf32>
    %1324 = tpu.matmul %1323, %5, %cst_601 {dimension_numbers = #tpu.dot_dimension_numbers<[1], [0], [0], [1], [0, 0, 1, 1], [], []>} : vector<2x32xbf16>, vector<32x32xbf16>, vector<2x32xf32> -> vector<2x32xf32>
    %1325 = vector.broadcast %1279 : vector<1x32xf32> to vector<2x32xf32>
    %1326 = arith.mulf %1322, %1325 : vector<2x32xf32>
    %1327 = vector.broadcast %1280 : vector<1x32xf32> to vector<2x32xf32>
    %1328 = arith.mulf %1324, %1327 : vector<2x32xf32>
    %1329 = arith.addf %1326, %1328 : vector<2x32xf32>
    %1330 = vector.extract_strided_slice %1321 {offsets = [0, 32], sizes = [2, 32], strides = [1, 1]} : vector<2x96xf32> to vector<2x32xf32>
    %1331 = arith.truncf %1330 : vector<2x32xf32> to vector<2x32xbf16>
    %cst_602 = arith.constant dense<0.000000e+00> : vector<2x32xf32>
    %1332 = tpu.matmul %1331, %5, %cst_602 {dimension_numbers = #tpu.dot_dimension_numbers<[1], [0], [0], [1], [0, 0, 1, 1], [], []>} : vector<2x32xbf16>, vector<32x32xbf16>, vector<2x32xf32> -> vector<2x32xf32>
    %1333 = vector.broadcast %1279 : vector<1x32xf32> to vector<2x32xf32>
    %1334 = arith.mulf %1330, %1333 : vector<2x32xf32>
    %1335 = vector.broadcast %1280 : vector<1x32xf32> to vector<2x32xf32>
    %1336 = arith.mulf %1332, %1335 : vector<2x32xf32>
    %1337 = arith.addf %1334, %1336 : vector<2x32xf32>
    %1338 = vector.extract_strided_slice %1321 {offsets = [0, 64], sizes = [2, 32], strides = [1, 1]} : vector<2x96xf32> to vector<2x32xf32>
    %1339 = vector.extract_strided_slice %1337 {offsets = [0, 0], sizes = [1, 32], strides = [1, 1]} : vector<2x32xf32> to vector<1x32xf32>
    %c0_603 = arith.constant 0 : index
    %c10_604 = arith.constant 10 : index
    %c0_605 = arith.constant 0 : index
    %1340 = vector.load %arg23[%c0_603, %c10_604, %c0_605] : memref<2x24x32xf32, #tpu.memory_space<vmem>>, vector<1x1x32xf32>
    %1341 = vector.shape_cast %1340 : vector<1x1x32xf32> to vector<1x32xf32>
    %1342 = vector.shape_cast %1339 : vector<1x32xf32> to vector<1x1x32xf32>
    tpu.vector_store %arg23[%c0_603, %c10_604, %c0_605], %1342 {strides = array<i32>} : memref<2x24x32xf32, #tpu.memory_space<vmem>>, vector<1x1x32xf32>,
    %1343 = vector.extract_strided_slice %1338 {offsets = [0, 0], sizes = [1, 32], strides = [1, 1]} : vector<2x32xf32> to vector<1x32xf32>
    %c0_606 = arith.constant 0 : index
    %c10_607 = arith.constant 10 : index
    %c0_608 = arith.constant 0 : index
    %1344 = vector.load %arg24[%c0_606, %c10_607, %c0_608] : memref<2x24x32xf32, #tpu.memory_space<vmem>>, vector<1x1x32xf32>
    %1345 = vector.shape_cast %1344 : vector<1x1x32xf32> to vector<1x32xf32>
    %1346 = vector.shape_cast %1343 : vector<1x32xf32> to vector<1x1x32xf32>
    tpu.vector_store %arg24[%c0_606, %c10_607, %c0_608], %1346 {strides = array<i32>} : memref<2x24x32xf32, #tpu.memory_space<vmem>>, vector<1x1x32xf32>,
    %1347 = vector.extract_strided_slice %1337 {offsets = [1, 0], sizes = [1, 32], strides = [1, 1]} : vector<2x32xf32> to vector<1x32xf32>
    %c0_609 = arith.constant 0 : index
    %c22 = arith.constant 22 : index
    %c0_610 = arith.constant 0 : index
    %1348 = vector.load %arg23[%c0_609, %c22, %c0_610] : memref<2x24x32xf32, #tpu.memory_space<vmem>>, vector<1x1x32xf32>
    %1349 = vector.shape_cast %1348 : vector<1x1x32xf32> to vector<1x32xf32>
    %1350 = vector.shape_cast %1347 : vector<1x32xf32> to vector<1x1x32xf32>
    tpu.vector_store %arg23[%c0_609, %c22, %c0_610], %1350 {strides = array<i32>} : memref<2x24x32xf32, #tpu.memory_space<vmem>>, vector<1x1x32xf32>,
    %1351 = vector.extract_strided_slice %1338 {offsets = [1, 0], sizes = [1, 32], strides = [1, 1]} : vector<2x32xf32> to vector<1x32xf32>
    %c0_611 = arith.constant 0 : index
    %c22_612 = arith.constant 22 : index
    %c0_613 = arith.constant 0 : index
    %1352 = vector.load %arg24[%c0_611, %c22_612, %c0_613] : memref<2x24x32xf32, #tpu.memory_space<vmem>>, vector<1x1x32xf32>
    %1353 = vector.shape_cast %1352 : vector<1x1x32xf32> to vector<1x32xf32>
    %1354 = vector.shape_cast %1351 : vector<1x32xf32> to vector<1x1x32xf32>
    tpu.vector_store %arg24[%c0_611, %c22_612, %c0_613], %1354 {strides = array<i32>} : memref<2x24x32xf32, #tpu.memory_space<vmem>>, vector<1x1x32xf32>,
    %c0_614 = arith.constant 0 : index
    %c0_615 = arith.constant 0 : index
    %c0_616 = arith.constant 0 : index
    %1355 = vector.load %arg23[%c0_614, %c0_615, %c0_616] : memref<2x24x32xf32, #tpu.memory_space<vmem>>, vector<1x24x32xf32>
    %1356 = vector.shape_cast %1355 : vector<1x24x32xf32> to vector<24x32xf32>
    %c0_617 = arith.constant 0 : index
    %c0_618 = arith.constant 0 : index
    %c0_619 = arith.constant 0 : index
    %1357 = vector.load %arg24[%c0_617, %c0_618, %c0_619] : memref<2x24x32xf32, #tpu.memory_space<vmem>>, vector<1x24x32xf32>
    %1358 = vector.shape_cast %1357 : vector<1x24x32xf32> to vector<24x32xf32>
    %1359 = arith.truncf %1329 : vector<2x32xf32> to vector<2x32xbf16>
    %1360 = arith.truncf %1356 : vector<24x32xf32> to vector<24x32xbf16>
    %1361 = arith.truncf %1358 : vector<24x32xf32> to vector<24x32xbf16>
    %1362 = vector.extract_strided_slice %1359 {offsets = [0, 0], sizes = [2, 8], strides = [1, 1]} : vector<2x32xbf16> to vector<2x8xbf16>
    %1363 = vector.extract_strided_slice %1360 {offsets = [0, 0], sizes = [24, 8], strides = [1, 1]} : vector<24x32xbf16> to vector<24x8xbf16>
    %cst_620 = arith.constant dense<0.000000e+00> : vector<2x24xf32>
    %1364 = tpu.matmul %1362, %1363, %cst_620 {dimension_numbers = #tpu.dot_dimension_numbers<[1], [1], [0], [0], [0, 0, 1, 0], [], []>} : vector<2x8xbf16>, vector<24x8xbf16>, vector<2x24xf32> -> vector<2x24xf32>
    %cst_621 = arith.constant 0.353553385 : f32
    %1365 = vector.broadcast %cst_621 : f32 to vector<2x24xf32>
    %1366 = arith.mulf %1364, %1365 : vector<2x24xf32>
    %cst_622 = arith.constant -1.000000e+30 : f32
    %1367 = vector.broadcast %cst_622 : f32 to vector<2x24xf32>
    %1368 = arith.select %1287, %1366, %1367 : vector<2x24xi1>, vector<2x24xf32>
    %cst_623 = arith.constant dense<0xFF800000> : vector<2xf32>
    %1369 = vector.multi_reduction <maximumf>, %1368, %cst_623 [1] : vector<2x24xf32> to vector<2xf32>
    %1370 = vector.shape_cast %1369 : vector<2xf32> to vector<2x1xf32>
    %1371 = vector.broadcast %1370 : vector<2x1xf32> to vector<2x24xf32>
    %1372 = arith.subf %1368, %1371 : vector<2x24xf32>
    %1373 = math.exp %1372 : vector<2x24xf32>
    %cst_624 = arith.constant dense<0.000000e+00> : vector<2xf32>
    %1374 = vector.multi_reduction <add>, %1373, %cst_624 [1] : vector<2x24xf32> to vector<2xf32>
    %1375 = vector.shape_cast %1374 : vector<2xf32> to vector<2x1xf32>
    %1376 = vector.broadcast %1375 : vector<2x1xf32> to vector<2x24xf32>
    %1377 = arith.divf %1373, %1376 : vector<2x24xf32>
    %1378 = arith.truncf %1377 : vector<2x24xf32> to vector<2x24xbf16>
    %1379 = vector.extract_strided_slice %1361 {offsets = [0, 0], sizes = [24, 8], strides = [1, 1]} : vector<24x32xbf16> to vector<24x8xbf16>
    %cst_625 = arith.constant dense<0.000000e+00> : vector<2x8xf32>
    %1380 = tpu.matmul %1378, %1379, %cst_625 {dimension_numbers = #tpu.dot_dimension_numbers<[1], [0], [0], [1], [0, 0, 1, 1], [], []>} : vector<2x24xbf16>, vector<24x8xbf16>, vector<2x8xf32> -> vector<2x8xf32>
    %1381 = vector.extract_strided_slice %1359 {offsets = [0, 8], sizes = [2, 8], strides = [1, 1]} : vector<2x32xbf16> to vector<2x8xbf16>
    %1382 = vector.extract_strided_slice %1360 {offsets = [0, 8], sizes = [24, 8], strides = [1, 1]} : vector<24x32xbf16> to vector<24x8xbf16>
    %cst_626 = arith.constant dense<0.000000e+00> : vector<2x24xf32>
    %1383 = tpu.matmul %1381, %1382, %cst_626 {dimension_numbers = #tpu.dot_dimension_numbers<[1], [1], [0], [0], [0, 0, 1, 0], [], []>} : vector<2x8xbf16>, vector<24x8xbf16>, vector<2x24xf32> -> vector<2x24xf32>
    %cst_627 = arith.constant 0.353553385 : f32
    %1384 = vector.broadcast %cst_627 : f32 to vector<2x24xf32>
    %1385 = arith.mulf %1383, %1384 : vector<2x24xf32>
    %cst_628 = arith.constant -1.000000e+30 : f32
    %1386 = vector.broadcast %cst_628 : f32 to vector<2x24xf32>
    %1387 = arith.select %1287, %1385, %1386 : vector<2x24xi1>, vector<2x24xf32>
    %cst_629 = arith.constant dense<0xFF800000> : vector<2xf32>
    %1388 = vector.multi_reduction <maximumf>, %1387, %cst_629 [1] : vector<2x24xf32> to vector<2xf32>
    %1389 = vector.shape_cast %1388 : vector<2xf32> to vector<2x1xf32>
    %1390 = vector.broadcast %1389 : vector<2x1xf32> to vector<2x24xf32>
    %1391 = arith.subf %1387, %1390 : vector<2x24xf32>
    %1392 = math.exp %1391 : vector<2x24xf32>
    %cst_630 = arith.constant dense<0.000000e+00> : vector<2xf32>
    %1393 = vector.multi_reduction <add>, %1392, %cst_630 [1] : vector<2x24xf32> to vector<2xf32>
    %1394 = vector.shape_cast %1393 : vector<2xf32> to vector<2x1xf32>
    %1395 = vector.broadcast %1394 : vector<2x1xf32> to vector<2x24xf32>
    %1396 = arith.divf %1392, %1395 : vector<2x24xf32>
    %1397 = arith.truncf %1396 : vector<2x24xf32> to vector<2x24xbf16>
    %1398 = vector.extract_strided_slice %1361 {offsets = [0, 8], sizes = [24, 8], strides = [1, 1]} : vector<24x32xbf16> to vector<24x8xbf16>
    %cst_631 = arith.constant dense<0.000000e+00> : vector<2x8xf32>
    %1399 = tpu.matmul %1397, %1398, %cst_631 {dimension_numbers = #tpu.dot_dimension_numbers<[1], [0], [0], [1], [0, 0, 1, 1], [], []>} : vector<2x24xbf16>, vector<24x8xbf16>, vector<2x8xf32> -> vector<2x8xf32>
    %1400 = vector.extract_strided_slice %1359 {offsets = [0, 16], sizes = [2, 8], strides = [1, 1]} : vector<2x32xbf16> to vector<2x8xbf16>
    %1401 = vector.extract_strided_slice %1360 {offsets = [0, 16], sizes = [24, 8], strides = [1, 1]} : vector<24x32xbf16> to vector<24x8xbf16>
    %cst_632 = arith.constant dense<0.000000e+00> : vector<2x24xf32>
    %1402 = tpu.matmul %1400, %1401, %cst_632 {dimension_numbers = #tpu.dot_dimension_numbers<[1], [1], [0], [0], [0, 0, 1, 0], [], []>} : vector<2x8xbf16>, vector<24x8xbf16>, vector<2x24xf32> -> vector<2x24xf32>
    %cst_633 = arith.constant 0.353553385 : f32
    %1403 = vector.broadcast %cst_633 : f32 to vector<2x24xf32>
    %1404 = arith.mulf %1402, %1403 : vector<2x24xf32>
    %cst_634 = arith.constant -1.000000e+30 : f32
    %1405 = vector.broadcast %cst_634 : f32 to vector<2x24xf32>
    %1406 = arith.select %1287, %1404, %1405 : vector<2x24xi1>, vector<2x24xf32>
    %cst_635 = arith.constant dense<0xFF800000> : vector<2xf32>
    %1407 = vector.multi_reduction <maximumf>, %1406, %cst_635 [1] : vector<2x24xf32> to vector<2xf32>
    %1408 = vector.shape_cast %1407 : vector<2xf32> to vector<2x1xf32>
    %1409 = vector.broadcast %1408 : vector<2x1xf32> to vector<2x24xf32>
    %1410 = arith.subf %1406, %1409 : vector<2x24xf32>
    %1411 = math.exp %1410 : vector<2x24xf32>
    %cst_636 = arith.constant dense<0.000000e+00> : vector<2xf32>
    %1412 = vector.multi_reduction <add>, %1411, %cst_636 [1] : vector<2x24xf32> to vector<2xf32>
    %1413 = vector.shape_cast %1412 : vector<2xf32> to vector<2x1xf32>
    %1414 = vector.broadcast %1413 : vector<2x1xf32> to vector<2x24xf32>
    %1415 = arith.divf %1411, %1414 : vector<2x24xf32>
    %1416 = arith.truncf %1415 : vector<2x24xf32> to vector<2x24xbf16>
    %1417 = vector.extract_strided_slice %1361 {offsets = [0, 16], sizes = [24, 8], strides = [1, 1]} : vector<24x32xbf16> to vector<24x8xbf16>
    %cst_637 = arith.constant dense<0.000000e+00> : vector<2x8xf32>
    %1418 = tpu.matmul %1416, %1417, %cst_637 {dimension_numbers = #tpu.dot_dimension_numbers<[1], [0], [0], [1], [0, 0, 1, 1], [], []>} : vector<2x24xbf16>, vector<24x8xbf16>, vector<2x8xf32> -> vector<2x8xf32>
    %1419 = vector.extract_strided_slice %1359 {offsets = [0, 24], sizes = [2, 8], strides = [1, 1]} : vector<2x32xbf16> to vector<2x8xbf16>
    %1420 = vector.extract_strided_slice %1360 {offsets = [0, 24], sizes = [24, 8], strides = [1, 1]} : vector<24x32xbf16> to vector<24x8xbf16>
    %cst_638 = arith.constant dense<0.000000e+00> : vector<2x24xf32>
    %1421 = tpu.matmul %1419, %1420, %cst_638 {dimension_numbers = #tpu.dot_dimension_numbers<[1], [1], [0], [0], [0, 0, 1, 0], [], []>} : vector<2x8xbf16>, vector<24x8xbf16>, vector<2x24xf32> -> vector<2x24xf32>
    %cst_639 = arith.constant 0.353553385 : f32
    %1422 = vector.broadcast %cst_639 : f32 to vector<2x24xf32>
    %1423 = arith.mulf %1421, %1422 : vector<2x24xf32>
    %cst_640 = arith.constant -1.000000e+30 : f32
    %1424 = vector.broadcast %cst_640 : f32 to vector<2x24xf32>
    %1425 = arith.select %1287, %1423, %1424 : vector<2x24xi1>, vector<2x24xf32>
    %cst_641 = arith.constant dense<0xFF800000> : vector<2xf32>
    %1426 = vector.multi_reduction <maximumf>, %1425, %cst_641 [1] : vector<2x24xf32> to vector<2xf32>
    %1427 = vector.shape_cast %1426 : vector<2xf32> to vector<2x1xf32>
    %1428 = vector.broadcast %1427 : vector<2x1xf32> to vector<2x24xf32>
    %1429 = arith.subf %1425, %1428 : vector<2x24xf32>
    %1430 = math.exp %1429 : vector<2x24xf32>
    %cst_642 = arith.constant dense<0.000000e+00> : vector<2xf32>
    %1431 = vector.multi_reduction <add>, %1430, %cst_642 [1] : vector<2x24xf32> to vector<2xf32>
    %1432 = vector.shape_cast %1431 : vector<2xf32> to vector<2x1xf32>
    %1433 = vector.broadcast %1432 : vector<2x1xf32> to vector<2x24xf32>
    %1434 = arith.divf %1430, %1433 : vector<2x24xf32>
    %1435 = arith.truncf %1434 : vector<2x24xf32> to vector<2x24xbf16>
    %1436 = vector.extract_strided_slice %1361 {offsets = [0, 24], sizes = [24, 8], strides = [1, 1]} : vector<24x32xbf16> to vector<24x8xbf16>
    %cst_643 = arith.constant dense<0.000000e+00> : vector<2x8xf32>
    %1437 = tpu.matmul %1435, %1436, %cst_643 {dimension_numbers = #tpu.dot_dimension_numbers<[1], [0], [0], [1], [0, 0, 1, 1], [], []>} : vector<2x24xbf16>, vector<24x8xbf16>, vector<2x8xf32> -> vector<2x8xf32>
    %1438 = tpu.concatenate %1380, %1399, %1418, %1437 in 1 : vector<2x8xf32>, vector<2x8xf32>, vector<2x8xf32>, vector<2x8xf32> -> vector<2x32xf32>
    %1439 = arith.truncf %1438 : vector<2x32xf32> to vector<2x32xbf16>
    %c0_644 = arith.constant 0 : index
    %c0_645 = arith.constant 0 : index
    %c0_646 = arith.constant 0 : index
    %1440 = vector.load %arg6[%c0_644, %c0_645, %c0_646] : memref<2x32x32xbf16, #tpu.memory_space<vmem>>, vector<1x32x32xbf16>
    %1441 = vector.shape_cast %1440 : vector<1x32x32xbf16> to vector<32x32xbf16>
    %cst_647 = arith.constant dense<0.000000e+00> : vector<2x32xf32>
    %1442 = tpu.matmul %1439, %1441, %cst_647 {dimension_numbers = #tpu.dot_dimension_numbers<[1], [0], [0], [1], [0, 0, 1, 1], [], []>} : vector<2x32xbf16>, vector<32x32xbf16>, vector<2x32xf32> -> vector<2x32xf32>
    %c0_648 = arith.constant 0 : index
    %c0_649 = arith.constant 0 : index
    %c0_650 = arith.constant 0 : index
    %1443 = vector.load %arg7[%c0_648, %c0_649, %c0_650] : memref<2x32x128xbf16, #tpu.memory_space<vmem>>, vector<1x32x128xbf16>
    %1444 = vector.shape_cast %1443 : vector<1x32x128xbf16> to vector<32x128xbf16>
    %cst_651 = arith.constant dense<0.000000e+00> : vector<2x128xf32>
    %1445 = tpu.matmul %1314, %1444, %cst_651 {dimension_numbers = #tpu.dot_dimension_numbers<[1], [0], [0], [1], [0, 0, 1, 1], [], []>} : vector<2x32xbf16>, vector<32x128xbf16>, vector<2x128xf32> -> vector<2x128xf32>
    %c0_652 = arith.constant 0 : index
    %c0_653 = arith.constant 0 : index
    %c0_654 = arith.constant 0 : index
    %1446 = vector.load %arg8[%c0_652, %c0_653, %c0_654] : memref<2x1x128xf32, #tpu.memory_space<vmem>>, vector<1x1x128xf32>
    %1447 = vector.shape_cast %1446 : vector<1x1x128xf32> to vector<1x128xf32>
    %1448 = vector.broadcast %1447 : vector<1x128xf32> to vector<2x128xf32>
    %1449 = arith.addf %1445, %1448 : vector<2x128xf32>
    %cst_655 = arith.constant 5.000000e-01 : f32
    %1450 = vector.broadcast %cst_655 : f32 to vector<2x128xf32>
    %1451 = arith.mulf %1450, %1449 : vector<2x128xf32>
    %cst_656 = arith.constant 4.471500e-02 : f32
    %1452 = vector.broadcast %cst_656 : f32 to vector<2x128xf32>
    %1453 = arith.mulf %1452, %1449 : vector<2x128xf32>
    %1454 = arith.mulf %1453, %1449 : vector<2x128xf32>
    %1455 = arith.mulf %1454, %1449 : vector<2x128xf32>
    %1456 = arith.addf %1449, %1455 : vector<2x128xf32>
    %cst_657 = arith.constant 0.797884583 : f32
    %1457 = vector.broadcast %cst_657 : f32 to vector<2x128xf32>
    %1458 = arith.mulf %1457, %1456 : vector<2x128xf32>
    %1459 = math.tanh %1458 : vector<2x128xf32>
    %cst_658 = arith.constant 1.000000e+00 : f32
    %1460 = vector.broadcast %cst_658 : f32 to vector<2x128xf32>
    %1461 = arith.addf %1460, %1459 : vector<2x128xf32>
    %1462 = arith.mulf %1451, %1461 : vector<2x128xf32>
    %1463 = arith.truncf %1462 : vector<2x128xf32> to vector<2x128xbf16>
    %c0_659 = arith.constant 0 : index
    %c0_660 = arith.constant 0 : index
    %c0_661 = arith.constant 0 : index
    %1464 = vector.load %arg9[%c0_659, %c0_660, %c0_661] : memref<2x128x32xbf16, #tpu.memory_space<vmem>>, vector<1x128x32xbf16>
    %1465 = vector.shape_cast %1464 : vector<1x128x32xbf16> to vector<128x32xbf16>
    %cst_662 = arith.constant dense<0.000000e+00> : vector<2x32xf32>
    %1466 = tpu.matmul %1463, %1465, %cst_662 {dimension_numbers = #tpu.dot_dimension_numbers<[1], [0], [0], [1], [0, 0, 1, 1], [], []>} : vector<2x128xbf16>, vector<128x32xbf16>, vector<2x32xf32> -> vector<2x32xf32>
    %c0_663 = arith.constant 0 : index
    %c0_664 = arith.constant 0 : index
    %c0_665 = arith.constant 0 : index
    %1467 = vector.load %arg10[%c0_663, %c0_664, %c0_665] : memref<2x1x32xf32, #tpu.memory_space<vmem>>, vector<1x1x32xf32>
    %1468 = vector.shape_cast %1467 : vector<1x1x32xf32> to vector<1x32xf32>
    %1469 = vector.broadcast %1468 : vector<1x32xf32> to vector<2x32xf32>
    %1470 = arith.addf %1466, %1469 : vector<2x32xf32>
    %1471 = arith.addf %1278, %1442 : vector<2x32xf32>
    %1472 = arith.addf %1471, %1470 : vector<2x32xf32>
    %c1_666 = arith.constant 1 : index
    %c0_667 = arith.constant 0 : index
    %c0_668 = arith.constant 0 : index
    %1473 = vector.load %arg2[%c1_666, %c0_667, %c0_668] : memref<2x1x32xf32, #tpu.memory_space<vmem>>, vector<1x1x32xf32>
    %1474 = vector.shape_cast %1473 : vector<1x1x32xf32> to vector<1x32xf32>
    %c1_669 = arith.constant 1 : index
    %c0_670 = arith.constant 0 : index
    %c0_671 = arith.constant 0 : index
    %1475 = vector.load %arg3[%c1_669, %c0_670, %c0_671] : memref<2x1x32xf32, #tpu.memory_space<vmem>>, vector<1x1x32xf32>
    %1476 = vector.shape_cast %1475 : vector<1x1x32xf32> to vector<1x32xf32>
    %cst_672 = arith.constant dense<0.000000e+00> : vector<2xf32>
    %1477 = vector.multi_reduction <add>, %1472, %cst_672 [1] : vector<2x32xf32> to vector<2xf32>
    %1478 = vector.shape_cast %1477 : vector<2xf32> to vector<2x1xf32>
    %cst_673 = arith.constant 3.200000e+01 : f32
    %1479 = vector.broadcast %cst_673 : f32 to vector<2x1xf32>
    %1480 = arith.divf %1478, %1479 : vector<2x1xf32>
    %1481 = vector.broadcast %1480 : vector<2x1xf32> to vector<2x32xf32>
    %1482 = arith.subf %1472, %1481 : vector<2x32xf32>
    %1483 = arith.mulf %1482, %1482 : vector<2x32xf32>
    %cst_674 = arith.constant dense<0.000000e+00> : vector<2xf32>
    %1484 = vector.multi_reduction <add>, %1483, %cst_674 [1] : vector<2x32xf32> to vector<2xf32>
    %1485 = vector.shape_cast %1484 : vector<2xf32> to vector<2x1xf32>
    %cst_675 = arith.constant 3.200000e+01 : f32
    %1486 = vector.broadcast %cst_675 : f32 to vector<2x1xf32>
    %1487 = arith.divf %1485, %1486 : vector<2x1xf32>
    %1488 = vector.broadcast %1480 : vector<2x1xf32> to vector<2x32xf32>
    %1489 = arith.subf %1472, %1488 : vector<2x32xf32>
    %cst_676 = arith.constant 9.99999974E-6 : f32
    %1490 = vector.broadcast %cst_676 : f32 to vector<2x1xf32>
    %1491 = arith.addf %1487, %1490 : vector<2x1xf32>
    %1492 = math.rsqrt %1491 : vector<2x1xf32>
    %1493 = vector.broadcast %1492 : vector<2x1xf32> to vector<2x32xf32>
    %1494 = arith.mulf %1489, %1493 : vector<2x32xf32>
    %1495 = vector.broadcast %1474 : vector<1x32xf32> to vector<2x32xf32>
    %1496 = arith.mulf %1494, %1495 : vector<2x32xf32>
    %1497 = vector.broadcast %1476 : vector<1x32xf32> to vector<2x32xf32>
    %1498 = arith.addf %1496, %1497 : vector<2x32xf32>
    %1499 = arith.truncf %1498 : vector<2x32xf32> to vector<2x32xbf16>
    %c1_677 = arith.constant 1 : index
    %c0_678 = arith.constant 0 : index
    %c0_679 = arith.constant 0 : index
    %1500 = vector.load %arg4[%c1_677, %c0_678, %c0_679] : memref<2x32x96xbf16, #tpu.memory_space<vmem>>, vector<1x32x96xbf16>
    %1501 = vector.shape_cast %1500 : vector<1x32x96xbf16> to vector<32x96xbf16>
    %cst_680 = arith.constant dense<0.000000e+00> : vector<2x96xf32>
    %1502 = tpu.matmul %1499, %1501, %cst_680 {dimension_numbers = #tpu.dot_dimension_numbers<[1], [0], [0], [1], [0, 0, 1, 1], [], []>} : vector<2x32xbf16>, vector<32x96xbf16>, vector<2x96xf32> -> vector<2x96xf32>
    %c1_681 = arith.constant 1 : index
    %c0_682 = arith.constant 0 : index
    %c0_683 = arith.constant 0 : index
    %1503 = vector.load %arg5[%c1_681, %c0_682, %c0_683] : memref<2x1x96xf32, #tpu.memory_space<vmem>>, vector<1x1x96xf32>
    %1504 = vector.shape_cast %1503 : vector<1x1x96xf32> to vector<1x96xf32>
    %1505 = vector.broadcast %1504 : vector<1x96xf32> to vector<2x96xf32>
    %1506 = arith.addf %1502, %1505 : vector<2x96xf32>
    %1507 = vector.extract_strided_slice %1506 {offsets = [0, 0], sizes = [2, 32], strides = [1, 1]} : vector<2x96xf32> to vector<2x32xf32>
    %1508 = arith.truncf %1507 : vector<2x32xf32> to vector<2x32xbf16>
    %cst_684 = arith.constant dense<0.000000e+00> : vector<2x32xf32>
    %1509 = tpu.matmul %1508, %5, %cst_684 {dimension_numbers = #tpu.dot_dimension_numbers<[1], [0], [0], [1], [0, 0, 1, 1], [], []>} : vector<2x32xbf16>, vector<32x32xbf16>, vector<2x32xf32> -> vector<2x32xf32>
    %1510 = vector.broadcast %1279 : vector<1x32xf32> to vector<2x32xf32>
    %1511 = arith.mulf %1507, %1510 : vector<2x32xf32>
    %1512 = vector.broadcast %1280 : vector<1x32xf32> to vector<2x32xf32>
    %1513 = arith.mulf %1509, %1512 : vector<2x32xf32>
    %1514 = arith.addf %1511, %1513 : vector<2x32xf32>
    %1515 = vector.extract_strided_slice %1506 {offsets = [0, 32], sizes = [2, 32], strides = [1, 1]} : vector<2x96xf32> to vector<2x32xf32>
    %1516 = arith.truncf %1515 : vector<2x32xf32> to vector<2x32xbf16>
    %cst_685 = arith.constant dense<0.000000e+00> : vector<2x32xf32>
    %1517 = tpu.matmul %1516, %5, %cst_685 {dimension_numbers = #tpu.dot_dimension_numbers<[1], [0], [0], [1], [0, 0, 1, 1], [], []>} : vector<2x32xbf16>, vector<32x32xbf16>, vector<2x32xf32> -> vector<2x32xf32>
    %1518 = vector.broadcast %1279 : vector<1x32xf32> to vector<2x32xf32>
    %1519 = arith.mulf %1515, %1518 : vector<2x32xf32>
    %1520 = vector.broadcast %1280 : vector<1x32xf32> to vector<2x32xf32>
    %1521 = arith.mulf %1517, %1520 : vector<2x32xf32>
    %1522 = arith.addf %1519, %1521 : vector<2x32xf32>
    %1523 = vector.extract_strided_slice %1506 {offsets = [0, 64], sizes = [2, 32], strides = [1, 1]} : vector<2x96xf32> to vector<2x32xf32>
    %1524 = vector.extract_strided_slice %1522 {offsets = [0, 0], sizes = [1, 32], strides = [1, 1]} : vector<2x32xf32> to vector<1x32xf32>
    %c1_686 = arith.constant 1 : index
    %c10_687 = arith.constant 10 : index
    %c0_688 = arith.constant 0 : index
    %1525 = vector.load %arg23[%c1_686, %c10_687, %c0_688] : memref<2x24x32xf32, #tpu.memory_space<vmem>>, vector<1x1x32xf32>
    %1526 = vector.shape_cast %1525 : vector<1x1x32xf32> to vector<1x32xf32>
    %1527 = vector.shape_cast %1524 : vector<1x32xf32> to vector<1x1x32xf32>
    tpu.vector_store %arg23[%c1_686, %c10_687, %c0_688], %1527 {strides = array<i32>} : memref<2x24x32xf32, #tpu.memory_space<vmem>>, vector<1x1x32xf32>,
    %1528 = vector.extract_strided_slice %1523 {offsets = [0, 0], sizes = [1, 32], strides = [1, 1]} : vector<2x32xf32> to vector<1x32xf32>
    %c1_689 = arith.constant 1 : index
    %c10_690 = arith.constant 10 : index
    %c0_691 = arith.constant 0 : index
    %1529 = vector.load %arg24[%c1_689, %c10_690, %c0_691] : memref<2x24x32xf32, #tpu.memory_space<vmem>>, vector<1x1x32xf32>
    %1530 = vector.shape_cast %1529 : vector<1x1x32xf32> to vector<1x32xf32>
    %1531 = vector.shape_cast %1528 : vector<1x32xf32> to vector<1x1x32xf32>
    tpu.vector_store %arg24[%c1_689, %c10_690, %c0_691], %1531 {strides = array<i32>} : memref<2x24x32xf32, #tpu.memory_space<vmem>>, vector<1x1x32xf32>,
    %1532 = vector.extract_strided_slice %1522 {offsets = [1, 0], sizes = [1, 32], strides = [1, 1]} : vector<2x32xf32> to vector<1x32xf32>
    %c1_692 = arith.constant 1 : index
    %c22_693 = arith.constant 22 : index
    %c0_694 = arith.constant 0 : index
    %1533 = vector.load %arg23[%c1_692, %c22_693, %c0_694] : memref<2x24x32xf32, #tpu.memory_space<vmem>>, vector<1x1x32xf32>
    %1534 = vector.shape_cast %1533 : vector<1x1x32xf32> to vector<1x32xf32>
    %1535 = vector.shape_cast %1532 : vector<1x32xf32> to vector<1x1x32xf32>
    tpu.vector_store %arg23[%c1_692, %c22_693, %c0_694], %1535 {strides = array<i32>} : memref<2x24x32xf32, #tpu.memory_space<vmem>>, vector<1x1x32xf32>,
    %1536 = vector.extract_strided_slice %1523 {offsets = [1, 0], sizes = [1, 32], strides = [1, 1]} : vector<2x32xf32> to vector<1x32xf32>
    %c1_695 = arith.constant 1 : index
    %c22_696 = arith.constant 22 : index
    %c0_697 = arith.constant 0 : index
    %1537 = vector.load %arg24[%c1_695, %c22_696, %c0_697] : memref<2x24x32xf32, #tpu.memory_space<vmem>>, vector<1x1x32xf32>
    %1538 = vector.shape_cast %1537 : vector<1x1x32xf32> to vector<1x32xf32>
    %1539 = vector.shape_cast %1536 : vector<1x32xf32> to vector<1x1x32xf32>
    tpu.vector_store %arg24[%c1_695, %c22_696, %c0_697], %1539 {strides = array<i32>} : memref<2x24x32xf32, #tpu.memory_space<vmem>>, vector<1x1x32xf32>,
    %c1_698 = arith.constant 1 : index
    %c0_699 = arith.constant 0 : index
    %c0_700 = arith.constant 0 : index
    %1540 = vector.load %arg23[%c1_698, %c0_699, %c0_700] : memref<2x24x32xf32, #tpu.memory_space<vmem>>, vector<1x24x32xf32>
    %1541 = vector.shape_cast %1540 : vector<1x24x32xf32> to vector<24x32xf32>
    %c1_701 = arith.constant 1 : index
    %c0_702 = arith.constant 0 : index
    %c0_703 = arith.constant 0 : index
    %1542 = vector.load %arg24[%c1_701, %c0_702, %c0_703] : memref<2x24x32xf32, #tpu.memory_space<vmem>>, vector<1x24x32xf32>
    %1543 = vector.shape_cast %1542 : vector<1x24x32xf32> to vector<24x32xf32>
    %1544 = arith.truncf %1514 : vector<2x32xf32> to vector<2x32xbf16>
    %1545 = arith.truncf %1541 : vector<24x32xf32> to vector<24x32xbf16>
    %1546 = arith.truncf %1543 : vector<24x32xf32> to vector<24x32xbf16>
    %1547 = vector.extract_strided_slice %1544 {offsets = [0, 0], sizes = [2, 8], strides = [1, 1]} : vector<2x32xbf16> to vector<2x8xbf16>
    %1548 = vector.extract_strided_slice %1545 {offsets = [0, 0], sizes = [24, 8], strides = [1, 1]} : vector<24x32xbf16> to vector<24x8xbf16>
    %cst_704 = arith.constant dense<0.000000e+00> : vector<2x24xf32>
    %1549 = tpu.matmul %1547, %1548, %cst_704 {dimension_numbers = #tpu.dot_dimension_numbers<[1], [1], [0], [0], [0, 0, 1, 0], [], []>} : vector<2x8xbf16>, vector<24x8xbf16>, vector<2x24xf32> -> vector<2x24xf32>
    %cst_705 = arith.constant 0.353553385 : f32
    %1550 = vector.broadcast %cst_705 : f32 to vector<2x24xf32>
    %1551 = arith.mulf %1549, %1550 : vector<2x24xf32>
    %cst_706 = arith.constant -1.000000e+30 : f32
    %1552 = vector.broadcast %cst_706 : f32 to vector<2x24xf32>
    %1553 = arith.select %1287, %1551, %1552 : vector<2x24xi1>, vector<2x24xf32>
    %cst_707 = arith.constant dense<0xFF800000> : vector<2xf32>
    %1554 = vector.multi_reduction <maximumf>, %1553, %cst_707 [1] : vector<2x24xf32> to vector<2xf32>
    %1555 = vector.shape_cast %1554 : vector<2xf32> to vector<2x1xf32>
    %1556 = vector.broadcast %1555 : vector<2x1xf32> to vector<2x24xf32>
    %1557 = arith.subf %1553, %1556 : vector<2x24xf32>
    %1558 = math.exp %1557 : vector<2x24xf32>
    %cst_708 = arith.constant dense<0.000000e+00> : vector<2xf32>
    %1559 = vector.multi_reduction <add>, %1558, %cst_708 [1] : vector<2x24xf32> to vector<2xf32>
    %1560 = vector.shape_cast %1559 : vector<2xf32> to vector<2x1xf32>
    %1561 = vector.broadcast %1560 : vector<2x1xf32> to vector<2x24xf32>
    %1562 = arith.divf %1558, %1561 : vector<2x24xf32>
    %1563 = arith.truncf %1562 : vector<2x24xf32> to vector<2x24xbf16>
    %1564 = vector.extract_strided_slice %1546 {offsets = [0, 0], sizes = [24, 8], strides = [1, 1]} : vector<24x32xbf16> to vector<24x8xbf16>
    %cst_709 = arith.constant dense<0.000000e+00> : vector<2x8xf32>
    %1565 = tpu.matmul %1563, %1564, %cst_709 {dimension_numbers = #tpu.dot_dimension_numbers<[1], [0], [0], [1], [0, 0, 1, 1], [], []>} : vector<2x24xbf16>, vector<24x8xbf16>, vector<2x8xf32> -> vector<2x8xf32>
    %1566 = vector.extract_strided_slice %1544 {offsets = [0, 8], sizes = [2, 8], strides = [1, 1]} : vector<2x32xbf16> to vector<2x8xbf16>
    %1567 = vector.extract_strided_slice %1545 {offsets = [0, 8], sizes = [24, 8], strides = [1, 1]} : vector<24x32xbf16> to vector<24x8xbf16>
    %cst_710 = arith.constant dense<0.000000e+00> : vector<2x24xf32>
    %1568 = tpu.matmul %1566, %1567, %cst_710 {dimension_numbers = #tpu.dot_dimension_numbers<[1], [1], [0], [0], [0, 0, 1, 0], [], []>} : vector<2x8xbf16>, vector<24x8xbf16>, vector<2x24xf32> -> vector<2x24xf32>
    %cst_711 = arith.constant 0.353553385 : f32
    %1569 = vector.broadcast %cst_711 : f32 to vector<2x24xf32>
    %1570 = arith.mulf %1568, %1569 : vector<2x24xf32>
    %cst_712 = arith.constant -1.000000e+30 : f32
    %1571 = vector.broadcast %cst_712 : f32 to vector<2x24xf32>
    %1572 = arith.select %1287, %1570, %1571 : vector<2x24xi1>, vector<2x24xf32>
    %cst_713 = arith.constant dense<0xFF800000> : vector<2xf32>
    %1573 = vector.multi_reduction <maximumf>, %1572, %cst_713 [1] : vector<2x24xf32> to vector<2xf32>
    %1574 = vector.shape_cast %1573 : vector<2xf32> to vector<2x1xf32>
    %1575 = vector.broadcast %1574 : vector<2x1xf32> to vector<2x24xf32>
    %1576 = arith.subf %1572, %1575 : vector<2x24xf32>
    %1577 = math.exp %1576 : vector<2x24xf32>
    %cst_714 = arith.constant dense<0.000000e+00> : vector<2xf32>
    %1578 = vector.multi_reduction <add>, %1577, %cst_714 [1] : vector<2x24xf32> to vector<2xf32>
    %1579 = vector.shape_cast %1578 : vector<2xf32> to vector<2x1xf32>
    %1580 = vector.broadcast %1579 : vector<2x1xf32> to vector<2x24xf32>
    %1581 = arith.divf %1577, %1580 : vector<2x24xf32>
    %1582 = arith.truncf %1581 : vector<2x24xf32> to vector<2x24xbf16>
    %1583 = vector.extract_strided_slice %1546 {offsets = [0, 8], sizes = [24, 8], strides = [1, 1]} : vector<24x32xbf16> to vector<24x8xbf16>
    %cst_715 = arith.constant dense<0.000000e+00> : vector<2x8xf32>
    %1584 = tpu.matmul %1582, %1583, %cst_715 {dimension_numbers = #tpu.dot_dimension_numbers<[1], [0], [0], [1], [0, 0, 1, 1], [], []>} : vector<2x24xbf16>, vector<24x8xbf16>, vector<2x8xf32> -> vector<2x8xf32>
    %1585 = vector.extract_strided_slice %1544 {offsets = [0, 16], sizes = [2, 8], strides = [1, 1]} : vector<2x32xbf16> to vector<2x8xbf16>
    %1586 = vector.extract_strided_slice %1545 {offsets = [0, 16], sizes = [24, 8], strides = [1, 1]} : vector<24x32xbf16> to vector<24x8xbf16>
    %cst_716 = arith.constant dense<0.000000e+00> : vector<2x24xf32>
    %1587 = tpu.matmul %1585, %1586, %cst_716 {dimension_numbers = #tpu.dot_dimension_numbers<[1], [1], [0], [0], [0, 0, 1, 0], [], []>} : vector<2x8xbf16>, vector<24x8xbf16>, vector<2x24xf32> -> vector<2x24xf32>
    %cst_717 = arith.constant 0.353553385 : f32
    %1588 = vector.broadcast %cst_717 : f32 to vector<2x24xf32>
    %1589 = arith.mulf %1587, %1588 : vector<2x24xf32>
    %cst_718 = arith.constant -1.000000e+30 : f32
    %1590 = vector.broadcast %cst_718 : f32 to vector<2x24xf32>
    %1591 = arith.select %1287, %1589, %1590 : vector<2x24xi1>, vector<2x24xf32>
    %cst_719 = arith.constant dense<0xFF800000> : vector<2xf32>
    %1592 = vector.multi_reduction <maximumf>, %1591, %cst_719 [1] : vector<2x24xf32> to vector<2xf32>
    %1593 = vector.shape_cast %1592 : vector<2xf32> to vector<2x1xf32>
    %1594 = vector.broadcast %1593 : vector<2x1xf32> to vector<2x24xf32>
    %1595 = arith.subf %1591, %1594 : vector<2x24xf32>
    %1596 = math.exp %1595 : vector<2x24xf32>
    %cst_720 = arith.constant dense<0.000000e+00> : vector<2xf32>
    %1597 = vector.multi_reduction <add>, %1596, %cst_720 [1] : vector<2x24xf32> to vector<2xf32>
    %1598 = vector.shape_cast %1597 : vector<2xf32> to vector<2x1xf32>
    %1599 = vector.broadcast %1598 : vector<2x1xf32> to vector<2x24xf32>
    %1600 = arith.divf %1596, %1599 : vector<2x24xf32>
    %1601 = arith.truncf %1600 : vector<2x24xf32> to vector<2x24xbf16>
    %1602 = vector.extract_strided_slice %1546 {offsets = [0, 16], sizes = [24, 8], strides = [1, 1]} : vector<24x32xbf16> to vector<24x8xbf16>
    %cst_721 = arith.constant dense<0.000000e+00> : vector<2x8xf32>
    %1603 = tpu.matmul %1601, %1602, %cst_721 {dimension_numbers = #tpu.dot_dimension_numbers<[1], [0], [0], [1], [0, 0, 1, 1], [], []>} : vector<2x24xbf16>, vector<24x8xbf16>, vector<2x8xf32> -> vector<2x8xf32>
    %1604 = vector.extract_strided_slice %1544 {offsets = [0, 24], sizes = [2, 8], strides = [1, 1]} : vector<2x32xbf16> to vector<2x8xbf16>
    %1605 = vector.extract_strided_slice %1545 {offsets = [0, 24], sizes = [24, 8], strides = [1, 1]} : vector<24x32xbf16> to vector<24x8xbf16>
    %cst_722 = arith.constant dense<0.000000e+00> : vector<2x24xf32>
    %1606 = tpu.matmul %1604, %1605, %cst_722 {dimension_numbers = #tpu.dot_dimension_numbers<[1], [1], [0], [0], [0, 0, 1, 0], [], []>} : vector<2x8xbf16>, vector<24x8xbf16>, vector<2x24xf32> -> vector<2x24xf32>
    %cst_723 = arith.constant 0.353553385 : f32
    %1607 = vector.broadcast %cst_723 : f32 to vector<2x24xf32>
    %1608 = arith.mulf %1606, %1607 : vector<2x24xf32>
    %cst_724 = arith.constant -1.000000e+30 : f32
    %1609 = vector.broadcast %cst_724 : f32 to vector<2x24xf32>
    %1610 = arith.select %1287, %1608, %1609 : vector<2x24xi1>, vector<2x24xf32>
    %cst_725 = arith.constant dense<0xFF800000> : vector<2xf32>
    %1611 = vector.multi_reduction <maximumf>, %1610, %cst_725 [1] : vector<2x24xf32> to vector<2xf32>
    %1612 = vector.shape_cast %1611 : vector<2xf32> to vector<2x1xf32>
    %1613 = vector.broadcast %1612 : vector<2x1xf32> to vector<2x24xf32>
    %1614 = arith.subf %1610, %1613 : vector<2x24xf32>
    %1615 = math.exp %1614 : vector<2x24xf32>
    %cst_726 = arith.constant dense<0.000000e+00> : vector<2xf32>
    %1616 = vector.multi_reduction <add>, %1615, %cst_726 [1] : vector<2x24xf32> to vector<2xf32>
    %1617 = vector.shape_cast %1616 : vector<2xf32> to vector<2x1xf32>
    %1618 = vector.broadcast %1617 : vector<2x1xf32> to vector<2x24xf32>
    %1619 = arith.divf %1615, %1618 : vector<2x24xf32>
    %1620 = arith.truncf %1619 : vector<2x24xf32> to vector<2x24xbf16>
    %1621 = vector.extract_strided_slice %1546 {offsets = [0, 24], sizes = [24, 8], strides = [1, 1]} : vector<24x32xbf16> to vector<24x8xbf16>
    %cst_727 = arith.constant dense<0.000000e+00> : vector<2x8xf32>
    %1622 = tpu.matmul %1620, %1621, %cst_727 {dimension_numbers = #tpu.dot_dimension_numbers<[1], [0], [0], [1], [0, 0, 1, 1], [], []>} : vector<2x24xbf16>, vector<24x8xbf16>, vector<2x8xf32> -> vector<2x8xf32>
    %1623 = tpu.concatenate %1565, %1584, %1603, %1622 in 1 : vector<2x8xf32>, vector<2x8xf32>, vector<2x8xf32>, vector<2x8xf32> -> vector<2x32xf32>
    %1624 = arith.truncf %1623 : vector<2x32xf32> to vector<2x32xbf16>
    %c1_728 = arith.constant 1 : index
    %c0_729 = arith.constant 0 : index
    %c0_730 = arith.constant 0 : index
    %1625 = vector.load %arg6[%c1_728, %c0_729, %c0_730] : memref<2x32x32xbf16, #tpu.memory_space<vmem>>, vector<1x32x32xbf16>
    %1626 = vector.shape_cast %1625 : vector<1x32x32xbf16> to vector<32x32xbf16>
    %cst_731 = arith.constant dense<0.000000e+00> : vector<2x32xf32>
    %1627 = tpu.matmul %1624, %1626, %cst_731 {dimension_numbers = #tpu.dot_dimension_numbers<[1], [0], [0], [1], [0, 0, 1, 1], [], []>} : vector<2x32xbf16>, vector<32x32xbf16>, vector<2x32xf32> -> vector<2x32xf32>
    %c1_732 = arith.constant 1 : index
    %c0_733 = arith.constant 0 : index
    %c0_734 = arith.constant 0 : index
    %1628 = vector.load %arg7[%c1_732, %c0_733, %c0_734] : memref<2x32x128xbf16, #tpu.memory_space<vmem>>, vector<1x32x128xbf16>
    %1629 = vector.shape_cast %1628 : vector<1x32x128xbf16> to vector<32x128xbf16>
    %cst_735 = arith.constant dense<0.000000e+00> : vector<2x128xf32>
    %1630 = tpu.matmul %1499, %1629, %cst_735 {dimension_numbers = #tpu.dot_dimension_numbers<[1], [0], [0], [1], [0, 0, 1, 1], [], []>} : vector<2x32xbf16>, vector<32x128xbf16>, vector<2x128xf32> -> vector<2x128xf32>
    %c1_736 = arith.constant 1 : index
    %c0_737 = arith.constant 0 : index
    %c0_738 = arith.constant 0 : index
    %1631 = vector.load %arg8[%c1_736, %c0_737, %c0_738] : memref<2x1x128xf32, #tpu.memory_space<vmem>>, vector<1x1x128xf32>
    %1632 = vector.shape_cast %1631 : vector<1x1x128xf32> to vector<1x128xf32>
    %1633 = vector.broadcast %1632 : vector<1x128xf32> to vector<2x128xf32>
    %1634 = arith.addf %1630, %1633 : vector<2x128xf32>
    %cst_739 = arith.constant 5.000000e-01 : f32
    %1635 = vector.broadcast %cst_739 : f32 to vector<2x128xf32>
    %1636 = arith.mulf %1635, %1634 : vector<2x128xf32>
    %cst_740 = arith.constant 4.471500e-02 : f32
    %1637 = vector.broadcast %cst_740 : f32 to vector<2x128xf32>
    %1638 = arith.mulf %1637, %1634 : vector<2x128xf32>
    %1639 = arith.mulf %1638, %1634 : vector<2x128xf32>
    %1640 = arith.mulf %1639, %1634 : vector<2x128xf32>
    %1641 = arith.addf %1634, %1640 : vector<2x128xf32>
    %cst_741 = arith.constant 0.797884583 : f32
    %1642 = vector.broadcast %cst_741 : f32 to vector<2x128xf32>
    %1643 = arith.mulf %1642, %1641 : vector<2x128xf32>
    %1644 = math.tanh %1643 : vector<2x128xf32>
    %cst_742 = arith.constant 1.000000e+00 : f32
    %1645 = vector.broadcast %cst_742 : f32 to vector<2x128xf32>
    %1646 = arith.addf %1645, %1644 : vector<2x128xf32>
    %1647 = arith.mulf %1636, %1646 : vector<2x128xf32>
    %1648 = arith.truncf %1647 : vector<2x128xf32> to vector<2x128xbf16>
    %c1_743 = arith.constant 1 : index
    %c0_744 = arith.constant 0 : index
    %c0_745 = arith.constant 0 : index
    %1649 = vector.load %arg9[%c1_743, %c0_744, %c0_745] : memref<2x128x32xbf16, #tpu.memory_space<vmem>>, vector<1x128x32xbf16>
    %1650 = vector.shape_cast %1649 : vector<1x128x32xbf16> to vector<128x32xbf16>
    %cst_746 = arith.constant dense<0.000000e+00> : vector<2x32xf32>
    %1651 = tpu.matmul %1648, %1650, %cst_746 {dimension_numbers = #tpu.dot_dimension_numbers<[1], [0], [0], [1], [0, 0, 1, 1], [], []>} : vector<2x128xbf16>, vector<128x32xbf16>, vector<2x32xf32> -> vector<2x32xf32>
    %c1_747 = arith.constant 1 : index
    %c0_748 = arith.constant 0 : index
    %c0_749 = arith.constant 0 : index
    %1652 = vector.load %arg10[%c1_747, %c0_748, %c0_749] : memref<2x1x32xf32, #tpu.memory_space<vmem>>, vector<1x1x32xf32>
    %1653 = vector.shape_cast %1652 : vector<1x1x32xf32> to vector<1x32xf32>
    %1654 = vector.broadcast %1653 : vector<1x32xf32> to vector<2x32xf32>
    %1655 = arith.addf %1651, %1654 : vector<2x32xf32>
    %1656 = arith.addf %1472, %1627 : vector<2x32xf32>
    %1657 = arith.addf %1656, %1655 : vector<2x32xf32>
    %c0_750 = arith.constant 0 : index
    %c0_751 = arith.constant 0 : index
    %1658 = vector.load %arg18[%c0_750, %c0_751] : memref<1x32xf32, #tpu.memory_space<vmem>>, vector<1x32xf32>
    %c0_752 = arith.constant 0 : index
    %c0_753 = arith.constant 0 : index
    %1659 = vector.load %arg19[%c0_752, %c0_753] : memref<1x32xf32, #tpu.memory_space<vmem>>, vector<1x32xf32>
    %cst_754 = arith.constant dense<0.000000e+00> : vector<2xf32>
    %1660 = vector.multi_reduction <add>, %1657, %cst_754 [1] : vector<2x32xf32> to vector<2xf32>
    %1661 = vector.shape_cast %1660 : vector<2xf32> to vector<2x1xf32>
    %cst_755 = arith.constant 3.200000e+01 : f32
    %1662 = vector.broadcast %cst_755 : f32 to vector<2x1xf32>
    %1663 = arith.divf %1661, %1662 : vector<2x1xf32>
    %1664 = vector.broadcast %1663 : vector<2x1xf32> to vector<2x32xf32>
    %1665 = arith.subf %1657, %1664 : vector<2x32xf32>
    %1666 = arith.mulf %1665, %1665 : vector<2x32xf32>
    %cst_756 = arith.constant dense<0.000000e+00> : vector<2xf32>
    %1667 = vector.multi_reduction <add>, %1666, %cst_756 [1] : vector<2x32xf32> to vector<2xf32>
    %1668 = vector.shape_cast %1667 : vector<2xf32> to vector<2x1xf32>
    %cst_757 = arith.constant 3.200000e+01 : f32
    %1669 = vector.broadcast %cst_757 : f32 to vector<2x1xf32>
    %1670 = arith.divf %1668, %1669 : vector<2x1xf32>
    %1671 = vector.broadcast %1663 : vector<2x1xf32> to vector<2x32xf32>
    %1672 = arith.subf %1657, %1671 : vector<2x32xf32>
    %cst_758 = arith.constant 9.99999974E-6 : f32
    %1673 = vector.broadcast %cst_758 : f32 to vector<2x1xf32>
    %1674 = arith.addf %1670, %1673 : vector<2x1xf32>
    %1675 = math.rsqrt %1674 : vector<2x1xf32>
    %1676 = vector.broadcast %1675 : vector<2x1xf32> to vector<2x32xf32>
    %1677 = arith.mulf %1672, %1676 : vector<2x32xf32>
    %1678 = vector.broadcast %1658 : vector<1x32xf32> to vector<2x32xf32>
    %1679 = arith.mulf %1677, %1678 : vector<2x32xf32>
    %1680 = vector.broadcast %1659 : vector<1x32xf32> to vector<2x32xf32>
    %1681 = arith.addf %1679, %1680 : vector<2x32xf32>
    %1682 = arith.truncf %1681 : vector<2x32xf32> to vector<2x32xbf16>
    %c0_759 = arith.constant 0 : index
    %c0_760 = arith.constant 0 : index
    %1683 = vector.load %arg20[%c0_759, %c0_760] : memref<32x128xbf16, #tpu.memory_space<vmem>>, vector<32x128xbf16>
    %cst_761 = arith.constant dense<0.000000e+00> : vector<2x128xf32>
    %1684 = tpu.matmul %1682, %1683, %cst_761 {dimension_numbers = #tpu.dot_dimension_numbers<[1], [0], [0], [1], [0, 0, 1, 1], [], []>} : vector<2x32xbf16>, vector<32x128xbf16>, vector<2x128xf32> -> vector<2x128xf32>
    %c0_762 = arith.constant 0 : index
    %c0_763 = arith.constant 0 : index
    %1685 = vector.load %arg21[%c0_762, %c0_763] : memref<1x128xf32, #tpu.memory_space<vmem>>, vector<1x128xf32>
    %1686 = vector.broadcast %1685 : vector<1x128xf32> to vector<2x128xf32>
    %1687 = arith.addf %1684, %1686 : vector<2x128xf32>
    %cst_764 = arith.constant dense<0xFF800000> : vector<2xf32>
    %1688 = vector.multi_reduction <maximumf>, %1687, %cst_764 [1] : vector<2x128xf32> to vector<2xf32>
    %1689 = vector.shape_cast %1688 : vector<2xf32> to vector<2x1xf32>
    %1690 = tpu.iota {dimensions = array<i32: 1>} : vector<2x128xi32>
    %1691 = arith.sitofp %1690 : vector<2x128xi32> to vector<2x128xf32>
    %1692 = vector.broadcast %1689 : vector<2x1xf32> to vector<2x128xf32>
    %1693 = arith.cmpf oeq, %1687, %1692 : vector<2x128xf32>
    %cst_765 = arith.constant 1.280000e+02 : f32
    %1694 = vector.broadcast %cst_765 : f32 to vector<2x128xf32>
    %1695 = arith.select %1693, %1691, %1694 : vector<2x128xi1>, vector<2x128xf32>
    %cst_766 = arith.constant dense<0x7F800000> : vector<2xf32>
    %1696 = vector.multi_reduction <minimumf>, %1695, %cst_766 [1] : vector<2x128xf32> to vector<2xf32>
    %1697 = vector.shape_cast %1696 : vector<2xf32> to vector<2x1xf32>
    %1698 = arith.fptosi %1697 : vector<2x1xf32> to vector<2x1xi32>
    %c0_767 = arith.constant 0 : index
    %c3 = arith.constant 3 : index
    %1699 = vector.load %arg22[%c0_767, %c3] : memref<2x4xi32, #tpu.memory_space<vmem>>, vector<2x1xi32>
    tpu.vector_store %arg22[%c0_767, %c3], %1698 {strides = array<i32>} : memref<2x4xi32, #tpu.memory_space<vmem>>, vector<2x1xi32>,
    return
  }
}

</mosaic_0001>

<bundles_post_ra>
// kernel: gptj_generate.1
= control target key start
LH: loop header
LB: loop body
LE: loop exit
PB: predicated region body
PF: predicated region fallthrough
CT: control target
= control target key end

     0   :  { %s13622_s0 = inlined_call_operand.vmem [shape: s32[16,1], index: 0, kind: input, shape index: {}]   ;;  %s13623_s1 = inlined_call_operand.vmem [shape: bf16[128,32], index: 1, kind: input, shape index: {}]   ;;  %s13624_s2 = inlined_call_operand.vmem [shape: f32[2,1,32], index: 2, kind: input, shape index: {}]   ;;  %s13625_s3 = inlined_call_operand.vmem [shape: f32[2,1,32], index: 3, kind: input, shape index: {}]   ;;  %s13626_s4 = inlined_call_operand.vmem [shape: bf16[2,32,96], index: 4, kind: input, shape index: {}]   ;;  %s13627_s5 = inlined_call_operand.vmem [shape: f32[2,1,96], index: 5, kind: input, shape index: {}]   ;;  %s13628_s6 = inlined_call_operand.vmem [shape: bf16[2,32,32], index: 6, kind: input, shape index: {}]   ;;  %s13629_s7 = inlined_call_operand.vmem [shape: bf16[2,32,128], index: 7, kind: input, shape index: {}]   ;;  %s13630_s8 = inlined_call_operand.vmem [shape: f32[2,1,128], index: 8, kind: input, shape index: {}]   ;;  %s13631_s9 = inlined_call_operand.vmem [shape: bf16[2,128,32], index: 9, kind: input, shape index: {}]   ;;  %s13632_s10 = inlined_call_operand.vmem [shape: f32[2,1,32], index: 10, kind: input, shape index: {}]   ;;  %s13633_s11 = inlined_call_operand.vmem [shape: f32[16,32], index: 11, kind: input, shape index: {}]   ;;  %s13634_s12 = inlined_call_operand.vmem [shape: f32[16,32], index: 12, kind: input, shape index: {}]   ;;  %s13635_s13 = inlined_call_operand.vmem [shape: f32[12,32], index: 13, kind: input, shape index: {}]   ;;  %s13636_s14 = inlined_call_operand.vmem [shape: f32[12,32], index: 14, kind: input, shape index: {}]   ;;  %s13637_s15 = inlined_call_operand.vmem [shape: bf16[32,32], index: 15, kind: input, shape index: {}]   ;;  %s13638_s16 = inlined_call_operand.vmem [shape: f32[16,16], index: 16, kind: input, shape index: {}]   ;;  %s13639_s17 = inlined_call_operand.vmem [shape: s32[2,24], index: 17, kind: input, shape index: {}]   ;;  %s13640_s18 = inlined_call_operand.vmem [shape: f32[1,32], index: 18, kind: input, shape index: {}]   ;;  %s13641_s19 = inlined_call_operand.vmem [shape: f32[1,32], index: 19, kind: input, shape index: {}]   ;;  %s13642_s20 = inlined_call_operand.vmem [shape: bf16[32,128], index: 20, kind: input, shape index: {}]   ;;  %s13643_s21 = inlined_call_operand.vmem [shape: f32[1,128], index: 21, kind: input, shape index: {}]   ;;  %s13644_s22 = inlined_call_operand.hbm [shape: s32[2,4], index: 22, kind: output, shape index: {}]  }
   0x1   :  { %13680 = sst [smem:[#allocation7_spill]] %s13622_s0 }
   0x2   :  { %13681 = sst [smem:[#allocation8_spill]] %s13623_s1 }
   0x3   :  { %13682 = sst [smem:[#allocation9_spill]] %s13624_s2 }
   0x4   :  { %13683 = sst [smem:[#allocation10_spill]] %s13625_s3 }
   0x5   :  { %13684 = sst [smem:[#allocation11_spill]] %s13626_s4 }
   0x6   :  { %13685 = sst [smem:[#allocation12_spill]] %s13627_s5 }
   0x7   :  { %13686 = sst [smem:[#allocation13_spill]] %s13628_s6 }
   0x8   :  { %13687 = sst [smem:[#allocation14_spill]] %s13632_s10 }
   0x9   :  { %13688 = sst [smem:[#allocation15_spill]] %s13636_s14 }
   0xa   :  { %13689 = sst [smem:[#allocation16_spill]] %s13641_s19 }
   0xb   :  { %13690 = sst [smem:[#allocation17_spill]] %s13644_s22 }
   0xc   :  { %v8837_v0 = vld [vmem:[%s13639_s17] ss:$0 sm:$0xff]  ;;  %v107_v1 = vld [vmem:[%s13639_s17 + $0x1] sm:$0x1]  ;;  %v110_v2 = vlaneseq  ;;  %s13691_s23 = sld [smem:[#allocation7_spill]]  ;;  %v11094_v4 = vmov 0  }
   0xd   :  { %10673 = vset.pattern.permute.xlu0 %v11094_v4  ;;  %vm2507_vm0 = vcmp.le.s32.totalorder %v107_v1, 8  ;;  %vm4591_vm1 = vcmp.le.s32.totalorder %v107_v1, 9  ;;  %vm6671_vm2 = vcmp.le.s32.totalorder %v107_v1, 10  ;;  %s13692_s24 = sld [smem:[#allocation8_spill]]  ;;  %v11095_v10 = vmov 0.0  }
   0xe   :  { %v2501_v6 = vshrl.u32 %v110_v2, 7  ;;  %v2508_v7 = vsel %vm2507_vm0, 1, %v11094_v4  ;;  %v4592_v8 = vsel %vm4591_vm1, 1, %v11094_v4  ;;  %9573 = vmatprep.subr.bf16.mxu0 %v11095_v10  ;;  %v6672_v11 = vsel %vm6671_vm2, 1, %v11094_v4  ;;  %9601 = vmatprep.subr.bf16.mxu1 %v11095_v10 }
   0xf   :  { %vm11096_vm4 = vmmov 0  }
  0x10   :  { %v2511_v13 = vsub.s32 0, %v2501_v6  ;;  %vm2506_vm3 = vcmp.eq.s32.totalorder %v8837_v0, %v2501_v6  ;;  %9589 = vmatprep.mubr.msk.bf16.mxu0 %vm11096_vm4, %v11095_v10  ;;  %9605 = vmatprep.mubr.msk.bf16.mxu1 %vm11096_vm4, %v11095_v10 }
  0x12   :  { %v108_v3 = vld [vmem:[%s13691_s23] sm:$0xff]  ;;  %v109_v9 = vld [vmem:[%s13691_s23 + $0x8] sm:$0xff]  ;;  %v2512_v14 = vrot.slane %v2508_v7, %v2511_v13  ;;  %v4596_v15 = vrot.slane %v4592_v8, %v2511_v13  ;;  %v6676_v16 = vrot.slane %v6672_v11, %v2511_v13 }
  0x13   :  { %v10704_v5 = vld [vmem:[%s13692_s24 + $0x38] sm:$0xff]   ;;  %113 = vperm.xlu0 %10673, %v108_v3   ;;  %v10705_v12 = vld [vmem:[%s13692_s24 + $0x30] sm:$0xff]   ;;  %v10706_v17 = vld [vmem:[%s13692_s24 + $0x28] sm:$0xff]  }
  0x14   :  { %9574 = vmatpush3.bf16.msra.mxu0 %v10704_v5  ;;  %vm2513_vm5 = vcmp.eq.s32.totalorder %v2512_v14, 1  ;;  %vm4597_vm6 = vcmp.eq.s32.totalorder %v4596_v15, 1  ;;  %vm6677_vm7 = vcmp.eq.s32.totalorder %v6676_v16, 1  ;;  %v10707_v21 = vld [vmem:[%s13692_s24 + $0x20] sm:$0xff]   ;;  %v10708_v22 = vld [vmem:[%s13692_s24 + $0x18] sm:$0xff]   ;;  %v10709_v23 = vld [vmem:[%s13692_s24 + $0x10] sm:$0xff]  }
  0x15   :  { %9575 = vmatprep.subr.bf16.mxu0 %v11095_v10  ;;  %vm11259_vm8 = vmand %vm2506_vm3, %vm2513_vm5  ;;  %v10710_v24 = vld [vmem:[%s13692_s24 + $0x8] sm:$0xff]   ;;  %v10711_v25 = vld [vmem:[%s13692_s24] sm:$0xff]  }
  0x16   :  { %vm11264_vm9 = vmand %vm2506_vm3, %vm4597_vm6 }
  0x17   :  { %116 = vperm.xlu0 %10673, %v109_v9   ;;  %vm11269_vm10 = vmand %vm2506_vm3, %vm6677_vm7 }
  0x18   :  { %9576 = vmatpush3.bf16.msra.mxu0 %v10705_v12 }
  0x19   :  { %9577 = vmatprep.subr.bf16.mxu0 %v11095_v10 }
  0x1c   :  { %9578 = vmatpush3.bf16.msra.mxu0 %v10706_v17 }
  0x1d   :  { %9579 = vmatprep.subr.bf16.mxu0 %v11095_v10 }
  0x20   :  { %9580 = vmatpush3.bf16.msra.mxu0 %v10707_v21 }
  0x21   :  { %9581 = vmatprep.subr.bf16.mxu0 %v11095_v10 }
  0x24   :  { %9582 = vmatpush3.bf16.msra.mxu0 %v10708_v22 }
  0x25   :  { %9583 = vmatprep.subr.bf16.mxu0 %v11095_v10 }
  0x28   :  { %9584 = vmatpush3.bf16.msra.mxu0 %v10709_v23 }
  0x29   :  { %9585 = vmatprep.subr.bf16.mxu0 %v11095_v10 }
  0x2c   :  { %9586 = vmatpush3.bf16.msra.mxu0 %v10710_v24 }
  0x2d   :  { %9587 = vmatprep.subr.bf16.mxu0 %v11095_v10 }
  0x30   :  { %9588 = vmatpush3.bf16.msra.mxu0 %v10711_v25 }
  0x31   :  { %9593 = vmatprep.subr.bf16.mxu0 %v11095_v10 }
  0x32   :  { %27 = vsyncpa [#allocation5], 0  ;;  %v11294_v27 = vand.u32 127, %v110_v2  ;;  %v11097_v29 = vmov 1.0|1.0   ;;  %vm73_vm14 = vcmask 261120  }
  0x33   :  { %74 = vst.msk [vmem:[#allocation2] sm:$0xff] %vm73_vm14, %v11095_v10  ;;  %75 = vst.msk [vmem:[#allocation2 + $0x8] sm:$0xff] %vm73_vm14, %v11095_v10  ;;  %s13699_s26 = sld [smem:[#allocation11_spill]]  ;;  %v11360_v1 = vld [vmem:[%s13637_s15 + $0x8] sm:$0xff]   ;;  %v11367_v2 = vld [vmem:[%s13637_s15] sm:$0xff]   ;;  %s13669_s27 = smov 96  }
  0x34   :  { %76 = vst.msk [vmem:[#allocation2 + $0x10] sm:$0xff] %vm73_vm14, %v11095_v10  ;;  %77 = vst.msk [vmem:[#allocation2 + $0x18] sm:$0xff] %vm73_vm14, %v11095_v10  ;;  %s13700_s29 = sld [smem:[#allocation9_spill]]  ;;  %9602 = vmatpush3.bf16.msra.mxu1 %v11360_v1  ;;  %v11393_v12 = vld [vmem:[%s13633_s11] sm:$0xff]  ;;  %s13671_s30 = smov 32   ;;  %v11402_v13 = vld [vmem:[%s13633_s11 + $0x8] sm:$0xff] }
  0x35   :  { %78 = vst.msk [vmem:[#allocation2 + $0x20] sm:$0xff] %vm73_vm14, %v11095_v10  ;;  %79 = vst.msk [vmem:[#allocation2 + $0x28] sm:$0xff] %vm73_vm14, %v11095_v10  ;;  %s13701_s0 = sld [smem:[#allocation10_spill]]  ;;  %9603 = vmatprep.subr.bf16.mxu1 %v11095_v10  ;;  %v11412_v15 = vld [vmem:[%s13634_s12] sm:$0xff]  ;;  %v11417_v21 = vld [vmem:[%s13634_s12 + $0x8] sm:$0xff]  ;;  %s11100_s11 = smov 72  }
  0x36   :  { %80 = vst.msk [vmem:[#allocation3] sm:$0xff] %vm73_vm14, %v11095_v10  ;;  %81 = vst.msk [vmem:[#allocation3 + $0x8] sm:$0xff] %vm73_vm14, %v11095_v10  ;;  %s13702_s2 = sld [smem:[#allocation12_spill]]  ;;  %s11101_s12 = smov 88   ;;  %vm488_vm15 = vcmask 64512   ;;  %vm13677_vm0 = vcmask 130048  }
  0x37   :  { %82 = vst.msk [vmem:[#allocation3 + $0x10] sm:$0xff] %vm73_vm14, %v11095_v10  ;;  %83 = vst.msk [vmem:[#allocation3 + $0x18] sm:$0xff] %vm73_vm14, %v11095_v10  ;;  %s13667_s25 = smov 120   ;;  %s11103_s3 = smov 80   ;;  %vm1015_vm1 = vcmask 195584   ;;  %vm2343_vm2 = vcmask 1040384  }
  0x38   :  { %84 = vst.msk [vmem:[#allocation3 + $0x20] sm:$0xff] %vm73_vm14, %v11095_v10  ;;  %85 = vst.msk [vmem:[#allocation3 + $0x28] sm:$0xff] %vm73_vm14, %v11095_v10  ;;  %9604 = vmatpush3.bf16.msra.mxu1 %v11367_v2  ;;  %s13665_s28 = smov 112   ;;  %s13663_s4 = smov 104   ;;  %vm2347_vm3 = vcmask 254976   ;;  %vm2442_vm5 = vcmask 1041408  }
  0x39   :  { %v10712_v46 = vld [vmem:[%s13699_s26 + $0x8] sm:$0xff]   ;;  %v10713_v47 = vld [vmem:[%s13699_s26] sm:$0xff]   ;;  %9609 = vmatprep.subr.bf16.mxu1 %v11095_v10  ;;  %s13653_s17 = smov 48   ;;  %s13652_s23 = smov 40   ;;  %vm2453_vm7 = vcmask 1024  }
  0x3a   :  { %v8730_v56 = vld [vmem:[%s13700_s29] ss:$0 sm:$0xff]  ;;  %s13656_s1 = smov 56   ;;  %s13703_s5 = sld [smem:[#allocation13_spill]] }
  0x3b   :  { %v8731_v60 = vld [vmem:[%s13701_s0] ss:$0 sm:$0xff]  ;;  %s13657_s6 = smov 8  }
  0x3c   :  { %v8732_v4 = vld [vmem:[%s13702_s2] ss:$0 sm:$0xff] }
  0x8e   :  { %v114_v26 = vpop.permute.xlu0 %113 }
  0x8f   :  { %vm118_vm11 = vcmp.eq.s32.totalorder %v114_v26, %v11294_v27 }
  0x92   :  { %v117_v28 = vpop.permute.xlu0 %116 }
  0x93   :  { %vm119_vm12 = vcmp.eq.s32.totalorder %v117_v28, %v11294_v27 }
  0x94   :  { %vm8728_vm13 = vmpackc.low %vm119_vm12, %vm118_vm11 }
  0x95   :  { %9590 = vmatmul.mubr.msk.bf16.vlgmr.msra.gmra.mxu0 %vm8728_vm13, %v11097_v29  ;;  %vm2727_vm13 = vcmask 253952  }
  0x96   :  { %9597 = vmatprep.mubr.msk.bf16.mxu0 %vm11096_vm4, %v11095_v10  ;;  %9594 = vmatpush3.bf16.msra.mxu0 %v10712_v46 }
  0x97   :  { %9595 = vmatprep.subr.bf16.mxu0 %v11095_v10 }
  0x9a   :  { %9596 = vmatpush3.bf16.msra.mxu0 %v10713_v47 }
  0x9b   :  { %9623 = vmatprep.subr.bf16.mxu0 %v11095_v10 }
 0x155   :  { %v11325_v30 = vpop.f32.mrf.mxu0 }
 0x156   :  { %v220_v31 = vsel %vm73_vm14, %v11325_v30, 0.0 }
 0x157   :  { %v9591_v32 = vpop.f32.mrf.mxu0  ;;  %221 = vadd.xlane.f32.xlu1 %v220_v31 }
 0x159   :  { %v11329_v33 = vpop.f32.mrf.mxu0 }
 0x15a   :  { %v223_v34 = vsel %vm73_vm14, %v11329_v33, 0.0 }
 0x15b   :  { %v9592_v35 = vpop.f32.mrf.mxu0  ;;  %224 = vadd.xlane.f32.xlu1 %v223_v34 }
 0x1e0   :  { %v222_v36 = vpop.xlane.xlu1 %221 }
 0x1e1   :  { %v227_v37 = vmul.f32 0.03125, %v222_v36 }
 0x1e3   :  { %v229_v38 = vsub.f32 %v11325_v30, %v227_v37 }
 0x1e4   :  { %v225_v39 = vpop.xlane.xlu1 %224 }
 0x1e5   :  { %v228_v40 = vmul.f32 0.03125, %v225_v39  ;;  %v231_v41 = vmul.f32 %v229_v38, %v229_v38 }
 0x1e7   :  { %v230_v42 = vsub.f32 %v11329_v33, %v228_v40  ;;  %v233_v43 = vsel %vm73_vm14, %v231_v41, 0.0 }
 0x1e8   :  { %234 = vadd.xlane.f32.xlu0 %v233_v43 }
 0x1e9   :  { %v232_v44 = vmul.f32 %v230_v42, %v230_v42 }
 0x1eb   :  { %v236_v45 = vsel %vm73_vm14, %v232_v44, 0.0 }
 0x1ec   :  { %237 = vadd.xlane.f32.xlu1 %v236_v45 }
 0x271   :  { %v235_v48 = vpop.xlane.xlu0 %234 }
 0x272   :  { %v239_v49 = vmul.f32 0.03125, %v235_v48 }
 0x274   :  { %v241_v50 = vadd.f32 1e-05, %v239_v49 }
 0x275   :  { %v238_v51 = vpop.xlane.xlu1 %237 }
 0x276   :  { %10834 = vrsqrt.f32 %v241_v50  ;;  %v240_v52 = vmul.f32 0.03125, %v238_v51 }
 0x278   :  { %v242_v53 = vadd.f32 1e-05, %v240_v52 }
 0x27a   :  { %10836 = vrsqrt.f32 %v242_v53 }
 0x283   :  { %v10835_v54 = vpop.eup %10834 }
 0x284   :  { %v245_v55 = vmul.f32 %v10835_v54, %v229_v38 }
 0x286   :  { %v253_v59 = vmul.f32 %v8730_v56, %v245_v55 }
 0x287   :  { %v10837_v57 = vpop.eup %10836 }
 0x288   :  { %v246_v58 = vmul.f32 %v10837_v57, %v230_v42  ;;  %v261_v62 = vadd.f32 %v8731_v60, %v253_v59 }
 0x28a   :  { %v254_v61 = vmul.f32 %v8730_v56, %v246_v58 }
 0x28c   :  { %v262_v63 = vadd.f32 %v8731_v60, %v254_v61 }
 0x28e   :  { %v11351_v0 = vpack.c.bf16 %v262_v63, %v261_v62  ;;  %v11467_v62 = vld [vmem:[%s13638_s16] sm:$0xff] }
 0x290   :  { %9598 = vmatmul.mubr.msk.bf16.vlgmr.msra.gmra.mxu0 %vm73_vm14, %v11351_v0 }
 0x291   :  { %9625 = vmatprep.mubr.msk.bf16.mxu0 %vm11096_vm4, %v11095_v10 }
 0x350   :  { %v324_v3 = vpop.f32.mrf.mxu0 }
 0x351   :  { %v11374_v7 = vadd.f32 %v8732_v4, %v324_v3 }
 0x352   :  { %v9599_v5 = vpop.f32.mrf.mxu0 }
 0x353   :  { %v388_v24 = vmul.f32 %v11374_v7, %v11393_v12 }
 0x354   :  { %v327_v6 = vpop.f32.mrf.mxu0 }
 0x355   :  { %v11376_v8 = vadd.f32 %v8732_v4, %v327_v6  ;;  %v11473_v6 = vld [vmem:[%s13638_s16 + $0x8] sm:$0xff]  ;;  %s13654_s16 = smov 64  }
 0x356   :  { %v9600_v9 = vpop.f32.mrf.mxu0 }
 0x357   :  { %v11380_v11 = vpack.c.bf16 %v11376_v8, %v11374_v7  ;;  %v389_v25 = vmul.f32 %v11376_v8, %v11402_v13 }
 0x359   :  { %395 = vrot.lane.b32.xlu1 %v11380_v11, %s13669_s27  ;;  %9606 = vmatmul.mubr.msk.bf16.vlgmr.msra.gmra.mxu1 %vm73_vm14, %v11380_v11 }
 0x35a   :  { %9610 = vmatpush3.bf16.msra.mxu1 %v11360_v1  ;;  %9613 = vmatprep.mubr.msk.bf16.mxu1 %vm11096_vm4, %v11095_v10 }
 0x35b   :  { %9611 = vmatprep.subr.bf16.mxu1 %v11095_v10 }
 0x35d   :  { %443 = vrot.lane.b32.xlu1 %v11393_v12, %s13671_s30 }
 0x35e   :  { %9612 = vmatpush3.bf16.msra.mxu1 %v11367_v2 }
 0x35f   :  { %9617 = vmatprep.subr.bf16.mxu1 %v11095_v10 }
 0x361   :  { %445 = vrot.lane.b32.xlu1 %v11402_v13, %s13671_s30 }
 0x3cb   :  { %v396_v14 = vpop.permute.xlu1 %395 }
 0x3cc   :  { %9614 = vmatmul.mubr.msk.bf16.vlgmr.msra.gmra.mxu1 %vm73_vm14, %v396_v14 }
 0x3cd   :  { %9619 = vmatprep.mubr.msk.bf16.mxu1 %vm11096_vm4, %v11095_v10 }
 0x3cf   :  { %v444_v41 = vpop.permute.xlu1 %443 }
 0x3d0   :  { %v449_v44 = vmul.f32 %v444_v41, %v11374_v7 }
 0x3d3   :  { %v446_v42 = vpop.permute.xlu1 %445 }
 0x3d4   :  { %v450_v45 = vmul.f32 %v446_v42, %v11376_v8 }
 0x419   :  { %v381_v16 = vpop.f32.mrf.mxu1 }
 0x41a   :  { %v390_v22 = vmul.f32 %v381_v16, %v11412_v15 }
 0x41b   :  { %v9607_v17 = vpop.f32.mrf.mxu1 }
 0x41c   :  { %v392_v31 = vadd.f32 %v390_v22, %v388_v24 }
 0x41d   :  { %v384_v23 = vpop.f32.mrf.mxu1 }
 0x41e   :  { %v391_v26 = vmul.f32 %v384_v23, %v11417_v21 }
 0x41f   :  { %v9608_v28 = vpop.f32.mrf.mxu1 }
 0x420   :  { %v393_v32 = vadd.f32 %v391_v26, %v389_v25 }
 0x422   :  { %v483_v34 = vpack.c.bf16 %v393_v32, %v392_v31 }
 0x48c   :  { %v434_v35 = vpop.f32.mrf.mxu1 }
 0x48d   :  { %v451_v36 = vmul.f32 %v434_v35, %v11412_v15 }
 0x48e   :  { %v9615_v37 = vpop.f32.mrf.mxu1 }
 0x48f   :  { %455 = vrot.lane.b32.xlu1 %v451_v36, %s13671_s30 }
 0x490   :  { %v437_v38 = vpop.f32.mrf.mxu1 }
 0x491   :  { %v452_v39 = vmul.f32 %v437_v38, %v11417_v21 }
 0x492   :  { %v9616_v40 = vpop.f32.mrf.mxu1 }
 0x493   :  { %457 = vrot.lane.b32.xlu0 %v452_v39, %s13671_s30 }
 0x501   :  { %v456_v43 = vpop.permute.xlu1 %455 }
 0x502   :  { %v11431_v47 = vadd.f32 %v456_v43, %v449_v44 }
 0x505   :  { %v458_v46 = vpop.permute.xlu0 %457 }
 0x506   :  { %v11433_v48 = vadd.f32 %v458_v46, %v450_v45 }
 0x508   :  { %v484_v49 = vpack.c.bf16 %v11433_v48, %v11431_v47 }
 0x50a   :  { %864 = vrot.lane.b32.xlu0 %v484_v49, %s11100_s11  ;;  %486 = vrot.lane.b32.xlu1 %v484_v49, %s13669_s27 }
 0x50e   :  { %614 = vrot.lane.b32.xlu1 %v484_v49, %s11101_s12 }
 0x512   :  { %612 = vrot.lane.b32.xlu1 %v483_v34, %s13667_s25 }
 0x516   :  { %739 = vrot.lane.b32.xlu1 %v484_v49, %s11103_s3 }
 0x51a   :  { %737 = vrot.lane.b32.xlu1 %v483_v34, %s13665_s28  ;;  %s13709_s28 = smov 40  }
 0x51e   :  { %862 = vrot.lane.b32.xlu1 %v483_v34, %s13663_s4 }
 0x57c   :  { %v487_v50 = vpop.permute.xlu1 %486  ;;  %v865_v57 = vpop.permute.xlu0 %864 }
 0x57d   :  { %v493_v51 = vsel %vm488_vm15, %v487_v50, 0  ;;  %v870_v59 = vsel %vm488_vm15, %v865_v57, 0 }
 0x57e   :  { %9618 = vmatpush3.bf16.xpose.msra.mxu1 %v493_v51 }
 0x57f   :  { %9629 = vmatprep.subr.bf16.mxu1 %v11095_v10 }
 0x580   :  { %v615_v52 = vpop.permute.xlu1 %614 }
 0x581   :  { %v620_v54 = vsel %vm488_vm15, %v615_v52, 0 }
 0x584   :  { %v613_v53 = vpop.permute.xlu1 %612 }
 0x585   :  { %9620 = vmatmul.mubr.msk.bf16.vlgmr.msra.gmra.mxu1 %vm488_vm15, %v483_v34 }
 0x586   :  { %9630 = vmatpush3.bf16.xpose.msra.mxu1 %v620_v54  ;;  %9631 = vmatprep.mubr.msk.bf16.mxu1 %vm11096_vm4, %v11095_v10 }
 0x587   :  { %9641 = vmatprep.subr.bf16.mxu1 %v11095_v10 }
 0x588   :  { %v740_v55 = vpop.permute.xlu1 %739 }
 0x589   :  { %v745_v56 = vsel %vm488_vm15, %v740_v55, 0 }
 0x58c   :  { %v738_v58 = vpop.permute.xlu1 %737 }
 0x58d   :  { %9632 = vmatmul.mubr.msk.bf16.vlgmr.msra.gmra.mxu1 %vm488_vm15, %v613_v53 }
 0x58e   :  { %9642 = vmatpush3.bf16.xpose.msra.mxu1 %v745_v56  ;;  %9643 = vmatprep.mubr.msk.bf16.mxu1 %vm11096_vm4, %v11095_v10 }
 0x58f   :  { %9653 = vmatprep.subr.bf16.mxu1 %v11095_v10 }
 0x590   :  { %v863_v60 = vpop.permute.xlu1 %862 }
 0x595   :  { %9644 = vmatmul.mubr.msk.bf16.vlgmr.msra.gmra.mxu1 %vm488_vm15, %v738_v58 }
 0x596   :  { %9654 = vmatpush3.bf16.xpose.msra.mxu1 %v870_v59  ;;  %9655 = vmatprep.mubr.msk.bf16.mxu1 %vm11096_vm4, %v11095_v10 }
 0x597   :  { %9665 = vmatprep.subr.bf16.mxu1 %v11095_v10 }
 0x59d   :  { %9656 = vmatmul.mubr.msk.bf16.vlgmr.msra.gmra.mxu1 %vm488_vm15, %v863_v60 }
 0x59e   :  { %9669 = vmatprep.mubr.msk.bf16.mxu1 %vm11096_vm4, %v11095_v10 }
 0x645   :  { %v529_v61 = vpop.f32.mrf.mxu1 }
 0x646   :  { %v536_v63 = vmul.f32 0.35355338, %v529_v61 }
 0x647   :  { %v9621_v3 = vpop.f32.mrf.mxu1 }
 0x648   :  { %v538_v4 = vadd.f32 %v536_v63, %v11467_v62 }
 0x649   :  { %v532_v5 = vpop.f32.mrf.mxu1 }
 0x64a   :  { %v537_v9 = vmul.f32 0.35355338, %v532_v5  ;;  %v541_v14 = vsel %vm13677_vm0, %v538_v4, -inf }
 0x64b   :  { %542 = vmax.xlane.f32.xlu0 %v541_v14  ;;  %v9622_v16 = vpop.f32.mrf.mxu1 }
 0x64c   :  { %v539_v17 = vadd.f32 %v537_v9, %v11473_v6 }
 0x64d   :  { %v656_v22 = vpop.f32.mrf.mxu1 }
 0x64e   :  { %v663_v23 = vmul.f32 0.35355338, %v656_v22  ;;  %v544_v24 = vsel %vm13677_vm0, %v539_v17, -inf }
 0x64f   :  { %545 = vmax.xlane.f32.xlu1 %v544_v24  ;;  %v9633_v25 = vpop.f32.mrf.mxu1 }
 0x650   :  { %v665_v26 = vadd.f32 %v663_v23, %v11467_v62 }
 0x651   :  { %v659_v28 = vpop.f32.mrf.mxu1 }
 0x652   :  { %v664_v31 = vmul.f32 0.35355338, %v659_v28  ;;  %v667_v32 = vsel %vm13677_vm0, %v665_v26, -inf }
 0x653   :  { %668 = vmax.xlane.f32.xlu0 %v667_v32  ;;  %v9634_v34 = vpop.f32.mrf.mxu1 }
 0x654   :  { %v666_v35 = vadd.f32 %v664_v31, %v11473_v6 }
 0x655   :  { %v781_v36 = vpop.f32.mrf.mxu1 }
 0x656   :  { %v788_v37 = vmul.f32 0.35355338, %v781_v36  ;;  %v670_v38 = vsel %vm13677_vm0, %v666_v35, -inf }
 0x657   :  { %671 = vmax.xlane.f32.xlu0 %v670_v38  ;;  %v9645_v39 = vpop.f32.mrf.mxu1 }
 0x658   :  { %v790_v40 = vadd.f32 %v788_v37, %v11467_v62 }
 0x659   :  { %v784_v41 = vpop.f32.mrf.mxu1 }
 0x65a   :  { %v789_v42 = vmul.f32 0.35355338, %v784_v41  ;;  %v792_v43 = vsel %vm13677_vm0, %v790_v40, -inf }
 0x65b   :  { %793 = vmax.xlane.f32.xlu1 %v792_v43  ;;  %v9646_v44 = vpop.f32.mrf.mxu1 }
 0x65c   :  { %v791_v45 = vadd.f32 %v789_v42, %v11473_v6 }
 0x65d   :  { %v906_v46 = vpop.f32.mrf.mxu1 }
 0x65e   :  { %v913_v49 = vmul.f32 0.35355338, %v906_v46  ;;  %v795_v50 = vsel %vm13677_vm0, %v791_v45, -inf }
 0x65f   :  { %796 = vmax.xlane.f32.xlu0 %v795_v50  ;;  %v9657_v51 = vpop.f32.mrf.mxu1 }
 0x660   :  { %v915_v52 = vadd.f32 %v913_v49, %v11467_v62 }
 0x661   :  { %v909_v53 = vpop.f32.mrf.mxu1 }
 0x662   :  { %v914_v54 = vmul.f32 0.35355338, %v909_v53  ;;  %v917_v55 = vsel %vm13677_vm0, %v915_v52, -inf }
 0x663   :  { %918 = vmax.xlane.f32.xlu1 %v917_v55  ;;  %v9658_v56 = vpop.f32.mrf.mxu1 }
 0x664   :  { %v916_v57 = vadd.f32 %v914_v54, %v11473_v6 }
 0x666   :  { %v920_v58 = vsel %vm13677_vm0, %v916_v57, -inf }
 0x667   :  { %921 = vmax.xlane.f32.xlu0 %v920_v58 }
 0x674   :  { %564 = vrot.lane.b32.xlu1 %v11380_v11, %s13654_s16  ;;  %s13659_s16 = smov 24  }
 0x6d4   :  { %v543_v59 = vpop.xlane.xlu0 %542 }
 0x6d5   :  { %v547_v60 = vsub.f32 %v538_v4, %v543_v59 }
 0x6d7   :  { %v549_v61 = vmul.f32 1.442695, %v547_v60 }
 0x6d8   :  { %v546_v63 = vpop.xlane.xlu1 %545 }
 0x6d9   :  { %10838 = vpow2.f32 %v549_v61  ;;  %v548_v3 = vsub.f32 %v539_v17, %v546_v63 }
 0x6db   :  { %v551_v5 = vmul.f32 1.442695, %v548_v3 }
 0x6dc   :  { %v669_v9 = vpop.xlane.xlu0 %668 }
 0x6dd   :  { %10840 = vpow2.f32 %v551_v5  ;;  %v673_v14 = vsub.f32 %v665_v26, %v669_v9 }
 0x6df   :  { %v675_v16 = vmul.f32 1.442695, %v673_v14 }
 0x6e0   :  { %v672_v22 = vpop.xlane.xlu0 %671 }
 0x6e1   :  { %10842 = vpow2.f32 %v675_v16  ;;  %v674_v23 = vsub.f32 %v666_v35, %v672_v22 }
 0x6e3   :  { %v677_v24 = vmul.f32 1.442695, %v674_v23 }
 0x6e4   :  { %v794_v25 = vpop.xlane.xlu1 %793 }
 0x6e5   :  { %10844 = vpow2.f32 %v677_v24  ;;  %v798_v28 = vsub.f32 %v790_v40, %v794_v25 }
 0x6e6   :  { %v10839_v31 = vpop.eup %10838 }
 0x6e7   :  { %v800_v32 = vmul.f32 1.442695, %v798_v28  ;;  %v553_v4 = vsel %vm13677_vm0, %v10839_v31, 0.0 }
 0x6e8   :  { %v797_v34 = vpop.xlane.xlu0 %796  ;;  %554 = vadd.xlane.f32.xlu1 %v553_v4 }
 0x6e9   :  { %10846 = vpow2.f32 %v800_v32  ;;  %v799_v17 = vsub.f32 %v791_v45, %v797_v34 }
 0x6ea   :  { %v10841_v36 = vpop.eup %10840 }
 0x6eb   :  { %v802_v37 = vmul.f32 1.442695, %v799_v17  ;;  %v556_v26 = vsel %vm13677_vm0, %v10841_v36, 0.0 }
 0x6ec   :  { %v919_v38 = vpop.xlane.xlu1 %918  ;;  %557 = vadd.xlane.f32.xlu0 %v556_v26 }
 0x6ed   :  { %10848 = vpow2.f32 %v802_v37  ;;  %v923_v35 = vsub.f32 %v915_v52, %v919_v38 }
 0x6ee   :  { %v10843_v39 = vpop.eup %10842 }
 0x6ef   :  { %v925_v41 = vmul.f32 1.442695, %v923_v35  ;;  %v679_v40 = vsel %vm13677_vm0, %v10843_v39, 0.0 }
 0x6f0   :  { %680 = vadd.xlane.f32.xlu1 %v679_v40  ;;  %v565_v42 = vpop.permute.xlu1 %564  ;;  %v922_v43 = vpop.xlane.xlu0 %921 }
 0x6f1   :  { %10850 = vpow2.f32 %v925_v41  ;;  %v924_v44 = vsub.f32 %v916_v57, %v922_v43  ;;  %9624 = vmatpush3.bf16.msra.mxu0 %v565_v42  ;;  %v10716_v43 = vld [vmem:[%s13629_s7 + $0x8] sm:$0xff]  }
 0x6f2   :  { %v10845_v46 = vpop.eup %10844  ;;  %9635 = vmatprep.subr.bf16.mxu0 %v11095_v10 }
 0x6f3   :  { %v927_v45 = vmul.f32 1.442695, %v924_v44  ;;  %v682_v49 = vsel %vm13677_vm0, %v10845_v46, 0.0 }
 0x6f4   :  { %683 = vadd.xlane.f32.xlu0 %v682_v49 }
 0x6f5   :  { %10852 = vpow2.f32 %v927_v45 }
 0x6f6   :  { %v10847_v50 = vpop.eup %10846 }
 0x6f7   :  { %v804_v51 = vsel %vm13677_vm0, %v10847_v50, 0.0 }
 0x6f8   :  { %805 = vadd.xlane.f32.xlu1 %v804_v51 }
 0x6fa   :  { %v10849_v52 = vpop.eup %10848 }
 0x6fb   :  { %v807_v53 = vsel %vm13677_vm0, %v10849_v52, 0.0 }
 0x6fc   :  { %808 = vadd.xlane.f32.xlu0 %v807_v53 }
 0x6fe   :  { %v10851_v54 = vpop.eup %10850 }
 0x6ff   :  { %v929_v55 = vsel %vm13677_vm0, %v10851_v54, 0.0 }
 0x700   :  { %930 = vadd.xlane.f32.xlu1 %v929_v55  ;;  %v10718_v55 = vld [vmem:[%s13703_s5 + $0x8] sm:$0xff]  }
 0x701   :  { %9666 = vmatpush3.bf16.msra.mxu1 %v10718_v55 }
 0x702   :  { %v10853_v56 = vpop.eup %10852  ;;  %9667 = vmatprep.subr.bf16.mxu1 %v11095_v10 }
 0x703   :  { %v932_v57 = vsel %vm13677_vm0, %v10853_v56, 0.0 }
 0x704   :  { %933 = vadd.xlane.f32.xlu0 %v932_v57 }
 0x711   :  { %815 = vrot.lane.b32.xlu1 %v11380_v11, %s13653_s17  ;;  %s13661_s17 = smov 16  }
 0x715   :  { %940 = vrot.lane.b32.xlu1 %v11380_v11, %s13652_s23  ;;  %s13714_s23 = smov 96  }
 0x71a   :  { %690 = vrot.lane.b32.xlu0 %v11380_v11, %s13656_s1 }
 0x771   :  { %v555_v58 = vpop.xlane.xlu1 %554 }
 0x772   :  { %10854 = vrcp.f32 %v555_v58 }
 0x775   :  { %v558_v59 = vpop.xlane.xlu0 %557 }
 0x776   :  { %10856 = vrcp.f32 %v558_v59  ;;  %v10719_v59 = vld [vmem:[%s13703_s5] sm:$0xff]  }
 0x777   :  { %9668 = vmatpush3.bf16.msra.mxu1 %v10719_v59 }
 0x778   :  { %9681 = vmatprep.subr.bf16.mxu1 %v11095_v10 }
 0x779   :  { %v681_v61 = vpop.xlane.xlu1 %680 }
 0x77d   :  { %v684_v60 = vpop.xlane.xlu0 %683 }
 0x77e   :  { %10858 = vrcp.f32 %v684_v60 }
 0x77f   :  { %v10855_v63 = vpop.eup %10854  ;;  %10860 = vrcp.f32 %v681_v61 }
 0x780   :  { %v560_v5 = vmul.f32 %v10855_v63, %v10839_v31 }
 0x781   :  { %v806_v16 = vpop.xlane.xlu1 %805 }
 0x783   :  { %v10857_v3 = vpop.eup %10856 }
 0x784   :  { %v562_v9 = vmul.f32 %v10857_v3, %v10841_v36 }
 0x785   :  { %v809_v14 = vpop.xlane.xlu0 %808 }
 0x786   :  { %v563_v22 = vpack.c.bf16 %v562_v9, %v560_v5  ;;  %10862 = vrcp.f32 %v809_v14 }
 0x787   :  { %10864 = vrcp.f32 %v806_v16 }
 0x788   :  { %9626 = vmatmul.mubr.msk.bf16.vlgmr.msra.gmra.mxu0 %vm13677_vm0, %v563_v22  ;;  %v8751_v22 = vld [vmem:[%s13630_s8] ss:$0 sm:$0xff] }
 0x789   :  { %9637 = vmatprep.mubr.msk.bf16.mxu0 %vm11096_vm4, %v11095_v10  ;;  %v931_v25 = vpop.xlane.xlu1 %930 }
 0x78b   :  { %v10859_v11 = vpop.eup %10858 }
 0x78c   :  { %v10861_v24 = vpop.eup %10860  ;;  %v688_v28 = vmul.f32 %v10859_v11, %v10845_v46  ;;  %v10717_v46 = vld [vmem:[%s13629_s7] sm:$0xff]  }
 0x78d   :  { %v934_v23 = vpop.xlane.xlu0 %933  ;;  %v686_v31 = vmul.f32 %v10861_v24, %v10843_v39  ;;  %v816_v17 = vpop.permute.xlu1 %815 }
 0x78e   :  { %10866 = vrcp.f32 %v934_v23 }
 0x78f   :  { %10868 = vrcp.f32 %v931_v25  ;;  %v689_v4 = vpack.c.bf16 %v688_v28, %v686_v31 }
 0x791   :  { %v691_v32 = vpop.permute.xlu0 %690  ;;  %v941_v39 = vpop.permute.xlu1 %940 }
 0x792   :  { %9636 = vmatpush3.bf16.msra.mxu0 %v691_v32 }
 0x793   :  { %9647 = vmatprep.subr.bf16.mxu0 %v11095_v10  ;;  %v10863_v34 = vpop.eup %10862 }
 0x794   :  { %v10865_v36 = vpop.eup %10864  ;;  %v813_v37 = vmul.f32 %v10863_v34, %v10849_v52 }
 0x795   :  { %9638 = vmatmul.mubr.msk.bf16.vlgmr.msra.gmra.mxu0 %vm13677_vm0, %v689_v4  ;;  %v811_v26 = vmul.f32 %v10865_v36, %v10847_v50 }
 0x796   :  { %9648 = vmatpush3.bf16.msra.mxu0 %v816_v17  ;;  %9649 = vmatprep.mubr.msk.bf16.mxu0 %vm11096_vm4, %v11095_v10 }
 0x797   :  { %9659 = vmatprep.subr.bf16.mxu0 %v11095_v10  ;;  %v814_v38 = vpack.c.bf16 %v813_v37, %v811_v26 }
 0x79b   :  { %v10867_v35 = vpop.eup %10866 }
 0x79c   :  { %v10869_v41 = vpop.eup %10868  ;;  %v938_v40 = vmul.f32 %v10867_v35, %v10853_v56 }
 0x79d   :  { %9650 = vmatmul.mubr.msk.bf16.vlgmr.msra.gmra.mxu0 %vm13677_vm0, %v814_v38  ;;  %v936_v42 = vmul.f32 %v10869_v41, %v10851_v54 }
 0x79e   :  { %9660 = vmatpush3.bf16.msra.mxu0 %v941_v39  ;;  %9661 = vmatprep.mubr.msk.bf16.mxu0 %vm11096_vm4, %v11095_v10 }
 0x79f   :  { %9673 = vmatprep.subr.bf16.mxu0 %v11095_v10  ;;  %v939_v44 = vpack.c.bf16 %v938_v40, %v936_v42 }
 0x7a5   :  { %9662 = vmatmul.mubr.msk.bf16.vlgmr.msra.gmra.mxu0 %vm13677_vm0, %v939_v44 }
 0x7a6   :  { %9674 = vmatpush3.bf16.msra.mxu0 %v10716_v43  ;;  %9677 = vmatprep.mubr.msk.bf16.mxu0 %vm11096_vm4, %v11095_v10 }
 0x7a7   :  { %9675 = vmatprep.subr.bf16.mxu0 %v11095_v10 }
 0x7aa   :  { %9676 = vmatpush3.bf16.msra.mxu0 %v10717_v46 }
 0x7ab   :  { %9701 = vmatprep.subr.bf16.mxu0 %v11095_v10 }
 0x7ad   :  { %9678 = vmatmul.mubr.msk.bf16.vlgmr.msra.gmra.mxu0 %vm73_vm14, %v11351_v0 }
 0x7ae   :  { %9705 = vmatprep.mubr.msk.bf16.mxu0 %vm11096_vm4, %v11095_v10 }
 0x848   :  { %v11534_v45 = vpop.f32.mrf.mxu0 }
 0x84a   :  { %v9627_v49 = vpop.f32.mrf.mxu0 }
 0x84c   :  { %v11536_v50 = vpop.f32.mrf.mxu0 }
 0x84e   :  { %v9628_v51 = vpop.f32.mrf.mxu0 }
 0x855   :  { %v730_v52 = vpop.f32.mrf.mxu0 }
 0x857   :  { %v9639_v53 = vpop.f32.mrf.mxu0 }
 0x859   :  { %v733_v54 = vpop.f32.mrf.mxu0 }
 0x85a   :  { %v10674_v56 = vpack.i.bf16 %v733_v54, %v730_v52 }
 0x85b   :  { %v9640_v57 = vpop.f32.mrf.mxu0 }
 0x85c   :  { %10675 = vrot.lane.b32.xlu0 %v10674_v56, %s13657_s6  ;;  %s13704_s6 = smov 112  }
 0x85d   :  { %v855_v0 = vpop.f32.mrf.mxu0 }
 0x85f   :  { %v9651_v58 = vpop.f32.mrf.mxu0 }
 0x861   :  { %v858_v60 = vpop.f32.mrf.mxu0 }
 0x862   :  { %v10679_v61 = vpack.i.bf16 %v858_v60, %v855_v0 }
 0x863   :  { %v9652_v63 = vpop.f32.mrf.mxu0 }
 0x864   :  { %10680 = vrot.lane.b32.xlu1 %v10679_v61, %s13661_s17  ;;  %s13711_s17 = smov 16  }
 0x865   :  { %v980_v3 = vpop.f32.mrf.mxu0 }
 0x867   :  { %v9663_v5 = vpop.f32.mrf.mxu0 }
 0x869   :  { %v983_v9 = vpop.f32.mrf.mxu0 }
 0x86a   :  { %v10684_v14 = vpack.i.bf16 %v983_v9, %v980_v3 }
 0x86b   :  { %v9664_v16 = vpop.f32.mrf.mxu0 }
 0x86c   :  { %10685 = vrot.lane.b32.xlu0 %v10684_v14, %s13659_s16  ;;  %v10720_v16 = vld [vmem:[%s13631_s9 + $0x38] sm:$0xff]   ;;  %s13705_s16 = smov 104  }
 0x86d   :  { %v1136_v11 = vpop.f32.mrf.mxu0 }
 0x86e   :  { %v1137_v23 = vadd.f32 %v8751_v22, %v1136_v11  ;;  %v10723_v11 = vld [vmem:[%s13631_s9 + $0x20] sm:$0xff]  }
 0x86f   :  { %v9679_v24 = vpop.f32.mrf.mxu0 }
 0x870   :  { %v1145_v25 = vmul.f32 0.044715, %v1137_v23  ;;  %v1143_v43 = vmul.f32 0.5, %v1137_v23  ;;  %v10725_v24 = vld [vmem:[%s13631_s9 + $0x10] sm:$0xff]  }
 0x871   :  { %v1139_v28 = vpop.f32.mrf.mxu0 }
 0x872   :  { %v1147_v32 = vmul.f32 %v1145_v25, %v1137_v23  ;;  %v1140_v31 = vadd.f32 %v8751_v22, %v1139_v28  ;;  %v10726_v25 = vld [vmem:[%s13631_s9 + $0x8] sm:$0xff]   ;;  %v10727_v28 = vld [vmem:[%s13631_s9] sm:$0xff]  }
 0x873   :  { %v9680_v4 = vpop.f32.mrf.mxu0 }
 0x874   :  { %v1149_v34 = vmul.f32 %v1147_v32, %v1137_v23  ;;  %v1146_v17 = vmul.f32 0.044715, %v1140_v31  ;;  %v1144_v44 = vmul.f32 0.5, %v1140_v31 }
 0x876   :  { %v1151_v36 = vadd.f32 %v1149_v34, %v1137_v23  ;;  %v1148_v37 = vmul.f32 %v1146_v17, %v1140_v31  ;;  %v10724_v23 = vld [vmem:[%s13631_s9 + $0x18] sm:$0xff]   ;;  %v8755_v17 = vld [vmem:[%s13632_s10] ss:$0 sm:$0xff] }
 0x878   :  { %v1153_v26 = vmul.f32 0.7978846, %v1151_v36  ;;  %v1150_v38 = vmul.f32 %v1148_v37, %v1140_v31 }
 0x87a   :  { %10870 = vtanh.f32 %v1153_v26  ;;  %v1152_v35 = vadd.f32 %v1150_v38, %v1140_v31 }
 0x87c   :  { %v1154_v39 = vmul.f32 0.7978846, %v1152_v35 }
 0x87e   :  { %10872 = vtanh.f32 %v1154_v39 }
 0x887   :  { %v10871_v41 = vpop.eup %10870 }
 0x888   :  { %v1157_v40 = vadd.f32 1.0, %v10871_v41 }
 0x88a   :  { %v1159_v49 = vmul.f32 %v1157_v40, %v1143_v43 }
 0x88b   :  { %v10873_v42 = vpop.eup %10872 }
 0x88c   :  { %v1158_v46 = vadd.f32 1.0, %v10873_v42 }
 0x88e   :  { %v1160_v51 = vmul.f32 %v1158_v46, %v1144_v44 }
 0x890   :  { %v1161_v52 = vpack.c.bf16 %v1160_v51, %v1159_v49 }
 0x8ce   :  { %v10676_v53 = vpop.permute.xlu0 %10675 }
 0x8cf   :  { %v10678_v55 = vunpack.i.h.bf16 %v10676_v53  ;;  %v10677_v56 = vunpack.i.l.bf16 %v10676_v53 }
 0x8d1   :  { %v1012_v59 = vsel %vm488_vm15, %v11536_v50, %v10678_v55  ;;  %v1011_v60 = vsel %vm488_vm15, %v11534_v45, %v10677_v56  ;;  %v10721_v45 = vld [vmem:[%s13631_s9 + $0x30] sm:$0xff]   ;;  %v10722_v50 = vld [vmem:[%s13631_s9 + $0x28] sm:$0xff]  }
 0x8d6   :  { %v10681_v54 = vpop.permute.xlu1 %10680 }
 0x8d7   :  { %v10683_v57 = vunpack.i.h.bf16 %v10681_v54  ;;  %v10682_v0 = vunpack.i.l.bf16 %v10681_v54 }
 0x8d9   :  { %v1014_v3 = vsel %vm13677_vm0, %v1012_v59, %v10683_v57  ;;  %v1013_v5 = vsel %vm13677_vm0, %v1011_v60, %v10682_v0  ;;  %v10728_v0 = vld [vmem:[%s13699_s26 + $0x18] sm:$0xff]  }
 0x8da   :  { %9702 = vmatpush3.bf16.msra.mxu0 %v10728_v0 }
 0x8db   :  { %9703 = vmatprep.subr.bf16.mxu0 %v11095_v10 }
 0x8de   :  { %v10686_v58 = vpop.permute.xlu0 %10685 }
 0x8df   :  { %v10688_v61 = vunpack.i.h.bf16 %v10686_v58  ;;  %v10687_v63 = vunpack.i.l.bf16 %v10686_v58  ;;  %v10729_v58 = vld [vmem:[%s13699_s26 + $0x10] sm:$0xff]  }
 0x8e0   :  { %9704 = vmatpush3.bf16.msra.mxu0 %v10729_v58 }
 0x8e1   :  { %v1017_v9 = vsel %vm1015_vm1, %v1014_v3, %v10688_v61  ;;  %v1016_v14 = vsel %vm1015_vm1, %v1013_v5, %v10687_v63  ;;  %9709 = vmatprep.subr.bf16.mxu0 %v11095_v10 }
 0x8e2   :  { %v1018_v22 = vpack.c.bf16 %v1017_v9, %v1016_v14 }
 0x8e4   :  { %9670 = vmatmul.mubr.msk.bf16.vlgmr.msra.gmra.mxu1 %vm73_vm14, %v1018_v22 }
 0x8e5   :  { %9682 = vmatpush3.bf16.msra.mxu1 %v10720_v16  ;;  %9697 = vmatprep.mubr.msk.bf16.mxu1 %vm11096_vm4, %v11095_v10  ;;  %v8766_v16 = vld [vmem:[%s13700_s29 + $0x1] ss:$0 sm:$0xff] }
 0x8e6   :  { %9683 = vmatprep.subr.bf16.mxu1 %v11095_v10 }
 0x8e9   :  { %9684 = vmatpush3.bf16.msra.mxu1 %v10721_v45 }
 0x8ea   :  { %9685 = vmatprep.subr.bf16.mxu1 %v11095_v10 }
 0x8ed   :  { %9686 = vmatpush3.bf16.msra.mxu1 %v10722_v50 }
 0x8ee   :  { %9687 = vmatprep.subr.bf16.mxu1 %v11095_v10 }
 0x8f1   :  { %9688 = vmatpush3.bf16.msra.mxu1 %v10723_v11  ;;  %v8767_v11 = vld [vmem:[%s13701_s0 + $0x1] ss:$0 sm:$0xff] }
 0x8f2   :  { %9689 = vmatprep.subr.bf16.mxu1 %v11095_v10 }
 0x8f5   :  { %9690 = vmatpush3.bf16.msra.mxu1 %v10724_v23 }
 0x8f6   :  { %9691 = vmatprep.subr.bf16.mxu1 %v11095_v10 }
 0x8f9   :  { %9692 = vmatpush3.bf16.msra.mxu1 %v10725_v24 }
 0x8fa   :  { %9693 = vmatprep.subr.bf16.mxu1 %v11095_v10 }
 0x8fd   :  { %9694 = vmatpush3.bf16.msra.mxu1 %v10726_v25 }
 0x8fe   :  { %9695 = vmatprep.subr.bf16.mxu1 %v11095_v10 }
 0x901   :  { %9696 = vmatpush3.bf16.msra.mxu1 %v10727_v28 }
 0x902   :  { %9731 = vmatprep.subr.bf16.mxu1 %v11095_v10 }
 0x904   :  { %9698 = vmatmul.mubr.bf16.vlgmr.msra.gmra.mxu1 %v1161_v52 }
 0x905   :  { %9733 = vmatprep.mubr.msk.bf16.mxu1 %vm11096_vm4, %v11095_v10 }
 0x9a4   :  { %v1072_v32 = vpop.f32.mrf.mxu1 }
 0x9a5   :  { %v1274_v37 = vadd.f32 %v1072_v32, %v11325_v30 }
 0x9a6   :  { %v9671_v31 = vpop.f32.mrf.mxu1 }
 0x9a7   :  { %v8773_v31 = vld [vmem:[%s13702_s2 + $0x1] ss:$0 sm:$0xff] }
 0x9a8   :  { %v1075_v4 = vpop.f32.mrf.mxu1 }
 0x9a9   :  { %v1275_v41 = vadd.f32 %v1075_v4, %v11329_v33 }
 0x9aa   :  { %v9672_v34 = vpop.f32.mrf.mxu1 }
 0x9c4   :  { %v1267_v36 = vpop.f32.mrf.mxu1 }
 0x9c5   :  { %v1268_v26 = vadd.f32 %v8755_v17, %v1267_v36 }
 0x9c6   :  { %v9699_v38 = vpop.f32.mrf.mxu1 }
 0x9c7   :  { %v11601_v35 = vadd.f32 %v1274_v37, %v1268_v26 }
 0x9c8   :  { %v1270_v39 = vpop.f32.mrf.mxu1 }
 0x9c9   :  { %v1271_v40 = vadd.f32 %v8755_v17, %v1270_v39  ;;  %v1286_v42 = vsel %vm73_vm14, %v11601_v35, 0.0 }
 0x9ca   :  { %1287 = vadd.xlane.f32.xlu1 %v1286_v42  ;;  %v9700_v43 = vpop.f32.mrf.mxu1 }
 0x9cb   :  { %v11606_v44 = vadd.f32 %v1275_v41, %v1271_v40 }
 0x9cd   :  { %v1289_v46 = vsel %vm73_vm14, %v11606_v44, 0.0 }
 0x9ce   :  { %1290 = vadd.xlane.f32.xlu0 %v1289_v46 }
 0xa53   :  { %v1288_v30 = vpop.xlane.xlu1 %1287 }
 0xa54   :  { %v1292_v49 = vmul.f32 0.03125, %v1288_v30 }
 0xa56   :  { %v1294_v51 = vsub.f32 %v11601_v35, %v1292_v49 }
 0xa57   :  { %v1291_v52 = vpop.xlane.xlu0 %1290 }
 0xa58   :  { %v1293_v53 = vmul.f32 0.03125, %v1291_v52  ;;  %v1296_v54 = vmul.f32 %v1294_v51, %v1294_v51 }
 0xa5a   :  { %v1295_v33 = vsub.f32 %v11606_v44, %v1293_v53  ;;  %v1298_v55 = vsel %vm73_vm14, %v1296_v54, 0.0 }
 0xa5b   :  { %1299 = vadd.xlane.f32.xlu0 %v1298_v55 }
 0xa5c   :  { %v1297_v56 = vmul.f32 %v1295_v33, %v1295_v33 }
 0xa5e   :  { %v1301_v57 = vsel %vm73_vm14, %v1297_v56, 0.0 }
 0xa5f   :  { %1302 = vadd.xlane.f32.xlu1 %v1301_v57 }
 0xa70   :  { %1498 = vrot.lane.b32.xlu1 %v11393_v12, %s13671_s30 }
 0xa74   :  { %1500 = vrot.lane.b32.xlu1 %v11402_v13, %s13671_s30 }
 0xae4   :  { %v1300_v59 = vpop.xlane.xlu0 %1299 }
 0xae5   :  { %v1304_v60 = vmul.f32 0.03125, %v1300_v59 }
 0xae7   :  { %v1306_v61 = vadd.f32 1e-05, %v1304_v60 }
 0xae8   :  { %v1303_v63 = vpop.xlane.xlu1 %1302 }
 0xae9   :  { %10874 = vrsqrt.f32 %v1306_v61  ;;  %v1305_v3 = vmul.f32 0.03125, %v1303_v63 }
 0xaeb   :  { %v1307_v5 = vadd.f32 1e-05, %v1305_v3 }
 0xaed   :  { %10876 = vrsqrt.f32 %v1307_v5 }
 0xaf6   :  { %v10875_v9 = vpop.eup %10874 }
 0xaf7   :  { %v1310_v14 = vmul.f32 %v10875_v9, %v1294_v51 }
 0xaf9   :  { %v1318_v50 = vmul.f32 %v8766_v16, %v1310_v14 }
 0xafa   :  { %v10877_v22 = vpop.eup %10876 }
 0xafb   :  { %v1311_v45 = vmul.f32 %v10877_v22, %v1295_v33  ;;  %v1326_v24 = vadd.f32 %v8767_v11, %v1318_v50 }
 0xafd   :  { %v1319_v23 = vmul.f32 %v8766_v16, %v1311_v45 }
 0xaff   :  { %v1327_v25 = vadd.f32 %v8767_v11, %v1319_v23 }
 0xb01   :  { %v11632_v28 = vpack.c.bf16 %v1327_v25, %v1326_v24 }
 0xb03   :  { %9706 = vmatmul.mubr.msk.bf16.vlgmr.msra.gmra.mxu0 %vm73_vm14, %v11632_v28 }
 0xb04   :  { %9710 = vmatpush3.bf16.msra.mxu0 %v11360_v1  ;;  %9713 = vmatprep.mubr.msk.bf16.mxu0 %vm11096_vm4, %v11095_v10 }
 0xb05   :  { %9711 = vmatprep.subr.bf16.mxu0 %v11095_v10 }
 0xb08   :  { %9712 = vmatpush3.bf16.msra.mxu0 %v11367_v2 }
 0xb09   :  { %9717 = vmatprep.subr.bf16.mxu0 %v11095_v10 }
 0xbc3   :  { %v1391_v32 = vpop.f32.mrf.mxu0 }
 0xbc4   :  { %v11645_v17 = vadd.f32 %v8773_v31, %v1391_v32 }
 0xbc5   :  { %v9707_v4 = vpop.f32.mrf.mxu0 }
 0xbc6   :  { %v1443_v42 = vmul.f32 %v11645_v17, %v11393_v12  ;;  %v1499_v12 = vpop.permute.xlu1 %1498 }
 0xbc7   :  { %v1394_v34 = vpop.f32.mrf.mxu0  ;;  %v1504_v0 = vmul.f32 %v1499_v12, %v11645_v17 }
 0xbc8   :  { %v11647_v36 = vadd.f32 %v8773_v31, %v1394_v34 }
 0xbc9   :  { %v9708_v37 = vpop.f32.mrf.mxu0 }
 0xbca   :  { %v11651_v26 = vpack.c.bf16 %v11647_v36, %v11645_v17  ;;  %v1444_v43 = vmul.f32 %v11647_v36, %v11402_v13  ;;  %v1501_v13 = vpop.permute.xlu1 %1500 }
 0xbcb   :  { %v1505_v58 = vmul.f32 %v1501_v13, %v11647_v36 }
 0xbcc   :  { %1450 = vrot.lane.b32.xlu0 %v11651_v26, %s13669_s27  ;;  %9714 = vmatmul.mubr.msk.bf16.vlgmr.msra.gmra.mxu0 %vm73_vm14, %v11651_v26 }
 0xbcd   :  { %9718 = vmatpush3.bf16.msra.mxu0 %v11360_v1  ;;  %9721 = vmatprep.mubr.msk.bf16.mxu0 %vm11096_vm4, %v11095_v10 }
 0xbce   :  { %9719 = vmatprep.subr.bf16.mxu0 %v11095_v10 }
 0xbd1   :  { %9720 = vmatpush3.bf16.msra.mxu0 %v11367_v2 }
 0xbd2   :  { %9725 = vmatprep.subr.bf16.mxu0 %v11095_v10 }
 0xc3e   :  { %v1451_v38 = vpop.permute.xlu0 %1450 }
 0xc3f   :  { %9722 = vmatmul.mubr.msk.bf16.vlgmr.msra.gmra.mxu0 %vm73_vm14, %v1451_v38 }
 0xc40   :  { %9727 = vmatprep.mubr.msk.bf16.mxu0 %vm11096_vm4, %v11095_v10 }
 0xc8c   :  { %v1436_v39 = vpop.f32.mrf.mxu0 }
 0xc8d   :  { %v1445_v40 = vmul.f32 %v1436_v39, %v11412_v15 }
 0xc8e   :  { %v9715_v41 = vpop.f32.mrf.mxu0 }
 0xc8f   :  { %v1447_v30 = vadd.f32 %v1445_v40, %v1443_v42 }
 0xc90   :  { %v1439_v1 = vpop.f32.mrf.mxu0 }
 0xc91   :  { %v1446_v2 = vmul.f32 %v1439_v1, %v11417_v21 }
 0xc92   :  { %v9716_v46 = vpop.f32.mrf.mxu0 }
 0xc93   :  { %v1448_v49 = vadd.f32 %v1446_v2, %v1444_v43 }
 0xc95   :  { %v1540_v51 = vpack.c.bf16 %v1448_v49, %v1447_v30 }
 0xcff   :  { %v1489_v52 = vpop.f32.mrf.mxu0 }
 0xd00   :  { %v1506_v53 = vmul.f32 %v1489_v52, %v11412_v15 }
 0xd01   :  { %v9723_v54 = vpop.f32.mrf.mxu0 }
 0xd02   :  { %1510 = vrot.lane.b32.xlu0 %v1506_v53, %s13671_s30 }
 0xd03   :  { %v1492_v33 = vpop.f32.mrf.mxu0 }
 0xd04   :  { %v1507_v55 = vmul.f32 %v1492_v33, %v11417_v21 }
 0xd05   :  { %v9724_v56 = vpop.f32.mrf.mxu0 }
 0xd06   :  { %1512 = vrot.lane.b32.xlu1 %v1507_v55, %s13671_s30  ;;  %s13715_s30 = smov 120  }
 0xd74   :  { %v1511_v57 = vpop.permute.xlu0 %1510 }
 0xd75   :  { %v11678_v60 = vadd.f32 %v1511_v57, %v1504_v0 }
 0xd78   :  { %v1513_v59 = vpop.permute.xlu1 %1512 }
 0xd79   :  { %v11680_v15 = vadd.f32 %v1513_v59, %v1505_v58 }
 0xd7b   :  { %v1541_v61 = vpack.c.bf16 %v11680_v15, %v11678_v60 }
 0xd7d   :  { %1669 = vrot.lane.b32.xlu1 %v1541_v61, %s11101_s12  ;;  %1543 = vrot.lane.b32.xlu0 %v1541_v61, %s13669_s27  ;;  %s13707_s12 = smov 64  }
 0xd81   :  { %1794 = vrot.lane.b32.xlu1 %v1541_v61, %s11103_s3  ;;  %1667 = vrot.lane.b32.xlu0 %v1540_v51, %s13667_s25  ;;  %s13708_s3 = smov 48   ;;  %s13713_s25 = smov 32  }
 0xd85   :  { %1919 = vrot.lane.b32.xlu1 %v1541_v61, %s11100_s11  ;;  %1792 = vrot.lane.b32.xlu0 %v1540_v51, %s13704_s6  ;;  %s13706_s11 = smov 56  }
 0xd89   :  { %1917 = vrot.lane.b32.xlu0 %v1540_v51, %s13705_s16 }
 0xdef   :  { %v1544_v21 = vpop.permute.xlu0 %1543  ;;  %v1670_v3 = vpop.permute.xlu1 %1669 }
 0xdf0   :  { %v1549_v63 = vsel %vm488_vm15, %v1544_v21, 0  ;;  %v1675_v5 = vsel %vm488_vm15, %v1670_v3, 0 }
 0xdf1   :  { %9726 = vmatpush3.bf16.xpose.msra.mxu0 %v1549_v63 }
 0xdf2   :  { %9737 = vmatprep.subr.bf16.mxu0 %v11095_v10 }
 0xdf3   :  { %v1795_v9 = vpop.permute.xlu1 %1794  ;;  %v1668_v14 = vpop.permute.xlu0 %1667 }
 0xdf4   :  { %v1800_v16 = vsel %vm488_vm15, %v1795_v9, 0 }
 0xdf7   :  { %v1920_v22 = vpop.permute.xlu1 %1919  ;;  %v1793_v45 = vpop.permute.xlu0 %1792 }
 0xdf8   :  { %9728 = vmatmul.mubr.msk.bf16.vlgmr.msra.gmra.mxu0 %vm488_vm15, %v1540_v51  ;;  %v1925_v50 = vsel %vm488_vm15, %v1920_v22, 0 }
 0xdf9   :  { %9738 = vmatpush3.bf16.xpose.msra.mxu0 %v1675_v5  ;;  %9739 = vmatprep.mubr.msk.bf16.mxu0 %vm11096_vm4, %v11095_v10 }
 0xdfa   :  { %9749 = vmatprep.subr.bf16.mxu0 %v11095_v10 }
 0xdfb   :  { %v1918_v11 = vpop.permute.xlu0 %1917 }
 0xe00   :  { %9740 = vmatmul.mubr.msk.bf16.vlgmr.msra.gmra.mxu0 %vm488_vm15, %v1668_v14 }
 0xe01   :  { %9750 = vmatpush3.bf16.xpose.msra.mxu0 %v1800_v16  ;;  %9751 = vmatprep.mubr.msk.bf16.mxu0 %vm11096_vm4, %v11095_v10 }
 0xe02   :  { %9761 = vmatprep.subr.bf16.mxu0 %v11095_v10 }
 0xe08   :  { %9752 = vmatmul.mubr.msk.bf16.vlgmr.msra.gmra.mxu0 %vm488_vm15, %v1793_v45 }
 0xe09   :  { %9762 = vmatpush3.bf16.xpose.msra.mxu0 %v1925_v50  ;;  %9763 = vmatprep.mubr.msk.bf16.mxu0 %vm11096_vm4, %v11095_v10 }
 0xe0a   :  { %9773 = vmatprep.subr.bf16.mxu0 %v11095_v10 }
 0xe10   :  { %9764 = vmatmul.mubr.msk.bf16.vlgmr.msra.gmra.mxu0 %vm488_vm15, %v1918_v11 }
 0xe11   :  { %9777 = vmatprep.mubr.msk.bf16.mxu0 %vm11096_vm4, %v11095_v10 }
 0xeb8   :  { %v1585_v23 = vpop.f32.mrf.mxu0 }
 0xeb9   :  { %v1592_v24 = vmul.f32 0.35355338, %v1585_v23 }
 0xeba   :  { %v9729_v25 = vpop.f32.mrf.mxu0 }
 0xebb   :  { %v1594_v32 = vadd.f32 %v1592_v24, %v11467_v62 }
 0xebc   :  { %v1588_v31 = vpop.f32.mrf.mxu0 }
 0xebd   :  { %v1593_v4 = vmul.f32 0.35355338, %v1588_v31  ;;  %v1596_v34 = vsel %vm13677_vm0, %v1594_v32, -inf }
 0xebe   :  { %1597 = vmax.xlane.f32.xlu1 %v1596_v34  ;;  %v9730_v37 = vpop.f32.mrf.mxu0 }
 0xebf   :  { %v1595_v38 = vadd.f32 %v1593_v4, %v11473_v6 }
 0xec0   :  { %v1711_v39 = vpop.f32.mrf.mxu0 }
 0xec1   :  { %v1718_v41 = vmul.f32 0.35355338, %v1711_v39  ;;  %v1599_v40 = vsel %vm13677_vm0, %v1595_v38, -inf }
 0xec2   :  { %1600 = vmax.xlane.f32.xlu0 %v1599_v40  ;;  %v9741_v1 = vpop.f32.mrf.mxu0 }
 0xec3   :  { %v1720_v42 = vadd.f32 %v1718_v41, %v11467_v62 }
 0xec4   :  { %v1714_v43 = vpop.f32.mrf.mxu0 }
 0xec5   :  { %v1719_v2 = vmul.f32 0.35355338, %v1714_v43  ;;  %v1722_v46 = vsel %vm13677_vm0, %v1720_v42, -inf }
 0xec6   :  { %1723 = vmax.xlane.f32.xlu0 %v1722_v46  ;;  %v9742_v30 = vpop.f32.mrf.mxu0 }
 0xec7   :  { %v1721_v49 = vadd.f32 %v1719_v2, %v11473_v6 }
 0xec8   :  { %v1836_v51 = vpop.f32.mrf.mxu0 }
 0xec9   :  { %v1843_v52 = vmul.f32 0.35355338, %v1836_v51  ;;  %v1725_v53 = vsel %vm13677_vm0, %v1721_v49, -inf }
 0xeca   :  { %1726 = vmax.xlane.f32.xlu1 %v1725_v53  ;;  %v9753_v54 = vpop.f32.mrf.mxu0 }
 0xecb   :  { %v1845_v33 = vadd.f32 %v1843_v52, %v11467_v62 }
 0xecc   :  { %v1839_v55 = vpop.f32.mrf.mxu0 }
 0xecd   :  { %v1844_v56 = vmul.f32 0.35355338, %v1839_v55  ;;  %v1847_v12 = vsel %vm13677_vm0, %v1845_v33, -inf }
 0xece   :  { %1848 = vmax.xlane.f32.xlu0 %v1847_v12  ;;  %v9754_v13 = vpop.f32.mrf.mxu0 }
 0xecf   :  { %v1846_v57 = vadd.f32 %v1844_v56, %v11473_v6 }
 0xed0   :  { %v1961_v0 = vpop.f32.mrf.mxu0 }
 0xed1   :  { %v1968_v58 = vmul.f32 0.35355338, %v1961_v0  ;;  %v1850_v59 = vsel %vm13677_vm0, %v1846_v57, -inf }
 0xed2   :  { %1851 = vmax.xlane.f32.xlu1 %v1850_v59  ;;  %v9765_v61 = vpop.f32.mrf.mxu0 }
 0xed3   :  { %v1970_v21 = vadd.f32 %v1968_v58, %v11467_v62 }
 0xed4   :  { %v1964_v63 = vpop.f32.mrf.mxu0 }
 0xed5   :  { %v1969_v3 = vmul.f32 0.35355338, %v1964_v63  ;;  %v1972_v5 = vsel %vm13677_vm0, %v1970_v21, -inf }
 0xed6   :  { %1973 = vmax.xlane.f32.xlu0 %v1972_v5  ;;  %v9766_v9 = vpop.f32.mrf.mxu0 }
 0xed7   :  { %v1971_v14 = vadd.f32 %v1969_v3, %v11473_v6 }
 0xed9   :  { %v1975_v16 = vsel %vm13677_vm0, %v1971_v14, -inf }
 0xeda   :  { %1976 = vmax.xlane.f32.xlu1 %v1975_v16 }
 0xf47   :  { %v1598_v22 = vpop.xlane.xlu1 %1597 }
 0xf48   :  { %v1602_v45 = vsub.f32 %v1594_v32, %v1598_v22 }
 0xf4a   :  { %v1604_v50 = vmul.f32 1.442695, %v1602_v45 }
 0xf4b   :  { %v1601_v11 = vpop.xlane.xlu0 %1600 }
 0xf4c   :  { %10878 = vpow2.f32 %v1604_v50  ;;  %v1603_v23 = vsub.f32 %v1595_v38, %v1601_v11 }
 0xf4e   :  { %v1606_v24 = vmul.f32 1.442695, %v1603_v23 }
 0xf4f   :  { %v1724_v25 = vpop.xlane.xlu0 %1723 }
 0xf50   :  { %10880 = vpow2.f32 %v1606_v24  ;;  %v1728_v62 = vsub.f32 %v1720_v42, %v1724_v25 }
 0xf52   :  { %v1730_v31 = vmul.f32 1.442695, %v1728_v62 }
 0xf53   :  { %v1727_v38 = vpop.xlane.xlu1 %1726 }
 0xf54   :  { %10882 = vpow2.f32 %v1730_v31  ;;  %v1729_v41 = vsub.f32 %v1721_v49, %v1727_v38 }
 0xf56   :  { %v1732_v43 = vmul.f32 1.442695, %v1729_v41 }
 0xf57   :  { %v1849_v40 = vpop.xlane.xlu0 %1848 }
 0xf58   :  { %v1853_v42 = vsub.f32 %v1845_v33, %v1849_v40  ;;  %10884 = vpow2.f32 %v1732_v43 }
 0xf59   :  { %v10879_v4 = vpop.eup %10878 }
 0xf5a   :  { %v1608_v34 = vsel %vm13677_vm0, %v10879_v4, 0.0  ;;  %v1855_v51 = vmul.f32 1.442695, %v1853_v42 }
 0xf5b   :  { %1609 = vadd.xlane.f32.xlu0 %v1608_v34  ;;  %v1852_v1 = vpop.xlane.xlu1 %1851 }
 0xf5c   :  { %v1854_v2 = vsub.f32 %v1846_v57, %v1852_v1  ;;  %10886 = vpow2.f32 %v1855_v51  ;;  %v10730_v51 = vld [vmem:[%s13629_s7 + $0x18] sm:$0xff]  }
 0xf5d   :  { %v10881_v6 = vpop.eup %10880 }
 0xf5e   :  { %v1611_v37 = vsel %vm13677_vm0, %v10881_v6, 0.0  ;;  %v1857_v53 = vmul.f32 1.442695, %v1854_v2 }
 0xf5f   :  { %1612 = vadd.xlane.f32.xlu1 %v1611_v37  ;;  %v1974_v46 = vpop.xlane.xlu0 %1973 }
 0xf60   :  { %v1978_v52 = vsub.f32 %v1970_v21, %v1974_v46  ;;  %10888 = vpow2.f32 %v1857_v53  ;;  %v10731_v53 = vld [vmem:[%s13629_s7 + $0x10] sm:$0xff]  }
 0xf61   :  { %v11729_v39 = vpop.eup %10882 }
 0xf62   :  { %v1734_v32 = vsel %vm13677_vm0, %v11729_v39, 0.0  ;;  %v1980_v55 = vmul.f32 1.442695, %v1978_v52 }
 0xf63   :  { %1735 = vadd.xlane.f32.xlu0 %v1734_v32  ;;  %v1977_v30 = vpop.xlane.xlu1 %1976 }
 0xf64   :  { %v1979_v54 = vsub.f32 %v1971_v14, %v1977_v30  ;;  %10890 = vpow2.f32 %v1980_v55 }
 0xf65   :  { %v10885_v12 = vpop.eup %10884 }
 0xf66   :  { %v1982_v56 = vmul.f32 1.442695, %v1979_v54  ;;  %v1737_v13 = vsel %vm13677_vm0, %v10885_v12, 0.0 }
 0xf68   :  { %10892 = vpow2.f32 %v1982_v56 }
 0xf69   :  { %v10887_v49 = vpop.eup %10886 }
 0xf6a   :  { %v1859_v0 = vsel %vm13677_vm0, %v10887_v49, 0.0 }
 0xf6d   :  { %v10889_v33 = vpop.eup %10888 }
 0xf6e   :  { %v1862_v58 = vsel %vm13677_vm0, %v10889_v33, 0.0 }
 0xf70   :  { %1745 = vrot.lane.b32.xlu1 %v11651_v26, %s13706_s11 }
 0xf71   :  { %v10891_v57 = vpop.eup %10890 }
 0xf72   :  { %v1984_v61 = vsel %vm13677_vm0, %v10891_v57, 0.0 }
 0xf75   :  { %v10893_v59 = vpop.eup %10892 }
 0xf76   :  { %v1987_v21 = vsel %vm13677_vm0, %v10893_v59, 0.0 }
 0xf79   :  { %1619 = vrot.lane.b32.xlu0 %v11651_v26, %s13707_s12 }
 0xf94   :  { %1738 = vadd.xlane.f32.xlu1 %v1737_v13 }
 0xf98   :  { %1860 = vadd.xlane.f32.xlu0 %v1859_v0  ;;  %1863 = vadd.xlane.f32.xlu1 %v1862_v58 }
 0xf9c   :  { %1985 = vadd.xlane.f32.xlu0 %v1984_v61  ;;  %1988 = vadd.xlane.f32.xlu1 %v1987_v21  ;;  %v10733_v61 = vld [vmem:[%s13703_s5 + $0x10] sm:$0xff]  }
 0xfad   :  { %1870 = vrot.lane.b32.xlu1 %v11651_v26, %s13708_s3  ;;  %s13712_s3 = smov 24  }
 0xfb2   :  { %1995 = vrot.lane.b32.xlu0 %v11651_v26, %s13709_s28  ;;  %s13710_s28 = smov 8  }
 0xfe4   :  { %v1610_v63 = vpop.xlane.xlu0 %1609 }
 0xfe5   :  { %10894 = vrcp.f32 %v1610_v63 }
 0xfe8   :  { %v1613_v3 = vpop.xlane.xlu1 %1612 }
 0xfe9   :  { %10896 = vrcp.f32 %v1613_v3 }
 0xfec   :  { %v1736_v5 = vpop.xlane.xlu0 %1735  ;;  %v1746_v11 = vpop.permute.xlu1 %1745 }
 0xfed   :  { %10898 = vrcp.f32 %v1736_v5 }
 0xff0   :  { %v1620_v9 = vpop.permute.xlu0 %1619 }
 0xff1   :  { %9732 = vmatpush3.bf16.msra.mxu1 %v1620_v9 }
 0xff2   :  { %9743 = vmatprep.subr.bf16.mxu1 %v11095_v10  ;;  %v10895_v14 = vpop.eup %10894 }
 0xff3   :  { %v1615_v22 = vmul.f32 %v10895_v14, %v10879_v4 }
 0xff6   :  { %v10897_v16 = vpop.eup %10896 }
 0xff7   :  { %v1617_v45 = vmul.f32 %v10897_v16, %v10881_v6 }
 0xff9   :  { %v1618_v50 = vpack.c.bf16 %v1617_v45, %v1615_v22  ;;  %v8799_v45 = vld [vmem:[%s13630_s8 + $0x1] ss:$0 sm:$0xff] }
 0xffa   :  { %v10899_v31 = vpop.eup %10898 }
 0xffb   :  { %9734 = vmatmul.mubr.msk.bf16.vlgmr.msra.gmra.mxu1 %vm13677_vm0, %v1618_v50  ;;  %v1741_v34 = vmul.f32 %v10899_v31, %v11729_v39 }
 0xffc   :  { %9744 = vmatpush3.bf16.msra.mxu1 %v1746_v11  ;;  %9745 = vmatprep.mubr.msk.bf16.mxu1 %vm11096_vm4, %v11095_v10 }
 0xffd   :  { %9755 = vmatprep.subr.bf16.mxu1 %v11095_v10 }
0x101d   :  { %v1739_v26 = vpop.xlane.xlu1 %1738 }
0x101e   :  { %10900 = vrcp.f32 %v1739_v26 }
0x1021   :  { %v1861_v23 = vpop.xlane.xlu0 %1860  ;;  %v1864_v24 = vpop.xlane.xlu1 %1863 }
0x1022   :  { %10902 = vrcp.f32 %v1861_v23 }
0x1023   :  { %10904 = vrcp.f32 %v1864_v24 }
0x1025   :  { %v1986_v25 = vpop.xlane.xlu0 %1985  ;;  %v1989_v62 = vpop.xlane.xlu1 %1988 }
0x1026   :  { %10906 = vrcp.f32 %v1986_v25 }
0x1027   :  { %10908 = vrcp.f32 %v1989_v62 }
0x1029   :  { %v1871_v41 = vpop.permute.xlu1 %1870  ;;  %v1996_v46 = vpop.permute.xlu0 %1995 }
0x102b   :  { %v10901_v4 = vpop.eup %10900 }
0x102c   :  { %v1743_v6 = vmul.f32 %v10901_v4, %v10885_v12 }
0x102e   :  { %v1744_v37 = vpack.c.bf16 %v1743_v6, %v1741_v34 }
0x102f   :  { %v10903_v32 = vpop.eup %10902 }
0x1030   :  { %v10905_v38 = vpop.eup %10904  ;;  %9746 = vmatmul.mubr.msk.bf16.vlgmr.msra.gmra.mxu1 %vm13677_vm0, %v1744_v37  ;;  %v1866_v40 = vmul.f32 %v10903_v32, %v10887_v49 }
0x1031   :  { %9756 = vmatpush3.bf16.msra.mxu1 %v1871_v41  ;;  %9757 = vmatprep.mubr.msk.bf16.mxu1 %vm11096_vm4, %v11095_v10  ;;  %v1868_v1 = vmul.f32 %v10905_v38, %v10889_v33 }
0x1032   :  { %9767 = vmatprep.subr.bf16.mxu1 %v11095_v10 }
0x1033   :  { %v10907_v42 = vpop.eup %10906  ;;  %v1869_v43 = vpack.c.bf16 %v1868_v1, %v1866_v40 }
0x1034   :  { %v10909_v2 = vpop.eup %10908  ;;  %v1991_v39 = vmul.f32 %v10907_v42, %v10891_v57  ;;  %v10732_v57 = vld [vmem:[%s13703_s5 + $0x18] sm:$0xff]  }
0x1035   :  { %v1993_v30 = vmul.f32 %v10909_v2, %v10893_v59  ;;  %9774 = vmatpush3.bf16.msra.mxu0 %v10732_v57 }
0x1036   :  { %9775 = vmatprep.subr.bf16.mxu0 %v11095_v10 }
0x1037   :  { %v1994_v52 = vpack.c.bf16 %v1993_v30, %v1991_v39 }
0x1038   :  { %9758 = vmatmul.mubr.msk.bf16.vlgmr.msra.gmra.mxu1 %vm13677_vm0, %v1869_v43 }
0x1039   :  { %9768 = vmatpush3.bf16.msra.mxu1 %v1996_v46  ;;  %9769 = vmatprep.mubr.msk.bf16.mxu1 %vm11096_vm4, %v11095_v10 }
0x103a   :  { %9781 = vmatprep.subr.bf16.mxu1 %v11095_v10  ;;  %9776 = vmatpush3.bf16.msra.mxu0 %v10733_v61 }
0x103b   :  { %9789 = vmatprep.subr.bf16.mxu0 %v11095_v10 }
0x1040   :  { %9770 = vmatmul.mubr.msk.bf16.vlgmr.msra.gmra.mxu1 %vm13677_vm0, %v1994_v52 }
0x1041   :  { %9782 = vmatpush3.bf16.msra.mxu1 %v10730_v51  ;;  %9785 = vmatprep.mubr.msk.bf16.mxu1 %vm11096_vm4, %v11095_v10 }
0x1042   :  { %9783 = vmatprep.subr.bf16.mxu1 %v11095_v10 }
0x1045   :  { %9784 = vmatpush3.bf16.msra.mxu1 %v10731_v53 }
0x1046   :  { %9809 = vmatprep.subr.bf16.mxu1 %v11095_v10 }
0x1048   :  { %9786 = vmatmul.mubr.msk.bf16.vlgmr.msra.gmra.mxu1 %vm73_vm14, %v11632_v28 }
0x1049   :  { %9813 = vmatprep.mubr.msk.bf16.mxu1 %vm11096_vm4, %v11095_v10 }
0x10bb   :  { %v11775_v54 = vpop.f32.mrf.mxu1 }
0x10bd   :  { %v9735_v55 = vpop.f32.mrf.mxu1 }
0x10bf   :  { %v1662_v56 = vpop.f32.mrf.mxu1 }
0x10c1   :  { %v9736_v12 = vpop.f32.mrf.mxu1 }
0x10f0   :  { %v1785_v49 = vpop.f32.mrf.mxu1 }
0x10f2   :  { %v9747_v13 = vpop.f32.mrf.mxu1 }
0x10f4   :  { %v1788_v33 = vpop.f32.mrf.mxu1 }
0x10f5   :  { %v10689_v0 = vpack.i.bf16 %v1788_v33, %v1785_v49 }
0x10f6   :  { %v9748_v58 = vpop.f32.mrf.mxu1 }
0x10f7   :  { %10690 = vrot.lane.b32.xlu1 %v10689_v0, %s13710_s28 }
0x10f8   :  { %v1910_v28 = vpop.f32.mrf.mxu1 }
0x10fa   :  { %v9759_v59 = vpop.f32.mrf.mxu1 }
0x10fc   :  { %v1913_v21 = vpop.f32.mrf.mxu1 }
0x10fd   :  { %v10694_v63 = vpack.i.bf16 %v1913_v21, %v1910_v28 }
0x10fe   :  { %v9760_v3 = vpop.f32.mrf.mxu1 }
0x10ff   :  { %10695 = vrot.lane.b32.xlu0 %v10694_v63, %s13711_s17 }
0x1100   :  { %v2035_v5 = vpop.f32.mrf.mxu1 }
0x1102   :  { %v9771_v9 = vpop.f32.mrf.mxu1 }
0x1104   :  { %v2038_v14 = vpop.f32.mrf.mxu1 }
0x1105   :  { %v10699_v16 = vpack.i.bf16 %v2038_v14, %v2035_v5  ;;  %v10734_v5 = vld [vmem:[%s13631_s9 + $0x78] sm:$0xff]   ;;  %v10737_v14 = vld [vmem:[%s13631_s9 + $0x60] sm:$0xff]  }
0x1106   :  { %v9772_v22 = vpop.f32.mrf.mxu1 }
0x1107   :  { %10700 = vrot.lane.b32.xlu1 %v10699_v16, %s13712_s3  ;;  %v10738_v16 = vld [vmem:[%s13631_s9 + $0x58] sm:$0xff]   ;;  %v10739_v22 = vld [vmem:[%s13631_s9 + $0x50] sm:$0xff]  }
0x1108   :  { %v2193_v50 = vpop.f32.mrf.mxu1 }
0x1109   :  { %v2194_v11 = vadd.f32 %v8799_v45, %v2193_v50  ;;  %v10741_v50 = vld [vmem:[%s13631_s9 + $0x40] sm:$0xff]  }
0x110a   :  { %v9787_v26 = vpop.f32.mrf.mxu1 }
0x110b   :  { %v2202_v23 = vmul.f32 0.044715, %v2194_v11  ;;  %v2200_v2 = vmul.f32 0.5, %v2194_v11 }
0x110c   :  { %v2196_v24 = vpop.f32.mrf.mxu1 }
0x110d   :  { %v2204_v25 = vmul.f32 %v2202_v23, %v2194_v11  ;;  %v2197_v62 = vadd.f32 %v8799_v45, %v2196_v24  ;;  %v10740_v45 = vld [vmem:[%s13631_s9 + $0x48] sm:$0xff]  }
0x110e   :  { %v9788_v31 = vpop.f32.mrf.mxu1 }
0x110f   :  { %v2206_v4 = vmul.f32 %v2204_v25, %v2194_v11  ;;  %v2203_v34 = vmul.f32 0.044715, %v2197_v62  ;;  %v2201_v46 = vmul.f32 0.5, %v2197_v62  ;;  %v8820_v25 = vld [vmem:[%s13632_s10 + $0x1] ss:$0 sm:$0xff] }
0x1111   :  { %v2208_v6 = vadd.f32 %v2206_v4, %v2194_v11  ;;  %v2205_v37 = vmul.f32 %v2203_v34, %v2197_v62 }
0x1113   :  { %v2210_v32 = vmul.f32 0.7978846, %v2208_v6  ;;  %v2207_v38 = vmul.f32 %v2205_v37, %v2197_v62 }
0x1115   :  { %10910 = vtanh.f32 %v2210_v32  ;;  %v2209_v41 = vadd.f32 %v2207_v38, %v2197_v62 }
0x1117   :  { %v2211_v40 = vmul.f32 0.7978846, %v2209_v41 }
0x1119   :  { %10912 = vtanh.f32 %v2211_v40 }
0x1122   :  { %v10911_v1 = vpop.eup %10910 }
0x1123   :  { %v2214_v42 = vadd.f32 1.0, %v10911_v1 }
0x1125   :  { %v2216_v30 = vmul.f32 %v2214_v42, %v2200_v2 }
0x1126   :  { %v10913_v43 = vpop.eup %10912 }
0x1127   :  { %v2215_v39 = vadd.f32 1.0, %v10913_v43 }
0x1129   :  { %v2217_v51 = vmul.f32 %v2215_v39, %v2201_v46 }
0x112b   :  { %v2218_v52 = vpack.c.bf16 %v2217_v51, %v2216_v30 }
0x1169   :  { %v10691_v53 = vpop.permute.xlu1 %10690 }
0x116a   :  { %v10693_v12 = vunpack.i.h.bf16 %v10691_v53  ;;  %v10692_v49 = vunpack.i.l.bf16 %v10691_v53 }
0x116c   :  { %v2067_v0 = vsel %vm488_vm15, %v1662_v56, %v10693_v12  ;;  %v2066_v58 = vsel %vm488_vm15, %v11775_v54, %v10692_v49  ;;  %v10735_v54 = vld [vmem:[%s13631_s9 + $0x70] sm:$0xff]   ;;  %v10736_v56 = vld [vmem:[%s13631_s9 + $0x68] sm:$0xff]  }
0x1171   :  { %v10696_v55 = vpop.permute.xlu0 %10695 }
0x1172   :  { %v10698_v13 = vunpack.i.h.bf16 %v10696_v55  ;;  %v10697_v33 = vunpack.i.l.bf16 %v10696_v55 }
0x1174   :  { %v2068_v61 = vsel %vm13677_vm0, %v2066_v58, %v10697_v33  ;;  %v2069_v21 = vsel %vm13677_vm0, %v2067_v0, %v10698_v13  ;;  %v8829_v13 = vld [vmem:[%s13640_s18] ss:$0 sm:$0xff] }
0x1179   :  { %v10701_v57 = vpop.permute.xlu1 %10700 }
0x117a   :  { %v10703_v28 = vunpack.i.h.bf16 %v10701_v57  ;;  %v10702_v59 = vunpack.i.l.bf16 %v10701_v57  ;;  %v8830_v57 = vld [vmem:[%s13641_s19] ss:$0 sm:$0xff] }
0x117c   :  { %v2070_v63 = vsel %vm1015_vm1, %v2068_v61, %v10702_v59  ;;  %v2071_v3 = vsel %vm1015_vm1, %v2069_v21, %v10703_v28  ;;  %v11042_v59 = vld [vmem:[%s13692_s24 + $0x38] sm:$0xff]   ;;  %v11043_v61 = vld [vmem:[%s13692_s24 + $0x30] sm:$0xff]   ;;  %v11044_v21 = vld [vmem:[%s13692_s24 + $0x28] sm:$0xff]  }
0x117d   :  { %v2072_v9 = vpack.c.bf16 %v2071_v3, %v2070_v63  ;;  %v11045_v63 = vld [vmem:[%s13692_s24 + $0x20] sm:$0xff]   ;;  %v11046_v3 = vld [vmem:[%s13692_s24 + $0x18] sm:$0xff]  }
0x117f   :  { %9778 = vmatmul.mubr.msk.bf16.vlgmr.msra.gmra.mxu0 %vm73_vm14, %v2072_v9  ;;  %v11048_v9 = vld [vmem:[%s13692_s24 + $0x8] sm:$0xff]  }
0x1180   :  { %9790 = vmatpush3.bf16.msra.mxu0 %v10734_v5  ;;  %9805 = vmatprep.mubr.msk.bf16.mxu0 %vm11096_vm4, %v11095_v10  ;;  %v11047_v5 = vld [vmem:[%s13692_s24 + $0x10] sm:$0xff]  }
0x1181   :  { %9791 = vmatprep.subr.bf16.mxu0 %v11095_v10 }
0x1184   :  { %9792 = vmatpush3.bf16.msra.mxu0 %v10735_v54  ;;  %v11049_v54 = vld [vmem:[%s13692_s24] sm:$0xff]  }
0x1185   :  { %9793 = vmatprep.subr.bf16.mxu0 %v11095_v10 }
0x1188   :  { %9794 = vmatpush3.bf16.msra.mxu0 %v10736_v56  ;;  %v8831_v56 = vld [vmem:[%s13643_s21] ss:$0 sm:$0xff] }
0x1189   :  { %9795 = vmatprep.subr.bf16.mxu0 %v11095_v10 }
0x118c   :  { %9796 = vmatpush3.bf16.msra.mxu0 %v10737_v14 }
0x118d   :  { %9797 = vmatprep.subr.bf16.mxu0 %v11095_v10 }
0x1190   :  { %9798 = vmatpush3.bf16.msra.mxu0 %v10738_v16 }
0x1191   :  { %9799 = vmatprep.subr.bf16.mxu0 %v11095_v10 }
0x1194   :  { %9800 = vmatpush3.bf16.msra.mxu0 %v10739_v22 }
0x1195   :  { %9801 = vmatprep.subr.bf16.mxu0 %v11095_v10 }
0x1198   :  { %9802 = vmatpush3.bf16.msra.mxu0 %v10740_v45 }
0x1199   :  { %9803 = vmatprep.subr.bf16.mxu0 %v11095_v10 }
0x119c   :  { %9804 = vmatpush3.bf16.msra.mxu0 %v10741_v50 }
0x119d   :  { %9837 = vmatprep.subr.bf16.mxu0 %v11095_v10 }
0x119f   :  { %9806 = vmatmul.mubr.bf16.vlgmr.msra.gmra.mxu0 %v2218_v52  ;;  %v10743_v52 = vld [vmem:[%s13642_s20] sm:$0xff]  }
0x11a0   :  { %9841 = vmatprep.mubr.msk.bf16.mxu0 %vm11096_vm4, %v11095_v10 }
0x123f   :  { %v2127_v11 = vpop.f32.mrf.mxu0 }
0x1240   :  { %v2333_v34 = vadd.f32 %v2127_v11, %v11601_v35 }
0x1241   :  { %v9779_v26 = vpop.f32.mrf.mxu0 }
0x1242   :  { %v11896_v26 = vcvt.s32.f32 %v11294_v27 }
0x1243   :  { %v2130_v23 = vpop.f32.mrf.mxu0 }
0x1244   :  { %v2334_v37 = vadd.f32 %v2130_v23, %v11606_v44  ;;  %v10742_v44 = vld [vmem:[%s13642_s20 + $0x8] sm:$0xff]  }
0x1245   :  { %v9780_v24 = vpop.f32.mrf.mxu0  ;;  %9810 = vmatpush3.bf16.msra.mxu1 %v10742_v44 }
0x1246   :  { %9811 = vmatprep.subr.bf16.mxu1 %v11095_v10 }
0x1249   :  { %9812 = vmatpush3.bf16.msra.mxu1 %v10743_v52 }
0x124a   :  { %9817 = vmatprep.subr.bf16.mxu1 %v11095_v10 }
0x125f   :  { %v2326_v62 = vpop.f32.mrf.mxu0 }
0x1260   :  { %v2327_v31 = vadd.f32 %v8820_v25, %v2326_v62 }
0x1261   :  { %v9807_v4 = vpop.f32.mrf.mxu0 }
0x1262   :  { %v2335_v32 = vadd.f32 %v2333_v34, %v2327_v31  ;;  %v11905_v34 = vld [vmem:[%s13637_s15 + $0x8] sm:$0xff]  }
0x1263   :  { %v2329_v6 = vpop.f32.mrf.mxu0 }
0x1264   :  { %v2330_v38 = vadd.f32 %v8820_v25, %v2329_v6  ;;  %v2338_v1 = vrot.slane %v2335_v32, 7  ;;  %v11914_v6 = vld [vmem:[%s13637_s15] sm:$0xff]  }
0x1265   :  { %v9808_v41 = vpop.f32.mrf.mxu0 }
0x1266   :  { %v2336_v40 = vadd.f32 %v2334_v37, %v2330_v38 }
0x1268   :  { %v2341_v42 = vrot.slane %v2336_v40, 6 }
0x126a   :  { %v2344_v43 = vsel %vm2343_vm2, %v2338_v1, %v2341_v42  ;;  %vm2734_vm2 = vcmask 254977  }
0x126b   :  { %v2348_v2 = vsel %vm2347_vm3, %v2344_v43, 0.0 }
0x126c   :  { %2349 = vadd.xlane.f32.xlu0 %v2348_v2 }
0x12f5   :  { %v2350_v46 = vpop.xlane.xlu0 %2349 }
0x12f6   :  { %v2351_v39 = vmul.f32 0.03125, %v2350_v46 }
0x12f8   :  { %v2352_v30 = vsub.f32 %v2344_v43, %v2351_v39  ;;  %v10744_v39 = vld [vmem:[%s13699_s26 + $0x8] sm:$0xff]  }
0x12f9   :  { %9838 = vmatpush3.bf16.msra.mxu0 %v10744_v39 }
0x12fa   :  { %v2353_v51 = vmul.f32 %v2352_v30, %v2352_v30  ;;  %9839 = vmatprep.subr.bf16.mxu0 %v11095_v10 }
0x12fc   :  { %v2354_v35 = vsel %vm2347_vm3, %v2353_v51, 0.0  ;;  %v11935_v51 = vld [vmem:[%s13635_s13 + $0x8] ss:$0 sm:$0xff] }
0x12fd   :  { %2355 = vadd.xlane.f32.xlu1 %v2354_v35 }
0x1386   :  { %v2356_v53 = vpop.xlane.xlu1 %2355 }
0x1387   :  { %v2357_v55 = vmul.f32 0.03125, %v2356_v53 }
0x1389   :  { %v2358_v12 = vadd.f32 1e-05, %v2357_v55  ;;  %v8838_v55 = vld [vmem:[%s13700_s29] ss:$0 sm:$0xff] }
0x138b   :  { %10914 = vrsqrt.f32 %v2358_v12 }
0x1398   :  { %v10915_v49 = vpop.eup %10914 }
0x1399   :  { %v2360_v33 = vmul.f32 %v10915_v49, %v2352_v30  ;;  %v10745_v30 = vld [vmem:[%s13699_s26] sm:$0xff]  }
0x139a   :  { %9840 = vmatpush3.bf16.msra.mxu0 %v10745_v30  ;;  %v8839_v49 = vld [vmem:[%s13701_s0] ss:$0 sm:$0xff] }
0x139b   :  { %v2367_v0 = vmul.f32 %v8829_v13, %v2360_v33  ;;  %9845 = vmatprep.subr.bf16.mxu0 %v11095_v10 }
0x139d   :  { %v2374_v58 = vadd.f32 %v8830_v57, %v2367_v0  ;;  %v8840_v0 = vld [vmem:[%s13702_s2] ss:$0 sm:$0xff] }
0x139f   :  { %v2375_v28 = vpack.c.bf16 %v2374_v58, %v2374_v58 }
0x13a1   :  { %9814 = vmatmul.mubr.msk.bf16.vlgmr.msra.gmra.mxu1 %vm73_vm14, %v2375_v28 }
0x13a2   :  { %9818 = vmatpush3.bf16.msra.mxu1 %v11042_v59  ;;  %9833 = vmatprep.mubr.msk.bf16.mxu1 %vm11096_vm4, %v11095_v10 }
0x13a3   :  { %9819 = vmatprep.subr.bf16.mxu1 %v11095_v10 }
0x13a6   :  { %9820 = vmatpush3.bf16.msra.mxu1 %v11043_v61 }
0x13a7   :  { %9821 = vmatprep.subr.bf16.mxu1 %v11095_v10 }
0x13aa   :  { %9822 = vmatpush3.bf16.msra.mxu1 %v11044_v21 }
0x13ab   :  { %9823 = vmatprep.subr.bf16.mxu1 %v11095_v10 }
0x13ae   :  { %9824 = vmatpush3.bf16.msra.mxu1 %v11045_v63 }
0x13af   :  { %9825 = vmatprep.subr.bf16.mxu1 %v11095_v10 }
0x13b2   :  { %9826 = vmatpush3.bf16.msra.mxu1 %v11046_v3 }
0x13b3   :  { %9827 = vmatprep.subr.bf16.mxu1 %v11095_v10 }
0x13b6   :  { %9828 = vmatpush3.bf16.msra.mxu1 %v11047_v5 }
0x13b7   :  { %9829 = vmatprep.subr.bf16.mxu1 %v11095_v10 }
0x13ba   :  { %9830 = vmatpush3.bf16.msra.mxu1 %v11048_v9 }
0x13bb   :  { %9831 = vmatprep.subr.bf16.mxu1 %v11095_v10 }
0x13be   :  { %9832 = vmatpush3.bf16.msra.mxu1 %v11049_v54 }
0x13bf   :  { %9853 = vmatprep.subr.bf16.mxu1 %v11095_v10 }
0x1461   :  { %v2436_v14 = vpop.f32.mrf.mxu1 }
0x1462   :  { %v2437_v16 = vadd.f32 %v8831_v56, %v2436_v14  ;;  %v11968_v14 = vld [vmem:[%s13636_s14 + $0x8] ss:$0 sm:$0xff] }
0x1463   :  { %v9815_v22 = vpop.f32.mrf.mxu1 }
0x1464   :  { %v2443_v45 = vsel %vm2442_vm5, %v2437_v16, -inf }
0x1465   :  { %2444 = vmax.xlane.f32.xlu0 %v2443_v45  ;;  %v2439_v50 = vpop.f32.mrf.mxu1 }
0x1467   :  { %v9816_v11 = vpop.f32.mrf.mxu1 }
0x14ee   :  { %v2445_v23 = vpop.xlane.xlu0 %2444 }
0x14ef   :  { %vm2447_vm6 = vcmp.eq.f32.partialorder %v2437_v16, %v2445_v23 }
0x14f0   :  { %v2448_v24 = vsel %vm2447_vm6, %v11896_v26, 128.0  ;;  %vm2799_vm6 = vcmask 189440  }
0x14f1   :  { %v2449_v25 = vsel %vm2442_vm5, %v2448_v24, inf }
0x14f2   :  { %2450 = vmin.xlane.f32.xlu0 %v2449_v25 }
0x157b   :  { %v2451_v62 = vpop.xlane.xlu0 %2450 }
0x157c   :  { %v10645_v31 = vtrunc.f32 %v2451_v62 }
0x157e   :  { %v10646_v4 = vcvt.f32.s32 %v10645_v31 }
0x1580   :  { %2454 = vst.msk [vmem:[#allocation4] sm:$0x3] %vm2453_vm7, %v10646_v4  ;;  %vm2455_vm11 = vcmp.eq.s32.totalorder %v10646_v4, %v11294_v27  ;;  %vm2815_vm7 = vcmask 1043456  }
0x1581   :  { %vm8835_vm12 = vmpackc.low %vm2455_vm11, %vm2455_vm11  ;;  %vm4544_vm11 = vcmask 9224  }
0x1582   :  { %9834 = vmatmul.mubr.msk.bf16.vlgmr.msra.gmra.mxu1 %vm8835_vm12, %v11097_v29 }
0x1583   :  { %9854 = vmatpush3.bf16.msra.mxu1 %v11905_v34  ;;  %9857 = vmatprep.mubr.msk.bf16.mxu1 %vm11096_vm4, %v11095_v10 }
0x1584   :  { %9855 = vmatprep.subr.bf16.mxu1 %v11095_v10 }
0x1587   :  { %9856 = vmatpush3.bf16.msra.mxu1 %v11914_v6 }
0x1588   :  { %9869 = vmatprep.subr.bf16.mxu1 %v11095_v10 }
0x1642   :  { %v11918_v37 = vpop.f32.mrf.mxu1 }
0x1643   :  { %v2517_v32 = vsel %vm2347_vm3, %v11918_v37, 0.0 }
0x1644   :  { %2518 = vadd.xlane.f32.xlu1 %v2517_v32  ;;  %v9835_v38 = vpop.f32.mrf.mxu1 }
0x1646   :  { %v2495_v41 = vpop.f32.mrf.mxu1 }
0x1648   :  { %v9836_v40 = vpop.f32.mrf.mxu1 }
0x16cd   :  { %v2519_v1 = vpop.xlane.xlu1 %2518 }
0x16ce   :  { %v2520_v42 = vmul.f32 0.03125, %v2519_v1 }
0x16d0   :  { %v2521_v43 = vsub.f32 %v11918_v37, %v2520_v42 }
0x16d2   :  { %v2522_v2 = vmul.f32 %v2521_v43, %v2521_v43 }
0x16d4   :  { %v2523_v46 = vsel %vm2347_vm3, %v2522_v2, 0.0 }
0x16d5   :  { %2524 = vadd.xlane.f32.xlu0 %v2523_v46 }
0x16eb   :  { %2713 = vrot.lane.b32.xlu0 %v11935_v51, %s13713_s25 }
0x175e   :  { %v2525_v35 = vpop.xlane.xlu0 %2524 }
0x175f   :  { %v2526_v44 = vmul.f32 0.03125, %v2525_v35 }
0x1761   :  { %v2527_v52 = vadd.f32 1e-05, %v2526_v44 }
0x1762   :  { %v11977_v23 = vpop.permute.xlu0 %2713 }
0x1763   :  { %10916 = vrsqrt.f32 %v2527_v52 }
0x1770   :  { %v10917_v53 = vpop.eup %10916 }
0x1771   :  { %v2529_v12 = vmul.f32 %v10917_v53, %v2521_v43 }
0x1773   :  { %v2536_v13 = vmul.f32 %v8838_v55, %v2529_v12 }
0x1775   :  { %v2543_v33 = vadd.f32 %v8839_v49, %v2536_v13 }
0x1777   :  { %v11945_v57 = vpack.c.bf16 %v2543_v33, %v2543_v33 }
0x1779   :  { %9842 = vmatmul.mubr.msk.bf16.vlgmr.msra.gmra.mxu0 %vm73_vm14, %v11945_v57 }
0x177a   :  { %9846 = vmatpush3.bf16.msra.mxu0 %v11905_v34  ;;  %9849 = vmatprep.mubr.msk.bf16.mxu0 %vm11096_vm4, %v11095_v10 }
0x177b   :  { %9847 = vmatprep.subr.bf16.mxu0 %v11095_v10 }
0x177e   :  { %9848 = vmatpush3.bf16.msra.mxu0 %v11914_v6 }
0x177f   :  { %9861 = vmatprep.subr.bf16.mxu0 %v11095_v10 }
0x1839   :  { %v2605_v58 = vpop.f32.mrf.mxu0 }
0x183a   :  { %v2606_v28 = vadd.f32 %v8840_v0, %v2605_v58 }
0x183b   :  { %v9843_v59 = vpop.f32.mrf.mxu0 }
0x183c   :  { %v2611_v61 = vpack.c.bf16 %v2606_v28, %v2606_v28  ;;  %v2716_v24 = vmul.f32 %v11977_v23, %v2606_v28  ;;  %v2659_v2 = vmul.f32 %v11935_v51, %v2606_v28 }
0x183d   :  { %v2608_v21 = vpop.f32.mrf.mxu0 }
0x183e   :  { %2667 = vrot.lane.b32.xlu1 %v2611_v61, %s13714_s23  ;;  %9850 = vmatmul.mubr.msk.bf16.vlgmr.msra.gmra.mxu0 %vm73_vm14, %v2611_v61 }
0x183f   :  { %v9844_v63 = vpop.f32.mrf.mxu0  ;;  %9865 = vmatprep.mubr.msk.bf16.mxu0 %vm11096_vm4, %v11095_v10 }
0x18b0   :  { %v2668_v3 = vpop.permute.xlu1 %2667 }
0x18b1   :  { %9858 = vmatmul.mubr.msk.bf16.vlgmr.msra.gmra.mxu1 %vm73_vm14, %v2668_v3 }
0x18b2   :  { %9873 = vmatprep.mubr.msk.bf16.mxu1 %vm11096_vm4, %v11095_v10 }
0x18fe   :  { %v2649_v5 = vpop.f32.mrf.mxu0 }
0x18ff   :  { %v2664_v43 = vmul.f32 %v11968_v14, %v2649_v5 }
0x1900   :  { %v9851_v9 = vpop.f32.mrf.mxu0 }
0x1901   :  { %v2665_v39 = vadd.f32 %v2664_v43, %v2659_v2 }
0x1902   :  { %v2652_v54 = vpop.f32.mrf.mxu0 }
0x1903   :  { %v11999_v30 = vpack.c.bf16 %v2665_v39, %v2665_v39 }
0x1904   :  { %v9852_v56 = vpop.f32.mrf.mxu0 }
0x1971   :  { %v2706_v16 = vpop.f32.mrf.mxu1 }
0x1972   :  { %v2717_v22 = vmul.f32 %v11968_v14, %v2706_v16 }
0x1973   :  { %v9859_v45 = vpop.f32.mrf.mxu1 }
0x1974   :  { %2719 = vrot.lane.b32.xlu1 %v2717_v22, %s13713_s25 }
0x1975   :  { %v2709_v50 = vpop.f32.mrf.mxu1 }
0x1977   :  { %v9860_v11 = vpop.f32.mrf.mxu1 }
0x1978   :  { %474 = vrot.lane.b32.xlu1 %v11433_v48, %s13714_s23 }
0x197c   :  { %464 = vrot.lane.b32.xlu1 %v11431_v47, %s13714_s23 }
0x1980   :  { %2730 = vrot.lane.b32.xlu1 %v2606_v28, %s13707_s12 }
0x19e6   :  { %v2720_v25 = vpop.permute.xlu1 %2719 }
0x19e7   :  { %v2722_v62 = vadd.f32 %v2720_v25, %v2716_v24 }
0x19e9   :  { %2724 = vrot.lane.b32.xlu0 %v2722_v62, %s13714_s23 }
0x19ea   :  { %v475_v31 = vpop.permute.xlu1 %474 }
0x19eb   :  { %477 = vst.msk [vmem:[#allocation2 + $0xc] sm:$0xff] %vm73_vm14, %v475_v31 }
0x19ee   :  { %v465_v4 = vpop.permute.xlu1 %464 }
0x19ef   :  { %467 = vst.msk [vmem:[#allocation2] sm:$0xff] %vm73_vm14, %v465_v4 }
0x19f2   :  { %v2731_v48 = vpop.permute.xlu1 %2730 }
0x19f3   :  { %2733 = vst.msk [vmem:[#allocation3 + $0x8] sm:$0x1] %vm2727_vm13, %v2731_v48 }
0x19f4   :  { %2736 = vst.msk [vmem:[#allocation3 + $0x13] sm:$0x2] %vm2734_vm2, %v2731_v48 }
0x19f6   :  { %v2737_v1 = vld [vmem:[#allocation2] sm:$0xff] }
0x1a5b   :  { %v2725_v47 = vpop.permute.xlu0 %2724 }
0x1a5c   :  { %2728 = vst.msk [vmem:[#allocation2 + $0x8] sm:$0x1] %vm2727_vm13, %v2725_v47 }
0x1a5d   :  { %2735 = vst.msk [vmem:[#allocation2 + $0x13] sm:$0x2] %vm2734_vm2, %v2725_v47 }
0x1a63   :  { %v2738_v40 = vld [vmem:[#allocation2 + $0x8] sm:$0xff] }
0x1a64   :  { %v2739_v32 = vld [vmem:[#allocation2 + $0x10] sm:$0xff]  ;;  %v11992_v42 = vpack.c.bf16 %v2738_v40, %v2737_v1 }
0x1a65   :  { %v11987_v38 = vpack.c.bf16 %v2739_v32, %v2739_v32 }
0x1a66   :  { %v2752_v46 = vsel %vm488_vm15, %v11992_v42, 0 }
0x1a67   :  { %v2755_v41 = vsel %vm488_vm15, %v11987_v38, 0 }
0x1a68   :  { %9862 = vmatpush3.bf16.xpose.msra.mxu0 %v2755_v41 }
0x1a69   :  { %9863 = vmatprep.subr.bf16.mxu0 %v11095_v10 }
0x1a70   :  { %9864 = vmatpush3.bf16.xpose.msra.mxu0 %v2752_v46 }
0x1a71   :  { %9885 = vmatprep.subr.bf16.mxu0 %v11095_v10 }
0x1a77   :  { %9866 = vmatmul.mubr.msk.bf16.vlgmr.msra.gmra.mxu0 %vm488_vm15, %v11999_v30 }
0x1a78   :  { %9889 = vmatprep.mubr.msk.bf16.mxu0 %vm11096_vm4, %v11095_v10 }
0x1b37   :  { %v2791_v35 = vpop.f32.mrf.mxu0 }
0x1b38   :  { %v2797_v44 = vmul.f32 0.35355338, %v2791_v35 }
0x1b39   :  { %v9867_v52 = vpop.f32.mrf.mxu0 }
0x1b3a   :  { %v2798_v53 = vsel %vm11259_vm8, %v2797_v44, -1e+30 }
0x1b3b   :  { %v2794_v55 = vpop.f32.mrf.mxu0  ;;  %v2800_v12 = vsel %vm2799_vm6, %v2798_v53, -inf }
0x1b3c   :  { %2801 = vmax.xlane.f32.xlu0 %v2800_v12 }
0x1b3d   :  { %v9868_v49 = vpop.f32.mrf.mxu0 }
0x1b52   :  { %479 = vrot.lane.b32.xlu0 %v11376_v8, %s13707_s12 }
0x1b56   :  { %469 = vrot.lane.b32.xlu0 %v11374_v7, %s13707_s12 }
0x1b5a   :  { %2864 = vrot.lane.b32.xlu0 %v11992_v42, %s13715_s30 }
0x1bc5   :  { %v2802_v13 = vpop.xlane.xlu0 %2801 }
0x1bc6   :  { %v2803_v33 = vsub.f32 %v2798_v53, %v2802_v13 }
0x1bc8   :  { %v2804_v0 = vmul.f32 1.442695, %v2803_v33 }
0x1bc9   :  { %v480_v58 = vpop.permute.xlu0 %479 }
0x1bca   :  { %10918 = vpow2.f32 %v2804_v0  ;;  %482 = vst.msk [vmem:[#allocation3 + $0xc] sm:$0xff] %vm73_vm14, %v480_v58 }
0x1bcd   :  { %v470_v28 = vpop.permute.xlu0 %469 }
0x1bce   :  { %472 = vst.msk [vmem:[#allocation3] sm:$0xff] %vm73_vm14, %v470_v28 }
0x1bd1   :  { %v2742_v59 = vld [vmem:[#allocation3 + $0x10] sm:$0xff]  ;;  %v2741_v21 = vld [vmem:[#allocation3 + $0x8] sm:$0xff]  ;;  %v2865_v50 = vpop.permute.xlu0 %2864 }
0x1bd2   :  { %v12016_v61 = vpack.c.bf16 %v2742_v59, %v2742_v59  ;;  %v2872_v11 = vsel %vm488_vm15, %v2865_v50, 0 }
0x1bd4   :  { %v2817_v7 = vsel %vm2815_vm7, %v12016_v61, 0 }
0x1bd5   :  { %9870 = vmatpush3.bf16.msra.mxu1 %v2817_v7  ;;  %v2740_v8 = vld [vmem:[#allocation3] sm:$0xff] }
0x1bd6   :  { %9871 = vmatprep.subr.bf16.mxu1 %v11095_v10  ;;  %v12021_v63 = vpack.c.bf16 %v2741_v21, %v2740_v8 }
0x1bd7   :  { %v10919_v3 = vpop.eup %10918 }
0x1bd8   :  { %v2806_v5 = vsel %vm2799_vm6, %v10919_v3, 0.0 }
0x1bd9   :  { %2807 = vadd.xlane.f32.xlu1 %v2806_v5  ;;  %9872 = vmatpush3.bf16.msra.mxu1 %v12021_v63 }
0x1bda   :  { %9877 = vmatprep.subr.bf16.mxu1 %v11095_v10 }
0x1bea   :  { %2866 = vrot.lane.b32.xlu1 %v11987_v38, %s13715_s30 }
0x1bee   :  { %2860 = vrot.lane.b32.xlu1 %v11999_v30, %s13715_s30 }
0x1c62   :  { %v2808_v9 = vpop.xlane.xlu1 %2807 }
0x1c63   :  { %10920 = vrcp.f32 %v2808_v9 }
0x1c66   :  { %v2867_v16 = vpop.permute.xlu1 %2866 }
0x1c67   :  { %v2875_v45 = vsel %vm488_vm15, %v2867_v16, 0 }
0x1c6a   :  { %v2861_v24 = vpop.permute.xlu1 %2860 }
0x1c70   :  { %v10921_v54 = vpop.eup %10920 }
0x1c71   :  { %v2810_v56 = vmul.f32 %v10921_v54, %v10919_v3 }
0x1c73   :  { %v2811_v22 = vpack.c.bf16 %v2810_v56, %v2810_v56 }
0x1c75   :  { %9874 = vmatmul.mubr.msk.bf16.vlgmr.msra.gmra.mxu1 %vm1015_vm1, %v2811_v22 }
0x1c76   :  { %9878 = vmatpush3.bf16.xpose.msra.mxu1 %v2875_v45  ;;  %9881 = vmatprep.mubr.msk.bf16.mxu1 %vm11096_vm4, %v11095_v10 }
0x1c77   :  { %9879 = vmatprep.subr.bf16.mxu1 %v11095_v10 }
0x1c7e   :  { %9880 = vmatpush3.bf16.xpose.msra.mxu1 %v2872_v11 }
0x1c7f   :  { %9901 = vmatprep.subr.bf16.mxu1 %v11095_v10 }
0x1c85   :  { %9882 = vmatmul.mubr.msk.bf16.vlgmr.msra.gmra.mxu1 %vm488_vm15, %v2861_v24 }
0x1c86   :  { %9905 = vmatprep.mubr.msk.bf16.mxu1 %vm11096_vm4, %v11095_v10 }
0x1d35   :  { %v12040_v25 = vpop.f32.mrf.mxu1 }
0x1d37   :  { %v9875_v62 = vpop.f32.mrf.mxu1 }
0x1d39   :  { %v2856_v31 = vpop.f32.mrf.mxu1 }
0x1d3b   :  { %v9876_v4 = vpop.f32.mrf.mxu1 }
0x1d45   :  { %v2911_v48 = vpop.f32.mrf.mxu1 }
0x1d46   :  { %v2917_v47 = vmul.f32 0.35355338, %v2911_v48 }
0x1d47   :  { %v9883_v32 = vpop.f32.mrf.mxu1 }
0x1d48   :  { %v2918_v41 = vsel %vm11259_vm8, %v2917_v47, -1e+30 }
0x1d49   :  { %v2914_v40 = vpop.f32.mrf.mxu1  ;;  %v2919_v1 = vsel %vm2799_vm6, %v2918_v41, -inf }
0x1d4a   :  { %2920 = vmax.xlane.f32.xlu0 %v2919_v1 }
0x1d4b   :  { %v9884_v43 = vpop.f32.mrf.mxu1 }
0x1d60   :  { %2935 = vrot.lane.b32.xlu0 %v12016_v61, %s13715_s30 }
0x1d64   :  { %2988 = vrot.lane.b32.xlu0 %v11987_v38, %s13704_s6 }
0x1d68   :  { %2984 = vrot.lane.b32.xlu0 %v11999_v30, %s13704_s6 }
0x1dd3   :  { %v2921_v2 = vpop.xlane.xlu0 %2920 }
0x1dd4   :  { %v2922_v46 = vsub.f32 %v2918_v41, %v2921_v2 }
0x1dd6   :  { %v2923_v39 = vmul.f32 1.442695, %v2922_v46  ;;  %v10746_v46 = vld [vmem:[%s13629_s7 + $0x8] sm:$0xff]  }
0x1dd7   :  { %v2936_v35 = vpop.permute.xlu0 %2935 }
0x1dd8   :  { %10922 = vpow2.f32 %v2923_v39  ;;  %v2942_v44 = vsel %vm2815_vm7, %v2936_v35, 0  ;;  %v10747_v35 = vld [vmem:[%s13629_s7] sm:$0xff]  }
0x1dd9   :  { %9886 = vmatpush3.bf16.msra.mxu0 %v2942_v44 }
0x1dda   :  { %9887 = vmatprep.subr.bf16.mxu0 %v11095_v10 }
0x1ddb   :  { %v2989_v33 = vpop.permute.xlu0 %2988 }
0x1ddc   :  { %v2997_v58 = vsel %vm488_vm15, %v2989_v33, 0 }
0x1ddf   :  { %v2985_v7 = vpop.permute.xlu0 %2984 }
0x1de5   :  { %v10923_v52 = vpop.eup %10922 }
0x1de6   :  { %v2925_v53 = vsel %vm2799_vm6, %v10923_v52, 0.0 }
0x1de7   :  { %2926 = vadd.xlane.f32.xlu1 %v2925_v53 }
0x1df8   :  { %2933 = vrot.lane.b32.xlu1 %v12021_v63, %s13715_s30 }
0x1dfc   :  { %2986 = vrot.lane.b32.xlu1 %v11992_v42, %s13704_s6 }
0x1e70   :  { %v2927_v55 = vpop.xlane.xlu1 %2926 }
0x1e71   :  { %10924 = vrcp.f32 %v2927_v55 }
0x1e74   :  { %v2934_v12 = vpop.permute.xlu1 %2933 }
0x1e75   :  { %9888 = vmatpush3.bf16.msra.mxu0 %v2934_v12 }
0x1e76   :  { %9893 = vmatprep.subr.bf16.mxu0 %v11095_v10 }
0x1e78   :  { %v2987_v28 = vpop.permute.xlu1 %2986 }
0x1e79   :  { %v2994_v59 = vsel %vm488_vm15, %v2987_v28, 0 }
0x1e7e   :  { %v10925_v49 = vpop.eup %10924 }
0x1e7f   :  { %v2929_v13 = vmul.f32 %v10925_v49, %v10923_v52 }
0x1e81   :  { %v2930_v0 = vpack.c.bf16 %v2929_v13, %v2929_v13 }
0x1e83   :  { %9890 = vmatmul.mubr.msk.bf16.vlgmr.msra.gmra.mxu0 %vm1015_vm1, %v2930_v0 }
0x1e84   :  { %9894 = vmatpush3.bf16.xpose.msra.mxu0 %v2997_v58  ;;  %9897 = vmatprep.mubr.msk.bf16.mxu0 %vm11096_vm4, %v11095_v10 }
0x1e85   :  { %9895 = vmatprep.subr.bf16.mxu0 %v11095_v10 }
0x1e8c   :  { %9896 = vmatpush3.bf16.xpose.msra.mxu0 %v2994_v59 }
0x1e8d   :  { %9917 = vmatprep.subr.bf16.mxu0 %v11095_v10 }
0x1e93   :  { %9898 = vmatmul.mubr.msk.bf16.vlgmr.msra.gmra.mxu0 %vm488_vm15, %v2985_v7 }
0x1e94   :  { %9921 = vmatprep.mubr.msk.bf16.mxu0 %vm11096_vm4, %v11095_v10 }
0x1f43   :  { %v12069_v8 = vpop.f32.mrf.mxu0 }
0x1f45   :  { %v9891_v21 = vpop.f32.mrf.mxu0 }
0x1f47   :  { %v2981_v3 = vpop.f32.mrf.mxu0 }
0x1f49   :  { %v9892_v5 = vpop.f32.mrf.mxu0 }
0x1f53   :  { %v3033_v9 = vpop.f32.mrf.mxu0 }
0x1f54   :  { %v3039_v54 = vmul.f32 0.35355338, %v3033_v9 }
0x1f55   :  { %v9899_v56 = vpop.f32.mrf.mxu0 }
0x1f56   :  { %v3040_v16 = vsel %vm11259_vm8, %v3039_v54, -1e+30 }
0x1f57   :  { %v3036_v22 = vpop.f32.mrf.mxu0  ;;  %v3041_v45 = vsel %vm2799_vm6, %v3040_v16, -inf }
0x1f58   :  { %3042 = vmax.xlane.f32.xlu1 %v3041_v45 }
0x1f59   :  { %v9900_v50 = vpop.f32.mrf.mxu0 }
0x1f69   :  { %3053 = vrot.lane.b32.xlu1 %v12021_v63, %s13704_s6 }
0x1f6d   :  { %3108 = vrot.lane.b32.xlu1 %v11987_v38, %s13705_s16 }
0x1f71   :  { %3104 = vrot.lane.b32.xlu1 %v11999_v30, %s13705_s16 }
0x1fe1   :  { %v3043_v11 = vpop.xlane.xlu1 %3042 }
0x1fe2   :  { %v3044_v24 = vsub.f32 %v3040_v16, %v3043_v11 }
0x1fe4   :  { %v3045_v62 = vmul.f32 1.442695, %v3044_v24  ;;  %v10749_v24 = vld [vmem:[%s13703_s5] sm:$0xff]  }
0x1fe5   :  { %v3054_v30 = vpop.permute.xlu1 %3053 }
0x1fe6   :  { %10926 = vpow2.f32 %v3045_v62 }
0x1fe9   :  { %v3109_v40 = vpop.permute.xlu1 %3108 }
0x1fea   :  { %v3117_v43 = vsel %vm488_vm15, %v3109_v40, 0 }
0x1fed   :  { %v3105_v39 = vpop.permute.xlu1 %3104 }
0x1ff3   :  { %v10927_v31 = vpop.eup %10926 }
0x1ff4   :  { %v3047_v4 = vsel %vm2799_vm6, %v10927_v31, 0.0 }
0x1ff5   :  { %3048 = vadd.xlane.f32.xlu0 %v3047_v4 }
0x200b   :  { %3055 = vrot.lane.b32.xlu0 %v12016_v61, %s13704_s6 }
0x200f   :  { %3106 = vrot.lane.b32.xlu0 %v11992_v42, %s13705_s16 }
0x207e   :  { %v3049_v48 = vpop.xlane.xlu0 %3048 }
0x207f   :  { %10928 = vrcp.f32 %v3049_v48 }
0x2082   :  { %v3056_v38 = vpop.permute.xlu0 %3055 }
0x2083   :  { %v3062_v47 = vsel %vm2815_vm7, %v3056_v38, 0  ;;  %v8859_v38 = vld [vmem:[%s13630_s8] ss:$0 sm:$0xff] }
0x2084   :  { %9902 = vmatpush3.bf16.msra.mxu1 %v3062_v47 }
0x2085   :  { %9903 = vmatprep.subr.bf16.mxu1 %v11095_v10 }
0x2086   :  { %v3107_v42 = vpop.permute.xlu0 %3106 }
0x2087   :  { %v3114_v2 = vsel %vm488_vm15, %v3107_v42, 0 }
0x2088   :  { %9904 = vmatpush3.bf16.msra.mxu1 %v3054_v30 }
0x2089   :  { %9909 = vmatprep.subr.bf16.mxu1 %v11095_v10 }
0x208c   :  { %v10929_v32 = vpop.eup %10928 }
0x208d   :  { %v3051_v41 = vmul.f32 %v10929_v32, %v10927_v31 }
0x208f   :  { %v3052_v1 = vpack.c.bf16 %v3051_v41, %v3051_v41 }
0x2091   :  { %9906 = vmatmul.mubr.msk.bf16.vlgmr.msra.gmra.mxu1 %vm1015_vm1, %v3052_v1 }
0x2092   :  { %9910 = vmatpush3.bf16.xpose.msra.mxu1 %v3117_v43  ;;  %9913 = vmatprep.mubr.msk.bf16.mxu1 %vm11096_vm4, %v11095_v10 }
0x2093   :  { %9911 = vmatprep.subr.bf16.mxu1 %v11095_v10 }
0x209a   :  { %9912 = vmatpush3.bf16.xpose.msra.mxu1 %v3114_v2 }
0x209b   :  { %9933 = vmatprep.subr.bf16.mxu1 %v11095_v10 }
0x20a1   :  { %9914 = vmatmul.mubr.msk.bf16.vlgmr.msra.gmra.mxu1 %vm488_vm15, %v3105_v39  ;;  %v10750_v39 = vld [vmem:[%s13631_s9 + $0x38] sm:$0xff]  }
0x20a2   :  { %9934 = vmatpush3.bf16.msra.mxu1 %v10746_v46  ;;  %9937 = vmatprep.mubr.msk.bf16.mxu1 %vm11096_vm4, %v11095_v10 }
0x20a3   :  { %9935 = vmatprep.subr.bf16.mxu1 %v11095_v10 }
0x20a6   :  { %9936 = vmatpush3.bf16.msra.mxu1 %v10747_v35 }
0x20a7   :  { %9961 = vmatprep.subr.bf16.mxu1 %v11095_v10 }
0x20a9   :  { %9938 = vmatmul.mubr.msk.bf16.vlgmr.msra.gmra.mxu1 %vm73_vm14, %v11945_v57 }
0x20aa   :  { %9965 = vmatprep.mubr.msk.bf16.mxu1 %vm11096_vm4, %v11095_v10 }
0x2151   :  { %v3098_v44 = vpop.f32.mrf.mxu1 }
0x2153   :  { %v9907_v52 = vpop.f32.mrf.mxu1 }
0x2154   :  { %v10751_v52 = vld [vmem:[%s13631_s9 + $0x30] sm:$0xff]  }
0x2155   :  { %v3101_v53 = vpop.f32.mrf.mxu1 }
0x2156   :  { %v10752_v53 = vld [vmem:[%s13631_s9 + $0x28] sm:$0xff]  }
0x2157   :  { %v9908_v55 = vpop.f32.mrf.mxu1 }
0x2158   :  { %v10753_v55 = vld [vmem:[%s13631_s9 + $0x20] sm:$0xff]  }
0x2161   :  { %v3153_v12 = vpop.f32.mrf.mxu1 }
0x2162   :  { %v3159_v49 = vmul.f32 0.35355338, %v3153_v12  ;;  %v10754_v12 = vld [vmem:[%s13631_s9 + $0x18] sm:$0xff]  }
0x2163   :  { %v9915_v13 = vpop.f32.mrf.mxu1 }
0x2164   :  { %v3160_v33 = vsel %vm11259_vm8, %v3159_v49, -1e+30  ;;  %v10755_v49 = vld [vmem:[%s13631_s9 + $0x10] sm:$0xff]  }
0x2165   :  { %v3156_v0 = vpop.f32.mrf.mxu1  ;;  %v3161_v58 = vsel %vm2799_vm6, %v3160_v33, -inf }
0x2166   :  { %3162 = vmax.xlane.f32.xlu0 %v3161_v58 }
0x2167   :  { %v9916_v28 = vpop.f32.mrf.mxu1 }
0x2168   :  { %v10757_v28 = vld [vmem:[%s13631_s9] sm:$0xff]  }
0x2169   :  { %v3356_v59 = vpop.f32.mrf.mxu1 }
0x216a   :  { %v3357_v47 = vadd.f32 %v8859_v38, %v3356_v59 }
0x216b   :  { %v9939_v57 = vpop.f32.mrf.mxu1 }
0x216c   :  { %v3363_v30 = vmul.f32 0.044715, %v3357_v47  ;;  %v3362_v58 = vmul.f32 0.5, %v3357_v47 }
0x216d   :  { %v3359_v7 = vpop.f32.mrf.mxu1 }
0x216e   :  { %v3364_v32 = vmul.f32 %v3363_v30, %v3357_v47 }
0x216f   :  { %v9940_v21 = vpop.f32.mrf.mxu1 }
0x2170   :  { %v3365_v1 = vmul.f32 %v3364_v32, %v3357_v47  ;;  %v8874_v32 = vld [vmem:[%s13700_s29 + $0x1] ss:$0 sm:$0xff] }
0x2172   :  { %v3366_v35 = vadd.f32 %v3365_v1, %v3357_v47 }
0x217c   :  { %3175 = vrot.lane.b32.xlu0 %v12016_v61, %s13705_s16 }
0x2180   :  { %3225 = vrot.lane.b32.xlu0 %v12069_v8, %s13710_s28 }
0x21ef   :  { %v3163_v3 = vpop.xlane.xlu0 %3162 }
0x21f0   :  { %v3164_v5 = vsub.f32 %v3160_v33, %v3163_v3  ;;  %v10756_v33 = vld [vmem:[%s13631_s9 + $0x8] sm:$0xff]  }
0x21f2   :  { %v3165_v9 = vmul.f32 1.442695, %v3164_v5 }
0x21f3   :  { %v3176_v54 = vpop.permute.xlu0 %3175 }
0x21f4   :  { %10930 = vpow2.f32 %v3165_v9  ;;  %v3182_v56 = vsel %vm2815_vm7, %v3176_v54, 0  ;;  %v8863_v9 = vld [vmem:[%s13632_s10] ss:$0 sm:$0xff] }
0x21f5   :  { %9918 = vmatpush3.bf16.msra.mxu0 %v3182_v56 }
0x21f6   :  { %9919 = vmatprep.subr.bf16.mxu0 %v11095_v10 }
0x21f7   :  { %v3226_v41 = vpop.permute.xlu0 %3225 }
0x21f8   :  { %v3236_v43 = vsel %vm488_vm15, %v12040_v25, %v3226_v41  ;;  %v3367_v25 = vmul.f32 0.7978846, %v3366_v35 }
0x2201   :  { %v10931_v16 = vpop.eup %10930 }
0x2202   :  { %v3167_v22 = vsel %vm2799_vm6, %v10931_v16, 0.0 }
0x2203   :  { %3168 = vadd.xlane.f32.xlu1 %v3167_v22 }
0x2214   :  { %3173 = vrot.lane.b32.xlu1 %v12021_v63, %s13705_s16  ;;  %v10748_v63 = vld [vmem:[%s13703_s5 + $0x8] sm:$0xff]  }
0x2218   :  { %3229 = vrot.lane.b32.xlu1 %v3098_v44, %s13711_s17 }
0x228c   :  { %v3169_v61 = vpop.xlane.xlu1 %3168 }
0x228d   :  { %10932 = vrcp.f32 %v3169_v61 }
0x228e   :  { %10934 = vtanh.f32 %v3367_v25 }
0x2290   :  { %v3174_v8 = vpop.permute.xlu1 %3173 }
0x2291   :  { %9920 = vmatpush3.bf16.msra.mxu0 %v3174_v8 }
0x2292   :  { %9925 = vmatprep.subr.bf16.mxu0 %v11095_v10 }
0x2294   :  { %v3230_v40 = vpop.permute.xlu1 %3229 }
0x2295   :  { %v3237_v42 = vsel %vm13677_vm0, %v3236_v43, %v3230_v40  ;;  %v8875_v40 = vld [vmem:[%s13701_s0 + $0x1] ss:$0 sm:$0xff] }
0x229a   :  { %v10933_v45 = vpop.eup %10932 }
0x229b   :  { %v3171_v50 = vmul.f32 %v10933_v45, %v10931_v16  ;;  %v10935_v13 = vpop.eup %10934 }
0x229c   :  { %v3369_v0 = vadd.f32 1.0, %v10935_v13 }
0x229d   :  { %v3172_v11 = vpack.c.bf16 %v3171_v50, %v3171_v50 }
0x229e   :  { %v3370_v59 = vmul.f32 %v3369_v0, %v3362_v58 }
0x229f   :  { %9922 = vmatmul.mubr.msk.bf16.vlgmr.msra.gmra.mxu0 %vm1015_vm1, %v3172_v11 }
0x22a0   :  { %9929 = vmatprep.mubr.msk.bf16.mxu0 %vm11096_vm4, %v11095_v10  ;;  %9926 = vmatpush3.bf16.msra.mxu0 %v10748_v63  ;;  %v3371_v57 = vpack.c.bf16 %v3370_v59, %v3370_v59 }
0x22a1   :  { %9927 = vmatprep.subr.bf16.mxu0 %v11095_v10 }
0x22a4   :  { %9928 = vmatpush3.bf16.msra.mxu0 %v10749_v24 }
0x22a5   :  { %9941 = vmatprep.subr.bf16.mxu0 %v11095_v10 }
0x235f   :  { %v3218_v62 = vpop.f32.mrf.mxu0 }
0x2360   :  { %3233 = vrot.lane.b32.xlu0 %v3218_v62, %s13712_s3 }
0x2361   :  { %v9923_v31 = vpop.f32.mrf.mxu0 }
0x2363   :  { %v3221_v4 = vpop.f32.mrf.mxu0 }
0x2364   :  { %v10759_v4 = vld [vmem:[%s13699_s26 + $0x10] sm:$0xff]  }
0x2365   :  { %v9924_v48 = vpop.f32.mrf.mxu0 }
0x23d2   :  { %v3234_v2 = vpop.permute.xlu0 %3233 }
0x23d3   :  { %v3238_v46 = vsel %vm1015_vm1, %v3237_v42, %v3234_v2  ;;  %v8881_v2 = vld [vmem:[%s13702_s2 + $0x1] ss:$0 sm:$0xff] }
0x23d4   :  { %v3239_v44 = vpack.c.bf16 %v3238_v46, %v3238_v46 }
0x23d6   :  { %9930 = vmatmul.mubr.msk.bf16.vlgmr.msra.gmra.mxu0 %vm73_vm14, %v3239_v44 }
0x23d7   :  { %9942 = vmatpush3.bf16.msra.mxu0 %v10750_v39  ;;  %9957 = vmatprep.mubr.msk.bf16.mxu0 %vm11096_vm4, %v11095_v10 }
0x23d8   :  { %9943 = vmatprep.subr.bf16.mxu0 %v11095_v10 }
0x23db   :  { %9944 = vmatpush3.bf16.msra.mxu0 %v10751_v52 }
0x23dc   :  { %9945 = vmatprep.subr.bf16.mxu0 %v11095_v10 }
0x23df   :  { %9946 = vmatpush3.bf16.msra.mxu0 %v10752_v53 }
0x23e0   :  { %9947 = vmatprep.subr.bf16.mxu0 %v11095_v10 }
0x23e3   :  { %9948 = vmatpush3.bf16.msra.mxu0 %v10753_v55 }
0x23e4   :  { %9949 = vmatprep.subr.bf16.mxu0 %v11095_v10 }
0x23e7   :  { %9950 = vmatpush3.bf16.msra.mxu0 %v10754_v12 }
0x23e8   :  { %9951 = vmatprep.subr.bf16.mxu0 %v11095_v10 }
0x23eb   :  { %9952 = vmatpush3.bf16.msra.mxu0 %v10755_v49 }
0x23ec   :  { %9953 = vmatprep.subr.bf16.mxu0 %v11095_v10 }
0x23ef   :  { %9954 = vmatpush3.bf16.msra.mxu0 %v10756_v33 }
0x23f0   :  { %9955 = vmatprep.subr.bf16.mxu0 %v11095_v10 }
0x23f3   :  { %9956 = vmatpush3.bf16.msra.mxu0 %v10757_v28 }
0x23f4   :  { %9993 = vmatprep.subr.bf16.mxu0 %v11095_v10 }
0x23f6   :  { %9958 = vmatmul.mubr.bf16.vlgmr.msra.gmra.mxu0 %v3371_v57 }
0x23f7   :  { %9997 = vmatprep.mubr.msk.bf16.mxu0 %vm11096_vm4, %v11095_v10 }
0x2496   :  { %v3293_v7 = vpop.f32.mrf.mxu0 }
0x2497   :  { %v3483_v56 = vadd.f32 %v3293_v7, %v11918_v37  ;;  %v10758_v37 = vld [vmem:[%s13699_s26 + $0x18] sm:$0xff]  }
0x2498   :  { %v9931_v21 = vpop.f32.mrf.mxu0  ;;  %9962 = vmatpush3.bf16.msra.mxu1 %v10758_v37 }
0x2499   :  { %9963 = vmatprep.subr.bf16.mxu1 %v11095_v10 }
0x249a   :  { %v3296_v3 = vpop.f32.mrf.mxu0 }
0x249c   :  { %v9932_v5 = vpop.f32.mrf.mxu0  ;;  %9964 = vmatpush3.bf16.msra.mxu1 %v10759_v4 }
0x249d   :  { %9969 = vmatprep.subr.bf16.mxu1 %v11095_v10 }
0x24b6   :  { %v3477_v54 = vpop.f32.mrf.mxu0 }
0x24b7   :  { %v3478_v16 = vadd.f32 %v8863_v9, %v3477_v54 }
0x24b8   :  { %v9959_v22 = vpop.f32.mrf.mxu0 }
0x24b9   :  { %v12184_v61 = vadd.f32 %v3483_v56, %v3478_v16 }
0x24ba   :  { %v3480_v8 = vpop.f32.mrf.mxu0 }
0x24bb   :  { %v3487_v45 = vsel %vm2347_vm3, %v12184_v61, 0.0 }
0x24bc   :  { %3488 = vadd.xlane.f32.xlu1 %v3487_v45  ;;  %v9960_v50 = vpop.f32.mrf.mxu0 }
0x2545   :  { %v3489_v11 = vpop.xlane.xlu1 %3488 }
0x2546   :  { %v3490_v63 = vmul.f32 0.03125, %v3489_v11 }
0x2548   :  { %v3491_v24 = vsub.f32 %v12184_v61, %v3490_v63 }
0x254a   :  { %v3492_v62 = vmul.f32 %v3491_v24, %v3491_v24 }
0x254c   :  { %v3493_v31 = vsel %vm2347_vm3, %v3492_v62, 0.0 }
0x254d   :  { %3494 = vadd.xlane.f32.xlu0 %v3493_v31 }
0x25d6   :  { %v3495_v48 = vpop.xlane.xlu0 %3494 }
0x25d7   :  { %v3496_v38 = vmul.f32 0.03125, %v3495_v48 }
0x25d9   :  { %v3497_v47 = vadd.f32 1e-05, %v3496_v38 }
0x25db   :  { %10936 = vrsqrt.f32 %v3497_v47 }
0x25e8   :  { %v10937_v30 = vpop.eup %10936 }
0x25e9   :  { %v3499_v41 = vmul.f32 %v10937_v30, %v3491_v24 }
0x25eb   :  { %v3506_v1 = vmul.f32 %v8874_v32, %v3499_v41 }
0x25ed   :  { %v3513_v43 = vadd.f32 %v8875_v40, %v3506_v1 }
0x25ef   :  { %v12204_v42 = vpack.c.bf16 %v3513_v43, %v3513_v43 }
0x25f1   :  { %9966 = vmatmul.mubr.msk.bf16.vlgmr.msra.gmra.mxu1 %vm73_vm14, %v12204_v42 }
0x25f2   :  { %9970 = vmatpush3.bf16.msra.mxu1 %v11905_v34  ;;  %9973 = vmatprep.mubr.msk.bf16.mxu1 %vm11096_vm4, %v11095_v10 }
0x25f3   :  { %9971 = vmatprep.subr.bf16.mxu1 %v11095_v10 }
0x25f6   :  { %9972 = vmatpush3.bf16.msra.mxu1 %v11914_v6 }
0x25f7   :  { %9977 = vmatprep.subr.bf16.mxu1 %v11095_v10 }
0x26b1   :  { %v3575_v46 = vpop.f32.mrf.mxu1 }
0x26b2   :  { %v3576_v39 = vadd.f32 %v8881_v2, %v3575_v46 }
0x26b3   :  { %v9967_v35 = vpop.f32.mrf.mxu1 }
0x26b4   :  { %v3581_v44 = vpack.c.bf16 %v3576_v39, %v3576_v39  ;;  %v3674_v28 = vmul.f32 %v3576_v39, %v11977_v23  ;;  %v3625_v22 = vmul.f32 %v11935_v51, %v3576_v39 }
0x26b5   :  { %v3578_v52 = vpop.f32.mrf.mxu1 }
0x26b6   :  { %3629 = vrot.lane.b32.xlu0 %v3581_v44, %s13714_s23  ;;  %9974 = vmatmul.mubr.msk.bf16.vlgmr.msra.gmra.mxu1 %vm73_vm14, %v3581_v44 }
0x26b7   :  { %v9968_v25 = vpop.f32.mrf.mxu1  ;;  %9978 = vmatpush3.bf16.msra.mxu1 %v11905_v34  ;;  %9981 = vmatprep.mubr.msk.bf16.mxu1 %vm11096_vm4, %v11095_v10 }
0x26b8   :  { %9979 = vmatprep.subr.bf16.mxu1 %v11095_v10 }
0x26bb   :  { %9980 = vmatpush3.bf16.msra.mxu1 %v11914_v6 }
0x26bc   :  { %9985 = vmatprep.subr.bf16.mxu1 %v11095_v10 }
0x2728   :  { %v3630_v53 = vpop.permute.xlu0 %3629 }
0x2729   :  { %9982 = vmatmul.mubr.msk.bf16.vlgmr.msra.gmra.mxu1 %vm73_vm14, %v3630_v53 }
0x272a   :  { %9989 = vmatprep.mubr.msk.bf16.mxu1 %vm11096_vm4, %v11095_v10 }
0x2776   :  { %v3619_v55 = vpop.f32.mrf.mxu1 }
0x2777   :  { %v3626_v16 = vmul.f32 %v11968_v14, %v3619_v55 }
0x2778   :  { %v9975_v12 = vpop.f32.mrf.mxu1 }
0x2779   :  { %v3627_v45 = vadd.f32 %v3626_v16, %v3625_v22 }
0x277a   :  { %v3622_v49 = vpop.f32.mrf.mxu1 }
0x277b   :  { %v12255_v50 = vpack.c.bf16 %v3627_v45, %v3627_v45 }
0x277c   :  { %v9976_v13 = vpop.f32.mrf.mxu1 }
0x27e9   :  { %v3668_v34 = vpop.f32.mrf.mxu1 }
0x27ea   :  { %v3675_v33 = vmul.f32 %v11968_v14, %v3668_v34 }
0x27eb   :  { %v9983_v0 = vpop.f32.mrf.mxu1 }
0x27ec   :  { %3677 = vrot.lane.b32.xlu1 %v3675_v33, %s13713_s25 }
0x27ed   :  { %v3671_v58 = vpop.f32.mrf.mxu1 }
0x27ef   :  { %v9984_v6 = vpop.f32.mrf.mxu1 }
0x27f0   :  { %1531 = vrot.lane.b32.xlu1 %v11680_v15, %s13714_s23 }
0x27f4   :  { %1519 = vrot.lane.b32.xlu1 %v11678_v60, %s13714_s23 }
0x27f8   :  { %3687 = vrot.lane.b32.xlu1 %v3576_v39, %s13707_s12 }
0x285e   :  { %v3678_v59 = vpop.permute.xlu1 %3677 }
0x285f   :  { %v3680_v57 = vadd.f32 %v3678_v59, %v3674_v28 }
0x2861   :  { %3682 = vrot.lane.b32.xlu0 %v3680_v57, %s13714_s23 }
0x2862   :  { %v1532_v7 = vpop.permute.xlu1 %1531 }
0x2863   :  { %1534 = vst.msk [vmem:[#allocation2 + $0x24] sm:$0xff] %vm73_vm14, %v1532_v7 }
0x2866   :  { %v1520_v21 = vpop.permute.xlu1 %1519 }
0x2867   :  { %1523 = vst.msk [vmem:[#allocation2 + $0x18] sm:$0xff] %vm73_vm14, %v1520_v21 }
0x286a   :  { %v3688_v3 = vpop.permute.xlu1 %3687 }
0x286b   :  { %3690 = vst.msk [vmem:[#allocation3 + $0x20] sm:$0x1] %vm2727_vm13, %v3688_v3 }
0x286c   :  { %3692 = vst.msk [vmem:[#allocation3 + $0x2b] sm:$0x2] %vm2734_vm2, %v3688_v3 }
0x286e   :  { %v3693_v54 = vld [vmem:[#allocation2 + $0x18] sm:$0xff] }
0x28d3   :  { %v3683_v60 = vpop.permute.xlu0 %3682 }
0x28d4   :  { %3685 = vst.msk [vmem:[#allocation2 + $0x20] sm:$0x1] %vm2727_vm13, %v3683_v60 }
0x28d5   :  { %3691 = vst.msk [vmem:[#allocation2 + $0x2b] sm:$0x2] %vm2734_vm2, %v3683_v60 }
0x28db   :  { %v3694_v9 = vld [vmem:[#allocation2 + $0x20] sm:$0xff] }
0x28dc   :  { %v3695_v15 = vld [vmem:[#allocation2 + $0x28] sm:$0xff]  ;;  %v12248_v56 = vpack.c.bf16 %v3694_v9, %v3693_v54 }
0x28dd   :  { %v12243_v23 = vpack.c.bf16 %v3695_v15, %v3695_v15 }
0x28de   :  { %v3708_v8 = vsel %vm488_vm15, %v12248_v56, 0 }
0x28df   :  { %v3711_v5 = vsel %vm488_vm15, %v12243_v23, 0 }
0x28e0   :  { %9986 = vmatpush3.bf16.xpose.msra.mxu1 %v3711_v5 }
0x28e1   :  { %9987 = vmatprep.subr.bf16.mxu1 %v11095_v10 }
0x28e8   :  { %9988 = vmatpush3.bf16.xpose.msra.mxu1 %v3708_v8 }
0x28e9   :  { %10009 = vmatprep.subr.bf16.mxu1 %v11095_v10 }
0x28ef   :  { %9990 = vmatmul.mubr.msk.bf16.vlgmr.msra.gmra.mxu1 %vm488_vm15, %v12255_v50 }
0x28f0   :  { %10013 = vmatprep.mubr.msk.bf16.mxu1 %vm11096_vm4, %v11095_v10 }
0x29af   :  { %v3747_v11 = vpop.f32.mrf.mxu1 }
0x29b0   :  { %v3753_v63 = vmul.f32 0.35355338, %v3747_v11 }
0x29b1   :  { %v9991_v14 = vpop.f32.mrf.mxu1 }
0x29b2   :  { %v3754_v51 = vsel %vm11259_vm8, %v3753_v63, -1e+30 }
0x29b3   :  { %v3750_v24 = vpop.f32.mrf.mxu1  ;;  %v3755_v62 = vsel %vm2799_vm6, %v3754_v51, -inf }
0x29b4   :  { %3756 = vmax.xlane.f32.xlu0 %v3755_v62 }
0x29b5   :  { %v9992_v31 = vpop.f32.mrf.mxu1 }
0x29ca   :  { %1536 = vrot.lane.b32.xlu0 %v11647_v36, %s13707_s12 }
0x29ce   :  { %1525 = vrot.lane.b32.xlu0 %v11645_v17, %s13707_s12 }
0x29d2   :  { %3818 = vrot.lane.b32.xlu0 %v12248_v56, %s13715_s30 }
0x2a3d   :  { %v3757_v37 = vpop.xlane.xlu0 %3756 }
0x2a3e   :  { %v3758_v4 = vsub.f32 %v3754_v51, %v3757_v37 }
0x2a40   :  { %v3759_v48 = vmul.f32 1.442695, %v3758_v4 }
0x2a41   :  { %v1537_v38 = vpop.permute.xlu0 %1536 }
0x2a42   :  { %10938 = vpow2.f32 %v3759_v48  ;;  %1539 = vst.msk [vmem:[#allocation3 + $0x24] sm:$0xff] %vm73_vm14, %v1537_v38 }
0x2a45   :  { %v1526_v47 = vpop.permute.xlu0 %1525 }
0x2a46   :  { %1529 = vst.msk [vmem:[#allocation3 + $0x18] sm:$0xff] %vm73_vm14, %v1526_v47 }
0x2a49   :  { %v3698_v30 = vld [vmem:[#allocation3 + $0x28] sm:$0xff]  ;;  %v3697_v41 = vld [vmem:[#allocation3 + $0x20] sm:$0xff]  ;;  %v3819_v25 = vpop.permute.xlu0 %3818 }
0x2a4a   :  { %v12272_v32 = vpack.c.bf16 %v3698_v30, %v3698_v30  ;;  %v3826_v53 = vsel %vm488_vm15, %v3819_v25, 0 }
0x2a4c   :  { %v3771_v36 = vsel %vm2815_vm7, %v12272_v32, 0 }
0x2a4d   :  { %9994 = vmatpush3.bf16.msra.mxu0 %v3771_v36  ;;  %v3696_v17 = vld [vmem:[#allocation3 + $0x18] sm:$0xff] }
0x2a4e   :  { %9995 = vmatprep.subr.bf16.mxu0 %v11095_v10  ;;  %v12277_v40 = vpack.c.bf16 %v3697_v41, %v3696_v17 }
0x2a4f   :  { %v10939_v1 = vpop.eup %10938 }
0x2a50   :  { %v3761_v43 = vsel %vm2799_vm6, %v10939_v1, 0.0 }
0x2a51   :  { %3762 = vadd.xlane.f32.xlu1 %v3761_v43  ;;  %9996 = vmatpush3.bf16.msra.mxu0 %v12277_v40 }
0x2a52   :  { %10001 = vmatprep.subr.bf16.mxu0 %v11095_v10 }
0x2a62   :  { %3820 = vrot.lane.b32.xlu1 %v12243_v23, %s13715_s30 }
0x2a66   :  { %3814 = vrot.lane.b32.xlu1 %v12255_v50, %s13715_s30 }
0x2ada   :  { %v3763_v2 = vpop.xlane.xlu1 %3762 }
0x2adb   :  { %10940 = vrcp.f32 %v3763_v2 }
0x2ade   :  { %v3821_v35 = vpop.permute.xlu1 %3820 }
0x2adf   :  { %v3829_v52 = vsel %vm488_vm15, %v3821_v35, 0 }
0x2ae2   :  { %v3815_v55 = vpop.permute.xlu1 %3814 }
0x2ae8   :  { %v10941_v46 = vpop.eup %10940 }
0x2ae9   :  { %v3765_v39 = vmul.f32 %v10941_v46, %v10939_v1 }
0x2aeb   :  { %v3766_v44 = vpack.c.bf16 %v3765_v39, %v3765_v39 }
0x2aed   :  { %9998 = vmatmul.mubr.msk.bf16.vlgmr.msra.gmra.mxu0 %vm1015_vm1, %v3766_v44 }
0x2aee   :  { %10002 = vmatpush3.bf16.xpose.msra.mxu0 %v3829_v52  ;;  %10005 = vmatprep.mubr.msk.bf16.mxu0 %vm11096_vm4, %v11095_v10 }
0x2aef   :  { %10003 = vmatprep.subr.bf16.mxu0 %v11095_v10 }
0x2af6   :  { %10004 = vmatpush3.bf16.xpose.msra.mxu0 %v3826_v53 }
0x2af7   :  { %10025 = vmatprep.subr.bf16.mxu0 %v11095_v10 }
0x2afd   :  { %10006 = vmatmul.mubr.msk.bf16.vlgmr.msra.gmra.mxu0 %vm488_vm15, %v3815_v55 }
0x2afe   :  { %10029 = vmatprep.mubr.msk.bf16.mxu0 %vm11096_vm4, %v11095_v10 }
0x2bad   :  { %v12296_v12 = vpop.f32.mrf.mxu0 }
0x2baf   :  { %v9999_v49 = vpop.f32.mrf.mxu0 }
0x2bb1   :  { %v3810_v13 = vpop.f32.mrf.mxu0 }
0x2bb3   :  { %v10000_v34 = vpop.f32.mrf.mxu0 }
0x2bb4   :  { %v10760_v34 = vld [vmem:[%s13629_s7 + $0x18] sm:$0xff]  }
0x2bbd   :  { %v3865_v33 = vpop.f32.mrf.mxu0 }
0x2bbe   :  { %v3871_v0 = vmul.f32 0.35355338, %v3865_v33 }
0x2bbf   :  { %v10007_v58 = vpop.f32.mrf.mxu0 }
0x2bc0   :  { %v3872_v6 = vsel %vm11259_vm8, %v3871_v0, -1e+30  ;;  %v10761_v0 = vld [vmem:[%s13629_s7 + $0x10] sm:$0xff]  }
0x2bc1   :  { %v3868_v28 = vpop.f32.mrf.mxu0  ;;  %v3873_v59 = vsel %vm2799_vm6, %v3872_v6, -inf }
0x2bc2   :  { %3874 = vmax.xlane.f32.xlu0 %v3873_v59 }
0x2bc3   :  { %v10008_v57 = vpop.f32.mrf.mxu0 }
0x2bd8   :  { %3889 = vrot.lane.b32.xlu0 %v12272_v32, %s13715_s30 }
0x2bdc   :  { %3942 = vrot.lane.b32.xlu0 %v12243_v23, %s13704_s6 }
0x2be0   :  { %3938 = vrot.lane.b32.xlu0 %v12255_v50, %s13704_s6 }
0x2c4b   :  { %v3875_v7 = vpop.xlane.xlu0 %3874 }
0x2c4c   :  { %v3876_v21 = vsub.f32 %v3872_v6, %v3875_v7 }
0x2c4e   :  { %v3877_v3 = vmul.f32 1.442695, %v3876_v21 }
0x2c4f   :  { %v3890_v60 = vpop.permute.xlu0 %3889 }
0x2c50   :  { %10942 = vpow2.f32 %v3877_v3  ;;  %v3896_v15 = vsel %vm2815_vm7, %v3890_v60, 0 }
0x2c51   :  { %10010 = vmatpush3.bf16.msra.mxu1 %v3896_v15 }
0x2c52   :  { %10011 = vmatprep.subr.bf16.mxu1 %v11095_v10 }
0x2c53   :  { %v3943_v45 = vpop.permute.xlu0 %3942 }
0x2c54   :  { %v3951_v63 = vsel %vm488_vm15, %v3943_v45, 0 }
0x2c57   :  { %v3939_v24 = vpop.permute.xlu0 %3938 }
0x2c5d   :  { %v10943_v5 = vpop.eup %10942 }
0x2c5e   :  { %v3879_v9 = vsel %vm2799_vm6, %v10943_v5, 0.0 }
0x2c5f   :  { %3880 = vadd.xlane.f32.xlu1 %v3879_v9 }
0x2c70   :  { %3887 = vrot.lane.b32.xlu1 %v12277_v40, %s13715_s30 }
0x2c74   :  { %3940 = vrot.lane.b32.xlu1 %v12248_v56, %s13704_s6 }
0x2ce8   :  { %v3881_v54 = vpop.xlane.xlu1 %3880 }
0x2ce9   :  { %10944 = vrcp.f32 %v3881_v54 }
0x2cec   :  { %v3888_v16 = vpop.permute.xlu1 %3887 }
0x2ced   :  { %10012 = vmatpush3.bf16.msra.mxu1 %v3888_v16 }
0x2cee   :  { %10017 = vmatprep.subr.bf16.mxu1 %v11095_v10 }
0x2cf0   :  { %v3941_v14 = vpop.permute.xlu1 %3940 }
0x2cf1   :  { %v3948_v51 = vsel %vm488_vm15, %v3941_v14, 0 }
0x2cf6   :  { %v10945_v22 = vpop.eup %10944 }
0x2cf7   :  { %v3883_v8 = vmul.f32 %v10945_v22, %v10943_v5 }
0x2cf9   :  { %v3884_v11 = vpack.c.bf16 %v3883_v8, %v3883_v8 }
0x2cfb   :  { %10014 = vmatmul.mubr.msk.bf16.vlgmr.msra.gmra.mxu1 %vm1015_vm1, %v3884_v11 }
0x2cfc   :  { %10018 = vmatpush3.bf16.xpose.msra.mxu1 %v3951_v63  ;;  %10021 = vmatprep.mubr.msk.bf16.mxu1 %vm11096_vm4, %v11095_v10 }
0x2cfd   :  { %10019 = vmatprep.subr.bf16.mxu1 %v11095_v10 }
0x2d04   :  { %10020 = vmatpush3.bf16.xpose.msra.mxu1 %v3948_v51 }
0x2d05   :  { %10041 = vmatprep.subr.bf16.mxu1 %v11095_v10 }
0x2d0b   :  { %10022 = vmatmul.mubr.msk.bf16.vlgmr.msra.gmra.mxu1 %vm488_vm15, %v3939_v24 }
0x2d0c   :  { %10045 = vmatprep.mubr.msk.bf16.mxu1 %vm11096_vm4, %v11095_v10 }
0x2dbb   :  { %v12325_v62 = vpop.f32.mrf.mxu1 }
0x2dbd   :  { %v10015_v31 = vpop.f32.mrf.mxu1 }
0x2dbf   :  { %v3935_v37 = vpop.f32.mrf.mxu1 }
0x2dc0   :  { %v10763_v37 = vld [vmem:[%s13703_s5 + $0x10] sm:$0xff]  }
0x2dc1   :  { %v10016_v4 = vpop.f32.mrf.mxu1 }
0x2dcb   :  { %v3987_v48 = vpop.f32.mrf.mxu1 }
0x2dcc   :  { %v3993_v38 = vmul.f32 0.35355338, %v3987_v48 }
0x2dcd   :  { %v10023_v47 = vpop.f32.mrf.mxu1 }
0x2dce   :  { %v3994_v30 = vsel %vm11259_vm8, %v3993_v38, -1e+30 }
0x2dcf   :  { %v3990_v36 = vpop.f32.mrf.mxu1  ;;  %v3995_v17 = vsel %vm2799_vm6, %v3994_v30, -inf }
0x2dd0   :  { %3996 = vmax.xlane.f32.xlu1 %v3995_v17 }
0x2dd1   :  { %v10024_v41 = vpop.f32.mrf.mxu1 }
0x2de1   :  { %4007 = vrot.lane.b32.xlu1 %v12277_v40, %s13704_s6 }
0x2de5   :  { %4062 = vrot.lane.b32.xlu1 %v12243_v23, %s13705_s16 }
0x2de9   :  { %4058 = vrot.lane.b32.xlu1 %v12255_v50, %s13705_s16 }
0x2e59   :  { %v3997_v1 = vpop.xlane.xlu1 %3996 }
0x2e5a   :  { %v3998_v43 = vsub.f32 %v3994_v30, %v3997_v1  ;;  %v8907_v30 = vld [vmem:[%s13630_s8 + $0x1] ss:$0 sm:$0xff] }
0x2e5c   :  { %v3999_v2 = vmul.f32 1.442695, %v3998_v43 }
0x2e5d   :  { %v4008_v50 = vpop.permute.xlu1 %4007 }
0x2e5e   :  { %10946 = vpow2.f32 %v3999_v2 }
0x2e61   :  { %v4063_v53 = vpop.permute.xlu1 %4062 }
0x2e62   :  { %v4071_v49 = vsel %vm488_vm15, %v4063_v53, 0  ;;  %v10766_v53 = vld [vmem:[%s13631_s9 + $0x68] sm:$0xff]  }
0x2e65   :  { %v4059_v33 = vpop.permute.xlu1 %4058 }
0x2e6b   :  { %v10947_v46 = vpop.eup %10946 }
0x2e6c   :  { %v4001_v39 = vsel %vm2799_vm6, %v10947_v46, 0.0 }
0x2e6d   :  { %4002 = vadd.xlane.f32.xlu0 %v4001_v39 }
0x2e83   :  { %4009 = vrot.lane.b32.xlu0 %v12272_v32, %s13704_s6 }
0x2e87   :  { %4060 = vrot.lane.b32.xlu0 %v12248_v56, %s13705_s16 }
0x2ef6   :  { %v4003_v35 = vpop.xlane.xlu0 %4002 }
0x2ef7   :  { %10948 = vrcp.f32 %v4003_v35 }
0x2efa   :  { %v4010_v23 = vpop.permute.xlu0 %4009 }
0x2efb   :  { %v4016_v44 = vsel %vm2815_vm7, %v4010_v23, 0 }
0x2efc   :  { %10026 = vmatpush3.bf16.msra.mxu0 %v4016_v44  ;;  %v10764_v44 = vld [vmem:[%s13631_s9 + $0x78] sm:$0xff]  }
0x2efd   :  { %10027 = vmatprep.subr.bf16.mxu0 %v11095_v10 }
0x2efe   :  { %v4061_v56 = vpop.permute.xlu0 %4060 }
0x2eff   :  { %v4068_v13 = vsel %vm488_vm15, %v4061_v56, 0  ;;  %v10769_v56 = vld [vmem:[%s13631_s9 + $0x50] sm:$0xff]  }
0x2f00   :  { %10028 = vmatpush3.bf16.msra.mxu0 %v4008_v50 }
0x2f01   :  { %10033 = vmatprep.subr.bf16.mxu0 %v11095_v10 }
0x2f04   :  { %v10949_v52 = vpop.eup %10948 }
0x2f05   :  { %v4005_v25 = vmul.f32 %v10949_v52, %v10947_v46 }
0x2f07   :  { %v4006_v55 = vpack.c.bf16 %v4005_v25, %v4005_v25  ;;  %v10765_v25 = vld [vmem:[%s13631_s9 + $0x70] sm:$0xff]  }
0x2f09   :  { %10030 = vmatmul.mubr.msk.bf16.vlgmr.msra.gmra.mxu0 %vm1015_vm1, %v4006_v55  ;;  %v10767_v55 = vld [vmem:[%s13631_s9 + $0x60] sm:$0xff]  }
0x2f0a   :  { %10034 = vmatpush3.bf16.xpose.msra.mxu0 %v4071_v49  ;;  %10037 = vmatprep.mubr.msk.bf16.mxu0 %vm11096_vm4, %v11095_v10  ;;  %v10768_v49 = vld [vmem:[%s13631_s9 + $0x58] sm:$0xff]  }
0x2f0b   :  { %10035 = vmatprep.subr.bf16.mxu0 %v11095_v10 }
0x2f12   :  { %10036 = vmatpush3.bf16.xpose.msra.mxu0 %v4068_v13 }
0x2f13   :  { %10057 = vmatprep.subr.bf16.mxu0 %v11095_v10 }
0x2f19   :  { %10038 = vmatmul.mubr.msk.bf16.vlgmr.msra.gmra.mxu0 %vm488_vm15, %v4059_v33 }
0x2f1a   :  { %10058 = vmatpush3.bf16.msra.mxu0 %v10760_v34  ;;  %10061 = vmatprep.mubr.msk.bf16.mxu0 %vm11096_vm4, %v11095_v10  ;;  %v10770_v34 = vld [vmem:[%s13631_s9 + $0x48] sm:$0xff]  }
0x2f1b   :  { %10059 = vmatprep.subr.bf16.mxu0 %v11095_v10 }
0x2f1e   :  { %10060 = vmatpush3.bf16.msra.mxu0 %v10761_v0 }
0x2f1f   :  { %10085 = vmatprep.subr.bf16.mxu0 %v11095_v10 }
0x2f21   :  { %10062 = vmatmul.mubr.msk.bf16.vlgmr.msra.gmra.mxu0 %vm73_vm14, %v12204_v42 }
0x2f22   :  { %10089 = vmatprep.mubr.msk.bf16.mxu0 %vm11096_vm4, %v11095_v10 }
0x2fc9   :  { %v4052_v58 = vpop.f32.mrf.mxu0 }
0x2fcb   :  { %v10031_v6 = vpop.f32.mrf.mxu0 }
0x2fcd   :  { %v4055_v28 = vpop.f32.mrf.mxu0 }
0x2fcf   :  { %v10032_v59 = vpop.f32.mrf.mxu0 }
0x2fd9   :  { %v4107_v57 = vpop.f32.mrf.mxu0 }
0x2fda   :  { %v4113_v7 = vmul.f32 0.35355338, %v4107_v57 }
0x2fdb   :  { %v10039_v21 = vpop.f32.mrf.mxu0 }
0x2fdc   :  { %v4114_v3 = vsel %vm11259_vm8, %v4113_v7, -1e+30 }
0x2fdd   :  { %v4110_v60 = vpop.f32.mrf.mxu0  ;;  %v4115_v15 = vsel %vm2799_vm6, %v4114_v3, -inf }
0x2fde   :  { %4116 = vmax.xlane.f32.xlu0 %v4115_v15 }
0x2fdf   :  { %v10040_v5 = vpop.f32.mrf.mxu0 }
0x2fe1   :  { %v4310_v9 = vpop.f32.mrf.mxu0 }
0x2fe2   :  { %v4311_v36 = vadd.f32 %v8907_v30, %v4310_v9  ;;  %v11053_v30 = vld [vmem:[%s13692_s24 + $0x30] sm:$0xff]  }
0x2fe3   :  { %v10063_v42 = vpop.f32.mrf.mxu0 }
0x2fe4   :  { %v4317_v17 = vmul.f32 0.044715, %v4311_v36  ;;  %v4316_v0 = vmul.f32 0.5, %v4311_v36 }
0x2fe5   :  { %v4313_v54 = vpop.f32.mrf.mxu0 }
0x2fe6   :  { %v4318_v41 = vmul.f32 %v4317_v17, %v4311_v36  ;;  %v11055_v17 = vld [vmem:[%s13692_s24 + $0x20] sm:$0xff]  }
0x2fe7   :  { %v10064_v16 = vpop.f32.mrf.mxu0 }
0x2fe8   :  { %v4319_v2 = vmul.f32 %v4318_v41, %v4311_v36  ;;  %v11056_v41 = vld [vmem:[%s13692_s24 + $0x18] sm:$0xff]  }
0x2fea   :  { %v4320_v50 = vadd.f32 %v4319_v2, %v4311_v36  ;;  %v11054_v36 = vld [vmem:[%s13692_s24 + $0x28] sm:$0xff]   ;;  %v11059_v2 = vld [vmem:[%s13692_s24] sm:$0xff]  }
0x2ff4   :  { %4129 = vrot.lane.b32.xlu0 %v12272_v32, %s13705_s16 }
0x2ff8   :  { %4179 = vrot.lane.b32.xlu0 %v12325_v62, %s13710_s28 }
0x3067   :  { %v4117_v22 = vpop.xlane.xlu0 %4116 }
0x3068   :  { %v4118_v8 = vsub.f32 %v4114_v3, %v4117_v22  ;;  %v8928_v3 = vld [vmem:[%s13632_s10 + $0x1] ss:$0 sm:$0xff] }
0x306a   :  { %v4119_v45 = vmul.f32 1.442695, %v4118_v8 }
0x306b   :  { %v4130_v18 = vpop.permute.xlu0 %4129 }
0x306c   :  { %10950 = vpow2.f32 %v4119_v45  ;;  %v4136_v11 = vsel %vm2815_vm7, %v4130_v18, 0 }
0x306d   :  { %10042 = vmatpush3.bf16.msra.mxu1 %v4136_v11 }
0x306e   :  { %10043 = vmatprep.subr.bf16.mxu1 %v11095_v10 }
0x306f   :  { %v4180_v1 = vpop.permute.xlu0 %4179 }
0x3070   :  { %v4190_v46 = vsel %vm488_vm15, %v12296_v12, %v4180_v1  ;;  %v4321_v12 = vmul.f32 0.7978846, %v4320_v50  ;;  %v11057_v1 = vld [vmem:[%s13692_s24 + $0x10] sm:$0xff]  }
0x3079   :  { %v10951_v63 = vpop.eup %10950 }
0x307a   :  { %v4121_v14 = vsel %vm2799_vm6, %v10951_v63, 0.0 }
0x307b   :  { %4122 = vadd.xlane.f32.xlu1 %v4121_v14  ;;  %v10772_v14 = vld [vmem:[%s13642_s20 + $0x8] sm:$0xff]  }
0x307c   :  { %10086 = vmatpush3.bf16.msra.mxu0 %v10772_v14  ;;  %v8947_v14 = vld [vmem:[%s13702_s2] ss:$0 sm:$0xff] }
0x307d   :  { %10087 = vmatprep.subr.bf16.mxu0 %v11095_v10 }
0x308c   :  { %4127 = vrot.lane.b32.xlu1 %v12277_v40, %s13705_s16  ;;  %v10762_v40 = vld [vmem:[%s13703_s5 + $0x18] sm:$0xff]  }
0x3090   :  { %4183 = vrot.lane.b32.xlu1 %v4052_v58, %s13711_s17  ;;  %v10771_v58 = vld [vmem:[%s13631_s9 + $0x40] sm:$0xff]  }
0x3104   :  { %v4123_v32 = vpop.xlane.xlu1 %4122 }
0x3105   :  { %10952 = vrcp.f32 %v4123_v32 }
0x3106   :  { %10954 = vtanh.f32 %v4321_v12 }
0x3108   :  { %v4128_v51 = vpop.permute.xlu1 %4127 }
0x3109   :  { %10044 = vmatpush3.bf16.msra.mxu1 %v4128_v51 }
0x310a   :  { %10049 = vmatprep.subr.bf16.mxu1 %v11095_v10 }
0x310c   :  { %v4184_v43 = vpop.permute.xlu1 %4183 }
0x310d   :  { %v4191_v39 = vsel %vm13677_vm0, %v4190_v46, %v4184_v43  ;;  %v11058_v43 = vld [vmem:[%s13692_s24 + $0x8] sm:$0xff]   ;;  %v8939_v46 = vld [vmem:[%s13643_s21] ss:$0 sm:$0xff] }
0x3112   :  { %v10953_v24 = vpop.eup %10952 }
0x3113   :  { %v4125_v62 = vmul.f32 %v10953_v24, %v10951_v63  ;;  %v10955_v13 = vpop.eup %10954 }
0x3114   :  { %v4323_v33 = vadd.f32 1.0, %v10955_v13  ;;  %v12502_v13 = vld [vmem:[%s13637_s15 + $0x8] sm:$0xff]  }
0x3115   :  { %v4126_v31 = vpack.c.bf16 %v4125_v62, %v4125_v62 }
0x3116   :  { %v4324_v6 = vmul.f32 %v4323_v33, %v4316_v0 }
0x3117   :  { %10046 = vmatmul.mubr.msk.bf16.vlgmr.msra.gmra.mxu1 %vm1015_vm1, %v4126_v31  ;;  %v8937_v31 = vld [vmem:[%s13640_s18] ss:$0 sm:$0xff] }
0x3118   :  { %10053 = vmatprep.mubr.msk.bf16.mxu1 %vm11096_vm4, %v11095_v10  ;;  %10050 = vmatpush3.bf16.msra.mxu1 %v10762_v40  ;;  %v4325_v28 = vpack.c.bf16 %v4324_v6, %v4324_v6 }
0x3119   :  { %10051 = vmatprep.subr.bf16.mxu1 %v11095_v10 }
0x311c   :  { %10052 = vmatpush3.bf16.msra.mxu1 %v10763_v37  ;;  %v8938_v37 = vld [vmem:[%s13641_s19] ss:$0 sm:$0xff]  ;;  %s13716_s19 = sld [smem:[#allocation15_spill]] }
0x311d   :  { %10065 = vmatprep.subr.bf16.mxu1 %v11095_v10 }
0x31d7   :  { %v4172_v4 = vpop.f32.mrf.mxu1 }
0x31d8   :  { %4187 = vrot.lane.b32.xlu0 %v4172_v4, %s13712_s3 }
0x31d9   :  { %v10047_v48 = vpop.f32.mrf.mxu1 }
0x31db   :  { %v4175_v38 = vpop.f32.mrf.mxu1 }
0x31dd   :  { %v10048_v47 = vpop.f32.mrf.mxu1 }
0x31de   :  { %v11052_v47 = vld [vmem:[%s13692_s24 + $0x38] sm:$0xff]  }
0x324a   :  { %v4188_v35 = vpop.permute.xlu0 %4187 }
0x324b   :  { %v4192_v23 = vsel %vm1015_vm1, %v4191_v39, %v4188_v35 }
0x324c   :  { %v4193_v52 = vpack.c.bf16 %v4192_v23, %v4192_v23 }
0x324e   :  { %10054 = vmatmul.mubr.msk.bf16.vlgmr.msra.gmra.mxu1 %vm73_vm14, %v4193_v52 }
0x324f   :  { %10066 = vmatpush3.bf16.msra.mxu1 %v10764_v44  ;;  %10081 = vmatprep.mubr.msk.bf16.mxu1 %vm11096_vm4, %v11095_v10 }
0x3250   :  { %10067 = vmatprep.subr.bf16.mxu1 %v11095_v10 }
0x3253   :  { %10068 = vmatpush3.bf16.msra.mxu1 %v10765_v25 }
0x3254   :  { %10069 = vmatprep.subr.bf16.mxu1 %v11095_v10 }
0x3257   :  { %10070 = vmatpush3.bf16.msra.mxu1 %v10766_v53 }
0x3258   :  { %10071 = vmatprep.subr.bf16.mxu1 %v11095_v10 }
0x325b   :  { %10072 = vmatpush3.bf16.msra.mxu1 %v10767_v55 }
0x325c   :  { %10073 = vmatprep.subr.bf16.mxu1 %v11095_v10 }
0x325f   :  { %10074 = vmatpush3.bf16.msra.mxu1 %v10768_v49 }
0x3260   :  { %10075 = vmatprep.subr.bf16.mxu1 %v11095_v10 }
0x3263   :  { %10076 = vmatpush3.bf16.msra.mxu1 %v10769_v56 }
0x3264   :  { %10077 = vmatprep.subr.bf16.mxu1 %v11095_v10 }
0x3267   :  { %10078 = vmatpush3.bf16.msra.mxu1 %v10770_v34  ;;  %v12511_v34 = vld [vmem:[%s13637_s15] sm:$0xff]  }
0x3268   :  { %10079 = vmatprep.subr.bf16.mxu1 %v11095_v10 }
0x326b   :  { %10080 = vmatpush3.bf16.msra.mxu1 %v10771_v58 }
0x326c   :  { %10113 = vmatprep.subr.bf16.mxu1 %v11095_v10 }
0x326e   :  { %10082 = vmatmul.mubr.bf16.vlgmr.msra.gmra.mxu1 %v4325_v28 }
0x326f   :  { %10117 = vmatprep.mubr.msk.bf16.mxu1 %vm11096_vm4, %v11095_v10 }
0x330e   :  { %v4247_v59 = vpop.f32.mrf.mxu1 }
0x330f   :  { %v4437_v15 = vadd.f32 %v4247_v59, %v12184_v61  ;;  %v10773_v61 = vld [vmem:[%s13642_s20] sm:$0xff]  }
0x3310   :  { %v10055_v57 = vpop.f32.mrf.mxu1  ;;  %10088 = vmatpush3.bf16.msra.mxu0 %v10773_v61 }
0x3311   :  { %10093 = vmatprep.subr.bf16.mxu0 %v11095_v10 }
0x3312   :  { %v4250_v7 = vpop.f32.mrf.mxu1 }
0x3314   :  { %v10056_v21 = vpop.f32.mrf.mxu1 }
0x332e   :  { %v4431_v60 = vpop.f32.mrf.mxu1 }
0x332f   :  { %v4432_v5 = vadd.f32 %v8928_v3, %v4431_v60  ;;  %v10774_v60 = vld [vmem:[%s13699_s26 + $0x8] sm:$0xff]  }
0x3330   :  { %v10083_v9 = vpop.f32.mrf.mxu1  ;;  %10114 = vmatpush3.bf16.msra.mxu1 %v10774_v60 }
0x3331   :  { %v4438_v42 = vadd.f32 %v4437_v15, %v4432_v5  ;;  %10115 = vmatprep.subr.bf16.mxu1 %v11095_v10  ;;  %v10775_v15 = vld [vmem:[%s13699_s26] sm:$0xff]   ;;  %v12532_v5 = vld [vmem:[%s13635_s13 + $0x9] ss:$0 sm:$0xff] }
0x3332   :  { %v4434_v54 = vpop.f32.mrf.mxu1 }
0x3333   :  { %v4441_v16 = vsel %vm2347_vm3, %v4438_v42, 0.0 }
0x3334   :  { %4442 = vadd.xlane.f32.xlu1 %v4441_v16  ;;  %v10084_v22 = vpop.f32.mrf.mxu1  ;;  %10116 = vmatpush3.bf16.msra.mxu1 %v10775_v15 }
0x3335   :  { %10121 = vmatprep.subr.bf16.mxu1 %v11095_v10  ;;  %v8945_v22 = vld [vmem:[%s13700_s29] ss:$0 sm:$0xff] }
0x33bd   :  { %v4443_v8 = vpop.xlane.xlu1 %4442 }
0x33be   :  { %v4444_v45 = vmul.f32 0.03125, %v4443_v8 }
0x33c0   :  { %v4445_v18 = vsub.f32 %v4438_v42, %v4444_v45  ;;  %v8946_v45 = vld [vmem:[%s13701_s0] ss:$0 sm:$0xff] }
0x33c2   :  { %v4446_v11 = vmul.f32 %v4445_v18, %v4445_v18 }
0x33c4   :  { %v4447_v63 = vsel %vm2347_vm3, %v4446_v11, 0.0 }
0x33c5   :  { %4448 = vadd.xlane.f32.xlu0 %v4447_v63 }
0x344e   :  { %v4449_v32 = vpop.xlane.xlu0 %4448 }
0x344f   :  { %v4450_v51 = vmul.f32 0.03125, %v4449_v32 }
0x3451   :  { %v4451_v24 = vadd.f32 1e-05, %v4450_v51 }
0x3453   :  { %10956 = vrsqrt.f32 %v4451_v24 }
0x3460   :  { %v10957_v62 = vpop.eup %10956 }
0x3461   :  { %v4453_v40 = vmul.f32 %v10957_v62, %v4445_v18 }
0x3463   :  { %v4460_v4 = vmul.f32 %v8937_v31, %v4453_v40 }
0x3465   :  { %v4467_v48 = vadd.f32 %v8938_v37, %v4460_v4 }
0x3467   :  { %v4468_v38 = vpack.c.bf16 %v4467_v48, %v4467_v48 }
0x3469   :  { %10090 = vmatmul.mubr.msk.bf16.vlgmr.msra.gmra.mxu0 %vm73_vm14, %v4468_v38 }
0x346a   :  { %10094 = vmatpush3.bf16.msra.mxu0 %v11052_v47  ;;  %10109 = vmatprep.mubr.msk.bf16.mxu0 %vm11096_vm4, %v11095_v10  ;;  %v12569_v47 = vld [vmem:[%s13716_s19 + $0x9] ss:$0 sm:$0xff] }
0x346b   :  { %10095 = vmatprep.subr.bf16.mxu0 %v11095_v10 }
0x346e   :  { %10096 = vmatpush3.bf16.msra.mxu0 %v11053_v30 }
0x346f   :  { %10097 = vmatprep.subr.bf16.mxu0 %v11095_v10 }
0x3472   :  { %10098 = vmatpush3.bf16.msra.mxu0 %v11054_v36 }
0x3473   :  { %10099 = vmatprep.subr.bf16.mxu0 %v11095_v10 }
0x3476   :  { %10100 = vmatpush3.bf16.msra.mxu0 %v11055_v17 }
0x3477   :  { %10101 = vmatprep.subr.bf16.mxu0 %v11095_v10 }
0x347a   :  { %10102 = vmatpush3.bf16.msra.mxu0 %v11056_v41 }
0x347b   :  { %10103 = vmatprep.subr.bf16.mxu0 %v11095_v10 }
0x347e   :  { %10104 = vmatpush3.bf16.msra.mxu0 %v11057_v1 }
0x347f   :  { %10105 = vmatprep.subr.bf16.mxu0 %v11095_v10 }
0x3482   :  { %10106 = vmatpush3.bf16.msra.mxu0 %v11058_v43 }
0x3483   :  { %10107 = vmatprep.subr.bf16.mxu0 %v11095_v10 }
0x3486   :  { %10108 = vmatpush3.bf16.msra.mxu0 %v11059_v2 }
0x3487   :  { %10129 = vmatprep.subr.bf16.mxu0 %v11095_v10 }
0x3529   :  { %v4529_v39 = vpop.f32.mrf.mxu0 }
0x352a   :  { %v4530_v35 = vadd.f32 %v8939_v46, %v4529_v39 }
0x352b   :  { %v10091_v23 = vpop.f32.mrf.mxu0 }
0x352c   :  { %v4535_v44 = vsel %vm2442_vm5, %v4530_v35, -inf }
0x352d   :  { %4536 = vmax.xlane.f32.xlu0 %v4535_v44  ;;  %v4532_v50 = vpop.f32.mrf.mxu0 }
0x352f   :  { %v10092_v52 = vpop.f32.mrf.mxu0 }
0x35b6   :  { %v4537_v25 = vpop.xlane.xlu0 %4536 }
0x35b7   :  { %vm4538_vm8 = vcmp.eq.f32.partialorder %v4530_v35, %v4537_v25  ;;  %v4819_v25 = vld [vmem:[#allocation2] sm:$0xff] }
0x35b8   :  { %v4539_v12 = vsel %vm4538_vm8, %v11896_v26, 128.0 }
0x35b9   :  { %v4540_v53 = vsel %vm2442_vm5, %v4539_v12, inf }
0x35ba   :  { %4541 = vmin.xlane.f32.xlu1 %v4540_v53 }
0x3643   :  { %v4542_v55 = vpop.xlane.xlu1 %4541 }
0x3644   :  { %v10647_v49 = vtrunc.f32 %v4542_v55 }
0x3646   :  { %v10648_v56 = vcvt.f32.s32 %v10647_v49 }
0x3648   :  { %vm4546_vm12 = vcmp.eq.s32.totalorder %v10648_v56, %v11294_v27  ;;  %4545 = vst.msk [vmem:[#allocation4] sm:$0x3] %vm4544_vm11, %v10648_v56  ;;  %vm6624_vm11 = vcmask 17424  }
0x3649   :  { %vm8943_vm0 = vmpackc.low %vm4546_vm12, %vm4546_vm12 }
0x364a   :  { %10110 = vmatmul.mubr.msk.bf16.vlgmr.msra.gmra.mxu0 %vm8943_vm0, %v11097_v29  ;;  %vm13717_vm0 = vcmask 130048  }
0x364b   :  { %10130 = vmatpush3.bf16.msra.mxu0 %v12502_v13  ;;  %10133 = vmatprep.mubr.msk.bf16.mxu0 %vm11096_vm4, %v11095_v10 }
0x364c   :  { %10131 = vmatprep.subr.bf16.mxu0 %v11095_v10 }
0x364f   :  { %10132 = vmatpush3.bf16.msra.mxu0 %v12511_v34 }
0x3650   :  { %10145 = vmatprep.subr.bf16.mxu0 %v11095_v10 }
0x370a   :  { %v12515_v33 = vpop.f32.mrf.mxu0 }
0x370b   :  { %v4601_v0 = vsel %vm2347_vm3, %v12515_v33, 0.0 }
0x370c   :  { %4602 = vadd.xlane.f32.xlu0 %v4601_v0  ;;  %v10111_v58 = vpop.f32.mrf.mxu0 }
0x370e   :  { %v4586_v6 = vpop.f32.mrf.mxu0 }
0x3710   :  { %v10112_v28 = vpop.f32.mrf.mxu0 }
0x3795   :  { %v4603_v59 = vpop.xlane.xlu0 %4602 }
0x3796   :  { %v4604_v57 = vmul.f32 0.03125, %v4603_v59 }
0x3798   :  { %v4605_v7 = vsub.f32 %v12515_v33, %v4604_v57 }
0x379a   :  { %v4606_v21 = vmul.f32 %v4605_v7, %v4605_v7 }
0x379c   :  { %v4607_v3 = vsel %vm2347_vm3, %v4606_v21, 0.0 }
0x379d   :  { %4608 = vadd.xlane.f32.xlu1 %v4607_v3 }
0x37ae   :  { %4797 = vrot.lane.b32.xlu1 %v12532_v5, %s13713_s25 }
0x3826   :  { %v4609_v9 = vpop.xlane.xlu1 %4608 }
0x3827   :  { %v4610_v42 = vmul.f32 0.03125, %v4609_v9 }
0x3829   :  { %v4611_v54 = vadd.f32 1e-05, %v4610_v42 }
0x382a   :  { %v12573_v43 = vpop.permute.xlu1 %4797 }
0x382b   :  { %10958 = vrsqrt.f32 %v4611_v54 }
0x3838   :  { %v10959_v16 = vpop.eup %10958 }
0x3839   :  { %v4613_v8 = vmul.f32 %v10959_v16, %v4605_v7 }
0x383b   :  { %v4620_v18 = vmul.f32 %v8945_v22, %v4613_v8 }
0x383d   :  { %v4627_v11 = vadd.f32 %v8946_v45, %v4620_v18 }
0x383f   :  { %v12542_v63 = vpack.c.bf16 %v4627_v11, %v4627_v11 }
0x3841   :  { %10118 = vmatmul.mubr.msk.bf16.vlgmr.msra.gmra.mxu1 %vm73_vm14, %v12542_v63 }
0x3842   :  { %10122 = vmatpush3.bf16.msra.mxu1 %v12502_v13  ;;  %10125 = vmatprep.mubr.msk.bf16.mxu1 %vm11096_vm4, %v11095_v10 }
0x3843   :  { %10123 = vmatprep.subr.bf16.mxu1 %v11095_v10 }
0x3846   :  { %10124 = vmatpush3.bf16.msra.mxu1 %v12511_v34 }
0x3847   :  { %10137 = vmatprep.subr.bf16.mxu1 %v11095_v10 }
0x3901   :  { %v4689_v61 = vpop.f32.mrf.mxu1 }
0x3902   :  { %v12555_v32 = vadd.f32 %v8947_v14, %v4689_v61  ;;  %v4822_v61 = vld [vmem:[#allocation3] sm:$0xff] }
0x3903   :  { %v10119_v51 = vpop.f32.mrf.mxu1 }
0x3904   :  { %v4695_v24 = vpack.c.bf16 %v12555_v32, %v12555_v32  ;;  %v4800_v2 = vmul.f32 %v12573_v43, %v12555_v32  ;;  %v4743_v55 = vmul.f32 %v12532_v5, %v12555_v32 }
0x3905   :  { %v4692_v62 = vpop.f32.mrf.mxu1 }
0x3906   :  { %4751 = vrot.lane.b32.xlu0 %v4695_v24, %s13714_s23  ;;  %10126 = vmatmul.mubr.msk.bf16.vlgmr.msra.gmra.mxu1 %vm73_vm14, %v4695_v24 }
0x3907   :  { %v10120_v31 = vpop.f32.mrf.mxu1  ;;  %10141 = vmatprep.mubr.msk.bf16.mxu1 %vm11096_vm4, %v11095_v10 }
0x3978   :  { %v4752_v40 = vpop.permute.xlu0 %4751 }
0x3979   :  { %10134 = vmatmul.mubr.msk.bf16.vlgmr.msra.gmra.mxu0 %vm73_vm14, %v4752_v40 }
0x397a   :  { %10149 = vmatprep.mubr.msk.bf16.mxu0 %vm11096_vm4, %v11095_v10 }
0x39c6   :  { %v4733_v37 = vpop.f32.mrf.mxu1 }
0x39c7   :  { %v4748_v53 = vmul.f32 %v12569_v47, %v4733_v37 }
0x39c8   :  { %v10127_v4 = vpop.f32.mrf.mxu1 }
0x39c9   :  { %v4749_v56 = vadd.f32 %v4748_v53, %v4743_v55 }
0x39ca   :  { %v4736_v48 = vpop.f32.mrf.mxu1 }
0x39cb   :  { %v12593_v0 = vpack.c.bf16 %v4749_v56, %v4749_v56 }
0x39cc   :  { %v10128_v38 = vpop.f32.mrf.mxu1 }
0x3a39   :  { %v4790_v30 = vpop.f32.mrf.mxu0 }
0x3a3a   :  { %v4801_v36 = vmul.f32 %v12569_v47, %v4790_v30 }
0x3a3b   :  { %v10135_v17 = vpop.f32.mrf.mxu0 }
0x3a3c   :  { %4803 = vrot.lane.b32.xlu1 %v4801_v36, %s13713_s25 }
0x3a3d   :  { %v4793_v41 = vpop.f32.mrf.mxu0 }
0x3a3f   :  { %v10136_v1 = vpop.f32.mrf.mxu0 }
0x3aae   :  { %v4804_v46 = vpop.permute.xlu1 %4803 }
0x3aaf   :  { %v4806_v39 = vadd.f32 %v4804_v46, %v4800_v2 }
0x3ab1   :  { %4808 = vrot.lane.b32.xlu0 %v4806_v39, %s13714_s23 }
0x3b23   :  { %v4809_v35 = vpop.permute.xlu0 %4808 }
0x3b24   :  { %4811 = vst.msk [vmem:[#allocation2 + $0x9] sm:$0x1] %vm2727_vm13, %v4809_v35 }
0x3b25   :  { %4817 = vst.msk [vmem:[#allocation2 + $0x14] sm:$0x2] %vm2734_vm2, %v4809_v35 }
0x3b2b   :  { %v4820_v52 = vld [vmem:[#allocation2 + $0x8] sm:$0xff] }
0x3b2c   :  { %v4821_v23 = vld [vmem:[#allocation2 + $0x10] sm:$0xff]  ;;  %v12585_v12 = vpack.c.bf16 %v4820_v52, %v4819_v25 }
0x3b2d   :  { %v12580_v44 = vpack.c.bf16 %v4821_v23, %v4821_v23 }
0x3b2e   :  { %v4834_v49 = vsel %vm488_vm15, %v12585_v12, 0 }
0x3b2f   :  { %v4837_v50 = vsel %vm488_vm15, %v12580_v44, 0 }
0x3b30   :  { %10138 = vmatpush3.bf16.xpose.msra.mxu1 %v4837_v50 }
0x3b31   :  { %10139 = vmatprep.subr.bf16.mxu1 %v11095_v10 }
0x3b38   :  { %10140 = vmatpush3.bf16.xpose.msra.mxu1 %v4834_v49 }
0x3b39   :  { %10161 = vmatprep.subr.bf16.mxu1 %v11095_v10 }
0x3b3f   :  { %10142 = vmatmul.mubr.msk.bf16.vlgmr.msra.gmra.mxu1 %vm488_vm15, %v12593_v0 }
0x3b40   :  { %10165 = vmatprep.mubr.msk.bf16.mxu1 %vm11096_vm4, %v11095_v10 }
0x3bff   :  { %v4873_v58 = vpop.f32.mrf.mxu1 }
0x3c00   :  { %v4879_v6 = vmul.f32 0.35355338, %v4873_v58 }
0x3c01   :  { %v10143_v28 = vpop.f32.mrf.mxu1 }
0x3c02   :  { %v4880_v59 = vsel %vm11264_vm9, %v4879_v6, -1e+30 }
0x3c03   :  { %v4876_v57 = vpop.f32.mrf.mxu1  ;;  %v4881_v7 = vsel %vm2799_vm6, %v4880_v59, -inf }
0x3c04   :  { %4882 = vmax.xlane.f32.xlu1 %v4881_v7 }
0x3c05   :  { %v10144_v21 = vpop.f32.mrf.mxu1 }
0x3c15   :  { %4946 = vrot.lane.b32.xlu1 %v12580_v44, %s13715_s30 }
0x3c19   :  { %4944 = vrot.lane.b32.xlu1 %v12585_v12, %s13715_s30 }
0x3c8d   :  { %v4883_v3 = vpop.xlane.xlu1 %4882 }
0x3c8e   :  { %v4884_v60 = vsub.f32 %v4880_v59, %v4883_v3 }
0x3c90   :  { %v4885_v15 = vmul.f32 1.442695, %v4884_v60 }
0x3c91   :  { %v4947_v51 = vpop.permute.xlu1 %4946 }
0x3c92   :  { %10960 = vpow2.f32 %v4885_v15  ;;  %v4955_v62 = vsel %vm488_vm15, %v4947_v51, 0 }
0x3c95   :  { %v4945_v31 = vpop.permute.xlu1 %4944 }
0x3c96   :  { %v4952_v40 = vsel %vm488_vm15, %v4945_v31, 0 }
0x3c9f   :  { %v10961_v9 = vpop.eup %10960 }
0x3ca0   :  { %v4887_v42 = vsel %vm2799_vm6, %v10961_v9, 0.0 }
0x3ca1   :  { %4888 = vadd.xlane.f32.xlu0 %v4887_v42 }
0x3cb7   :  { %4813 = vrot.lane.b32.xlu0 %v12555_v32, %s13707_s12 }
0x3cbb   :  { %4940 = vrot.lane.b32.xlu0 %v12593_v0, %s13715_s30 }
0x3d2a   :  { %v4889_v54 = vpop.xlane.xlu0 %4888 }
0x3d2b   :  { %10962 = vrcp.f32 %v4889_v54 }
0x3d2e   :  { %v4814_v16 = vpop.permute.xlu0 %4813 }
0x3d2f   :  { %4816 = vst.msk [vmem:[#allocation3 + $0x9] sm:$0x1] %vm2727_vm13, %v4814_v16 }
0x3d30   :  { %4818 = vst.msk [vmem:[#allocation3 + $0x14] sm:$0x2] %vm2734_vm2, %v4814_v16 }
0x3d32   :  { %v4941_v37 = vpop.permute.xlu0 %4940 }
0x3d36   :  { %v4823_v11 = vld [vmem:[#allocation3 + $0x8] sm:$0xff] }
0x3d37   :  { %v4824_v22 = vld [vmem:[#allocation3 + $0x10] sm:$0xff]  ;;  %v12618_v32 = vpack.c.bf16 %v4823_v11, %v4822_v61 }
0x3d38   :  { %v12613_v8 = vpack.c.bf16 %v4824_v22, %v4824_v22  ;;  %v10963_v45 = vpop.eup %10962 }
0x3d39   :  { %v4891_v14 = vmul.f32 %v10963_v45, %v10961_v9 }
0x3d3a   :  { %v4897_v18 = vsel %vm2815_vm7, %v12613_v8, 0 }
0x3d3b   :  { %10146 = vmatpush3.bf16.msra.mxu0 %v4897_v18  ;;  %v4892_v24 = vpack.c.bf16 %v4891_v14, %v4891_v14 }
0x3d3c   :  { %10147 = vmatprep.subr.bf16.mxu0 %v11095_v10 }
0x3d3f   :  { %10148 = vmatpush3.bf16.msra.mxu0 %v12618_v32 }
0x3d40   :  { %10153 = vmatprep.subr.bf16.mxu0 %v11095_v10 }
0x3d42   :  { %10150 = vmatmul.mubr.msk.bf16.vlgmr.msra.gmra.mxu0 %vm1015_vm1, %v4892_v24 }
0x3d43   :  { %10154 = vmatpush3.bf16.xpose.msra.mxu0 %v4955_v62  ;;  %10157 = vmatprep.mubr.msk.bf16.mxu0 %vm11096_vm4, %v11095_v10 }
0x3d44   :  { %10155 = vmatprep.subr.bf16.mxu0 %v11095_v10 }
0x3d4b   :  { %10156 = vmatpush3.bf16.xpose.msra.mxu0 %v4952_v40 }
0x3d4c   :  { %10177 = vmatprep.subr.bf16.mxu0 %v11095_v10 }
0x3d52   :  { %10158 = vmatmul.mubr.msk.bf16.vlgmr.msra.gmra.mxu0 %vm488_vm15, %v4941_v37 }
0x3d53   :  { %10181 = vmatprep.mubr.msk.bf16.mxu0 %vm11096_vm4, %v11095_v10 }
0x3e02   :  { %v12632_v4 = vpop.f32.mrf.mxu0 }
0x3e04   :  { %v10151_v48 = vpop.f32.mrf.mxu0 }
0x3e06   :  { %v4936_v38 = vpop.f32.mrf.mxu0 }
0x3e08   :  { %v10152_v30 = vpop.f32.mrf.mxu0 }
0x3e12   :  { %v4991_v36 = vpop.f32.mrf.mxu0 }
0x3e13   :  { %v4997_v17 = vmul.f32 0.35355338, %v4991_v36 }
0x3e14   :  { %v10159_v41 = vpop.f32.mrf.mxu0 }
0x3e15   :  { %v4998_v1 = vsel %vm11264_vm9, %v4997_v17, -1e+30 }
0x3e16   :  { %v4994_v2 = vpop.f32.mrf.mxu0  ;;  %v4999_v46 = vsel %vm2799_vm6, %v4998_v1, -inf }
0x3e17   :  { %5000 = vmax.xlane.f32.xlu1 %v4999_v46  ;;  %v10777_v46 = vld [vmem:[%s13629_s7] sm:$0xff]  }
0x3e18   :  { %v10160_v39 = vpop.f32.mrf.mxu0 }
0x3e28   :  { %5013 = vrot.lane.b32.xlu1 %v12618_v32, %s13715_s30 }
0x3e2c   :  { %5068 = vrot.lane.b32.xlu1 %v12580_v44, %s13704_s6 }
0x3e30   :  { %5064 = vrot.lane.b32.xlu1 %v12593_v0, %s13704_s6 }
0x3ea0   :  { %v5001_v35 = vpop.xlane.xlu1 %5000 }
0x3ea1   :  { %v5002_v23 = vsub.f32 %v4998_v1, %v5001_v35  ;;  %v10776_v1 = vld [vmem:[%s13629_s7 + $0x8] sm:$0xff]  }
0x3ea3   :  { %v5003_v50 = vmul.f32 1.442695, %v5002_v23 }
0x3ea4   :  { %v5014_v56 = vpop.permute.xlu1 %5013 }
0x3ea5   :  { %10964 = vpow2.f32 %v5003_v50 }
0x3ea8   :  { %v5069_v28 = vpop.permute.xlu1 %5068 }
0x3ea9   :  { %v5077_v57 = vsel %vm488_vm15, %v5069_v28, 0 }
0x3eac   :  { %v5065_v3 = vpop.permute.xlu1 %5064 }
0x3eb2   :  { %v10965_v52 = vpop.eup %10964 }
0x3eb3   :  { %v5005_v25 = vsel %vm2799_vm6, %v10965_v52, 0.0 }
0x3eb4   :  { %5006 = vadd.xlane.f32.xlu0 %v5005_v25 }
0x3eca   :  { %5015 = vrot.lane.b32.xlu0 %v12613_v8, %s13715_s30 }
0x3ece   :  { %5066 = vrot.lane.b32.xlu0 %v12585_v12, %s13704_s6 }
0x3f3d   :  { %v5007_v53 = vpop.xlane.xlu0 %5006 }
0x3f3e   :  { %10966 = vrcp.f32 %v5007_v53 }
0x3f41   :  { %v5016_v55 = vpop.permute.xlu0 %5015 }
0x3f42   :  { %v5022_v49 = vsel %vm2815_vm7, %v5016_v55, 0 }
0x3f43   :  { %10162 = vmatpush3.bf16.msra.mxu1 %v5022_v49 }
0x3f44   :  { %10163 = vmatprep.subr.bf16.mxu1 %v11095_v10 }
0x3f45   :  { %v5067_v7 = vpop.permute.xlu0 %5066 }
0x3f46   :  { %v5074_v21 = vsel %vm488_vm15, %v5067_v7, 0 }
0x3f47   :  { %10164 = vmatpush3.bf16.msra.mxu1 %v5014_v56 }
0x3f48   :  { %10169 = vmatprep.subr.bf16.mxu1 %v11095_v10 }
0x3f4b   :  { %v10967_v58 = vpop.eup %10966 }
0x3f4c   :  { %v5009_v6 = vmul.f32 %v10967_v58, %v10965_v52 }
0x3f4e   :  { %v5010_v59 = vpack.c.bf16 %v5009_v6, %v5009_v6 }
0x3f50   :  { %10166 = vmatmul.mubr.msk.bf16.vlgmr.msra.gmra.mxu1 %vm1015_vm1, %v5010_v59 }
0x3f51   :  { %10170 = vmatpush3.bf16.xpose.msra.mxu1 %v5077_v57  ;;  %10173 = vmatprep.mubr.msk.bf16.mxu1 %vm11096_vm4, %v11095_v10 }
0x3f52   :  { %10171 = vmatprep.subr.bf16.mxu1 %v11095_v10 }
0x3f59   :  { %10172 = vmatpush3.bf16.xpose.msra.mxu1 %v5074_v21 }
0x3f5a   :  { %10193 = vmatprep.subr.bf16.mxu1 %v11095_v10 }
0x3f60   :  { %10174 = vmatmul.mubr.msk.bf16.vlgmr.msra.gmra.mxu1 %vm488_vm15, %v5065_v3 }
0x3f61   :  { %10197 = vmatprep.mubr.msk.bf16.mxu1 %vm11096_vm4, %v11095_v10 }
0x4010   :  { %v12661_v60 = vpop.f32.mrf.mxu1 }
0x4012   :  { %v10167_v15 = vpop.f32.mrf.mxu1 }
0x4014   :  { %v5061_v9 = vpop.f32.mrf.mxu1 }
0x4016   :  { %v10168_v42 = vpop.f32.mrf.mxu1 }
0x4020   :  { %v5113_v54 = vpop.f32.mrf.mxu1 }
0x4021   :  { %v5119_v16 = vmul.f32 0.35355338, %v5113_v54 }
0x4022   :  { %v10175_v22 = vpop.f32.mrf.mxu1 }
0x4023   :  { %v5120_v45 = vsel %vm11264_vm9, %v5119_v16, -1e+30 }
0x4024   :  { %v5116_v18 = vpop.f32.mrf.mxu1  ;;  %v5121_v11 = vsel %vm2799_vm6, %v5120_v45, -inf }
0x4025   :  { %5122 = vmax.xlane.f32.xlu0 %v5121_v11 }
0x4026   :  { %v10176_v14 = vpop.f32.mrf.mxu1 }
0x403b   :  { %5135 = vrot.lane.b32.xlu0 %v12613_v8, %s13704_s6 }
0x403f   :  { %5188 = vrot.lane.b32.xlu0 %v12580_v44, %s13705_s16 }
0x4043   :  { %5184 = vrot.lane.b32.xlu0 %v12593_v0, %s13705_s16 }
0x40ae   :  { %v5123_v61 = vpop.xlane.xlu0 %5122 }
0x40af   :  { %v5124_v51 = vsub.f32 %v5120_v45, %v5123_v61  ;;  %v10779_v45 = vld [vmem:[%s13703_s5] sm:$0xff]  }
0x40b1   :  { %v5125_v24 = vmul.f32 1.442695, %v5124_v51  ;;  %v8966_v51 = vld [vmem:[%s13630_s8] ss:$0 sm:$0xff] }
0x40b2   :  { %v5136_v62 = vpop.permute.xlu0 %5135 }
0x40b3   :  { %10968 = vpow2.f32 %v5125_v24  ;;  %v5142_v31 = vsel %vm2815_vm7, %v5136_v62, 0 }
0x40b4   :  { %10178 = vmatpush3.bf16.msra.mxu0 %v5142_v31 }
0x40b5   :  { %10179 = vmatprep.subr.bf16.mxu0 %v11095_v10 }
0x40b6   :  { %v5189_v30 = vpop.permute.xlu0 %5188 }
0x40b7   :  { %v5197_v17 = vsel %vm488_vm15, %v5189_v30, 0 }
0x40ba   :  { %v5185_v2 = vpop.permute.xlu0 %5184 }
0x40c0   :  { %v10969_v40 = vpop.eup %10968 }
0x40c1   :  { %v5127_v37 = vsel %vm2799_vm6, %v10969_v40, 0.0 }
0x40c2   :  { %5128 = vadd.xlane.f32.xlu1 %v5127_v37 }
0x40d3   :  { %5133 = vrot.lane.b32.xlu1 %v12618_v32, %s13704_s6 }
0x40d7   :  { %5186 = vrot.lane.b32.xlu1 %v12585_v12, %s13705_s16 }
0x414b   :  { %v5129_v44 = vpop.xlane.xlu1 %5128 }
0x414c   :  { %10970 = vrcp.f32 %v5129_v44 }
0x414f   :  { %v5134_v0 = vpop.permute.xlu1 %5133 }
0x4150   :  { %10180 = vmatpush3.bf16.msra.mxu0 %v5134_v0 }
0x4151   :  { %10185 = vmatprep.subr.bf16.mxu0 %v11095_v10 }
0x4153   :  { %v5187_v12 = vpop.permute.xlu1 %5186 }
0x4154   :  { %v5194_v41 = vsel %vm488_vm15, %v5187_v12, 0 }
0x4159   :  { %v10971_v48 = vpop.eup %10970 }
0x415a   :  { %v5131_v38 = vmul.f32 %v10971_v48, %v10969_v40 }
0x415c   :  { %v5132_v36 = vpack.c.bf16 %v5131_v38, %v5131_v38 }
0x415e   :  { %10182 = vmatmul.mubr.msk.bf16.vlgmr.msra.gmra.mxu0 %vm1015_vm1, %v5132_v36  ;;  %v10780_v36 = vld [vmem:[%s13631_s9 + $0x38] sm:$0xff]  }
0x415f   :  { %10186 = vmatpush3.bf16.xpose.msra.mxu0 %v5197_v17  ;;  %10189 = vmatprep.mubr.msk.bf16.mxu0 %vm11096_vm4, %v11095_v10 }
0x4160   :  { %10187 = vmatprep.subr.bf16.mxu0 %v11095_v10 }
0x4167   :  { %10188 = vmatpush3.bf16.xpose.msra.mxu0 %v5194_v41  ;;  %v10781_v41 = vld [vmem:[%s13631_s9 + $0x30] sm:$0xff]  }
0x4168   :  { %10209 = vmatprep.subr.bf16.mxu0 %v11095_v10 }
0x416e   :  { %10190 = vmatmul.mubr.msk.bf16.vlgmr.msra.gmra.mxu0 %vm488_vm15, %v5185_v2  ;;  %v10783_v2 = vld [vmem:[%s13631_s9 + $0x20] sm:$0xff]  }
0x416f   :  { %10210 = vmatpush3.bf16.msra.mxu0 %v10776_v1  ;;  %10213 = vmatprep.mubr.msk.bf16.mxu0 %vm11096_vm4, %v11095_v10  ;;  %v10782_v1 = vld [vmem:[%s13631_s9 + $0x28] sm:$0xff]  }
0x4170   :  { %10211 = vmatprep.subr.bf16.mxu0 %v11095_v10 }
0x4173   :  { %10212 = vmatpush3.bf16.msra.mxu0 %v10777_v46  ;;  %v10784_v46 = vld [vmem:[%s13631_s9 + $0x18] sm:$0xff]  }
0x4174   :  { %10237 = vmatprep.subr.bf16.mxu0 %v11095_v10 }
0x4176   :  { %10214 = vmatmul.mubr.msk.bf16.vlgmr.msra.gmra.mxu0 %vm73_vm14, %v12542_v63 }
0x4177   :  { %10241 = vmatprep.mubr.msk.bf16.mxu0 %vm11096_vm4, %v11095_v10 }
0x421e   :  { %v5178_v39 = vpop.f32.mrf.mxu0 }
0x4220   :  { %v10183_v35 = vpop.f32.mrf.mxu0 }
0x4222   :  { %v5181_v23 = vpop.f32.mrf.mxu0 }
0x4223   :  { %v10786_v23 = vld [vmem:[%s13631_s9 + $0x8] sm:$0xff]  }
0x4224   :  { %v10184_v50 = vpop.f32.mrf.mxu0 }
0x422e   :  { %v5233_v52 = vpop.f32.mrf.mxu0 }
0x422f   :  { %v5239_v25 = vmul.f32 0.35355338, %v5233_v52 }
0x4230   :  { %v10191_v53 = vpop.f32.mrf.mxu0 }
0x4231   :  { %v5240_v55 = vsel %vm11264_vm9, %v5239_v25, -1e+30  ;;  %v10787_v25 = vld [vmem:[%s13631_s9] sm:$0xff]  }
0x4232   :  { %v5236_v49 = vpop.f32.mrf.mxu0  ;;  %v5241_v56 = vsel %vm2799_vm6, %v5240_v55, -inf }
0x4233   :  { %5242 = vmax.xlane.f32.xlu1 %v5241_v56 }
0x4234   :  { %v10192_v58 = vpop.f32.mrf.mxu0 }
0x4236   :  { %v5436_v6 = vpop.f32.mrf.mxu0 }
0x4237   :  { %v5437_v24 = vadd.f32 %v8966_v51, %v5436_v6  ;;  %v8982_v51 = vld [vmem:[%s13701_s0 + $0x1] ss:$0 sm:$0xff] }
0x4238   :  { %v10215_v63 = vpop.f32.mrf.mxu0 }
0x4239   :  { %v5443_v62 = vmul.f32 0.044715, %v5437_v24  ;;  %v5442_v52 = vmul.f32 0.5, %v5437_v24  ;;  %v8970_v63 = vld [vmem:[%s13632_s10] ss:$0 sm:$0xff] }
0x423a   :  { %v5439_v28 = vpop.f32.mrf.mxu0 }
0x423b   :  { %v5444_v31 = vmul.f32 %v5443_v62, %v5437_v24 }
0x423c   :  { %v10216_v59 = vpop.f32.mrf.mxu0 }
0x423d   :  { %v5445_v44 = vmul.f32 %v5444_v31, %v5437_v24 }
0x423f   :  { %v5446_v17 = vadd.f32 %v5445_v44, %v5437_v24 }
0x4244   :  { %5253 = vrot.lane.b32.xlu1 %v12618_v32, %s13705_s16 }
0x4248   :  { %5305 = vrot.lane.b32.xlu1 %v12661_v60, %s13710_s28 }
0x42bc   :  { %v5243_v57 = vpop.xlane.xlu1 %5242 }
0x42bd   :  { %v5244_v7 = vsub.f32 %v5240_v55, %v5243_v57 }
0x42bf   :  { %v5245_v21 = vmul.f32 1.442695, %v5244_v7 }
0x42c0   :  { %v5254_v60 = vpop.permute.xlu1 %5253 }
0x42c1   :  { %10972 = vpow2.f32 %v5245_v21 }
0x42c4   :  { %v5306_v40 = vpop.permute.xlu1 %5305 }
0x42c5   :  { %v5316_v0 = vsel %vm488_vm15, %v12632_v4, %v5306_v40  ;;  %v5447_v4 = vmul.f32 0.7978846, %v5446_v17  ;;  %v8988_v40 = vld [vmem:[%s13702_s2 + $0x1] ss:$0 sm:$0xff] }
0x42ce   :  { %v10973_v3 = vpop.eup %10972 }
0x42cf   :  { %v5247_v15 = vsel %vm2799_vm6, %v10973_v3, 0.0 }
0x42d0   :  { %5248 = vadd.xlane.f32.xlu0 %v5247_v15 }
0x42e6   :  { %5255 = vrot.lane.b32.xlu0 %v12613_v8, %s13705_s16  ;;  %v10778_v8 = vld [vmem:[%s13703_s5 + $0x8] sm:$0xff]  }
0x42ea   :  { %5309 = vrot.lane.b32.xlu0 %v5178_v39, %s13711_s17  ;;  %v10785_v39 = vld [vmem:[%s13631_s9 + $0x10] sm:$0xff]  }
0x4359   :  { %v5249_v9 = vpop.xlane.xlu0 %5248 }
0x435a   :  { %10974 = vrcp.f32 %v5249_v9 }
0x435b   :  { %10976 = vtanh.f32 %v5447_v4 }
0x435d   :  { %v5256_v42 = vpop.permute.xlu0 %5255 }
0x435e   :  { %v5262_v32 = vsel %vm2815_vm7, %v5256_v42, 0 }
0x435f   :  { %10194 = vmatpush3.bf16.msra.mxu1 %v5262_v32 }
0x4360   :  { %10195 = vmatprep.subr.bf16.mxu1 %v11095_v10 }
0x4361   :  { %v5310_v37 = vpop.permute.xlu0 %5309 }
0x4362   :  { %v5317_v48 = vsel %vm13717_vm0, %v5316_v0, %v5310_v37 }
0x4363   :  { %10196 = vmatpush3.bf16.msra.mxu1 %v5254_v60 }
0x4364   :  { %10201 = vmatprep.subr.bf16.mxu1 %v11095_v10 }
0x4367   :  { %v10975_v54 = vpop.eup %10974 }
0x4368   :  { %v5251_v16 = vmul.f32 %v10975_v54, %v10973_v3  ;;  %v10977_v35 = vpop.eup %10976 }
0x4369   :  { %v5449_v50 = vadd.f32 1.0, %v10977_v35 }
0x436a   :  { %v5252_v22 = vpack.c.bf16 %v5251_v16, %v5251_v16 }
0x436b   :  { %v5450_v53 = vmul.f32 %v5449_v50, %v5442_v52 }
0x436c   :  { %10198 = vmatmul.mubr.msk.bf16.vlgmr.msra.gmra.mxu1 %vm1015_vm1, %v5252_v22  ;;  %v10789_v22 = vld [vmem:[%s13699_s26 + $0x10] sm:$0xff]  }
0x436d   :  { %10205 = vmatprep.mubr.msk.bf16.mxu1 %vm11096_vm4, %v11095_v10  ;;  %10202 = vmatpush3.bf16.msra.mxu1 %v10778_v8  ;;  %v5451_v55 = vpack.c.bf16 %v5450_v53, %v5450_v53 }
0x436e   :  { %10203 = vmatprep.subr.bf16.mxu1 %v11095_v10 }
0x4371   :  { %10204 = vmatpush3.bf16.msra.mxu1 %v10779_v45 }
0x4372   :  { %10217 = vmatprep.subr.bf16.mxu1 %v11095_v10 }
0x442c   :  { %v5298_v18 = vpop.f32.mrf.mxu1 }
0x442d   :  { %5313 = vrot.lane.b32.xlu1 %v5298_v18, %s13712_s3 }
0x442e   :  { %v10199_v11 = vpop.f32.mrf.mxu1 }
0x4430   :  { %v5301_v14 = vpop.f32.mrf.mxu1 }
0x4431   :  { %v8981_v14 = vld [vmem:[%s13700_s29 + $0x1] ss:$0 sm:$0xff] }
0x4432   :  { %v10200_v61 = vpop.f32.mrf.mxu1 }
0x449f   :  { %v5314_v38 = vpop.permute.xlu1 %5313 }
0x44a0   :  { %v5318_v30 = vsel %vm1015_vm1, %v5317_v48, %v5314_v38 }
0x44a1   :  { %v5319_v12 = vpack.c.bf16 %v5318_v30, %v5318_v30 }
0x44a3   :  { %10206 = vmatmul.mubr.msk.bf16.vlgmr.msra.gmra.mxu1 %vm73_vm14, %v5319_v12 }
0x44a4   :  { %10218 = vmatpush3.bf16.msra.mxu1 %v10780_v36  ;;  %10233 = vmatprep.mubr.msk.bf16.mxu1 %vm11096_vm4, %v11095_v10 }
0x44a5   :  { %10219 = vmatprep.subr.bf16.mxu1 %v11095_v10 }
0x44a8   :  { %10220 = vmatpush3.bf16.msra.mxu1 %v10781_v41 }
0x44a9   :  { %10221 = vmatprep.subr.bf16.mxu1 %v11095_v10 }
0x44ac   :  { %10222 = vmatpush3.bf16.msra.mxu1 %v10782_v1 }
0x44ad   :  { %10223 = vmatprep.subr.bf16.mxu1 %v11095_v10 }
0x44b0   :  { %10224 = vmatpush3.bf16.msra.mxu1 %v10783_v2 }
0x44b1   :  { %10225 = vmatprep.subr.bf16.mxu1 %v11095_v10 }
0x44b4   :  { %10226 = vmatpush3.bf16.msra.mxu1 %v10784_v46 }
0x44b5   :  { %10227 = vmatprep.subr.bf16.mxu1 %v11095_v10 }
0x44b8   :  { %10228 = vmatpush3.bf16.msra.mxu1 %v10785_v39 }
0x44b9   :  { %10229 = vmatprep.subr.bf16.mxu1 %v11095_v10 }
0x44bc   :  { %10230 = vmatpush3.bf16.msra.mxu1 %v10786_v23 }
0x44bd   :  { %10231 = vmatprep.subr.bf16.mxu1 %v11095_v10 }
0x44c0   :  { %10232 = vmatpush3.bf16.msra.mxu1 %v10787_v25 }
0x44c1   :  { %10269 = vmatprep.subr.bf16.mxu1 %v11095_v10 }
0x44c3   :  { %10234 = vmatmul.mubr.bf16.vlgmr.msra.gmra.mxu1 %v5451_v55 }
0x44c4   :  { %10273 = vmatprep.mubr.msk.bf16.mxu1 %vm11096_vm4, %v11095_v10 }
0x4563   :  { %v5373_v49 = vpop.f32.mrf.mxu1 }
0x4564   :  { %v5563_v59 = vadd.f32 %v5373_v49, %v12515_v33  ;;  %v10788_v33 = vld [vmem:[%s13699_s26 + $0x18] sm:$0xff]  }
0x4565   :  { %v10207_v56 = vpop.f32.mrf.mxu1  ;;  %10238 = vmatpush3.bf16.msra.mxu0 %v10788_v33 }
0x4566   :  { %10239 = vmatprep.subr.bf16.mxu0 %v11095_v10 }
0x4567   :  { %v5376_v58 = vpop.f32.mrf.mxu1 }
0x4569   :  { %v10208_v6 = vpop.f32.mrf.mxu1  ;;  %10240 = vmatpush3.bf16.msra.mxu0 %v10789_v22 }
0x456a   :  { %10245 = vmatprep.subr.bf16.mxu0 %v11095_v10 }
0x4583   :  { %v5557_v28 = vpop.f32.mrf.mxu1 }
0x4584   :  { %v5558_v57 = vadd.f32 %v8970_v63, %v5557_v28 }
0x4585   :  { %v10235_v7 = vpop.f32.mrf.mxu1 }
0x4586   :  { %v12776_v21 = vadd.f32 %v5563_v59, %v5558_v57 }
0x4587   :  { %v5560_v3 = vpop.f32.mrf.mxu1 }
0x4588   :  { %v5567_v15 = vsel %vm2347_vm3, %v12776_v21, 0.0 }
0x4589   :  { %5568 = vadd.xlane.f32.xlu0 %v5567_v15  ;;  %v10236_v9 = vpop.f32.mrf.mxu1 }
0x4612   :  { %v5569_v42 = vpop.xlane.xlu0 %5568 }
0x4613   :  { %v5570_v32 = vmul.f32 0.03125, %v5569_v42 }
0x4615   :  { %v5571_v60 = vsub.f32 %v12776_v21, %v5570_v32 }
0x4617   :  { %v5572_v54 = vmul.f32 %v5571_v60, %v5571_v60 }
0x4619   :  { %v5573_v16 = vsel %vm2347_vm3, %v5572_v54, 0.0 }
0x461a   :  { %5574 = vadd.xlane.f32.xlu1 %v5573_v16 }
0x46a3   :  { %v5575_v8 = vpop.xlane.xlu1 %5574 }
0x46a4   :  { %v5576_v45 = vmul.f32 0.03125, %v5575_v8 }
0x46a6   :  { %v5577_v18 = vadd.f32 1e-05, %v5576_v45 }
0x46a8   :  { %10978 = vrsqrt.f32 %v5577_v18 }
0x46b5   :  { %v10979_v11 = vpop.eup %10978 }
0x46b6   :  { %v5579_v61 = vmul.f32 %v10979_v11, %v5571_v60 }
0x46b8   :  { %v5586_v24 = vmul.f32 %v8981_v14, %v5579_v61  ;;  %v5776_v61 = vld [vmem:[#allocation3 + $0x18] sm:$0xff] }
0x46ba   :  { %v5593_v62 = vadd.f32 %v8982_v51, %v5586_v24 }
0x46bc   :  { %v12796_v31 = vpack.c.bf16 %v5593_v62, %v5593_v62 }
0x46be   :  { %10242 = vmatmul.mubr.msk.bf16.vlgmr.msra.gmra.mxu0 %vm73_vm14, %v12796_v31 }
0x46bf   :  { %10246 = vmatpush3.bf16.msra.mxu0 %v12502_v13  ;;  %10249 = vmatprep.mubr.msk.bf16.mxu0 %vm11096_vm4, %v11095_v10 }
0x46c0   :  { %10247 = vmatprep.subr.bf16.mxu0 %v11095_v10 }
0x46c3   :  { %10248 = vmatpush3.bf16.msra.mxu0 %v12511_v34 }
0x46c4   :  { %10253 = vmatprep.subr.bf16.mxu0 %v11095_v10 }
0x477e   :  { %v5655_v37 = vpop.f32.mrf.mxu0 }
0x477f   :  { %v12809_v44 = vadd.f32 %v8988_v40, %v5655_v37 }
0x4780   :  { %v10243_v0 = vpop.f32.mrf.mxu0 }
0x4781   :  { %v5661_v48 = vpack.c.bf16 %v12809_v44, %v12809_v44  ;;  %v5754_v39 = vmul.f32 %v12809_v44, %v12573_v43  ;;  %v5773_v43 = vld [vmem:[#allocation2 + $0x18] sm:$0xff]  ;;  %v5705_v58 = vmul.f32 %v12532_v5, %v12809_v44 }
0x4782   :  { %v5658_v38 = vpop.f32.mrf.mxu0 }
0x4783   :  { %5709 = vrot.lane.b32.xlu0 %v5661_v48, %s13714_s23  ;;  %10250 = vmatmul.mubr.msk.bf16.vlgmr.msra.gmra.mxu0 %vm73_vm14, %v5661_v48 }
0x4784   :  { %v10244_v30 = vpop.f32.mrf.mxu0  ;;  %10254 = vmatpush3.bf16.msra.mxu0 %v12502_v13  ;;  %10257 = vmatprep.mubr.msk.bf16.mxu0 %vm11096_vm4, %v11095_v10 }
0x4785   :  { %10255 = vmatprep.subr.bf16.mxu0 %v11095_v10 }
0x4788   :  { %10256 = vmatpush3.bf16.msra.mxu0 %v12511_v34 }
0x4789   :  { %10261 = vmatprep.subr.bf16.mxu0 %v11095_v10 }
0x47f5   :  { %v5710_v36 = vpop.permute.xlu0 %5709 }
0x47f6   :  { %10258 = vmatmul.mubr.msk.bf16.vlgmr.msra.gmra.mxu0 %vm73_vm14, %v5710_v36 }
0x47f7   :  { %10265 = vmatprep.mubr.msk.bf16.mxu0 %vm11096_vm4, %v11095_v10 }
0x4843   :  { %v5699_v17 = vpop.f32.mrf.mxu0 }
0x4844   :  { %v5706_v56 = vmul.f32 %v12569_v47, %v5699_v17 }
0x4845   :  { %v10251_v12 = vpop.f32.mrf.mxu0 }
0x4846   :  { %v5707_v63 = vadd.f32 %v5706_v56, %v5705_v58 }
0x4847   :  { %v5702_v41 = vpop.f32.mrf.mxu0 }
0x4848   :  { %v12844_v28 = vpack.c.bf16 %v5707_v63, %v5707_v63 }
0x4849   :  { %v10252_v4 = vpop.f32.mrf.mxu0 }
0x48b6   :  { %v5748_v13 = vpop.f32.mrf.mxu0 }
0x48b7   :  { %v5755_v1 = vmul.f32 %v12569_v47, %v5748_v13 }
0x48b8   :  { %v10259_v2 = vpop.f32.mrf.mxu0 }
0x48b9   :  { %5757 = vrot.lane.b32.xlu1 %v5755_v1, %s13713_s25 }
0x48ba   :  { %v5751_v46 = vpop.f32.mrf.mxu0 }
0x48bc   :  { %v10260_v34 = vpop.f32.mrf.mxu0 }
0x492b   :  { %v5758_v35 = vpop.permute.xlu1 %5757 }
0x492c   :  { %v5760_v23 = vadd.f32 %v5758_v35, %v5754_v39 }
0x492e   :  { %5762 = vrot.lane.b32.xlu0 %v5760_v23, %s13714_s23 }
0x49a0   :  { %v5763_v50 = vpop.permute.xlu0 %5762 }
0x49a1   :  { %5765 = vst.msk [vmem:[#allocation2 + $0x21] sm:$0x1] %vm2727_vm13, %v5763_v50 }
0x49a2   :  { %5771 = vst.msk [vmem:[#allocation2 + $0x2c] sm:$0x2] %vm2734_vm2, %v5763_v50 }
0x49a8   :  { %v5774_v55 = vld [vmem:[#allocation2 + $0x20] sm:$0xff] }
0x49a9   :  { %v5775_v52 = vld [vmem:[#allocation2 + $0x28] sm:$0xff]  ;;  %v12836_v49 = vpack.c.bf16 %v5774_v55, %v5773_v43 }
0x49aa   :  { %v12831_v25 = vpack.c.bf16 %v5775_v52, %v5775_v52 }
0x49ab   :  { %v5788_v6 = vsel %vm488_vm15, %v12836_v49, 0 }
0x49ac   :  { %v5791_v53 = vsel %vm488_vm15, %v12831_v25, 0 }
0x49ad   :  { %10262 = vmatpush3.bf16.xpose.msra.mxu0 %v5791_v53 }
0x49ae   :  { %10263 = vmatprep.subr.bf16.mxu0 %v11095_v10 }
0x49b5   :  { %10264 = vmatpush3.bf16.xpose.msra.mxu0 %v5788_v6 }
0x49b6   :  { %10285 = vmatprep.subr.bf16.mxu0 %v11095_v10 }
0x49bc   :  { %10266 = vmatmul.mubr.msk.bf16.vlgmr.msra.gmra.mxu0 %vm488_vm15, %v12844_v28 }
0x49bd   :  { %10289 = vmatprep.mubr.msk.bf16.mxu0 %vm11096_vm4, %v11095_v10 }
0x4a7c   :  { %v5827_v59 = vpop.f32.mrf.mxu0 }
0x4a7d   :  { %v5833_v47 = vmul.f32 0.35355338, %v5827_v59 }
0x4a7e   :  { %v10267_v57 = vpop.f32.mrf.mxu0 }
0x4a7f   :  { %v5834_v5 = vsel %vm11264_vm9, %v5833_v47, -1e+30 }
0x4a80   :  { %v5830_v7 = vpop.f32.mrf.mxu0  ;;  %v5835_v3 = vsel %vm2799_vm6, %v5834_v5, -inf }
0x4a81   :  { %5836 = vmax.xlane.f32.xlu1 %v5835_v3 }
0x4a82   :  { %v10268_v15 = vpop.f32.mrf.mxu0 }
0x4a92   :  { %5900 = vrot.lane.b32.xlu1 %v12831_v25, %s13715_s30 }
0x4a96   :  { %5898 = vrot.lane.b32.xlu1 %v12836_v49, %s13715_s30 }
0x4b0a   :  { %v5837_v9 = vpop.xlane.xlu1 %5836 }
0x4b0b   :  { %v5838_v42 = vsub.f32 %v5834_v5, %v5837_v9 }
0x4b0d   :  { %v5839_v32 = vmul.f32 1.442695, %v5838_v42 }
0x4b0e   :  { %v5901_v24 = vpop.permute.xlu1 %5900 }
0x4b0f   :  { %10980 = vpow2.f32 %v5839_v32  ;;  %v5909_v40 = vsel %vm488_vm15, %v5901_v24, 0 }
0x4b12   :  { %v5899_v37 = vpop.permute.xlu1 %5898 }
0x4b1c   :  { %v10981_v60 = vpop.eup %10980 }
0x4b1d   :  { %v5841_v54 = vsel %vm2799_vm6, %v10981_v60, 0.0 }
0x4b1e   :  { %5842 = vadd.xlane.f32.xlu0 %v5841_v54 }
0x4b34   :  { %5767 = vrot.lane.b32.xlu0 %v12809_v44, %s13707_s12  ;;  %v5906_v44 = vsel %vm488_vm15, %v5899_v37, 0 }
0x4b38   :  { %5894 = vrot.lane.b32.xlu0 %v12844_v28, %s13715_s30 }
0x4ba7   :  { %v5843_v16 = vpop.xlane.xlu0 %5842 }
0x4ba8   :  { %10982 = vrcp.f32 %v5843_v16 }
0x4bab   :  { %v5768_v33 = vpop.permute.xlu0 %5767 }
0x4bac   :  { %5770 = vst.msk [vmem:[#allocation3 + $0x21] sm:$0x1] %vm2727_vm13, %v5768_v33 }
0x4bad   :  { %5772 = vst.msk [vmem:[#allocation3 + $0x2c] sm:$0x2] %vm2734_vm2, %v5768_v33 }
0x4baf   :  { %v5895_v0 = vpop.permute.xlu0 %5894 }
0x4bb3   :  { %v5777_v11 = vld [vmem:[#allocation3 + $0x20] sm:$0xff] }
0x4bb4   :  { %v5778_v22 = vld [vmem:[#allocation3 + $0x28] sm:$0xff]  ;;  %v12869_v51 = vpack.c.bf16 %v5777_v11, %v5776_v61 }
0x4bb5   :  { %v12864_v8 = vpack.c.bf16 %v5778_v22, %v5778_v22  ;;  %v10983_v45 = vpop.eup %10982 }
0x4bb6   :  { %v5845_v14 = vmul.f32 %v10983_v45, %v10981_v60 }
0x4bb7   :  { %v5851_v18 = vsel %vm2815_vm7, %v12864_v8, 0 }
0x4bb8   :  { %10270 = vmatpush3.bf16.msra.mxu1 %v5851_v18  ;;  %v5846_v62 = vpack.c.bf16 %v5845_v14, %v5845_v14 }
0x4bb9   :  { %10271 = vmatprep.subr.bf16.mxu1 %v11095_v10 }
0x4bbc   :  { %10272 = vmatpush3.bf16.msra.mxu1 %v12869_v51 }
0x4bbd   :  { %10277 = vmatprep.subr.bf16.mxu1 %v11095_v10 }
0x4bbf   :  { %10274 = vmatmul.mubr.msk.bf16.vlgmr.msra.gmra.mxu1 %vm1015_vm1, %v5846_v62 }
0x4bc0   :  { %10278 = vmatpush3.bf16.xpose.msra.mxu1 %v5909_v40  ;;  %10281 = vmatprep.mubr.msk.bf16.mxu1 %vm11096_vm4, %v11095_v10 }
0x4bc1   :  { %10279 = vmatprep.subr.bf16.mxu1 %v11095_v10 }
0x4bc8   :  { %10280 = vmatpush3.bf16.xpose.msra.mxu1 %v5906_v44 }
0x4bc9   :  { %10301 = vmatprep.subr.bf16.mxu1 %v11095_v10 }
0x4bcf   :  { %10282 = vmatmul.mubr.msk.bf16.vlgmr.msra.gmra.mxu1 %vm488_vm15, %v5895_v0 }
0x4bd0   :  { %10305 = vmatprep.mubr.msk.bf16.mxu1 %vm11096_vm4, %v11095_v10 }
0x4c7f   :  { %v12883_v48 = vpop.f32.mrf.mxu1 }
0x4c81   :  { %v10275_v38 = vpop.f32.mrf.mxu1 }
0x4c83   :  { %v5890_v30 = vpop.f32.mrf.mxu1 }
0x4c84   :  { %v10790_v30 = vld [vmem:[%s13629_s7 + $0x18] sm:$0xff]  }
0x4c85   :  { %v10276_v36 = vpop.f32.mrf.mxu1 }
0x4c8f   :  { %v5945_v17 = vpop.f32.mrf.mxu1 }
0x4c90   :  { %v5951_v12 = vmul.f32 0.35355338, %v5945_v17  ;;  %v10791_v17 = vld [vmem:[%s13629_s7 + $0x10] sm:$0xff]  }
0x4c91   :  { %v10283_v41 = vpop.f32.mrf.mxu1 }
0x4c92   :  { %v5952_v4 = vsel %vm11264_vm9, %v5951_v12, -1e+30 }
0x4c93   :  { %v5948_v13 = vpop.f32.mrf.mxu1  ;;  %v5953_v1 = vsel %vm2799_vm6, %v5952_v4, -inf }
0x4c94   :  { %5954 = vmax.xlane.f32.xlu1 %v5953_v1 }
0x4c95   :  { %v10284_v2 = vpop.f32.mrf.mxu1 }
0x4ca5   :  { %5967 = vrot.lane.b32.xlu1 %v12869_v51, %s13715_s30 }
0x4ca9   :  { %6022 = vrot.lane.b32.xlu1 %v12831_v25, %s13704_s6 }
0x4cad   :  { %6018 = vrot.lane.b32.xlu1 %v12844_v28, %s13704_s6 }
0x4d1d   :  { %v5955_v46 = vpop.xlane.xlu1 %5954 }
0x4d1e   :  { %v5956_v34 = vsub.f32 %v5952_v4, %v5955_v46 }
0x4d20   :  { %v5957_v39 = vmul.f32 1.442695, %v5956_v34 }
0x4d21   :  { %v5968_v55 = vpop.permute.xlu1 %5967 }
0x4d22   :  { %10984 = vpow2.f32 %v5957_v39 }
0x4d25   :  { %v6023_v58 = vpop.permute.xlu1 %6022 }
0x4d26   :  { %v6031_v63 = vsel %vm488_vm15, %v6023_v58, 0 }
0x4d29   :  { %v6019_v57 = vpop.permute.xlu1 %6018 }
0x4d2f   :  { %v10985_v35 = vpop.eup %10984 }
0x4d30   :  { %v5959_v23 = vsel %vm2799_vm6, %v10985_v35, 0.0 }
0x4d31   :  { %5960 = vadd.xlane.f32.xlu0 %v5959_v23 }
0x4d47   :  { %5969 = vrot.lane.b32.xlu0 %v12864_v8, %s13715_s30 }
0x4d4b   :  { %6020 = vrot.lane.b32.xlu0 %v12836_v49, %s13704_s6 }
0x4dba   :  { %v5961_v50 = vpop.xlane.xlu0 %5960 }
0x4dbb   :  { %10986 = vrcp.f32 %v5961_v50 }
0x4dbe   :  { %v5970_v52 = vpop.permute.xlu0 %5969 }
0x4dbf   :  { %v5976_v53 = vsel %vm2815_vm7, %v5970_v52, 0 }
0x4dc0   :  { %10286 = vmatpush3.bf16.msra.mxu0 %v5976_v53 }
0x4dc1   :  { %10287 = vmatprep.subr.bf16.mxu0 %v11095_v10 }
0x4dc2   :  { %v6021_v59 = vpop.permute.xlu0 %6020 }
0x4dc3   :  { %v6028_v47 = vsel %vm488_vm15, %v6021_v59, 0 }
0x4dc4   :  { %10288 = vmatpush3.bf16.msra.mxu0 %v5968_v55 }
0x4dc5   :  { %10293 = vmatprep.subr.bf16.mxu0 %v11095_v10 }
0x4dc8   :  { %v10987_v43 = vpop.eup %10986 }
0x4dc9   :  { %v5963_v56 = vmul.f32 %v10987_v43, %v10985_v35 }
0x4dcb   :  { %v5964_v6 = vpack.c.bf16 %v5963_v56, %v5963_v56 }
0x4dcd   :  { %10290 = vmatmul.mubr.msk.bf16.vlgmr.msra.gmra.mxu0 %vm1015_vm1, %v5964_v6 }
0x4dce   :  { %10294 = vmatpush3.bf16.xpose.msra.mxu0 %v6031_v63  ;;  %10297 = vmatprep.mubr.msk.bf16.mxu0 %vm11096_vm4, %v11095_v10 }
0x4dcf   :  { %10295 = vmatprep.subr.bf16.mxu0 %v11095_v10 }
0x4dd6   :  { %10296 = vmatpush3.bf16.xpose.msra.mxu0 %v6028_v47 }
0x4dd7   :  { %10317 = vmatprep.subr.bf16.mxu0 %v11095_v10 }
0x4ddd   :  { %10298 = vmatmul.mubr.msk.bf16.vlgmr.msra.gmra.mxu0 %vm488_vm15, %v6019_v57 }
0x4dde   :  { %10321 = vmatprep.mubr.msk.bf16.mxu0 %vm11096_vm4, %v11095_v10 }
0x4e8d   :  { %v12912_v5 = vpop.f32.mrf.mxu0 }
0x4e8f   :  { %v10291_v7 = vpop.f32.mrf.mxu0 }
0x4e90   :  { %v10793_v7 = vld [vmem:[%s13703_s5 + $0x10] sm:$0xff]  }
0x4e91   :  { %v6015_v3 = vpop.f32.mrf.mxu0 }
0x4e93   :  { %v10292_v15 = vpop.f32.mrf.mxu0 }
0x4e9d   :  { %v6067_v9 = vpop.f32.mrf.mxu0 }
0x4e9e   :  { %v6073_v42 = vmul.f32 0.35355338, %v6067_v9 }
0x4e9f   :  { %v10299_v32 = vpop.f32.mrf.mxu0 }
0x4ea0   :  { %v6074_v60 = vsel %vm11264_vm9, %v6073_v42, -1e+30  ;;  %v9014_v32 = vld [vmem:[%s13630_s8 + $0x1] ss:$0 sm:$0xff] }
0x4ea1   :  { %v6070_v54 = vpop.f32.mrf.mxu0  ;;  %v6075_v16 = vsel %vm2799_vm6, %v6074_v60, -inf }
0x4ea2   :  { %6076 = vmax.xlane.f32.xlu0 %v6075_v16 }
0x4ea3   :  { %v10300_v33 = vpop.f32.mrf.mxu0 }
0x4eb8   :  { %6089 = vrot.lane.b32.xlu0 %v12864_v8, %s13704_s6 }
0x4ebc   :  { %6142 = vrot.lane.b32.xlu0 %v12831_v25, %s13705_s16 }
0x4ec0   :  { %6138 = vrot.lane.b32.xlu0 %v12844_v28, %s13705_s16 }
0x4f2b   :  { %v6077_v22 = vpop.xlane.xlu0 %6076 }
0x4f2c   :  { %v6078_v45 = vsub.f32 %v6074_v60, %v6077_v22 }
0x4f2e   :  { %v6079_v18 = vmul.f32 1.442695, %v6078_v45 }
0x4f2f   :  { %v6090_v11 = vpop.permute.xlu0 %6089 }
0x4f30   :  { %10988 = vpow2.f32 %v6079_v18  ;;  %v6096_v14 = vsel %vm2815_vm7, %v6090_v11, 0 }
0x4f31   :  { %10302 = vmatpush3.bf16.msra.mxu1 %v6096_v14 }
0x4f32   :  { %10303 = vmatprep.subr.bf16.mxu1 %v11095_v10 }
0x4f33   :  { %v6143_v37 = vpop.permute.xlu0 %6142 }
0x4f34   :  { %v6151_v0 = vsel %vm488_vm15, %v6143_v37, 0  ;;  %v10797_v37 = vld [vmem:[%s13631_s9 + $0x60] sm:$0xff]  }
0x4f37   :  { %v6139_v36 = vpop.permute.xlu0 %6138 }
0x4f3d   :  { %v10989_v61 = vpop.eup %10988 }
0x4f3e   :  { %v6081_v24 = vsel %vm2799_vm6, %v10989_v61, 0.0 }
0x4f3f   :  { %6082 = vadd.xlane.f32.xlu1 %v6081_v24  ;;  %v10794_v24 = vld [vmem:[%s13631_s9 + $0x78] sm:$0xff]  }
0x4f50   :  { %6087 = vrot.lane.b32.xlu1 %v12869_v51, %s13704_s6 }
0x4f54   :  { %6140 = vrot.lane.b32.xlu1 %v12836_v49, %s13705_s16 }
0x4fc8   :  { %v6083_v25 = vpop.xlane.xlu1 %6082 }
0x4fc9   :  { %10990 = vrcp.f32 %v6083_v25 }
0x4fcc   :  { %v6088_v28 = vpop.permute.xlu1 %6087 }
0x4fcd   :  { %10304 = vmatpush3.bf16.msra.mxu1 %v6088_v28 }
0x4fce   :  { %10309 = vmatprep.subr.bf16.mxu1 %v11095_v10 }
0x4fd0   :  { %v6141_v49 = vpop.permute.xlu1 %6140 }
0x4fd1   :  { %v6148_v38 = vsel %vm488_vm15, %v6141_v49, 0 }
0x4fd6   :  { %v10991_v62 = vpop.eup %10990 }
0x4fd7   :  { %v6085_v40 = vmul.f32 %v10991_v62, %v10989_v61  ;;  %v10795_v62 = vld [vmem:[%s13631_s9 + $0x70] sm:$0xff]  }
0x4fd9   :  { %v6086_v44 = vpack.c.bf16 %v6085_v40, %v6085_v40  ;;  %v10796_v40 = vld [vmem:[%s13631_s9 + $0x68] sm:$0xff]  }
0x4fdb   :  { %10306 = vmatmul.mubr.msk.bf16.vlgmr.msra.gmra.mxu1 %vm1015_vm1, %v6086_v44  ;;  %v10798_v44 = vld [vmem:[%s13631_s9 + $0x58] sm:$0xff]  }
0x4fdc   :  { %10310 = vmatpush3.bf16.xpose.msra.mxu1 %v6151_v0  ;;  %10313 = vmatprep.mubr.msk.bf16.mxu1 %vm11096_vm4, %v11095_v10  ;;  %v10799_v0 = vld [vmem:[%s13631_s9 + $0x50] sm:$0xff]  }
0x4fdd   :  { %10311 = vmatprep.subr.bf16.mxu1 %v11095_v10 }
0x4fe4   :  { %10312 = vmatpush3.bf16.xpose.msra.mxu1 %v6148_v38  ;;  %v10800_v38 = vld [vmem:[%s13631_s9 + $0x48] sm:$0xff]  }
0x4fe5   :  { %10333 = vmatprep.subr.bf16.mxu1 %v11095_v10 }
0x4feb   :  { %10314 = vmatmul.mubr.msk.bf16.vlgmr.msra.gmra.mxu1 %vm488_vm15, %v6139_v36 }
0x4fec   :  { %10334 = vmatpush3.bf16.msra.mxu1 %v10790_v30  ;;  %10337 = vmatprep.mubr.msk.bf16.mxu1 %vm11096_vm4, %v11095_v10 }
0x4fed   :  { %10335 = vmatprep.subr.bf16.mxu1 %v11095_v10 }
0x4ff0   :  { %10336 = vmatpush3.bf16.msra.mxu1 %v10791_v17  ;;  %v10801_v17 = vld [vmem:[%s13631_s9 + $0x40] sm:$0xff]  }
0x4ff1   :  { %10361 = vmatprep.subr.bf16.mxu1 %v11095_v10 }
0x4ff3   :  { %10338 = vmatmul.mubr.msk.bf16.vlgmr.msra.gmra.mxu1 %vm73_vm14, %v12796_v31 }
0x4ff4   :  { %10365 = vmatprep.mubr.msk.bf16.mxu1 %vm11096_vm4, %v11095_v10 }
0x509b   :  { %v6132_v12 = vpop.f32.mrf.mxu1 }
0x509d   :  { %v10307_v41 = vpop.f32.mrf.mxu1 }
0x509f   :  { %v6135_v4 = vpop.f32.mrf.mxu1 }
0x50a1   :  { %v10308_v13 = vpop.f32.mrf.mxu1 }
0x50ab   :  { %v6187_v1 = vpop.f32.mrf.mxu1 }
0x50ac   :  { %v6193_v2 = vmul.f32 0.35355338, %v6187_v1 }
0x50ad   :  { %v10315_v46 = vpop.f32.mrf.mxu1 }
0x50ae   :  { %v6194_v34 = vsel %vm11264_vm9, %v6193_v2, -1e+30  ;;  %vm13718_vm9 = vmmov %vm13717_vm0  ;;  %v9035_v46 = vld [vmem:[%s13632_s10 + $0x1] ss:$0 sm:$0xff]  ;;  %s13719_s10 = sld [smem:[#allocation16_spill]] }
0x50af   :  { %v6190_v39 = vpop.f32.mrf.mxu1  ;;  %v6195_v35 = vsel %vm2799_vm6, %v6194_v34, -inf }
0x50b0   :  { %6196 = vmax.xlane.f32.xlu1 %v6195_v35 }
0x50b1   :  { %v10316_v23 = vpop.f32.mrf.mxu1 }
0x50b3   :  { %v6390_v50 = vpop.f32.mrf.mxu1 }
0x50b4   :  { %v6391_v60 = vadd.f32 %v9014_v32, %v6390_v50  ;;  %v11064_v32 = vld [vmem:[%s13692_s24 + $0x28] sm:$0xff]  }
0x50b5   :  { %v10339_v31 = vpop.f32.mrf.mxu1 }
0x50b6   :  { %v6397_v54 = vmul.f32 0.044715, %v6391_v60  ;;  %v6396_v36 = vmul.f32 0.5, %v6391_v60 }
0x50b7   :  { %v6393_v52 = vpop.f32.mrf.mxu1 }
0x50b8   :  { %v6398_v16 = vmul.f32 %v6397_v54, %v6391_v60  ;;  %v11066_v54 = vld [vmem:[%s13692_s24 + $0x18] sm:$0xff]  }
0x50b9   :  { %v10340_v53 = vpop.f32.mrf.mxu1 }
0x50ba   :  { %v6399_v45 = vmul.f32 %v6398_v16, %v6391_v60  ;;  %v11067_v16 = vld [vmem:[%s13692_s24 + $0x10] sm:$0xff]  }
0x50bc   :  { %v6400_v25 = vadd.f32 %v6399_v45, %v6391_v60  ;;  %v11065_v60 = vld [vmem:[%s13692_s24 + $0x20] sm:$0xff]  }
0x50bd   :  { %v9046_v45 = vld [vmem:[%s13643_s21] ss:$0 sm:$0xff] }
0x50c1   :  { %6207 = vrot.lane.b32.xlu1 %v12869_v51, %s13705_s16 }
0x50c5   :  { %6259 = vrot.lane.b32.xlu1 %v12912_v5, %s13710_s28 }
0x5139   :  { %v6197_v55 = vpop.xlane.xlu1 %6196 }
0x513a   :  { %v6198_v43 = vsub.f32 %v6194_v34, %v6197_v55 }
0x513c   :  { %v6199_v56 = vmul.f32 1.442695, %v6198_v43 }
0x513d   :  { %v6208_v59 = vpop.permute.xlu1 %6207 }
0x513e   :  { %10992 = vpow2.f32 %v6199_v56 }
0x5141   :  { %v6260_v33 = vpop.permute.xlu1 %6259 }
0x5142   :  { %v6270_v18 = vsel %vm488_vm15, %v12883_v48, %v6260_v33  ;;  %v6401_v48 = vmul.f32 0.7978846, %v6400_v25  ;;  %v11068_v33 = vld [vmem:[%s13692_s24 + $0x8] sm:$0xff]  }
0x514b   :  { %v10993_v19 = vpop.eup %10992 }
0x514c   :  { %v6201_v58 = vsel %vm2799_vm6, %v10993_v19, 0.0 }
0x514d   :  { %6202 = vadd.xlane.f32.xlu0 %v6201_v58 }
0x5163   :  { %6209 = vrot.lane.b32.xlu0 %v12864_v8, %s13705_s16  ;;  %v10792_v8 = vld [vmem:[%s13703_s5 + $0x18] sm:$0xff]  }
0x5167   :  { %6263 = vrot.lane.b32.xlu0 %v6132_v12, %s13711_s17 }
0x51d6   :  { %v6203_v6 = vpop.xlane.xlu0 %6202 }
0x51d7   :  { %10994 = vrcp.f32 %v6203_v6  ;;  %v10802_v6 = vld [vmem:[%s13642_s20 + $0x8] sm:$0xff]  }
0x51d8   :  { %10996 = vtanh.f32 %v6401_v48  ;;  %10362 = vmatpush3.bf16.msra.mxu1 %v10802_v6 }
0x51d9   :  { %10363 = vmatprep.subr.bf16.mxu1 %v11095_v10 }
0x51da   :  { %v6210_v63 = vpop.permute.xlu0 %6209 }
0x51db   :  { %v6216_v51 = vsel %vm2815_vm7, %v6210_v63, 0 }
0x51dc   :  { %10318 = vmatpush3.bf16.msra.mxu0 %v6216_v51 }
0x51dd   :  { %10319 = vmatprep.subr.bf16.mxu0 %v11095_v10 }
0x51de   :  { %v6264_v22 = vpop.permute.xlu0 %6263 }
0x51df   :  { %v6271_v11 = vsel %vm13718_vm9, %v6270_v18, %v6264_v22  ;;  %v11069_v22 = vld [vmem:[%s13692_s24] sm:$0xff]  }
0x51e0   :  { %10320 = vmatpush3.bf16.msra.mxu0 %v6208_v59 }
0x51e1   :  { %10325 = vmatprep.subr.bf16.mxu0 %v11095_v10 }
0x51e4   :  { %v10995_v47 = vpop.eup %10994 }
0x51e5   :  { %v6205_v57 = vmul.f32 %v10995_v47, %v10993_v19  ;;  %v10997_v49 = vpop.eup %10996 }
0x51e6   :  { %v6403_v30 = vadd.f32 1.0, %v10997_v49 }
0x51e7   :  { %v6206_v5 = vpack.c.bf16 %v6205_v57, %v6205_v57  ;;  %v9044_v57 = vld [vmem:[%s13640_s18] ss:$0 sm:$0xff] }
0x51e8   :  { %v6404_v12 = vmul.f32 %v6403_v30, %v6396_v36 }
0x51e9   :  { %10322 = vmatmul.mubr.msk.bf16.vlgmr.msra.gmra.mxu0 %vm1015_vm1, %v6206_v5 }
0x51ea   :  { %10329 = vmatprep.mubr.msk.bf16.mxu0 %vm11096_vm4, %v11095_v10  ;;  %10326 = vmatpush3.bf16.msra.mxu0 %v10792_v8  ;;  %v6405_v41 = vpack.c.bf16 %v6404_v12, %v6404_v12  ;;  %v9045_v8 = vld [vmem:[%s13719_s10] ss:$0 sm:$0xff] }
0x51eb   :  { %10327 = vmatprep.subr.bf16.mxu0 %v11095_v10 }
0x51ee   :  { %10328 = vmatpush3.bf16.msra.mxu0 %v10793_v7 }
0x51ef   :  { %10341 = vmatprep.subr.bf16.mxu0 %v11095_v10 }
0x52a9   :  { %v6252_v3 = vpop.f32.mrf.mxu0 }
0x52aa   :  { %6267 = vrot.lane.b32.xlu1 %v6252_v3, %s13712_s3 }
0x52ab   :  { %v10323_v15 = vpop.f32.mrf.mxu0 }
0x52ad   :  { %v6255_v9 = vpop.f32.mrf.mxu0 }
0x52ae   :  { %v11062_v9 = vld [vmem:[%s13692_s24 + $0x38] sm:$0xff]  }
0x52af   :  { %v10324_v42 = vpop.f32.mrf.mxu0 }
0x52b0   :  { %v11063_v42 = vld [vmem:[%s13692_s24 + $0x30] sm:$0xff]  }
0x531c   :  { %v6268_v14 = vpop.permute.xlu1 %6267 }
0x531d   :  { %v6272_v61 = vsel %vm1015_vm1, %v6271_v11, %v6268_v14 }
0x531e   :  { %v6273_v28 = vpack.c.bf16 %v6272_v61, %v6272_v61 }
0x5320   :  { %10330 = vmatmul.mubr.msk.bf16.vlgmr.msra.gmra.mxu0 %vm73_vm14, %v6273_v28 }
0x5321   :  { %10342 = vmatpush3.bf16.msra.mxu0 %v10794_v24  ;;  %10357 = vmatprep.mubr.msk.bf16.mxu0 %vm11096_vm4, %v11095_v10 }
0x5322   :  { %10343 = vmatprep.subr.bf16.mxu0 %v11095_v10 }
0x5325   :  { %10344 = vmatpush3.bf16.msra.mxu0 %v10795_v62 }
0x5326   :  { %10345 = vmatprep.subr.bf16.mxu0 %v11095_v10 }
0x5329   :  { %10346 = vmatpush3.bf16.msra.mxu0 %v10796_v40 }
0x532a   :  { %10347 = vmatprep.subr.bf16.mxu0 %v11095_v10 }
0x532d   :  { %10348 = vmatpush3.bf16.msra.mxu0 %v10797_v37 }
0x532e   :  { %10349 = vmatprep.subr.bf16.mxu0 %v11095_v10 }
0x5331   :  { %10350 = vmatpush3.bf16.msra.mxu0 %v10798_v44 }
0x5332   :  { %10351 = vmatprep.subr.bf16.mxu0 %v11095_v10 }
0x5335   :  { %10352 = vmatpush3.bf16.msra.mxu0 %v10799_v0  ;;  %v13089_v0 = vld [vmem:[%s13637_s15 + $0x8] sm:$0xff]  }
0x5336   :  { %10353 = vmatprep.subr.bf16.mxu0 %v11095_v10 }
0x5339   :  { %10354 = vmatpush3.bf16.msra.mxu0 %v10800_v38 }
0x533a   :  { %10355 = vmatprep.subr.bf16.mxu0 %v11095_v10 }
0x533d   :  { %10356 = vmatpush3.bf16.msra.mxu0 %v10801_v17 }
0x533e   :  { %10389 = vmatprep.subr.bf16.mxu0 %v11095_v10 }
0x5340   :  { %10358 = vmatmul.mubr.bf16.vlgmr.msra.gmra.mxu0 %v6405_v41 }
0x5341   :  { %10393 = vmatprep.mubr.msk.bf16.mxu0 %vm11096_vm4, %v11095_v10 }
0x53e0   :  { %v6327_v4 = vpop.f32.mrf.mxu0 }
0x53e1   :  { %v6517_v39 = vadd.f32 %v6327_v4, %v12776_v21  ;;  %v10803_v21 = vld [vmem:[%s13642_s20] sm:$0xff]  }
0x53e2   :  { %v10331_v13 = vpop.f32.mrf.mxu0  ;;  %10364 = vmatpush3.bf16.msra.mxu1 %v10803_v21 }
0x53e3   :  { %10369 = vmatprep.subr.bf16.mxu1 %v11095_v10 }
0x53e4   :  { %v6330_v1 = vpop.f32.mrf.mxu0 }
0x53e5   :  { %v10804_v1 = vld [vmem:[%s13699_s26 + $0x8] sm:$0xff]  }
0x53e6   :  { %v10332_v2 = vpop.f32.mrf.mxu0  ;;  %10390 = vmatpush3.bf16.msra.mxu0 %v10804_v1 }
0x53e7   :  { %10391 = vmatprep.subr.bf16.mxu0 %v11095_v10  ;;  %v10805_v2 = vld [vmem:[%s13699_s26] sm:$0xff]  }
0x53ea   :  { %10392 = vmatpush3.bf16.msra.mxu0 %v10805_v2 }
0x53eb   :  { %10397 = vmatprep.subr.bf16.mxu0 %v11095_v10 }
0x5400   :  { %v6511_v34 = vpop.f32.mrf.mxu0 }
0x5401   :  { %v6512_v35 = vadd.f32 %v9035_v46, %v6511_v34  ;;  %v13119_v46 = vld [vmem:[%s13635_s13 + $0xa] ss:$0 sm:$0xff] }
0x5402   :  { %v10359_v23 = vpop.f32.mrf.mxu0 }
0x5403   :  { %v6518_v50 = vadd.f32 %v6517_v39, %v6512_v35 }
0x5404   :  { %v6514_v31 = vpop.f32.mrf.mxu0 }
0x5405   :  { %v6521_v52 = vsel %vm2347_vm3, %v6518_v50, 0.0 }
0x5406   :  { %6522 = vadd.xlane.f32.xlu0 %v6521_v52  ;;  %v10360_v53 = vpop.f32.mrf.mxu0  ;;  %v9053_v52 = vld [vmem:[%s13701_s0] ss:$0 sm:$0xff] }
0x548f   :  { %v6523_v55 = vpop.xlane.xlu0 %6522 }
0x5490   :  { %v6524_v43 = vmul.f32 0.03125, %v6523_v55 }
0x5492   :  { %v6525_v56 = vsub.f32 %v6518_v50, %v6524_v43  ;;  %v9052_v50 = vld [vmem:[%s13700_s29] ss:$0 sm:$0xff] }
0x5494   :  { %v6526_v19 = vmul.f32 %v6525_v56, %v6525_v56 }
0x5496   :  { %v6527_v58 = vsel %vm2347_vm3, %v6526_v19, 0.0 }
0x5497   :  { %6528 = vadd.xlane.f32.xlu1 %v6527_v58 }
0x5520   :  { %v6529_v63 = vpop.xlane.xlu1 %6528 }
0x5521   :  { %v6530_v51 = vmul.f32 0.03125, %v6529_v63 }
0x5523   :  { %v6531_v59 = vadd.f32 1e-05, %v6530_v51 }
0x5525   :  { %10998 = vrsqrt.f32 %v6531_v59 }
0x5532   :  { %v10999_v47 = vpop.eup %10998 }
0x5533   :  { %v6533_v5 = vmul.f32 %v10999_v47, %v6525_v56  ;;  %v9054_v56 = vld [vmem:[%s13702_s2] ss:$0 sm:$0xff] }
0x5535   :  { %v6540_v7 = vmul.f32 %v9044_v57, %v6533_v5 }
0x5537   :  { %v6547_v3 = vadd.f32 %v9045_v8, %v6540_v7  ;;  %v13152_v7 = vld [vmem:[%s13716_s19 + $0xa] ss:$0 sm:$0xff] }
0x5539   :  { %v6548_v15 = vpack.c.bf16 %v6547_v3, %v6547_v3 }
0x553b   :  { %10366 = vmatmul.mubr.msk.bf16.vlgmr.msra.gmra.mxu1 %vm73_vm14, %v6548_v15 }
0x553c   :  { %10370 = vmatpush3.bf16.msra.mxu1 %v11062_v9  ;;  %10385 = vmatprep.mubr.msk.bf16.mxu1 %vm11096_vm4, %v11095_v10 }
0x553d   :  { %10371 = vmatprep.subr.bf16.mxu1 %v11095_v10 }
0x5540   :  { %10372 = vmatpush3.bf16.msra.mxu1 %v11063_v42 }
0x5541   :  { %10373 = vmatprep.subr.bf16.mxu1 %v11095_v10 }
0x5544   :  { %10374 = vmatpush3.bf16.msra.mxu1 %v11064_v32 }
0x5545   :  { %10375 = vmatprep.subr.bf16.mxu1 %v11095_v10 }
0x5548   :  { %10376 = vmatpush3.bf16.msra.mxu1 %v11065_v60 }
0x5549   :  { %10377 = vmatprep.subr.bf16.mxu1 %v11095_v10 }
0x554c   :  { %10378 = vmatpush3.bf16.msra.mxu1 %v11066_v54 }
0x554d   :  { %10379 = vmatprep.subr.bf16.mxu1 %v11095_v10 }
0x5550   :  { %10380 = vmatpush3.bf16.msra.mxu1 %v11067_v16 }
0x5551   :  { %10381 = vmatprep.subr.bf16.mxu1 %v11095_v10 }
0x5554   :  { %10382 = vmatpush3.bf16.msra.mxu1 %v11068_v33 }
0x5555   :  { %10383 = vmatprep.subr.bf16.mxu1 %v11095_v10 }
0x5558   :  { %10384 = vmatpush3.bf16.msra.mxu1 %v11069_v22 }
0x5559   :  { %10405 = vmatprep.subr.bf16.mxu1 %v11095_v10 }
0x55fb   :  { %v6609_v18 = vpop.f32.mrf.mxu1 }
0x55fc   :  { %v6610_v11 = vadd.f32 %v9046_v45, %v6609_v18 }
0x55fd   :  { %v10367_v14 = vpop.f32.mrf.mxu1 }
0x55fe   :  { %v6615_v61 = vsel %vm2442_vm5, %v6610_v11, -inf }
0x55ff   :  { %6616 = vmax.xlane.f32.xlu0 %v6615_v61  ;;  %v6612_v24 = vpop.f32.mrf.mxu1  ;;  %v6899_v61 = vld [vmem:[#allocation2] sm:$0xff] }
0x5601   :  { %v10368_v25 = vpop.f32.mrf.mxu1 }
0x5688   :  { %v6617_v28 = vpop.xlane.xlu0 %6616 }
0x5689   :  { %vm6618_vm8 = vcmp.eq.f32.partialorder %v6610_v11, %v6617_v28 }
0x568a   :  { %v6619_v62 = vsel %vm6618_vm8, %v11896_v26, 128.0 }
0x568b   :  { %v6620_v48 = vsel %vm2442_vm5, %v6619_v62, inf }
0x568c   :  { %6621 = vmin.xlane.f32.xlu0 %v6620_v48 }
0x5715   :  { %v6622_v40 = vpop.xlane.xlu0 %6621 }
0x5716   :  { %v10649_v37 = vtrunc.f32 %v6622_v40 }
0x5718   :  { %v10650_v44 = vcvt.f32.s32 %v10649_v37 }
0x571a   :  { %vm6626_vm12 = vcmp.eq.s32.totalorder %v10650_v44, %v11294_v27  ;;  %6625 = vst.msk [vmem:[#allocation4] sm:$0x3] %vm6624_vm11, %v10650_v44  ;;  %v13098_v27 = vld [vmem:[%s13637_s15] sm:$0xff]   ;;  %s13720_s15 = sld [smem:[#allocation14_spill]] }
0x571b   :  { %vm9050_vm0 = vmpackc.low %vm6626_vm12, %vm6626_vm12 }
0x571c   :  { %10386 = vmatmul.mubr.msk.bf16.vlgmr.msra.gmra.mxu1 %vm9050_vm0, %v11097_v29 }
0x571d   :  { %10406 = vmatpush3.bf16.msra.mxu1 %v13089_v0  ;;  %10409 = vmatprep.mubr.msk.bf16.mxu1 %vm11096_vm4, %v11095_v10 }
0x571e   :  { %10407 = vmatprep.subr.bf16.mxu1 %v11095_v10 }
0x5721   :  { %10408 = vmatpush3.bf16.msra.mxu1 %v13098_v27 }
0x5722   :  { %10421 = vmatprep.subr.bf16.mxu1 %v11095_v10 }
0x57dc   :  { %v13102_v29 = vpop.f32.mrf.mxu1 }
0x57dd   :  { %v6681_v49 = vsel %vm2347_vm3, %v13102_v29, 0.0 }
0x57de   :  { %6682 = vadd.xlane.f32.xlu1 %v6681_v49  ;;  %v10387_v38 = vpop.f32.mrf.mxu1 }
0x57e0   :  { %v6666_v30 = vpop.f32.mrf.mxu1 }
0x57e2   :  { %v10388_v36 = vpop.f32.mrf.mxu1 }
0x5867   :  { %v6683_v17 = vpop.xlane.xlu1 %6682 }
0x5868   :  { %v6684_v12 = vmul.f32 0.03125, %v6683_v17 }
0x586a   :  { %v6685_v41 = vsub.f32 %v13102_v29, %v6684_v12 }
0x586c   :  { %v6686_v4 = vmul.f32 %v6685_v41, %v6685_v41 }
0x586e   :  { %v6687_v13 = vsel %vm2347_vm3, %v6686_v4, 0.0 }
0x586f   :  { %6688 = vadd.xlane.f32.xlu0 %v6687_v13 }
0x5885   :  { %6877 = vrot.lane.b32.xlu0 %v13119_v46, %s13713_s25 }
0x58f8   :  { %v6689_v34 = vpop.xlane.xlu0 %6688 }
0x58f9   :  { %v6690_v39 = vmul.f32 0.03125, %v6689_v34 }
0x58fb   :  { %v6691_v35 = vadd.f32 1e-05, %v6690_v39 }
0x58fc   :  { %v13156_v60 = vpop.permute.xlu0 %6877 }
0x58fd   :  { %11000 = vrsqrt.f32 %v6691_v35  ;;  %v6902_v35 = vld [vmem:[#allocation3] sm:$0xff] }
0x590a   :  { %v11001_v23 = vpop.eup %11000 }
0x590b   :  { %v6693_v31 = vmul.f32 %v11001_v23, %v6685_v41 }
0x590d   :  { %v6700_v53 = vmul.f32 %v9052_v50, %v6693_v31 }
0x590f   :  { %v6707_v55 = vadd.f32 %v9053_v52, %v6700_v53 }
0x5911   :  { %v13129_v43 = vpack.c.bf16 %v6707_v55, %v6707_v55 }
0x5913   :  { %10394 = vmatmul.mubr.msk.bf16.vlgmr.msra.gmra.mxu0 %vm73_vm14, %v13129_v43 }
0x5914   :  { %10398 = vmatpush3.bf16.msra.mxu0 %v13089_v0  ;;  %10401 = vmatprep.mubr.msk.bf16.mxu0 %vm11096_vm4, %v11095_v10 }
0x5915   :  { %10399 = vmatprep.subr.bf16.mxu0 %v11095_v10 }
0x5918   :  { %10400 = vmatpush3.bf16.msra.mxu0 %v13098_v27 }
0x5919   :  { %10413 = vmatprep.subr.bf16.mxu0 %v11095_v10 }
0x59d3   :  { %v6769_v19 = vpop.f32.mrf.mxu0 }
0x59d4   :  { %v6770_v58 = vadd.f32 %v9054_v56, %v6769_v19 }
0x59d5   :  { %v10395_v6 = vpop.f32.mrf.mxu0 }
0x59d6   :  { %v6775_v21 = vpack.c.bf16 %v6770_v58, %v6770_v58  ;;  %v6880_v54 = vmul.f32 %v13156_v60, %v6770_v58  ;;  %v6823_v28 = vmul.f32 %v13119_v46, %v6770_v58 }
0x59d7   :  { %v6772_v63 = vpop.f32.mrf.mxu0 }
0x59d8   :  { %6831 = vrot.lane.b32.xlu1 %v6775_v21, %s13714_s23  ;;  %10402 = vmatmul.mubr.msk.bf16.vlgmr.msra.gmra.mxu0 %vm73_vm14, %v6775_v21 }
0x59d9   :  { %v10396_v51 = vpop.f32.mrf.mxu0  ;;  %10417 = vmatprep.mubr.msk.bf16.mxu0 %vm11096_vm4, %v11095_v10 }
0x5a4a   :  { %v6832_v59 = vpop.permute.xlu1 %6831 }
0x5a4b   :  { %10410 = vmatmul.mubr.msk.bf16.vlgmr.msra.gmra.mxu1 %vm73_vm14, %v6832_v59 }
0x5a4c   :  { %10425 = vmatprep.mubr.msk.bf16.mxu1 %vm11096_vm4, %v11095_v10 }
0x5a98   :  { %v6813_v47 = vpop.f32.mrf.mxu0 }
0x5a99   :  { %v6828_v25 = vmul.f32 %v13152_v7, %v6813_v47 }
0x5a9a   :  { %v10403_v57 = vpop.f32.mrf.mxu0 }
0x5a9b   :  { %v6829_v48 = vadd.f32 %v6828_v25, %v6823_v28 }
0x5a9c   :  { %v6816_v5 = vpop.f32.mrf.mxu0 }
0x5a9d   :  { %v13174_v40 = vpack.c.bf16 %v6829_v48, %v6829_v48 }
0x5a9e   :  { %v10404_v8 = vpop.f32.mrf.mxu0 }
0x5b0b   :  { %v6870_v3 = vpop.f32.mrf.mxu1 }
0x5b0c   :  { %v6881_v15 = vmul.f32 %v13152_v7, %v6870_v3 }
0x5b0d   :  { %v10411_v9 = vpop.f32.mrf.mxu1 }
0x5b0e   :  { %6883 = vrot.lane.b32.xlu1 %v6881_v15, %s13713_s25 }
0x5b0f   :  { %v6873_v42 = vpop.f32.mrf.mxu1 }
0x5b11   :  { %v10412_v32 = vpop.f32.mrf.mxu1 }
0x5b80   :  { %v6884_v16 = vpop.permute.xlu1 %6883 }
0x5b81   :  { %v6886_v33 = vadd.f32 %v6884_v16, %v6880_v54 }
0x5b83   :  { %6888 = vrot.lane.b32.xlu1 %v6886_v33, %s13714_s23 }
0x5bf5   :  { %v6889_v22 = vpop.permute.xlu1 %6888 }
0x5bf6   :  { %6891 = vst.msk [vmem:[#allocation2 + $0xa] sm:$0x1] %vm2727_vm13, %v6889_v22 }
0x5bf7   :  { %6897 = vst.msk [vmem:[#allocation2 + $0x15] sm:$0x2] %vm2734_vm2, %v6889_v22 }
0x5bfd   :  { %v6900_v14 = vld [vmem:[#allocation2 + $0x8] sm:$0xff] }
0x5bfe   :  { %v6901_v45 = vld [vmem:[#allocation2 + $0x10] sm:$0xff]  ;;  %v13167_v24 = vpack.c.bf16 %v6900_v14, %v6899_v61 }
0x5bff   :  { %v13162_v18 = vpack.c.bf16 %v6901_v45, %v6901_v45 }
0x5c00   :  { %v6914_v62 = vsel %vm488_vm15, %v13167_v24, 0 }
0x5c01   :  { %v6917_v11 = vsel %vm488_vm15, %v13162_v18, 0 }
0x5c02   :  { %10414 = vmatpush3.bf16.xpose.msra.mxu0 %v6917_v11 }
0x5c03   :  { %10415 = vmatprep.subr.bf16.mxu0 %v11095_v10 }
0x5c0a   :  { %10416 = vmatpush3.bf16.xpose.msra.mxu0 %v6914_v62 }
0x5c0b   :  { %10437 = vmatprep.subr.bf16.mxu0 %v11095_v10 }
0x5c11   :  { %10418 = vmatmul.mubr.msk.bf16.vlgmr.msra.gmra.mxu0 %vm488_vm15, %v13174_v40 }
0x5c12   :  { %10441 = vmatprep.mubr.msk.bf16.mxu0 %vm11096_vm4, %v11095_v10 }
0x5cd1   :  { %v6953_v37 = vpop.f32.mrf.mxu0 }
0x5cd2   :  { %v6959_v44 = vmul.f32 0.35355338, %v6953_v37 }
0x5cd3   :  { %v10419_v49 = vpop.f32.mrf.mxu0 }
0x5cd4   :  { %v6960_v38 = vsel %vm11269_vm10, %v6959_v44, -1e+30 }
0x5cd5   :  { %v6956_v30 = vpop.f32.mrf.mxu0  ;;  %v6961_v36 = vsel %vm2799_vm6, %v6960_v38, -inf }
0x5cd6   :  { %6962 = vmax.xlane.f32.xlu0 %v6961_v36 }
0x5cd7   :  { %v10420_v17 = vpop.f32.mrf.mxu0 }
0x5cec   :  { %6893 = vrot.lane.b32.xlu0 %v6770_v58, %s13707_s12 }
0x5cf0   :  { %7024 = vrot.lane.b32.xlu0 %v13167_v24, %s13715_s30 }
0x5d5f   :  { %v6963_v12 = vpop.xlane.xlu0 %6962 }
0x5d60   :  { %v6964_v41 = vsub.f32 %v6960_v38, %v6963_v12 }
0x5d62   :  { %v6965_v4 = vmul.f32 1.442695, %v6964_v41 }
0x5d63   :  { %v6894_v13 = vpop.permute.xlu0 %6893 }
0x5d64   :  { %11002 = vpow2.f32 %v6965_v4  ;;  %6896 = vst.msk [vmem:[#allocation3 + $0xa] sm:$0x1] %vm2727_vm13, %v6894_v13 }
0x5d65   :  { %6898 = vst.msk [vmem:[#allocation3 + $0x15] sm:$0x2] %vm2734_vm2, %v6894_v13 }
0x5d67   :  { %v7025_v6 = vpop.permute.xlu0 %7024 }
0x5d68   :  { %v7032_v21 = vsel %vm488_vm15, %v7025_v6, 0 }
0x5d6b   :  { %v6903_v39 = vld [vmem:[#allocation3 + $0x8] sm:$0xff] }
0x5d6c   :  { %v6904_v1 = vld [vmem:[#allocation3 + $0x10] sm:$0xff]  ;;  %v13193_v50 = vpack.c.bf16 %v6903_v39, %v6902_v35 }
0x5d6d   :  { %v13188_v2 = vpack.c.bf16 %v6904_v1, %v6904_v1 }
0x5d6f   :  { %v6977_v34 = vsel %vm2815_vm7, %v13188_v2, 0 }
0x5d70   :  { %10422 = vmatpush3.bf16.msra.mxu1 %v6977_v34 }
0x5d71   :  { %10423 = vmatprep.subr.bf16.mxu1 %v11095_v10  ;;  %v11003_v23 = vpop.eup %11002 }
0x5d72   :  { %v6967_v31 = vsel %vm2799_vm6, %v11003_v23, 0.0 }
0x5d73   :  { %6968 = vadd.xlane.f32.xlu1 %v6967_v31 }
0x5d74   :  { %10424 = vmatpush3.bf16.msra.mxu1 %v13193_v50 }
0x5d75   :  { %10429 = vmatprep.subr.bf16.mxu1 %v11095_v10 }
0x5d84   :  { %7026 = vrot.lane.b32.xlu1 %v13162_v18, %s13715_s30 }
0x5d88   :  { %7020 = vrot.lane.b32.xlu1 %v13174_v40, %s13715_s30 }
0x5dfc   :  { %v6969_v52 = vpop.xlane.xlu1 %6968 }
0x5dfd   :  { %11004 = vrcp.f32 %v6969_v52 }
0x5e00   :  { %v7027_v56 = vpop.permute.xlu1 %7026 }
0x5e01   :  { %v7035_v58 = vsel %vm488_vm15, %v7027_v56, 0 }
0x5e04   :  { %v7021_v63 = vpop.permute.xlu1 %7020 }
0x5e0a   :  { %v11005_v53 = vpop.eup %11004 }
0x5e0b   :  { %v6971_v55 = vmul.f32 %v11005_v53, %v11003_v23 }
0x5e0d   :  { %v6972_v19 = vpack.c.bf16 %v6971_v55, %v6971_v55 }
0x5e0f   :  { %10426 = vmatmul.mubr.msk.bf16.vlgmr.msra.gmra.mxu1 %vm1015_vm1, %v6972_v19 }
0x5e10   :  { %10430 = vmatpush3.bf16.xpose.msra.mxu1 %v7035_v58  ;;  %10433 = vmatprep.mubr.msk.bf16.mxu1 %vm11096_vm4, %v11095_v10 }
0x5e11   :  { %10431 = vmatprep.subr.bf16.mxu1 %v11095_v10 }
0x5e18   :  { %10432 = vmatpush3.bf16.xpose.msra.mxu1 %v7032_v21 }
0x5e19   :  { %10453 = vmatprep.subr.bf16.mxu1 %v11095_v10 }
0x5e1f   :  { %10434 = vmatmul.mubr.msk.bf16.vlgmr.msra.gmra.mxu1 %vm488_vm15, %v7021_v63 }
0x5e20   :  { %10457 = vmatprep.mubr.msk.bf16.mxu1 %vm11096_vm4, %v11095_v10 }
0x5ecf   :  { %v13212_v51 = vpop.f32.mrf.mxu1 }
0x5ed1   :  { %v10427_v59 = vpop.f32.mrf.mxu1 }
0x5ed3   :  { %v7016_v47 = vpop.f32.mrf.mxu1 }
0x5ed5   :  { %v10428_v57 = vpop.f32.mrf.mxu1 }
0x5edf   :  { %v7071_v5 = vpop.f32.mrf.mxu1 }
0x5ee0   :  { %v7077_v8 = vmul.f32 0.35355338, %v7071_v5  ;;  %v10806_v5 = vld [vmem:[%s13629_s7 + $0x8] sm:$0xff]  }
0x5ee1   :  { %v10435_v3 = vpop.f32.mrf.mxu1 }
0x5ee2   :  { %v7078_v15 = vsel %vm11269_vm10, %v7077_v8, -1e+30  ;;  %v10807_v3 = vld [vmem:[%s13629_s7] sm:$0xff]  }
0x5ee3   :  { %v7074_v9 = vpop.f32.mrf.mxu1  ;;  %v7079_v42 = vsel %vm2799_vm6, %v7078_v15, -inf }
0x5ee4   :  { %7080 = vmax.xlane.f32.xlu0 %v7079_v42 }
0x5ee5   :  { %v10436_v32 = vpop.f32.mrf.mxu1 }
0x5efa   :  { %7095 = vrot.lane.b32.xlu0 %v13188_v2, %s13715_s30 }
0x5efe   :  { %7148 = vrot.lane.b32.xlu0 %v13162_v18, %s13704_s6 }
0x5f02   :  { %7144 = vrot.lane.b32.xlu0 %v13174_v40, %s13704_s6 }
0x5f6d   :  { %v7081_v54 = vpop.xlane.xlu0 %7080 }
0x5f6e   :  { %v7082_v16 = vsub.f32 %v7078_v15, %v7081_v54 }
0x5f70   :  { %v7083_v33 = vmul.f32 1.442695, %v7082_v16 }
0x5f71   :  { %v7096_v22 = vpop.permute.xlu0 %7095 }
0x5f72   :  { %11006 = vpow2.f32 %v7083_v33  ;;  %v7102_v45 = vsel %vm2815_vm7, %v7096_v22, 0 }
0x5f73   :  { %10438 = vmatpush3.bf16.msra.mxu0 %v7102_v45 }
0x5f74   :  { %10439 = vmatprep.subr.bf16.mxu0 %v11095_v10 }
0x5f75   :  { %v7149_v48 = vpop.permute.xlu0 %7148 }
0x5f76   :  { %v7157_v44 = vsel %vm488_vm15, %v7149_v48, 0 }
0x5f79   :  { %v7145_v30 = vpop.permute.xlu0 %7144 }
0x5f7f   :  { %v11007_v11 = vpop.eup %11006 }
0x5f80   :  { %v7085_v14 = vsel %vm2799_vm6, %v11007_v11, 0.0 }
0x5f81   :  { %7086 = vadd.xlane.f32.xlu1 %v7085_v14 }
0x5f92   :  { %7093 = vrot.lane.b32.xlu1 %v13193_v50, %s13715_s30 }
0x5f96   :  { %7146 = vrot.lane.b32.xlu1 %v13167_v24, %s13704_s6 }
0x600a   :  { %v7087_v61 = vpop.xlane.xlu1 %7086 }
0x600b   :  { %11008 = vrcp.f32 %v7087_v61 }
0x600e   :  { %v7094_v25 = vpop.permute.xlu1 %7093 }
0x600f   :  { %10440 = vmatpush3.bf16.msra.mxu0 %v7094_v25 }
0x6010   :  { %10445 = vmatprep.subr.bf16.mxu0 %v11095_v10 }
0x6012   :  { %v7147_v49 = vpop.permute.xlu1 %7146 }
0x6013   :  { %v7154_v38 = vsel %vm488_vm15, %v7147_v49, 0 }
0x6018   :  { %v11009_v28 = vpop.eup %11008 }
0x6019   :  { %v7089_v62 = vmul.f32 %v11009_v28, %v11007_v11 }
0x601b   :  { %v7090_v37 = vpack.c.bf16 %v7089_v62, %v7089_v62 }
0x601d   :  { %10442 = vmatmul.mubr.msk.bf16.vlgmr.msra.gmra.mxu0 %vm1015_vm1, %v7090_v37 }
0x601e   :  { %10446 = vmatpush3.bf16.xpose.msra.mxu0 %v7157_v44  ;;  %10449 = vmatprep.mubr.msk.bf16.mxu0 %vm11096_vm4, %v11095_v10 }
0x601f   :  { %10447 = vmatprep.subr.bf16.mxu0 %v11095_v10 }
0x6026   :  { %10448 = vmatpush3.bf16.xpose.msra.mxu0 %v7154_v38 }
0x6027   :  { %10469 = vmatprep.subr.bf16.mxu0 %v11095_v10 }
0x602d   :  { %10450 = vmatmul.mubr.msk.bf16.vlgmr.msra.gmra.mxu0 %vm488_vm15, %v7145_v30 }
0x602e   :  { %10473 = vmatprep.mubr.msk.bf16.mxu0 %vm11096_vm4, %v11095_v10 }
0x60dd   :  { %v13241_v36 = vpop.f32.mrf.mxu0 }
0x60df   :  { %v10443_v17 = vpop.f32.mrf.mxu0 }
0x60e1   :  { %v7141_v12 = vpop.f32.mrf.mxu0 }
0x60e3   :  { %v10444_v41 = vpop.f32.mrf.mxu0 }
0x60ed   :  { %v7193_v4 = vpop.f32.mrf.mxu0 }
0x60ee   :  { %v7199_v13 = vmul.f32 0.35355338, %v7193_v4  ;;  %v10809_v4 = vld [vmem:[%s13703_s5] sm:$0xff]  }
0x60ef   :  { %v10451_v1 = vpop.f32.mrf.mxu0 }
0x60f0   :  { %v7200_v34 = vsel %vm11269_vm10, %v7199_v13, -1e+30 }
0x60f1   :  { %v7196_v39 = vpop.f32.mrf.mxu0  ;;  %v7201_v35 = vsel %vm2799_vm6, %v7200_v34, -inf }
0x60f2   :  { %7202 = vmax.xlane.f32.xlu1 %v7201_v35  ;;  %v9073_v35 = vld [vmem:[%s13630_s8] ss:$0 sm:$0xff] }
0x60f3   :  { %v10452_v23 = vpop.f32.mrf.mxu0 }
0x6103   :  { %7213 = vrot.lane.b32.xlu1 %v13193_v50, %s13704_s6 }
0x6107   :  { %7268 = vrot.lane.b32.xlu1 %v13162_v18, %s13705_s16 }
0x610b   :  { %7264 = vrot.lane.b32.xlu1 %v13174_v40, %s13705_s16 }
0x617b   :  { %v7203_v31 = vpop.xlane.xlu1 %7202 }
0x617c   :  { %v7204_v52 = vsub.f32 %v7200_v34, %v7203_v31 }
0x617e   :  { %v7205_v53 = vmul.f32 1.442695, %v7204_v52 }
0x617f   :  { %v7214_v40 = vpop.permute.xlu1 %7213 }
0x6180   :  { %11010 = vpow2.f32 %v7205_v53 }
0x6183   :  { %v7269_v63 = vpop.permute.xlu1 %7268 }
0x6184   :  { %v7277_v47 = vsel %vm488_vm15, %v7269_v63, 0 }
0x6187   :  { %v7265_v8 = vpop.permute.xlu1 %7264 }
0x618d   :  { %v11011_v55 = vpop.eup %11010 }
0x618e   :  { %v7207_v56 = vsel %vm2799_vm6, %v11011_v55, 0.0 }
0x618f   :  { %7208 = vadd.xlane.f32.xlu0 %v7207_v56 }
0x61a5   :  { %7215 = vrot.lane.b32.xlu0 %v13188_v2, %s13704_s6 }
0x61a9   :  { %7266 = vrot.lane.b32.xlu0 %v13167_v24, %s13705_s16 }
0x6218   :  { %v7209_v19 = vpop.xlane.xlu0 %7208 }
0x6219   :  { %11012 = vrcp.f32 %v7209_v19 }
0x621c   :  { %v7216_v18 = vpop.permute.xlu0 %7215 }
0x621d   :  { %v7222_v58 = vsel %vm2815_vm7, %v7216_v18, 0 }
0x621e   :  { %10454 = vmatpush3.bf16.msra.mxu1 %v7222_v58 }
0x621f   :  { %10455 = vmatprep.subr.bf16.mxu1 %v11095_v10 }
0x6220   :  { %v7267_v24 = vpop.permute.xlu0 %7266 }
0x6221   :  { %v7274_v57 = vsel %vm488_vm15, %v7267_v24, 0  ;;  %v10813_v24 = vld [vmem:[%s13631_s9 + $0x20] sm:$0xff]  }
0x6222   :  { %10456 = vmatpush3.bf16.msra.mxu1 %v7214_v40 }
0x6223   :  { %10461 = vmatprep.subr.bf16.mxu1 %v11095_v10 }
0x6226   :  { %v11013_v6 = vpop.eup %11012 }
0x6227   :  { %v7211_v21 = vmul.f32 %v11013_v6, %v11011_v55  ;;  %v10810_v6 = vld [vmem:[%s13631_s9 + $0x38] sm:$0xff]  }
0x6229   :  { %v7212_v59 = vpack.c.bf16 %v7211_v21, %v7211_v21 }
0x622b   :  { %10458 = vmatmul.mubr.msk.bf16.vlgmr.msra.gmra.mxu1 %vm1015_vm1, %v7212_v59  ;;  %v10811_v59 = vld [vmem:[%s13631_s9 + $0x30] sm:$0xff]  }
0x622c   :  { %10462 = vmatpush3.bf16.xpose.msra.mxu1 %v7277_v47  ;;  %10465 = vmatprep.mubr.msk.bf16.mxu1 %vm11096_vm4, %v11095_v10  ;;  %v10812_v47 = vld [vmem:[%s13631_s9 + $0x28] sm:$0xff]  }
0x622d   :  { %10463 = vmatprep.subr.bf16.mxu1 %v11095_v10 }
0x6234   :  { %10464 = vmatpush3.bf16.xpose.msra.mxu1 %v7274_v57  ;;  %v10814_v57 = vld [vmem:[%s13631_s9 + $0x18] sm:$0xff]  }
0x6235   :  { %10485 = vmatprep.subr.bf16.mxu1 %v11095_v10 }
0x623b   :  { %10466 = vmatmul.mubr.msk.bf16.vlgmr.msra.gmra.mxu1 %vm488_vm15, %v7265_v8 }
0x623c   :  { %10486 = vmatpush3.bf16.msra.mxu1 %v10806_v5  ;;  %10489 = vmatprep.mubr.msk.bf16.mxu1 %vm11096_vm4, %v11095_v10  ;;  %v10815_v5 = vld [vmem:[%s13631_s9 + $0x10] sm:$0xff]  }
0x623d   :  { %10487 = vmatprep.subr.bf16.mxu1 %v11095_v10 }
0x6240   :  { %10488 = vmatpush3.bf16.msra.mxu1 %v10807_v3  ;;  %v10816_v3 = vld [vmem:[%s13631_s9 + $0x8] sm:$0xff]  }
0x6241   :  { %10513 = vmatprep.subr.bf16.mxu1 %v11095_v10 }
0x6243   :  { %10490 = vmatmul.mubr.msk.bf16.vlgmr.msra.gmra.mxu1 %vm73_vm14, %v13129_v43 }
0x6244   :  { %10517 = vmatprep.mubr.msk.bf16.mxu1 %vm11096_vm4, %v11095_v10 }
0x62eb   :  { %v7258_v15 = vpop.f32.mrf.mxu1 }
0x62ed   :  { %v10459_v9 = vpop.f32.mrf.mxu1 }
0x62ef   :  { %v7261_v42 = vpop.f32.mrf.mxu1 }
0x62f0   :  { %v10817_v42 = vld [vmem:[%s13631_s9] sm:$0xff]  }
0x62f1   :  { %v10460_v32 = vpop.f32.mrf.mxu1 }
0x62fb   :  { %v7313_v54 = vpop.f32.mrf.mxu1 }
0x62fc   :  { %v7319_v16 = vmul.f32 0.35355338, %v7313_v54 }
0x62fd   :  { %v10467_v33 = vpop.f32.mrf.mxu1 }
0x62fe   :  { %v7320_v22 = vsel %vm11269_vm10, %v7319_v16, -1e+30 }
0x62ff   :  { %v7316_v45 = vpop.f32.mrf.mxu1  ;;  %v7321_v11 = vsel %vm2799_vm6, %v7320_v22, -inf }
0x6300   :  { %7322 = vmax.xlane.f32.xlu0 %v7321_v11  ;;  %v9077_v11 = vld [vmem:[%s13720_s15] ss:$0 sm:$0xff] }
0x6301   :  { %v10468_v14 = vpop.f32.mrf.mxu1 }
0x6303   :  { %v7516_v61 = vpop.f32.mrf.mxu1 }
0x6304   :  { %v7517_v23 = vadd.f32 %v9073_v35, %v7516_v61 }
0x6305   :  { %v10491_v43 = vpop.f32.mrf.mxu1 }
0x6306   :  { %v7523_v31 = vmul.f32 0.044715, %v7517_v23  ;;  %v7522_v9 = vmul.f32 0.5, %v7517_v23 }
0x6307   :  { %v7519_v25 = vpop.f32.mrf.mxu1 }
0x6308   :  { %v7524_v52 = vmul.f32 %v7523_v31, %v7517_v23 }
0x6309   :  { %v10492_v28 = vpop.f32.mrf.mxu1 }
0x630a   :  { %v7525_v56 = vmul.f32 %v7524_v52, %v7517_v23 }
0x630c   :  { %v7526_v21 = vadd.f32 %v7525_v56, %v7517_v23  ;;  %v9095_v23 = vld [vmem:[%s13702_s2 + $0x1] ss:$0 sm:$0xff] }
0x6316   :  { %7335 = vrot.lane.b32.xlu0 %v13188_v2, %s13705_s16 }
0x631a   :  { %7385 = vrot.lane.b32.xlu0 %v13241_v36, %s13710_s28 }
0x6389   :  { %v7323_v62 = vpop.xlane.xlu0 %7322 }
0x638a   :  { %v7324_v48 = vsub.f32 %v7320_v22, %v7323_v62 }
0x638c   :  { %v7325_v37 = vmul.f32 1.442695, %v7324_v48 }
0x638d   :  { %v7336_v44 = vpop.permute.xlu0 %7335 }
0x638e   :  { %11014 = vpow2.f32 %v7325_v37  ;;  %v7342_v49 = vsel %vm2815_vm7, %v7336_v44, 0 }
0x638f   :  { %10470 = vmatpush3.bf16.msra.mxu0 %v7342_v49 }
0x6390   :  { %10471 = vmatprep.subr.bf16.mxu0 %v11095_v10 }
0x6391   :  { %v7386_v53 = vpop.permute.xlu0 %7385 }
0x6392   :  { %v7396_v19 = vsel %vm488_vm15, %v13212_v51, %v7386_v53  ;;  %v7527_v51 = vmul.f32 0.7978846, %v7526_v21 }
0x639b   :  { %v11015_v38 = vpop.eup %11014 }
0x639c   :  { %v7327_v30 = vsel %vm2799_vm6, %v11015_v38, 0.0 }
0x639d   :  { %7328 = vadd.xlane.f32.xlu1 %v7327_v30 }
0x63ae   :  { %7333 = vrot.lane.b32.xlu1 %v13193_v50, %s13705_s16  ;;  %v10808_v50 = vld [vmem:[%s13703_s5 + $0x8] sm:$0xff]  }
0x63b2   :  { %7389 = vrot.lane.b32.xlu1 %v7258_v15, %s13711_s17 }
0x6426   :  { %v7329_v2 = vpop.xlane.xlu1 %7328 }
0x6427   :  { %11016 = vrcp.f32 %v7329_v2 }
0x6428   :  { %11018 = vtanh.f32 %v7527_v51 }
0x642a   :  { %v7334_v36 = vpop.permute.xlu1 %7333 }
0x642b   :  { %10472 = vmatpush3.bf16.msra.mxu0 %v7334_v36  ;;  %v10819_v36 = vld [vmem:[%s13699_s26 + $0x10] sm:$0xff]  }
0x642c   :  { %10477 = vmatprep.subr.bf16.mxu0 %v11095_v10 }
0x642e   :  { %v7390_v55 = vpop.permute.xlu1 %7389 }
0x642f   :  { %v7397_v18 = vsel %vm13718_vm9, %v7396_v19, %v7390_v55 }
0x6434   :  { %v11017_v17 = vpop.eup %11016 }
0x6435   :  { %v7331_v12 = vmul.f32 %v11017_v17, %v11015_v38  ;;  %v11019_v8 = vpop.eup %11018 }
0x6436   :  { %v7529_v15 = vadd.f32 1.0, %v11019_v8 }
0x6437   :  { %v7332_v41 = vpack.c.bf16 %v7331_v12, %v7331_v12 }
0x6438   :  { %v7530_v32 = vmul.f32 %v7529_v15, %v7522_v9 }
0x6439   :  { %10474 = vmatmul.mubr.msk.bf16.vlgmr.msra.gmra.mxu0 %vm1015_vm1, %v7332_v41 }
0x643a   :  { %10481 = vmatprep.mubr.msk.bf16.mxu0 %vm11096_vm4, %v11095_v10  ;;  %10478 = vmatpush3.bf16.msra.mxu0 %v10808_v50  ;;  %v7531_v54 = vpack.c.bf16 %v7530_v32, %v7530_v32 }
0x643b   :  { %10479 = vmatprep.subr.bf16.mxu0 %v11095_v10 }
0x643e   :  { %10480 = vmatpush3.bf16.msra.mxu0 %v10809_v4  ;;  %v9088_v4 = vld [vmem:[%s13700_s29 + $0x1] ss:$0 sm:$0xff] }
0x643f   :  { %10493 = vmatprep.subr.bf16.mxu0 %v11095_v10 }
0x64f9   :  { %v7378_v13 = vpop.f32.mrf.mxu0 }
0x64fa   :  { %7393 = vrot.lane.b32.xlu0 %v7378_v13, %s13712_s3 }
0x64fb   :  { %v10475_v1 = vpop.f32.mrf.mxu0 }
0x64fc   :  { %v9089_v1 = vld [vmem:[%s13701_s0 + $0x1] ss:$0 sm:$0xff] }
0x64fd   :  { %v7381_v34 = vpop.f32.mrf.mxu0 }
0x64ff   :  { %v10476_v39 = vpop.f32.mrf.mxu0 }
0x656c   :  { %v7394_v58 = vpop.permute.xlu0 %7393 }
0x656d   :  { %v7398_v40 = vsel %vm1015_vm1, %v7397_v18, %v7394_v58 }
0x656e   :  { %v7399_v63 = vpack.c.bf16 %v7398_v40, %v7398_v40 }
0x6570   :  { %10482 = vmatmul.mubr.msk.bf16.vlgmr.msra.gmra.mxu0 %vm73_vm14, %v7399_v63 }
0x6571   :  { %10494 = vmatpush3.bf16.msra.mxu0 %v10810_v6  ;;  %10509 = vmatprep.mubr.msk.bf16.mxu0 %vm11096_vm4, %v11095_v10 }
0x6572   :  { %10495 = vmatprep.subr.bf16.mxu0 %v11095_v10 }
0x6575   :  { %10496 = vmatpush3.bf16.msra.mxu0 %v10811_v59 }
0x6576   :  { %10497 = vmatprep.subr.bf16.mxu0 %v11095_v10 }
0x6579   :  { %10498 = vmatpush3.bf16.msra.mxu0 %v10812_v47 }
0x657a   :  { %10499 = vmatprep.subr.bf16.mxu0 %v11095_v10 }
0x657d   :  { %10500 = vmatpush3.bf16.msra.mxu0 %v10813_v24 }
0x657e   :  { %10501 = vmatprep.subr.bf16.mxu0 %v11095_v10 }
0x6581   :  { %10502 = vmatpush3.bf16.msra.mxu0 %v10814_v57 }
0x6582   :  { %10503 = vmatprep.subr.bf16.mxu0 %v11095_v10 }
0x6585   :  { %10504 = vmatpush3.bf16.msra.mxu0 %v10815_v5 }
0x6586   :  { %10505 = vmatprep.subr.bf16.mxu0 %v11095_v10 }
0x6589   :  { %10506 = vmatpush3.bf16.msra.mxu0 %v10816_v3 }
0x658a   :  { %10507 = vmatprep.subr.bf16.mxu0 %v11095_v10 }
0x658d   :  { %10508 = vmatpush3.bf16.msra.mxu0 %v10817_v42 }
0x658e   :  { %10545 = vmatprep.subr.bf16.mxu0 %v11095_v10 }
0x6590   :  { %10510 = vmatmul.mubr.bf16.vlgmr.msra.gmra.mxu0 %v7531_v54 }
0x6591   :  { %10549 = vmatprep.mubr.msk.bf16.mxu0 %vm11096_vm4, %v11095_v10 }
0x6630   :  { %v7453_v16 = vpop.f32.mrf.mxu0 }
0x6631   :  { %v7643_v61 = vadd.f32 %v7453_v16, %v13102_v29  ;;  %v10818_v29 = vld [vmem:[%s13699_s26 + $0x18] sm:$0xff]  }
0x6632   :  { %v10483_v33 = vpop.f32.mrf.mxu0  ;;  %10514 = vmatpush3.bf16.msra.mxu1 %v10818_v29 }
0x6633   :  { %10515 = vmatprep.subr.bf16.mxu1 %v11095_v10 }
0x6634   :  { %v7456_v22 = vpop.f32.mrf.mxu0 }
0x6636   :  { %v10484_v45 = vpop.f32.mrf.mxu0  ;;  %10516 = vmatpush3.bf16.msra.mxu1 %v10819_v36 }
0x6637   :  { %10521 = vmatprep.subr.bf16.mxu1 %v11095_v10 }
0x6650   :  { %v7637_v14 = vpop.f32.mrf.mxu0 }
0x6651   :  { %v7638_v43 = vadd.f32 %v9077_v11, %v7637_v14 }
0x6652   :  { %v10511_v25 = vpop.f32.mrf.mxu0 }
0x6653   :  { %v13356_v28 = vadd.f32 %v7643_v61, %v7638_v43 }
0x6654   :  { %v7640_v62 = vpop.f32.mrf.mxu0 }
0x6655   :  { %v7647_v48 = vsel %vm2347_vm3, %v13356_v28, 0.0 }
0x6656   :  { %7648 = vadd.xlane.f32.xlu1 %v7647_v48  ;;  %v10512_v37 = vpop.f32.mrf.mxu0 }
0x66df   :  { %v7649_v44 = vpop.xlane.xlu1 %7648 }
0x66e0   :  { %v7650_v49 = vmul.f32 0.03125, %v7649_v44 }
0x66e2   :  { %v7651_v38 = vsub.f32 %v13356_v28, %v7650_v49 }
0x66e4   :  { %v7652_v30 = vmul.f32 %v7651_v38, %v7651_v38 }
0x66e6   :  { %v7653_v2 = vsel %vm2347_vm3, %v7652_v30, 0.0 }
0x66e7   :  { %7654 = vadd.xlane.f32.xlu0 %v7653_v2  ;;  %v7856_v2 = vld [vmem:[#allocation3 + $0x18] sm:$0xff] }
0x6770   :  { %v7655_v17 = vpop.xlane.xlu0 %7654 }
0x6771   :  { %v7656_v12 = vmul.f32 0.03125, %v7655_v17 }
0x6773   :  { %v7657_v41 = vadd.f32 1e-05, %v7656_v12 }
0x6775   :  { %11020 = vrsqrt.f32 %v7657_v41 }
0x6782   :  { %v11021_v50 = vpop.eup %11020 }
0x6783   :  { %v7659_v13 = vmul.f32 %v11021_v50, %v7651_v38 }
0x6785   :  { %v7666_v34 = vmul.f32 %v9088_v4, %v7659_v13 }
0x6787   :  { %v7673_v39 = vadd.f32 %v9089_v1, %v7666_v34 }
0x6789   :  { %v13376_v35 = vpack.c.bf16 %v7673_v39, %v7673_v39 }
0x678b   :  { %10518 = vmatmul.mubr.msk.bf16.vlgmr.msra.gmra.mxu1 %vm73_vm14, %v13376_v35 }
0x678c   :  { %10522 = vmatpush3.bf16.msra.mxu1 %v13089_v0  ;;  %10525 = vmatprep.mubr.msk.bf16.mxu1 %vm11096_vm4, %v11095_v10 }
0x678d   :  { %10523 = vmatprep.subr.bf16.mxu1 %v11095_v10 }
0x6790   :  { %10524 = vmatpush3.bf16.msra.mxu1 %v13098_v27 }
0x6791   :  { %10529 = vmatprep.subr.bf16.mxu1 %v11095_v10 }
0x684b   :  { %v7735_v31 = vpop.f32.mrf.mxu1 }
0x684c   :  { %v7736_v52 = vadd.f32 %v9095_v23, %v7735_v31 }
0x684d   :  { %v10519_v53 = vpop.f32.mrf.mxu1 }
0x684e   :  { %v7741_v55 = vpack.c.bf16 %v7736_v52, %v7736_v52  ;;  %v7834_v47 = vmul.f32 %v7736_v52, %v13156_v60  ;;  %v7853_v60 = vld [vmem:[#allocation2 + $0x18] sm:$0xff]  ;;  %v7785_v54 = vmul.f32 %v13119_v46, %v7736_v52 }
0x684f   :  { %v7738_v56 = vpop.f32.mrf.mxu1 }
0x6850   :  { %7789 = vrot.lane.b32.xlu0 %v7741_v55, %s13714_s23  ;;  %10526 = vmatmul.mubr.msk.bf16.vlgmr.msra.gmra.mxu1 %vm73_vm14, %v7741_v55 }
0x6851   :  { %v10520_v19 = vpop.f32.mrf.mxu1  ;;  %10530 = vmatpush3.bf16.msra.mxu1 %v13089_v0  ;;  %10533 = vmatprep.mubr.msk.bf16.mxu1 %vm11096_vm4, %v11095_v10 }
0x6852   :  { %10531 = vmatprep.subr.bf16.mxu1 %v11095_v10 }
0x6855   :  { %10532 = vmatpush3.bf16.msra.mxu1 %v13098_v27 }
0x6856   :  { %10537 = vmatprep.subr.bf16.mxu1 %v11095_v10 }
0x68c2   :  { %v7790_v18 = vpop.permute.xlu0 %7789 }
0x68c3   :  { %10534 = vmatmul.mubr.msk.bf16.vlgmr.msra.gmra.mxu1 %vm73_vm14, %v7790_v18 }
0x68c4   :  { %10541 = vmatprep.mubr.msk.bf16.mxu1 %vm11096_vm4, %v11095_v10 }
0x6910   :  { %v7779_v58 = vpop.f32.mrf.mxu1 }
0x6911   :  { %v7786_v32 = vmul.f32 %v13152_v7, %v7779_v58 }
0x6912   :  { %v10527_v40 = vpop.f32.mrf.mxu1 }
0x6913   :  { %v7787_v33 = vadd.f32 %v7786_v32, %v7785_v54 }
0x6914   :  { %v7782_v6 = vpop.f32.mrf.mxu1 }
0x6915   :  { %v13418_v22 = vpack.c.bf16 %v7787_v33, %v7787_v33 }
0x6916   :  { %v10528_v21 = vpop.f32.mrf.mxu1 }
0x6983   :  { %v7828_v0 = vpop.f32.mrf.mxu1 }
0x6984   :  { %v7835_v63 = vmul.f32 %v13152_v7, %v7828_v0 }
0x6985   :  { %v10535_v59 = vpop.f32.mrf.mxu1 }
0x6986   :  { %7837 = vrot.lane.b32.xlu1 %v7835_v63, %s13713_s25  ;;  %s13722_s25 = sld [smem:[#allocation16_spill]] }
0x6987   :  { %v7831_v51 = vpop.f32.mrf.mxu1 }
0x6989   :  { %v10536_v27 = vpop.f32.mrf.mxu1 }
0x69f8   :  { %v7838_v24 = vpop.permute.xlu1 %7837 }
0x69f9   :  { %v7840_v57 = vadd.f32 %v7838_v24, %v7834_v47 }
0x69fb   :  { %7842 = vrot.lane.b32.xlu1 %v7840_v57, %s13714_s23 }
0x6a6d   :  { %v7843_v5 = vpop.permute.xlu1 %7842 }
0x6a6e   :  { %7845 = vst.msk [vmem:[#allocation2 + $0x22] sm:$0x1] %vm2727_vm13, %v7843_v5 }
0x6a6f   :  { %7851 = vst.msk [vmem:[#allocation2 + $0x2d] sm:$0x2] %vm2734_vm2, %v7843_v5 }
0x6a75   :  { %v7854_v9 = vld [vmem:[#allocation2 + $0x20] sm:$0xff] }
0x6a76   :  { %v7855_v8 = vld [vmem:[#allocation2 + $0x28] sm:$0xff]  ;;  %v13411_v42 = vpack.c.bf16 %v7854_v9, %v7853_v60 }
0x6a77   :  { %v13406_v3 = vpack.c.bf16 %v7855_v8, %v7855_v8 }
0x6a78   :  { %v7868_v16 = vsel %vm488_vm15, %v13411_v42, 0 }
0x6a79   :  { %v7871_v15 = vsel %vm488_vm15, %v13406_v3, 0 }
0x6a7a   :  { %10538 = vmatpush3.bf16.xpose.msra.mxu1 %v7871_v15 }
0x6a7b   :  { %10539 = vmatprep.subr.bf16.mxu1 %v11095_v10 }
0x6a82   :  { %10540 = vmatpush3.bf16.xpose.msra.mxu1 %v7868_v16 }
0x6a83   :  { %10561 = vmatprep.subr.bf16.mxu1 %v11095_v10 }
0x6a89   :  { %10542 = vmatmul.mubr.msk.bf16.vlgmr.msra.gmra.mxu1 %vm488_vm15, %v13418_v22 }
0x6a8a   :  { %10565 = vmatprep.mubr.msk.bf16.mxu1 %vm11096_vm4, %v11095_v10 }
0x6b49   :  { %v7907_v45 = vpop.f32.mrf.mxu1 }
0x6b4a   :  { %v7913_v11 = vmul.f32 0.35355338, %v7907_v45 }
0x6b4b   :  { %v10543_v7 = vpop.f32.mrf.mxu1 }
0x6b4c   :  { %v7914_v46 = vsel %vm11269_vm10, %v7913_v11, -1e+30 }
0x6b4d   :  { %v7910_v14 = vpop.f32.mrf.mxu1  ;;  %v7915_v61 = vsel %vm2799_vm6, %v7914_v46, -inf }
0x6b4e   :  { %7916 = vmax.xlane.f32.xlu0 %v7915_v61 }
0x6b4f   :  { %v10544_v43 = vpop.f32.mrf.mxu1 }
0x6b64   :  { %7847 = vrot.lane.b32.xlu0 %v7736_v52, %s13707_s12 }
0x6b68   :  { %7978 = vrot.lane.b32.xlu0 %v13411_v42, %s13715_s30 }
0x6bd7   :  { %v7917_v25 = vpop.xlane.xlu0 %7916 }
0x6bd8   :  { %v7918_v62 = vsub.f32 %v7914_v46, %v7917_v25 }
0x6bda   :  { %v7919_v48 = vmul.f32 1.442695, %v7918_v62 }
0x6bdb   :  { %v7848_v37 = vpop.permute.xlu0 %7847 }
0x6bdc   :  { %11022 = vpow2.f32 %v7919_v48  ;;  %7850 = vst.msk [vmem:[#allocation3 + $0x22] sm:$0x1] %vm2727_vm13, %v7848_v37 }
0x6bdd   :  { %7852 = vst.msk [vmem:[#allocation3 + $0x2d] sm:$0x2] %vm2734_vm2, %v7848_v37 }
0x6bdf   :  { %v7979_v34 = vpop.permute.xlu0 %7978 }
0x6be0   :  { %v7986_v39 = vsel %vm488_vm15, %v7979_v34, 0 }
0x6be3   :  { %v7857_v30 = vld [vmem:[#allocation3 + $0x20] sm:$0xff] }
0x6be4   :  { %v7858_v44 = vld [vmem:[#allocation3 + $0x28] sm:$0xff]  ;;  %v13437_v36 = vpack.c.bf16 %v7857_v30, %v7856_v2 }
0x6be5   :  { %v13432_v49 = vpack.c.bf16 %v7858_v44, %v7858_v44 }
0x6be7   :  { %v7931_v38 = vsel %vm2815_vm7, %v13432_v49, 0 }
0x6be8   :  { %10546 = vmatpush3.bf16.msra.mxu0 %v7931_v38 }
0x6be9   :  { %10547 = vmatprep.subr.bf16.mxu0 %v11095_v10  ;;  %v11023_v29 = vpop.eup %11022 }
0x6bea   :  { %v7921_v17 = vsel %vm2799_vm6, %v11023_v29, 0.0 }
0x6beb   :  { %7922 = vadd.xlane.f32.xlu1 %v7921_v17 }
0x6bec   :  { %10548 = vmatpush3.bf16.msra.mxu0 %v13437_v36 }
0x6bed   :  { %10553 = vmatprep.subr.bf16.mxu0 %v11095_v10 }
0x6bfc   :  { %7980 = vrot.lane.b32.xlu1 %v13406_v3, %s13715_s30 }
0x6c00   :  { %7974 = vrot.lane.b32.xlu1 %v13418_v22, %s13715_s30 }
0x6c74   :  { %v7923_v12 = vpop.xlane.xlu1 %7922 }
0x6c75   :  { %11024 = vrcp.f32 %v7923_v12 }
0x6c78   :  { %v7981_v4 = vpop.permute.xlu1 %7980 }
0x6c79   :  { %v7989_v1 = vsel %vm488_vm15, %v7981_v4, 0 }
0x6c7c   :  { %v7975_v23 = vpop.permute.xlu1 %7974 }
0x6c82   :  { %v11025_v41 = vpop.eup %11024 }
0x6c83   :  { %v7925_v50 = vmul.f32 %v11025_v41, %v11023_v29 }
0x6c85   :  { %v7926_v13 = vpack.c.bf16 %v7925_v50, %v7925_v50 }
0x6c87   :  { %10550 = vmatmul.mubr.msk.bf16.vlgmr.msra.gmra.mxu0 %vm1015_vm1, %v7926_v13 }
0x6c88   :  { %10554 = vmatpush3.bf16.xpose.msra.mxu0 %v7989_v1  ;;  %10557 = vmatprep.mubr.msk.bf16.mxu0 %vm11096_vm4, %v11095_v10 }
0x6c89   :  { %10555 = vmatprep.subr.bf16.mxu0 %v11095_v10 }
0x6c90   :  { %10556 = vmatpush3.bf16.xpose.msra.mxu0 %v7986_v39  ;;  %v10820_v39 = vld [vmem:[%s13629_s7 + $0x18] sm:$0xff]  }
0x6c91   :  { %10577 = vmatprep.subr.bf16.mxu0 %v11095_v10 }
0x6c97   :  { %10558 = vmatmul.mubr.msk.bf16.vlgmr.msra.gmra.mxu0 %vm488_vm15, %v7975_v23 }
0x6c98   :  { %10581 = vmatprep.mubr.msk.bf16.mxu0 %vm11096_vm4, %v11095_v10 }
0x6d47   :  { %v13456_v31 = vpop.f32.mrf.mxu0 }
0x6d49   :  { %v10551_v52 = vpop.f32.mrf.mxu0 }
0x6d4a   :  { %v10821_v52 = vld [vmem:[%s13629_s7 + $0x10] sm:$0xff]  }
0x6d4b   :  { %v7970_v53 = vpop.f32.mrf.mxu0 }
0x6d4d   :  { %v10552_v55 = vpop.f32.mrf.mxu0 }
0x6d57   :  { %v8025_v56 = vpop.f32.mrf.mxu0 }
0x6d58   :  { %v8031_v19 = vmul.f32 0.35355338, %v8025_v56 }
0x6d59   :  { %v10559_v18 = vpop.f32.mrf.mxu0 }
0x6d5a   :  { %v8032_v58 = vsel %vm11269_vm10, %v8031_v19, -1e+30 }
0x6d5b   :  { %v8028_v40 = vpop.f32.mrf.mxu0  ;;  %v8033_v6 = vsel %vm2799_vm6, %v8032_v58, -inf }
0x6d5c   :  { %8034 = vmax.xlane.f32.xlu0 %v8033_v6 }
0x6d5d   :  { %v10560_v21 = vpop.f32.mrf.mxu0 }
0x6d72   :  { %8049 = vrot.lane.b32.xlu0 %v13432_v49, %s13715_s30 }
0x6d76   :  { %8102 = vrot.lane.b32.xlu0 %v13406_v3, %s13704_s6 }
0x6d7a   :  { %8098 = vrot.lane.b32.xlu0 %v13418_v22, %s13704_s6 }
0x6de5   :  { %v8035_v0 = vpop.xlane.xlu0 %8034 }
0x6de6   :  { %v8036_v63 = vsub.f32 %v8032_v58, %v8035_v0 }
0x6de8   :  { %v8037_v59 = vmul.f32 1.442695, %v8036_v63 }
0x6de9   :  { %v8050_v51 = vpop.permute.xlu0 %8049 }
0x6dea   :  { %11026 = vpow2.f32 %v8037_v59  ;;  %v8056_v27 = vsel %vm2815_vm7, %v8050_v51, 0 }
0x6deb   :  { %10562 = vmatpush3.bf16.msra.mxu1 %v8056_v27 }
0x6dec   :  { %10563 = vmatprep.subr.bf16.mxu1 %v11095_v10 }
0x6ded   :  { %v8103_v9 = vpop.permute.xlu0 %8102 }
0x6dee   :  { %v8111_v32 = vsel %vm488_vm15, %v8103_v9, 0 }
0x6df1   :  { %v8099_v33 = vpop.permute.xlu0 %8098 }
0x6df7   :  { %v11027_v47 = vpop.eup %11026 }
0x6df8   :  { %v8039_v24 = vsel %vm2799_vm6, %v11027_v47, 0.0 }
0x6df9   :  { %8040 = vadd.xlane.f32.xlu1 %v8039_v24 }
0x6e0a   :  { %8047 = vrot.lane.b32.xlu1 %v13437_v36, %s13715_s30 }
0x6e0e   :  { %8100 = vrot.lane.b32.xlu1 %v13411_v42, %s13704_s6 }
0x6e82   :  { %v8041_v57 = vpop.xlane.xlu1 %8040 }
0x6e83   :  { %11028 = vrcp.f32 %v8041_v57 }
0x6e86   :  { %v8048_v5 = vpop.permute.xlu1 %8047 }
0x6e87   :  { %10564 = vmatpush3.bf16.msra.mxu1 %v8048_v5 }
0x6e88   :  { %10569 = vmatprep.subr.bf16.mxu1 %v11095_v10 }
0x6e8a   :  { %v8101_v54 = vpop.permute.xlu1 %8100 }
0x6e8b   :  { %v8108_v16 = vsel %vm488_vm15, %v8101_v54, 0 }
0x6e90   :  { %v11029_v8 = vpop.eup %11028 }
0x6e91   :  { %v8043_v15 = vmul.f32 %v11029_v8, %v11027_v47 }
0x6e93   :  { %v8044_v60 = vpack.c.bf16 %v8043_v15, %v8043_v15 }
0x6e95   :  { %10566 = vmatmul.mubr.msk.bf16.vlgmr.msra.gmra.mxu1 %vm1015_vm1, %v8044_v60 }
0x6e96   :  { %10570 = vmatpush3.bf16.xpose.msra.mxu1 %v8111_v32  ;;  %10573 = vmatprep.mubr.msk.bf16.mxu1 %vm11096_vm4, %v11095_v10 }
0x6e97   :  { %10571 = vmatprep.subr.bf16.mxu1 %v11095_v10 }
0x6e9e   :  { %10572 = vmatpush3.bf16.xpose.msra.mxu1 %v8108_v16  ;;  %v10823_v16 = vld [vmem:[%s13703_s5 + $0x10] sm:$0xff]  }
0x6e9f   :  { %10593 = vmatprep.subr.bf16.mxu1 %v11095_v10 }
0x6ea5   :  { %10574 = vmatmul.mubr.msk.bf16.vlgmr.msra.gmra.mxu1 %vm488_vm15, %v8099_v33 }
0x6ea6   :  { %10597 = vmatprep.mubr.msk.bf16.mxu1 %vm11096_vm4, %v11095_v10 }
0x6f55   :  { %v13485_v45 = vpop.f32.mrf.mxu1 }
0x6f57   :  { %v10567_v11 = vpop.f32.mrf.mxu1 }
0x6f59   :  { %v8095_v7 = vpop.f32.mrf.mxu1 }
0x6f5b   :  { %v10568_v46 = vpop.f32.mrf.mxu1 }
0x6f5c   :  { %v9121_v46 = vld [vmem:[%s13630_s8 + $0x1] ss:$0 sm:$0xff] }
0x6f65   :  { %v8147_v14 = vpop.f32.mrf.mxu1 }
0x6f66   :  { %v8153_v61 = vmul.f32 0.35355338, %v8147_v14 }
0x6f67   :  { %v10575_v43 = vpop.f32.mrf.mxu1 }
0x6f68   :  { %v8154_v25 = vsel %vm11269_vm10, %v8153_v61, -1e+30 }
0x6f69   :  { %v8150_v62 = vpop.f32.mrf.mxu1  ;;  %v8155_v48 = vsel %vm2799_vm6, %v8154_v25, -inf }
0x6f6a   :  { %8156 = vmax.xlane.f32.xlu1 %v8155_v48 }
0x6f6b   :  { %v10576_v37 = vpop.f32.mrf.mxu1 }
0x6f7b   :  { %8167 = vrot.lane.b32.xlu1 %v13437_v36, %s13704_s6 }
0x6f7f   :  { %8222 = vrot.lane.b32.xlu1 %v13406_v3, %s13705_s16 }
0x6f83   :  { %8218 = vrot.lane.b32.xlu1 %v13418_v22, %s13705_s16 }
0x6ff3   :  { %v8157_v44 = vpop.xlane.xlu1 %8156 }
0x6ff4   :  { %v8158_v38 = vsub.f32 %v8154_v25, %v8157_v44 }
0x6ff6   :  { %v8159_v30 = vmul.f32 1.442695, %v8158_v38 }
0x6ff7   :  { %v8168_v22 = vpop.permute.xlu1 %8167 }
0x6ff8   :  { %11030 = vpow2.f32 %v8159_v30 }
0x6ffb   :  { %v8223_v4 = vpop.permute.xlu1 %8222 }
0x6ffc   :  { %v8231_v1 = vsel %vm488_vm15, %v8223_v4, 0 }
0x6fff   :  { %v8219_v23 = vpop.permute.xlu1 %8218 }
0x7005   :  { %v11031_v2 = vpop.eup %11030 }
0x7006   :  { %v8161_v29 = vsel %vm2799_vm6, %v11031_v2, 0.0 }
0x7007   :  { %8162 = vadd.xlane.f32.xlu0 %v8161_v29 }
0x701d   :  { %8169 = vrot.lane.b32.xlu0 %v13432_v49, %s13704_s6 }
0x7021   :  { %8220 = vrot.lane.b32.xlu0 %v13411_v42, %s13705_s16 }
0x7090   :  { %v8163_v17 = vpop.xlane.xlu0 %8162 }
0x7091   :  { %11032 = vrcp.f32 %v8163_v17 }
0x7094   :  { %v8170_v3 = vpop.permute.xlu0 %8169 }
0x7095   :  { %v8176_v12 = vsel %vm2815_vm7, %v8170_v3, 0  ;;  %v10825_v3 = vld [vmem:[%s13631_s9 + $0x70] sm:$0xff]  }
0x7096   :  { %10578 = vmatpush3.bf16.msra.mxu0 %v8176_v12  ;;  %v10826_v12 = vld [vmem:[%s13631_s9 + $0x68] sm:$0xff]  }
0x7097   :  { %10579 = vmatprep.subr.bf16.mxu0 %v11095_v10 }
0x7098   :  { %v8221_v42 = vpop.permute.xlu0 %8220 }
0x7099   :  { %v8228_v34 = vsel %vm488_vm15, %v8221_v42, 0 }
0x709a   :  { %10580 = vmatpush3.bf16.msra.mxu0 %v8168_v22  ;;  %v10827_v22 = vld [vmem:[%s13631_s9 + $0x60] sm:$0xff]  }
0x709b   :  { %10585 = vmatprep.subr.bf16.mxu0 %v11095_v10 }
0x709e   :  { %v11033_v41 = vpop.eup %11032 }
0x709f   :  { %v8165_v50 = vmul.f32 %v11033_v41, %v11031_v2  ;;  %v10824_v2 = vld [vmem:[%s13631_s9 + $0x78] sm:$0xff]  }
0x70a0   :  { %v10828_v41 = vld [vmem:[%s13631_s9 + $0x58] sm:$0xff]  }
0x70a1   :  { %v8166_v13 = vpack.c.bf16 %v8165_v50, %v8165_v50  ;;  %v10829_v50 = vld [vmem:[%s13631_s9 + $0x50] sm:$0xff]  }
0x70a3   :  { %10582 = vmatmul.mubr.msk.bf16.vlgmr.msra.gmra.mxu0 %vm1015_vm1, %v8166_v13  ;;  %v10830_v13 = vld [vmem:[%s13631_s9 + $0x48] sm:$0xff]  }
0x70a4   :  { %10586 = vmatpush3.bf16.xpose.msra.mxu0 %v8231_v1  ;;  %10589 = vmatprep.mubr.msk.bf16.mxu0 %vm11096_vm4, %v11095_v10 }
0x70a5   :  { %10587 = vmatprep.subr.bf16.mxu0 %v11095_v10 }
0x70ac   :  { %10588 = vmatpush3.bf16.xpose.msra.mxu0 %v8228_v34  ;;  %v10831_v34 = vld [vmem:[%s13631_s9 + $0x40] sm:$0xff]  }
0x70ad   :  { %10609 = vmatprep.subr.bf16.mxu0 %v11095_v10 }
0x70b3   :  { %10590 = vmatmul.mubr.msk.bf16.vlgmr.msra.gmra.mxu0 %vm488_vm15, %v8219_v23 }
0x70b4   :  { %10610 = vmatpush3.bf16.msra.mxu0 %v10820_v39  ;;  %10613 = vmatprep.mubr.msk.bf16.mxu0 %vm11096_vm4, %v11095_v10 }
0x70b5   :  { %10611 = vmatprep.subr.bf16.mxu0 %v11095_v10 }
0x70b8   :  { %10612 = vmatpush3.bf16.msra.mxu0 %v10821_v52 }
0x70b9   :  { %10637 = vmatprep.subr.bf16.mxu0 %v11095_v10 }
0x70bb   :  { %10614 = vmatmul.mubr.msk.bf16.vlgmr.msra.gmra.mxu0 %vm73_vm14, %v13376_v35 }
0x70bc   :  { %10641 = vmatprep.mubr.msk.bf16.mxu0 %vm11096_vm4, %v11095_v10 }
0x7163   :  { %v8212_v53 = vpop.f32.mrf.mxu0 }
0x7165   :  { %v10583_v55 = vpop.f32.mrf.mxu0 }
0x7167   :  { %v8215_v56 = vpop.f32.mrf.mxu0 }
0x7169   :  { %v10584_v19 = vpop.f32.mrf.mxu0 }
0x716a   :  { %v9142_v19 = vld [vmem:[%s13720_s15 + $0x1] ss:$0 sm:$0xff] }
0x7173   :  { %v8267_v18 = vpop.f32.mrf.mxu0 }
0x7174   :  { %v8273_v58 = vmul.f32 0.35355338, %v8267_v18 }
0x7175   :  { %v10591_v40 = vpop.f32.mrf.mxu0 }
0x7176   :  { %v8274_v6 = vsel %vm11269_vm10, %v8273_v58, -1e+30  ;;  %vm13721_vm10 = vmmov %vm13718_vm9 }
0x7177   :  { %v8270_v21 = vpop.f32.mrf.mxu0  ;;  %v8275_v0 = vsel %vm2799_vm6, %v8274_v6, -inf }
0x7178   :  { %8276 = vmax.xlane.f32.xlu0 %v8275_v0 }
0x7179   :  { %v10592_v63 = vpop.f32.mrf.mxu0 }
0x717b   :  { %v8470_v59 = vpop.f32.mrf.mxu0 }
0x717c   :  { %v8471_v14 = vadd.f32 %v9121_v46, %v8470_v59 }
0x717d   :  { %v10615_v35 = vpop.f32.mrf.mxu0 }
0x717e   :  { %v8477_v61 = vmul.f32 0.044715, %v8471_v14  ;;  %v8476_v42 = vmul.f32 0.5, %v8471_v14 }
0x717f   :  { %v8473_v51 = vpop.f32.mrf.mxu0 }
0x7180   :  { %v8478_v43 = vmul.f32 %v8477_v61, %v8471_v14 }
0x7181   :  { %v10616_v27 = vpop.f32.mrf.mxu0 }
0x7182   :  { %v8479_v48 = vmul.f32 %v8478_v43, %v8471_v14 }
0x7184   :  { %v8480_v29 = vadd.f32 %v8479_v48, %v8471_v14 }
0x718e   :  { %8289 = vrot.lane.b32.xlu0 %v13432_v49, %s13705_s16 }
0x7192   :  { %8339 = vrot.lane.b32.xlu0 %v13485_v45, %s13710_s28 }
0x7201   :  { %v8277_v47 = vpop.xlane.xlu0 %8276 }
0x7202   :  { %v8278_v24 = vsub.f32 %v8274_v6, %v8277_v47 }
0x7204   :  { %v8279_v57 = vmul.f32 1.442695, %v8278_v24 }
0x7205   :  { %v8290_v20 = vpop.permute.xlu0 %8289 }
0x7206   :  { %11034 = vpow2.f32 %v8279_v57  ;;  %v8296_v5 = vsel %vm2815_vm7, %v8290_v20, 0  ;;  %v10832_v57 = vld [vmem:[%s13642_s20 + $0x8] sm:$0xff]  }
0x7207   :  { %10594 = vmatpush3.bf16.msra.mxu1 %v8296_v5  ;;  %10638 = vmatpush3.bf16.msra.mxu0 %v10832_v57 }
0x7208   :  { %10595 = vmatprep.subr.bf16.mxu1 %v11095_v10  ;;  %10639 = vmatprep.subr.bf16.mxu0 %v11095_v10 }
0x7209   :  { %v8340_v25 = vpop.permute.xlu0 %8339 }
0x720a   :  { %v8350_v37 = vsel %vm488_vm15, %v13456_v31, %v8340_v25  ;;  %v8481_v31 = vmul.f32 0.7978846, %v8480_v29 }
0x7213   :  { %v11035_v8 = vpop.eup %11034 }
0x7214   :  { %v8281_v15 = vsel %vm2799_vm6, %v11035_v8, 0.0 }
0x7215   :  { %8282 = vadd.xlane.f32.xlu1 %v8281_v15 }
0x7226   :  { %8287 = vrot.lane.b32.xlu1 %v13437_v36, %s13705_s16  ;;  %v10822_v36 = vld [vmem:[%s13703_s5 + $0x18] sm:$0xff]  }
0x722a   :  { %8343 = vrot.lane.b32.xlu1 %v8212_v53, %s13711_s17 }
0x729e   :  { %v8283_v49 = vpop.xlane.xlu1 %8282 }
0x729f   :  { %11036 = vrcp.f32 %v8283_v49  ;;  %v9151_v49 = vld [vmem:[%s13640_s18] ss:$0 sm:$0xff]  ;;  %s11113_s18 = smov [#allocation4]  }
0x72a0   :  { %11038 = vtanh.f32 %v8481_v31  ;;  %s8712_s5 = sshll.u32 %s11113_s18, 4  ;;  %s8713_s5 = int_to_ptr.vmem [resolvable:$true] %s8712_s5 }
0x72a1   :  { %p11077_p1 = scmp.lt.s32.totalorder %s8713_s5, %s8713_s5 }
0x72a2   :  { %v8288_v9 = vpop.permute.xlu1 %8287 }
0x72a3   :  { %10596 = vmatpush3.bf16.msra.mxu1 %v8288_v9 }
0x72a4   :  { %10601 = vmatprep.subr.bf16.mxu1 %v11095_v10 }
0x72a6   :  { %v8344_v62 = vpop.permute.xlu1 %8343 }
0x72a7   :  { %v8351_v44 = vsel %vm13721_vm10, %v8350_v37, %v8344_v62 }
0x72ac   :  { %v11037_v60 = vpop.eup %11036 }
0x72ad   :  { %v8285_v32 = vmul.f32 %v11037_v60, %v11035_v8  ;;  %v11039_v4 = vpop.eup %11038  ;;  %v9152_v60 = vld [vmem:[%s13722_s25] ss:$0 sm:$0xff] }
0x72ae   :  { %v8483_v1 = vadd.f32 1.0, %v11039_v4 }
0x72af   :  { %v8286_v54 = vpack.c.bf16 %v8285_v32, %v8285_v32 }
0x72b0   :  { %v8484_v39 = vmul.f32 %v8483_v1, %v8476_v42 }
0x72b1   :  { %10598 = vmatmul.mubr.msk.bf16.vlgmr.msra.gmra.mxu1 %vm1015_vm1, %v8286_v54 }
0x72b2   :  { %10605 = vmatprep.mubr.msk.bf16.mxu1 %vm11096_vm4, %v11095_v10  ;;  %10602 = vmatpush3.bf16.msra.mxu1 %v10822_v36  ;;  %v8485_v23 = vpack.c.bf16 %v8484_v39, %v8484_v39  ;;  %v9153_v36 = vld [vmem:[%s13643_s21] ss:$0 sm:$0xff]  ;;  %s11072_s21 = scalar_lea.vmem %s8713_s5, 32 }
0x72b3   :  { %10603 = vmatprep.subr.bf16.mxu1 %v11095_v10  ;;  %p11073_p0 = scmp.ne.s32.totalorder %s8713_s5, %s11072_s21  ;;  %p11078_p2 = scmp.lt.s32.totalorder %s11072_s21, %s11072_s21 }
0x72b5   :  { %p11079_p3 = por %p11078_p2, %p11077_p1 }
0x72b6   :  { %10604 = vmatpush3.bf16.msra.mxu1 %v10823_v16 }
0x72b7   :  { %10617 = vmatprep.subr.bf16.mxu1 %v11095_v10  ;;  %p11080_p4 = pnand %p11079_p3, %p11073_p0 }
0x7371   :  { %v8332_v33 = vpop.f32.mrf.mxu1 }
0x7372   :  { %8347 = vrot.lane.b32.xlu0 %v8332_v33, %s13712_s3 }
0x7373   :  { %v10599_v45 = vpop.f32.mrf.mxu1 }
0x7375   :  { %v8335_v11 = vpop.f32.mrf.mxu1 }
0x7377   :  { %v10600_v7 = vpop.f32.mrf.mxu1 }
0x73e4   :  { %v8348_v38 = vpop.permute.xlu0 %8347 }
0x73e5   :  { %v8352_v30 = vsel %vm1015_vm1, %v8351_v44, %v8348_v38 }
0x73e6   :  { %v8353_v17 = vpack.c.bf16 %v8352_v30, %v8352_v30 }
0x73e8   :  { %10606 = vmatmul.mubr.msk.bf16.vlgmr.msra.gmra.mxu1 %vm73_vm14, %v8353_v17 }
0x73e9   :  { %10618 = vmatpush3.bf16.msra.mxu1 %v10824_v2  ;;  %10633 = vmatprep.mubr.msk.bf16.mxu1 %vm11096_vm4, %v11095_v10 }
0x73ea   :  { %10619 = vmatprep.subr.bf16.mxu1 %v11095_v10 }
0x73ed   :  { %10620 = vmatpush3.bf16.msra.mxu1 %v10825_v3 }
0x73ee   :  { %10621 = vmatprep.subr.bf16.mxu1 %v11095_v10 }
0x73f1   :  { %10622 = vmatpush3.bf16.msra.mxu1 %v10826_v12 }
0x73f2   :  { %10623 = vmatprep.subr.bf16.mxu1 %v11095_v10 }
0x73f5   :  { %10624 = vmatpush3.bf16.msra.mxu1 %v10827_v22 }
0x73f6   :  { %10625 = vmatprep.subr.bf16.mxu1 %v11095_v10 }
0x73f9   :  { %10626 = vmatpush3.bf16.msra.mxu1 %v10828_v41 }
0x73fa   :  { %10627 = vmatprep.subr.bf16.mxu1 %v11095_v10 }
0x73fd   :  { %10628 = vmatpush3.bf16.msra.mxu1 %v10829_v50 }
0x73fe   :  { %10629 = vmatprep.subr.bf16.mxu1 %v11095_v10 }
0x7401   :  { %10630 = vmatpush3.bf16.msra.mxu1 %v10830_v13 }
0x7402   :  { %10631 = vmatprep.subr.bf16.mxu1 %v11095_v10 }
0x7405   :  { %10632 = vmatpush3.bf16.msra.mxu1 %v10831_v34 }
0x7408   :  { %10634 = vmatmul.mubr.bf16.vlgmr.msra.gmra.mxu1 %v8485_v23 }
0x74a8   :  { %v8407_v52 = vpop.f32.mrf.mxu1 }
0x74a9   :  { %v8597_v58 = vadd.f32 %v8407_v52, %v13356_v28  ;;  %v10833_v28 = vld [vmem:[%s13642_s20] sm:$0xff]  }
0x74aa   :  { %v10607_v53 = vpop.f32.mrf.mxu1  ;;  %10640 = vmatpush3.bf16.msra.mxu0 %v10833_v28 }
0x74ac   :  { %v8410_v55 = vpop.f32.mrf.mxu1 }
0x74ae   :  { %v10608_v56 = vpop.f32.mrf.mxu1 }
0x74c8   :  { %v8591_v18 = vpop.f32.mrf.mxu1 }
0x74c9   :  { %v8592_v40 = vadd.f32 %v9142_v19, %v8591_v18 }
0x74ca   :  { %v10635_v6 = vpop.f32.mrf.mxu1 }
0x74cb   :  { %v8598_v21 = vadd.f32 %v8597_v58, %v8592_v40 }
0x74cc   :  { %v8594_v0 = vpop.f32.mrf.mxu1 }
0x74cd   :  { %v8601_v63 = vsel %vm2347_vm3, %v8598_v21, 0.0 }
0x74ce   :  { %8602 = vadd.xlane.f32.xlu1 %v8601_v63  ;;  %v10636_v59 = vpop.f32.mrf.mxu1 }
0x7557   :  { %v8603_v35 = vpop.xlane.xlu1 %8602 }
0x7558   :  { %v8604_v51 = vmul.f32 0.03125, %v8603_v35 }
0x755a   :  { %v8605_v27 = vsub.f32 %v8598_v21, %v8604_v51 }
0x755c   :  { %v8606_v47 = vmul.f32 %v8605_v27, %v8605_v27 }
0x755e   :  { %v8607_v24 = vsel %vm2347_vm3, %v8606_v47, 0.0 }
0x755f   :  { %8608 = vadd.xlane.f32.xlu0 %v8607_v24 }
0x75e8   :  { %v8609_v20 = vpop.xlane.xlu0 %8608 }
0x75e9   :  { %v8610_v5 = vmul.f32 0.03125, %v8609_v20 }
0x75eb   :  { %v8611_v8 = vadd.f32 1e-05, %v8610_v5 }
0x75ed   :  { %11040 = vrsqrt.f32 %v8611_v8 }
0x75fa   :  { %v11041_v15 = vpop.eup %11040 }
0x75fb   :  { %v8613_v9 = vmul.f32 %v11041_v15, %v8605_v27 }
0x75fd   :  { %v8620_v10 = vmul.f32 %v9151_v49, %v8613_v9 }
0x75ff   :  { %v8627_v32 = vadd.f32 %v9152_v60, %v8620_v10 }
0x7601   :  { %v8628_v54 = vpack.c.bf16 %v8627_v32, %v8627_v32 }
0x7603   :  { %10642 = vmatmul.mubr.msk.bf16.vlgmr.msra.gmra.mxu0 %vm73_vm14, %v8628_v54  ;;  %vm8704_vm14 = vcmask 25624  }
0x76c3   :  { %v8689_v16 = vpop.f32.mrf.mxu0 }
0x76c4   :  { %v8690_v33 = vadd.f32 %v9153_v36, %v8689_v16 }
0x76c5   :  { %v10643_v45 = vpop.f32.mrf.mxu0 }
0x76c6   :  { %v8695_v11 = vsel %vm2442_vm5, %v8690_v33, -inf }
0x76c7   :  { %8696 = vmax.xlane.f32.xlu0 %v8695_v11  ;;  %v8692_v7 = vpop.f32.mrf.mxu0 }
0x76c9   :  { %v10644_v46 = vpop.f32.mrf.mxu0 }
0x7750   :  { %v8697_v14 = vpop.xlane.xlu0 %8696 }
0x7751   :  { %vm8698_vm4 = vcmp.eq.f32.partialorder %v8690_v33, %v8697_v14 }
0x7752   :  { %v8699_v61 = vsel %vm8698_vm4, %v11896_v26, 128.0 }
0x7753   :  { %v8700_v43 = vsel %vm2442_vm5, %v8699_v61, inf }
0x7754   :  { %8701 = vmin.xlane.f32.xlu1 %v8700_v43 }
0x77dd   :  { %v8702_v25 = vpop.xlane.xlu1 %8701 }
0x77de   :  { %v10651_v62 = vtrunc.f32 %v8702_v25 }
0x77e0   :  { %v10652_v48 = vcvt.f32.s32 %v10651_v62 }
0x77e2   :  { %8705 = vst.msk [vmem:[#allocation4] sm:$0x3] %vm8704_vm14, %v10652_v48 }
0x77e3   :  { %11083 = shalt.err (!%p11080_p4)
}
0x77e4   :  { %s13723_s30 = sld [smem:[#allocation17_spill]] }
0x77ea   :  { %8715 = dma.vmem_to_hbm [thread:$0]  %s8713_s5, 32, %s13723_s30, [#allocation5]  }
0x77eb   :  { %11092 = dma.done.wait [#allocation5], 32  }
0x77ec   :  { %11093 = vsyncadd [#allocation5], 4294967264 }
0x77ed   :  { %8719 = vsyncpa [#allocation5], 1 }

</bundles_post_ra>
